<compile_context>
chip_gen: v7x
topology: tpu7x:2x2x1
jax: 0.10.0
libtpu: 0.0.40
codegen_flags: <defaults>
</compile_context>

<pallas_src>
import functools

import numpy as np
import jax
import jax.numpy as jnp
from jax.experimental import pallas as pl
from jax.experimental.pallas import tpu as pltpu

_BN_EPS = 1e-5
_VMEM_LIMIT = 32 * 1024 * 1024


# ----------------------------- Pallas kernels --------------------------------

def _stem_kernel(xc_ref, w1_ref, b1_ref, tp_ref, o_ref):
    """conv1 (3x3/s2 as im2col matmul) + folded BN + ReLU + maxpool(3x3/s2/p1).

    xc_ref: (1, P1, 27) bf16  im2col rows of (x - x_recon) for one image
    w1_ref: (27, 64)    bf16  conv1 weight with BN scale and 100/7 folded in
    b1_ref: (1, 64)     f32   folded BN bias
    tp_ref: (9, P2, P1) bf16  0/1 maxpool tap-selection matrices
    o_ref : (1, P2, 64) bf16  pooled feature map (spatial flattened row-major)
    """
    xc = xc_ref[0]
    y = jnp.dot(xc, w1_ref[...], preferred_element_type=jnp.float32) + b1_ref[...]
    y = jnp.maximum(y, 0.0).astype(jnp.bfloat16)          # (P1, 64), >= 0
    # Each tap matrix row-selects one input pixel (all-zero row for padding);
    # zero padding == -inf padding here because y >= 0 post-ReLU.
    m = jnp.dot(tp_ref[0], y, preferred_element_type=jnp.float32)
    for t in range(1, 9):
        m = jnp.maximum(m, jnp.dot(tp_ref[t], y, preferred_element_type=jnp.float32))
    o_ref[0] = m.astype(o_ref.dtype)


def _bottleneck_kernel(x_ref, t2_ref, w1_ref, b1_ref, w2_ref, b2_ref,
                       w3_ref, b3_ref, *rest, has_ds, stride2, pool):
    """One fused ResNet Bottleneck: 1x1 -> 3x3 -> 1x1 + residual (+avgpool).

    BN scales are folded into the bf16 weights; biases are f32.  The 3x3 conv
    is sum over 9 taps of (T_t @ h1) @ W2_t, where T_t is a 0/1 gather matrix
    of shape (HoWo, HW); stride 2 is encoded in T_t (and T_4 = exact stride-2
    subsample, reused for the 1x1/s2 downsample path).
    """
    if has_ds:
        wd_ref, bd_ref, o_ref = rest
    else:
        (o_ref,) = rest

    x = x_ref[0]                                            # (HW, Cin) bf16

    # conv1 (1x1) + BN + ReLU
    h1 = jnp.dot(x, w1_ref[...], preferred_element_type=jnp.float32) + b1_ref[...]
    h1 = jnp.maximum(h1, 0.0).astype(jnp.bfloat16)          # (HW, P)

    # conv2 (3x3, stride via tap matrices) + BN + ReLU
    def tap(t):
        g = jnp.dot(t2_ref[t], h1, preferred_element_type=jnp.float32)
        return jnp.dot(g.astype(jnp.bfloat16), w2_ref[t],
                       preferred_element_type=jnp.float32)

    acc = tap(0)
    for t in range(1, 9):
        acc = acc + tap(t)
    h2 = jnp.maximum(acc + b2_ref[...], 0.0).astype(jnp.bfloat16)   # (HoWo, P)

    # conv3 (1x1) + BN
    y = jnp.dot(h2, w3_ref[...], preferred_element_type=jnp.float32) + b3_ref[...]

    # identity / downsample path
    if has_ds:
        if stride2:
            xi = jnp.dot(t2_ref[4], x,
                         preferred_element_type=jnp.float32).astype(jnp.bfloat16)
        else:
            xi = x
        idt = jnp.dot(xi, wd_ref[...], preferred_element_type=jnp.float32) + bd_ref[...]
    else:
        idt = x.astype(jnp.float32)

    y = jnp.maximum(y + idt, 0.0)                           # (HoWo, 4P) f32

    if pool:
        # fused AdaptiveAvgPool2d((1, 1))
        o_ref[0] = jnp.mean(y, axis=0, keepdims=True)       # (1, 4P) f32
    else:
        o_ref[0] = y.astype(o_ref.dtype)


# ----------------------------- call wrappers ----------------------------------

def _compiler_params():
    return pltpu.CompilerParams(dimension_semantics=("parallel",),
                                vmem_limit_bytes=_VMEM_LIMIT)


def _full_spec(arr):
    zeros = (0,) * arr.ndim
    return pl.BlockSpec(arr.shape, lambda b: zeros)


def _run_stem(stem, xcol):
    n, p1, k = xcol.shape
    tp = stem["t_pool"]
    p2 = tp.shape[1]
    cout = stem["w"].shape[1]
    return pl.pallas_call(
        _stem_kernel,
        out_shape=jax.ShapeDtypeStruct((n, p2, cout), jnp.bfloat16),
        grid_spec=pltpu.PrefetchScalarGridSpec(
            num_scalar_prefetch=0,
            grid=(n,),
            in_specs=[
                pl.BlockSpec((1, p1, k), lambda b: (b, 0, 0)),
                _full_spec(stem["w"]),
                _full_spec(stem["b"]),
                _full_spec(tp),
            ],
            out_specs=pl.BlockSpec((1, p2, cout), lambda b: (b, 0, 0)),
        ),
        compiler_params=_compiler_params(),
    )(xcol, stem["w"], stem["b"], tp)


def _run_bottleneck(p, x, pool=False):
    n, hw, cin = x.shape
    t2 = p["t2"]
    howo = t2.shape[1]
    cout = p["w3"].shape[1]
    has_ds = "wd" in p

    args = [x, t2, p["w1"], p["b1"], p["w2"], p["b2"], p["w3"], p["b3"]]
    in_specs = [pl.BlockSpec((1, hw, cin), lambda b: (b, 0, 0))]
    in_specs += [_full_spec(a) for a in args[1:]]
    if has_ds:
        args += [p["wd"], p["bd"]]
        in_specs += [_full_spec(p["wd"]), _full_spec(p["bd"])]

    if pool:
        out_shape = jax.ShapeDtypeStruct((n, 1, cout), jnp.float32)
        out_spec = pl.BlockSpec((1, 1, cout), lambda b: (b, 0, 0))
    else:
        out_shape = jax.ShapeDtypeStruct((n, howo, cout), jnp.bfloat16)
        out_spec = pl.BlockSpec((1, howo, cout), lambda b: (b, 0, 0))

    kernel = functools.partial(_bottleneck_kernel, has_ds=has_ds,
                               stride2=(p["stride"] == 2), pool=pool)
    return pl.pallas_call(
        kernel,
        out_shape=out_shape,
        grid_spec=pltpu.PrefetchScalarGridSpec(
            num_scalar_prefetch=0,
            grid=(n,),
            in_specs=in_specs,
            out_specs=out_spec,
        ),
        compiler_params=_compiler_params(),
    )(*args)


# ----------------------------- parameters -------------------------------------

def _tap_mats(h, w, stride):
    """0/1 gather matrices T[t] of shape (HoWo, HW) for a 3x3 window, pad=1."""
    ho = (h - 1) // stride + 1
    wo = (w - 1) // stride + 1
    t = np.zeros((9, ho * wo, h * w), np.float32)
    for di in range(3):
        for dj in range(3):
            k = di * 3 + dj
            for i in range(ho):
                r = stride * i + di - 1
                if not 0 <= r < h:
                    continue
                for j in range(wo):
                    c = stride * j + dj - 1
                    if 0 <= c < w:
                        t[k, i * wo + j, r * w + c] = 1.0
    return jnp.asarray(t, jnp.bfloat16)


def _fold_bn(w, cout, extra_scale=1.0):
    """Fold eval-mode BatchNorm (and optional input scale) into conv weights."""
    gamma = jnp.ones((cout,), jnp.float32)
    beta = jnp.zeros((cout,), jnp.float32)
    mean = jnp.zeros((cout,), jnp.float32)
    var = jnp.ones((cout,), jnp.float32)
    scale = gamma / jnp.sqrt(var + _BN_EPS)
    bias = beta - mean * scale
    w_f = (w * (scale * extra_scale)).astype(jnp.bfloat16)
    return w_f, bias.reshape(1, cout).astype(jnp.float32)


def make_params(key, hw=32):
    keys = iter(jax.random.split(key, 64))

    def conv3x3_w(cin, cout):
        # kaiming_normal_(mode='fan_out', nonlinearity='relu')
        std = (2.0 / (cout * 9)) ** 0.5
        w = jax.random.normal(next(keys), (3, 3, cin, cout), jnp.float32) * std
        return w.reshape(9, cin, cout)

    def conv1x1_w(cin, cout):
        std = (2.0 / cout) ** 0.5
        return jax.random.normal(next(keys), (cin, cout), jnp.float32) * std

    h1 = hw // 2      # after conv1 (stride 2)
    h2 = h1 // 2      # after maxpool (stride 2)
    h3 = h2 // 2      # after layer2's stride-2 block

    w_stem = conv3x3_w(3, 64).reshape(27, 64)
    w_stem, b_stem = _fold_bn(w_stem, 64, extra_scale=100.0 / 7.0)
    stem = {"w": w_stem, "b": b_stem, "t_pool": _tap_mats(h1, h1, 2)}

    def bottleneck(cin, planes, stride, has_ds, h_in):
        w1, b1 = _fold_bn(conv1x1_w(cin, planes), planes)
        w2, b2 = _fold_bn(conv3x3_w(planes, planes), planes)
        w3, b3 = _fold_bn(conv1x1_w(planes, planes * 4), planes * 4)
        blk = {"w1": w1, "b1": b1, "w2": w2, "b2": b2, "w3": w3, "b3": b3,
               "t2": _tap_mats(h_in, h_in, stride), "stride": stride}
        if has_ds:
            wd, bd = _fold_bn(conv1x1_w(cin, planes * 4), planes * 4)
            blk["wd"], blk["bd"] = wd, bd
        return blk

    layer1 = [bottleneck(64, 64, 1, True, h2)]
    layer1 += [bottleneck(256, 64, 1, False, h2) for _ in range(2)]
    layer2 = [bottleneck(256, 128, 2, True, h2)]
    layer2 += [bottleneck(512, 128, 1, False, h3) for _ in range(3)]
    return {"stem": stem, "layer1": layer1, "layer2": layer2}


# ----------------------------- forward -----------------------------------------

def vae_recon_encoder_forward(params, x_nchw, x_recon_nchw):
    # NCHW (PyTorch) -> NHWC.  The diff / pad / 3-channel im2col for the stem
    # conv is done in XLA (27-wide, tiny, fuses with the diff); everything
    # else runs inside the fused Pallas kernels.
    x = jnp.transpose(x_nchw, (0, 2, 3, 1)).astype(jnp.float32)
    r = jnp.transpose(x_recon_nchw, (0, 2, 3, 1)).astype(jnp.float32)
    n, h, w, c = x.shape
    d = x - r                       # the /7*100 scale is folded into conv1's weights
    ho, wo = h // 2, w // 2
    dp = jnp.pad(d, ((0, 0), (1, 1), (1, 1), (0, 0)))
    taps = [dp[:, di:di + 2 * ho:2, dj:dj + 2 * wo:2, :]
            for di in range(3) for dj in range(3)]
    xcol = jnp.stack(taps, axis=3).reshape(n, ho * wo, 9 * c).astype(jnp.bfloat16)

    feat = _run_stem(params["stem"], xcol)          # (n, (h/4)*(w/4), 64) bf16
    for blk in params["layer1"]:
        feat = _run_bottleneck(blk, feat)
    for blk in params["layer2"][:-1]:
        feat = _run_bottleneck(blk, feat)
    pooled = _run_bottleneck(params["layer2"][-1], feat, pool=True)  # (n, 1, 512) f32
    return pooled.reshape(n, 512)


# ----------------------------- main ---------------------------------------------

if __name__ == "__main__":
    key = jax.random.PRNGKey(0)
    kx, kr, kp = jax.random.split(key, 3)

    N, C, H, W = 2, 3, 32, 32
    x = jax.random.normal(kx, (N, C, H, W), jnp.float32)
    # TODO(synk): stand-in for vae.decode(vae.encode(x).latent_dist.mean).sample
    x_recon = jax.random.normal(kr, (N, C, H, W), jnp.float32)

    params = make_params(kp, hw=H)

    fwd = jax.jit(functools.partial(vae_recon_encoder_forward, params))
    out = jax.block_until_ready(fwd(x, x_recon))

    assert out.shape == (N, 512), out.shape
    assert out.dtype == jnp.float32
    assert bool(jnp.all(jnp.isfinite(out)))
    print("KERNEL_OK")
</pallas_src>

<mosaic_0001>
module attributes {stable_mosaic.version = 11 : i64} {
  func.func @_stem_kernel(%arg0: i32, %arg1: memref<1x256x27xbf16, #tpu.memory_space<vmem>>, %arg2: memref<27x64xbf16, #tpu.memory_space<vmem>>, %arg3: memref<1x64xf32, #tpu.memory_space<vmem>>, %arg4: memref<9x64x256xbf16, #tpu.memory_space<vmem>>, %arg5: memref<1x64x64xbf16, #tpu.memory_space<vmem>>) attributes {dimension_semantics = [#tpu.dimension_semantics<parallel>], iteration_bounds = array<i64: 2>, scalar_prefetch = 0 : i64, scratch_operands = 0 : i64, tpu.core_type = #tpu.core_type<tc>, window_params = [{transform_indices = @transform_0, window_bounds = array<i64: 1, 256, 27>}, {pipeline_mode = #tpu.pipeline_mode<synchronous>, transform_indices = @transform_1, window_bounds = array<i64: 27, 64>}, {pipeline_mode = #tpu.pipeline_mode<synchronous>, transform_indices = @transform_2, window_bounds = array<i64: 1, 64>}, {pipeline_mode = #tpu.pipeline_mode<synchronous>, transform_indices = @transform_3, window_bounds = array<i64: 9, 64, 256>}, {transform_indices = @transform_4, window_bounds = array<i64: 1, 64, 64>}]} {
    %c0 = arith.constant 0 : index
    %c0_0 = arith.constant 0 : index
    %c0_1 = arith.constant 0 : index
    %0 = vector.load %arg1[%c0, %c0_0, %c0_1] : memref<1x256x27xbf16, #tpu.memory_space<vmem>>, vector<1x256x27xbf16>
    %1 = vector.shape_cast %0 : vector<1x256x27xbf16> to vector<256x27xbf16>
    %c0_2 = arith.constant 0 : index
    %c0_3 = arith.constant 0 : index
    %2 = vector.load %arg2[%c0_2, %c0_3] : memref<27x64xbf16, #tpu.memory_space<vmem>>, vector<27x64xbf16>
    %cst = arith.constant dense<0.000000e+00> : vector<256x64xf32>
    %3 = tpu.matmul %1, %2, %cst {dimension_numbers = #tpu.dot_dimension_numbers<[1], [0], [0], [1], [0, 0, 1, 1], [], []>} : vector<256x27xbf16>, vector<27x64xbf16>, vector<256x64xf32> -> vector<256x64xf32>
    %c0_4 = arith.constant 0 : index
    %c0_5 = arith.constant 0 : index
    %4 = vector.load %arg3[%c0_4, %c0_5] : memref<1x64xf32, #tpu.memory_space<vmem>>, vector<1x64xf32>
    %5 = vector.broadcast %4 : vector<1x64xf32> to vector<256x64xf32>
    %6 = arith.addf %3, %5 : vector<256x64xf32>
    %cst_6 = arith.constant 0.000000e+00 : f32
    %7 = vector.broadcast %cst_6 : f32 to vector<256x64xf32>
    %8 = arith.maximumf %6, %7 : vector<256x64xf32>
    %9 = arith.truncf %8 : vector<256x64xf32> to vector<256x64xbf16>
    %c0_7 = arith.constant 0 : index
    %c0_8 = arith.constant 0 : index
    %c0_9 = arith.constant 0 : index
    %10 = vector.load %arg4[%c0_7, %c0_8, %c0_9] : memref<9x64x256xbf16, #tpu.memory_space<vmem>>, vector<1x64x256xbf16>
    %11 = vector.shape_cast %10 : vector<1x64x256xbf16> to vector<64x256xbf16>
    %cst_10 = arith.constant dense<0.000000e+00> : vector<64x64xf32>
    %12 = tpu.matmul %11, %9, %cst_10 {dimension_numbers = #tpu.dot_dimension_numbers<[1], [0], [0], [1], [0, 0, 1, 1], [], []>} : vector<64x256xbf16>, vector<256x64xbf16>, vector<64x64xf32> -> vector<64x64xf32>
    %c1 = arith.constant 1 : index
    %c0_11 = arith.constant 0 : index
    %c0_12 = arith.constant 0 : index
    %13 = vector.load %arg4[%c1, %c0_11, %c0_12] : memref<9x64x256xbf16, #tpu.memory_space<vmem>>, vector<1x64x256xbf16>
    %14 = vector.shape_cast %13 : vector<1x64x256xbf16> to vector<64x256xbf16>
    %cst_13 = arith.constant dense<0.000000e+00> : vector<64x64xf32>
    %15 = tpu.matmul %14, %9, %cst_13 {dimension_numbers = #tpu.dot_dimension_numbers<[1], [0], [0], [1], [0, 0, 1, 1], [], []>} : vector<64x256xbf16>, vector<256x64xbf16>, vector<64x64xf32> -> vector<64x64xf32>
    %16 = arith.maximumf %12, %15 : vector<64x64xf32>
    %c2 = arith.constant 2 : index
    %c0_14 = arith.constant 0 : index
    %c0_15 = arith.constant 0 : index
    %17 = vector.load %arg4[%c2, %c0_14, %c0_15] : memref<9x64x256xbf16, #tpu.memory_space<vmem>>, vector<1x64x256xbf16>
    %18 = vector.shape_cast %17 : vector<1x64x256xbf16> to vector<64x256xbf16>
    %cst_16 = arith.constant dense<0.000000e+00> : vector<64x64xf32>
    %19 = tpu.matmul %18, %9, %cst_16 {dimension_numbers = #tpu.dot_dimension_numbers<[1], [0], [0], [1], [0, 0, 1, 1], [], []>} : vector<64x256xbf16>, vector<256x64xbf16>, vector<64x64xf32> -> vector<64x64xf32>
    %20 = arith.maximumf %16, %19 : vector<64x64xf32>
    %c3 = arith.constant 3 : index
    %c0_17 = arith.constant 0 : index
    %c0_18 = arith.constant 0 : index
    %21 = vector.load %arg4[%c3, %c0_17, %c0_18] : memref<9x64x256xbf16, #tpu.memory_space<vmem>>, vector<1x64x256xbf16>
    %22 = vector.shape_cast %21 : vector<1x64x256xbf16> to vector<64x256xbf16>
    %cst_19 = arith.constant dense<0.000000e+00> : vector<64x64xf32>
    %23 = tpu.matmul %22, %9, %cst_19 {dimension_numbers = #tpu.dot_dimension_numbers<[1], [0], [0], [1], [0, 0, 1, 1], [], []>} : vector<64x256xbf16>, vector<256x64xbf16>, vector<64x64xf32> -> vector<64x64xf32>
    %24 = arith.maximumf %20, %23 : vector<64x64xf32>
    %c4 = arith.constant 4 : index
    %c0_20 = arith.constant 0 : index
    %c0_21 = arith.constant 0 : index
    %25 = vector.load %arg4[%c4, %c0_20, %c0_21] : memref<9x64x256xbf16, #tpu.memory_space<vmem>>, vector<1x64x256xbf16>
    %26 = vector.shape_cast %25 : vector<1x64x256xbf16> to vector<64x256xbf16>
    %cst_22 = arith.constant dense<0.000000e+00> : vector<64x64xf32>
    %27 = tpu.matmul %26, %9, %cst_22 {dimension_numbers = #tpu.dot_dimension_numbers<[1], [0], [0], [1], [0, 0, 1, 1], [], []>} : vector<64x256xbf16>, vector<256x64xbf16>, vector<64x64xf32> -> vector<64x64xf32>
    %28 = arith.maximumf %24, %27 : vector<64x64xf32>
    %c5 = arith.constant 5 : index
    %c0_23 = arith.constant 0 : index
    %c0_24 = arith.constant 0 : index
    %29 = vector.load %arg4[%c5, %c0_23, %c0_24] : memref<9x64x256xbf16, #tpu.memory_space<vmem>>, vector<1x64x256xbf16>
    %30 = vector.shape_cast %29 : vector<1x64x256xbf16> to vector<64x256xbf16>
    %cst_25 = arith.constant dense<0.000000e+00> : vector<64x64xf32>
    %31 = tpu.matmul %30, %9, %cst_25 {dimension_numbers = #tpu.dot_dimension_numbers<[1], [0], [0], [1], [0, 0, 1, 1], [], []>} : vector<64x256xbf16>, vector<256x64xbf16>, vector<64x64xf32> -> vector<64x64xf32>
    %32 = arith.maximumf %28, %31 : vector<64x64xf32>
    %c6 = arith.constant 6 : index
    %c0_26 = arith.constant 0 : index
    %c0_27 = arith.constant 0 : index
    %33 = vector.load %arg4[%c6, %c0_26, %c0_27] : memref<9x64x256xbf16, #tpu.memory_space<vmem>>, vector<1x64x256xbf16>
    %34 = vector.shape_cast %33 : vector<1x64x256xbf16> to vector<64x256xbf16>
    %cst_28 = arith.constant dense<0.000000e+00> : vector<64x64xf32>
    %35 = tpu.matmul %34, %9, %cst_28 {dimension_numbers = #tpu.dot_dimension_numbers<[1], [0], [0], [1], [0, 0, 1, 1], [], []>} : vector<64x256xbf16>, vector<256x64xbf16>, vector<64x64xf32> -> vector<64x64xf32>
    %36 = arith.maximumf %32, %35 : vector<64x64xf32>
    %c7 = arith.constant 7 : index
    %c0_29 = arith.constant 0 : index
    %c0_30 = arith.constant 0 : index
    %37 = vector.load %arg4[%c7, %c0_29, %c0_30] : memref<9x64x256xbf16, #tpu.memory_space<vmem>>, vector<1x64x256xbf16>
    %38 = vector.shape_cast %37 : vector<1x64x256xbf16> to vector<64x256xbf16>
    %cst_31 = arith.constant dense<0.000000e+00> : vector<64x64xf32>
    %39 = tpu.matmul %38, %9, %cst_31 {dimension_numbers = #tpu.dot_dimension_numbers<[1], [0], [0], [1], [0, 0, 1, 1], [], []>} : vector<64x256xbf16>, vector<256x64xbf16>, vector<64x64xf32> -> vector<64x64xf32>
    %40 = arith.maximumf %36, %39 : vector<64x64xf32>
    %c8 = arith.constant 8 : index
    %c0_32 = arith.constant 0 : index
    %c0_33 = arith.constant 0 : index
    %41 = vector.load %arg4[%c8, %c0_32, %c0_33] : memref<9x64x256xbf16, #tpu.memory_space<vmem>>, vector<1x64x256xbf16>
    %42 = vector.shape_cast %41 : vector<1x64x256xbf16> to vector<64x256xbf16>
    %cst_34 = arith.constant dense<0.000000e+00> : vector<64x64xf32>
    %43 = tpu.matmul %42, %9, %cst_34 {dimension_numbers = #tpu.dot_dimension_numbers<[1], [0], [0], [1], [0, 0, 1, 1], [], []>} : vector<64x256xbf16>, vector<256x64xbf16>, vector<64x64xf32> -> vector<64x64xf32>
    %44 = arith.maximumf %40, %43 : vector<64x64xf32>
    %45 = arith.truncf %44 : vector<64x64xf32> to vector<64x64xbf16>
    %c0_35 = arith.constant 0 : index
    %c0_36 = arith.constant 0 : index
    %c0_37 = arith.constant 0 : index
    %46 = vector.load %arg5[%c0_35, %c0_36, %c0_37] : memref<1x64x64xbf16, #tpu.memory_space<vmem>>, vector<1x64x64xbf16>
    %47 = vector.shape_cast %46 : vector<1x64x64xbf16> to vector<64x64xbf16>
    %48 = vector.shape_cast %45 : vector<64x64xbf16> to vector<1x64x64xbf16>
    tpu.vector_store %arg5[%c0_35, %c0_36, %c0_37], %48 {strides = array<i32>} : memref<1x64x64xbf16, #tpu.memory_space<vmem>>, vector<1x64x64xbf16>,
    return
  }
  func.func @transform_0(%arg0: i32) -> (i32, i32, i32) {
    %c0_i32 = arith.constant 0 : i32
    %c0_i32_0 = arith.constant 0 : i32
    %c0_i32_1 = arith.constant 0 : i32
    return %arg0, %c0_i32, %c0_i32_0 : i32, i32, i32
  }
  func.func @transform_1(%arg0: i32) -> (i32, i32) {
    %c0_i32 = arith.constant 0 : i32
    %c0_i32_0 = arith.constant 0 : i32
    %c0_i32_1 = arith.constant 0 : i32
    return %c0_i32, %c0_i32_0 : i32, i32
  }
  func.func @transform_2(%arg0: i32) -> (i32, i32) {
    %c0_i32 = arith.constant 0 : i32
    %c0_i32_0 = arith.constant 0 : i32
    %c0_i32_1 = arith.constant 0 : i32
    return %c0_i32, %c0_i32_0 : i32, i32
  }
  func.func @transform_3(%arg0: i32) -> (i32, i32, i32) {
    %c0_i32 = arith.constant 0 : i32
    %c0_i32_0 = arith.constant 0 : i32
    %c0_i32_1 = arith.constant 0 : i32
    %c0_i32_2 = arith.constant 0 : i32
    return %c0_i32, %c0_i32_0, %c0_i32_1 : i32, i32, i32
  }
  func.func @transform_4(%arg0: i32) -> (i32, i32, i32) {
    %c0_i32 = arith.constant 0 : i32
    %c0_i32_0 = arith.constant 0 : i32
    %c0_i32_1 = arith.constant 0 : i32
    return %arg0, %c0_i32, %c0_i32_0 : i32, i32, i32
  }
}

module attributes {stable_mosaic.version = 11 : i64} {
  func.func @_bottleneck_kernel(%arg0: i32, %arg1: memref<1x64x256xbf16, #tpu.memory_space<vmem>>, %arg2: memref<9x64x64xbf16, #tpu.memory_space<vmem>>, %arg3: memref<256x64xbf16, #tpu.memory_space<vmem>>, %arg4: memref<1x64xf32, #tpu.memory_space<vmem>>, %arg5: memref<9x64x64xbf16, #tpu.memory_space<vmem>>, %arg6: memref<1x64xf32, #tpu.memory_space<vmem>>, %arg7: memref<64x256xbf16, #tpu.memory_space<vmem>>, %arg8: memref<1x256xf32, #tpu.memory_space<vmem>>, %arg9: memref<1x64x256xbf16, #tpu.memory_space<vmem>>) attributes {dimension_semantics = [#tpu.dimension_semantics<parallel>], iteration_bounds = array<i64: 2>, scalar_prefetch = 0 : i64, scratch_operands = 0 : i64, tpu.core_type = #tpu.core_type<tc>, window_params = [{transform_indices = @transform_0, window_bounds = array<i64: 1, 64, 256>}, {pipeline_mode = #tpu.pipeline_mode<synchronous>, transform_indices = @transform_1, window_bounds = array<i64: 9, 64, 64>}, {pipeline_mode = #tpu.pipeline_mode<synchronous>, transform_indices = @transform_2, window_bounds = array<i64: 256, 64>}, {pipeline_mode = #tpu.pipeline_mode<synchronous>, transform_indices = @transform_3, window_bounds = array<i64: 1, 64>}, {pipeline_mode = #tpu.pipeline_mode<synchronous>, transform_indices = @transform_4, window_bounds = array<i64: 9, 64, 64>}, {pipeline_mode = #tpu.pipeline_mode<synchronous>, transform_indices = @transform_5, window_bounds = array<i64: 1, 64>}, {pipeline_mode = #tpu.pipeline_mode<synchronous>, transform_indices = @transform_6, window_bounds = array<i64: 64, 256>}, {pipeline_mode = #tpu.pipeline_mode<synchronous>, transform_indices = @transform_7, window_bounds = array<i64: 1, 256>}, {transform_indices = @transform_8, window_bounds = array<i64: 1, 64, 256>}]} {
    %c0 = arith.constant 0 : index
    %c0_0 = arith.constant 0 : index
    %c0_1 = arith.constant 0 : index
    %0 = vector.load %arg1[%c0, %c0_0, %c0_1] : memref<1x64x256xbf16, #tpu.memory_space<vmem>>, vector<1x64x256xbf16>
    %1 = vector.shape_cast %0 : vector<1x64x256xbf16> to vector<64x256xbf16>
    %c0_2 = arith.constant 0 : index
    %c0_3 = arith.constant 0 : index
    %2 = vector.load %arg3[%c0_2, %c0_3] : memref<256x64xbf16, #tpu.memory_space<vmem>>, vector<256x64xbf16>
    %cst = arith.constant dense<0.000000e+00> : vector<64x64xf32>
    %3 = tpu.matmul %1, %2, %cst {dimension_numbers = #tpu.dot_dimension_numbers<[1], [0], [0], [1], [0, 0, 1, 1], [], []>} : vector<64x256xbf16>, vector<256x64xbf16>, vector<64x64xf32> -> vector<64x64xf32>
    %c0_4 = arith.constant 0 : index
    %c0_5 = arith.constant 0 : index
    %4 = vector.load %arg4[%c0_4, %c0_5] : memref<1x64xf32, #tpu.memory_space<vmem>>, vector<1x64xf32>
    %5 = vector.broadcast %4 : vector<1x64xf32> to vector<64x64xf32>
    %6 = arith.addf %3, %5 : vector<64x64xf32>
    %cst_6 = arith.constant 0.000000e+00 : f32
    %7 = vector.broadcast %cst_6 : f32 to vector<64x64xf32>
    %8 = arith.maximumf %6, %7 : vector<64x64xf32>
    %9 = arith.truncf %8 : vector<64x64xf32> to vector<64x64xbf16>
    %c0_7 = arith.constant 0 : index
    %c0_8 = arith.constant 0 : index
    %c0_9 = arith.constant 0 : index
    %10 = vector.load %arg2[%c0_7, %c0_8, %c0_9] : memref<9x64x64xbf16, #tpu.memory_space<vmem>>, vector<1x64x64xbf16>
    %11 = vector.shape_cast %10 : vector<1x64x64xbf16> to vector<64x64xbf16>
    %cst_10 = arith.constant dense<0.000000e+00> : vector<64x64xf32>
    %12 = tpu.matmul %11, %9, %cst_10 {dimension_numbers = #tpu.dot_dimension_numbers<[1], [0], [0], [1], [0, 0, 1, 1], [], []>} : vector<64x64xbf16>, vector<64x64xbf16>, vector<64x64xf32> -> vector<64x64xf32>
    %13 = arith.truncf %12 : vector<64x64xf32> to vector<64x64xbf16>
    %c0_11 = arith.constant 0 : index
    %c0_12 = arith.constant 0 : index
    %c0_13 = arith.constant 0 : index
    %14 = vector.load %arg5[%c0_11, %c0_12, %c0_13] : memref<9x64x64xbf16, #tpu.memory_space<vmem>>, vector<1x64x64xbf16>
    %15 = vector.shape_cast %14 : vector<1x64x64xbf16> to vector<64x64xbf16>
    %cst_14 = arith.constant dense<0.000000e+00> : vector<64x64xf32>
    %16 = tpu.matmul %13, %15, %cst_14 {dimension_numbers = #tpu.dot_dimension_numbers<[1], [0], [0], [1], [0, 0, 1, 1], [], []>} : vector<64x64xbf16>, vector<64x64xbf16>, vector<64x64xf32> -> vector<64x64xf32>
    %c1 = arith.constant 1 : index
    %c0_15 = arith.constant 0 : index
    %c0_16 = arith.constant 0 : index
    %17 = vector.load %arg2[%c1, %c0_15, %c0_16] : memref<9x64x64xbf16, #tpu.memory_space<vmem>>, vector<1x64x64xbf16>
    %18 = vector.shape_cast %17 : vector<1x64x64xbf16> to vector<64x64xbf16>
    %cst_17 = arith.constant dense<0.000000e+00> : vector<64x64xf32>
    %19 = tpu.matmul %18, %9, %cst_17 {dimension_numbers = #tpu.dot_dimension_numbers<[1], [0], [0], [1], [0, 0, 1, 1], [], []>} : vector<64x64xbf16>, vector<64x64xbf16>, vector<64x64xf32> -> vector<64x64xf32>
    %20 = arith.truncf %19 : vector<64x64xf32> to vector<64x64xbf16>
    %c1_18 = arith.constant 1 : index
    %c0_19 = arith.constant 0 : index
    %c0_20 = arith.constant 0 : index
    %21 = vector.load %arg5[%c1_18, %c0_19, %c0_20] : memref<9x64x64xbf16, #tpu.memory_space<vmem>>, vector<1x64x64xbf16>
    %22 = vector.shape_cast %21 : vector<1x64x64xbf16> to vector<64x64xbf16>
    %cst_21 = arith.constant dense<0.000000e+00> : vector<64x64xf32>
    %23 = tpu.matmul %20, %22, %cst_21 {dimension_numbers = #tpu.dot_dimension_numbers<[1], [0], [0], [1], [0, 0, 1, 1], [], []>} : vector<64x64xbf16>, vector<64x64xbf16>, vector<64x64xf32> -> vector<64x64xf32>
    %24 = arith.addf %16, %23 : vector<64x64xf32>
    %c2 = arith.constant 2 : index
    %c0_22 = arith.constant 0 : index
    %c0_23 = arith.constant 0 : index
    %25 = vector.load %arg2[%c2, %c0_22, %c0_23] : memref<9x64x64xbf16, #tpu.memory_space<vmem>>, vector<1x64x64xbf16>
    %26 = vector.shape_cast %25 : vector<1x64x64xbf16> to vector<64x64xbf16>
    %cst_24 = arith.constant dense<0.000000e+00> : vector<64x64xf32>
    %27 = tpu.matmul %26, %9, %cst_24 {dimension_numbers = #tpu.dot_dimension_numbers<[1], [0], [0], [1], [0, 0, 1, 1], [], []>} : vector<64x64xbf16>, vector<64x64xbf16>, vector<64x64xf32> -> vector<64x64xf32>
    %28 = arith.truncf %27 : vector<64x64xf32> to vector<64x64xbf16>
    %c2_25 = arith.constant 2 : index
    %c0_26 = arith.constant 0 : index
    %c0_27 = arith.constant 0 : index
    %29 = vector.load %arg5[%c2_25, %c0_26, %c0_27] : memref<9x64x64xbf16, #tpu.memory_space<vmem>>, vector<1x64x64xbf16>
    %30 = vector.shape_cast %29 : vector<1x64x64xbf16> to vector<64x64xbf16>
    %cst_28 = arith.constant dense<0.000000e+00> : vector<64x64xf32>
    %31 = tpu.matmul %28, %30, %cst_28 {dimension_numbers = #tpu.dot_dimension_numbers<[1], [0], [0], [1], [0, 0, 1, 1], [], []>} : vector<64x64xbf16>, vector<64x64xbf16>, vector<64x64xf32> -> vector<64x64xf32>
    %32 = arith.addf %24, %31 : vector<64x64xf32>
    %c3 = arith.constant 3 : index
    %c0_29 = arith.constant 0 : index
    %c0_30 = arith.constant 0 : index
    %33 = vector.load %arg2[%c3, %c0_29, %c0_30] : memref<9x64x64xbf16, #tpu.memory_space<vmem>>, vector<1x64x64xbf16>
    %34 = vector.shape_cast %33 : vector<1x64x64xbf16> to vector<64x64xbf16>
    %cst_31 = arith.constant dense<0.000000e+00> : vector<64x64xf32>
    %35 = tpu.matmul %34, %9, %cst_31 {dimension_numbers = #tpu.dot_dimension_numbers<[1], [0], [0], [1], [0, 0, 1, 1], [], []>} : vector<64x64xbf16>, vector<64x64xbf16>, vector<64x64xf32> -> vector<64x64xf32>
    %36 = arith.truncf %35 : vector<64x64xf32> to vector<64x64xbf16>
    %c3_32 = arith.constant 3 : index
    %c0_33 = arith.constant 0 : index
    %c0_34 = arith.constant 0 : index
    %37 = vector.load %arg5[%c3_32, %c0_33, %c0_34] : memref<9x64x64xbf16, #tpu.memory_space<vmem>>, vector<1x64x64xbf16>
    %38 = vector.shape_cast %37 : vector<1x64x64xbf16> to vector<64x64xbf16>
    %cst_35 = arith.constant dense<0.000000e+00> : vector<64x64xf32>
    %39 = tpu.matmul %36, %38, %cst_35 {dimension_numbers = #tpu.dot_dimension_numbers<[1], [0], [0], [1], [0, 0, 1, 1], [], []>} : vector<64x64xbf16>, vector<64x64xbf16>, vector<64x64xf32> -> vector<64x64xf32>
    %40 = arith.addf %32, %39 : vector<64x64xf32>
    %c4 = arith.constant 4 : index
    %c0_36 = arith.constant 0 : index
    %c0_37 = arith.constant 0 : index
    %41 = vector.load %arg2[%c4, %c0_36, %c0_37] : memref<9x64x64xbf16, #tpu.memory_space<vmem>>, vector<1x64x64xbf16>
    %42 = vector.shape_cast %41 : vector<1x64x64xbf16> to vector<64x64xbf16>
    %cst_38 = arith.constant dense<0.000000e+00> : vector<64x64xf32>
    %43 = tpu.matmul %42, %9, %cst_38 {dimension_numbers = #tpu.dot_dimension_numbers<[1], [0], [0], [1], [0, 0, 1, 1], [], []>} : vector<64x64xbf16>, vector<64x64xbf16>, vector<64x64xf32> -> vector<64x64xf32>
    %44 = arith.truncf %43 : vector<64x64xf32> to vector<64x64xbf16>
    %c4_39 = arith.constant 4 : index
    %c0_40 = arith.constant 0 : index
    %c0_41 = arith.constant 0 : index
    %45 = vector.load %arg5[%c4_39, %c0_40, %c0_41] : memref<9x64x64xbf16, #tpu.memory_space<vmem>>, vector<1x64x64xbf16>
    %46 = vector.shape_cast %45 : vector<1x64x64xbf16> to vector<64x64xbf16>
    %cst_42 = arith.constant dense<0.000000e+00> : vector<64x64xf32>
    %47 = tpu.matmul %44, %46, %cst_42 {dimension_numbers = #tpu.dot_dimension_numbers<[1], [0], [0], [1], [0, 0, 1, 1], [], []>} : vector<64x64xbf16>, vector<64x64xbf16>, vector<64x64xf32> -> vector<64x64xf32>
    %48 = arith.addf %40, %47 : vector<64x64xf32>
    %c5 = arith.constant 5 : index
    %c0_43 = arith.constant 0 : index
    %c0_44 = arith.constant 0 : index
    %49 = vector.load %arg2[%c5, %c0_43, %c0_44] : memref<9x64x64xbf16, #tpu.memory_space<vmem>>, vector<1x64x64xbf16>
    %50 = vector.shape_cast %49 : vector<1x64x64xbf16> to vector<64x64xbf16>
    %cst_45 = arith.constant dense<0.000000e+00> : vector<64x64xf32>
    %51 = tpu.matmul %50, %9, %cst_45 {dimension_numbers = #tpu.dot_dimension_numbers<[1], [0], [0], [1], [0, 0, 1, 1], [], []>} : vector<64x64xbf16>, vector<64x64xbf16>, vector<64x64xf32> -> vector<64x64xf32>
    %52 = arith.truncf %51 : vector<64x64xf32> to vector<64x64xbf16>
    %c5_46 = arith.constant 5 : index
    %c0_47 = arith.constant 0 : index
    %c0_48 = arith.constant 0 : index
    %53 = vector.load %arg5[%c5_46, %c0_47, %c0_48] : memref<9x64x64xbf16, #tpu.memory_space<vmem>>, vector<1x64x64xbf16>
    %54 = vector.shape_cast %53 : vector<1x64x64xbf16> to vector<64x64xbf16>
    %cst_49 = arith.constant dense<0.000000e+00> : vector<64x64xf32>
    %55 = tpu.matmul %52, %54, %cst_49 {dimension_numbers = #tpu.dot_dimension_numbers<[1], [0], [0], [1], [0, 0, 1, 1], [], []>} : vector<64x64xbf16>, vector<64x64xbf16>, vector<64x64xf32> -> vector<64x64xf32>
    %56 = arith.addf %48, %55 : vector<64x64xf32>
    %c6 = arith.constant 6 : index
    %c0_50 = arith.constant 0 : index
    %c0_51 = arith.constant 0 : index
    %57 = vector.load %arg2[%c6, %c0_50, %c0_51] : memref<9x64x64xbf16, #tpu.memory_space<vmem>>, vector<1x64x64xbf16>
    %58 = vector.shape_cast %57 : vector<1x64x64xbf16> to vector<64x64xbf16>
    %cst_52 = arith.constant dense<0.000000e+00> : vector<64x64xf32>
    %59 = tpu.matmul %58, %9, %cst_52 {dimension_numbers = #tpu.dot_dimension_numbers<[1], [0], [0], [1], [0, 0, 1, 1], [], []>} : vector<64x64xbf16>, vector<64x64xbf16>, vector<64x64xf32> -> vector<64x64xf32>
    %60 = arith.truncf %59 : vector<64x64xf32> to vector<64x64xbf16>
    %c6_53 = arith.constant 6 : index
    %c0_54 = arith.constant 0 : index
    %c0_55 = arith.constant 0 : index
    %61 = vector.load %arg5[%c6_53, %c0_54, %c0_55] : memref<9x64x64xbf16, #tpu.memory_space<vmem>>, vector<1x64x64xbf16>
    %62 = vector.shape_cast %61 : vector<1x64x64xbf16> to vector<64x64xbf16>
    %cst_56 = arith.constant dense<0.000000e+00> : vector<64x64xf32>
    %63 = tpu.matmul %60, %62, %cst_56 {dimension_numbers = #tpu.dot_dimension_numbers<[1], [0], [0], [1], [0, 0, 1, 1], [], []>} : vector<64x64xbf16>, vector<64x64xbf16>, vector<64x64xf32> -> vector<64x64xf32>
    %64 = arith.addf %56, %63 : vector<64x64xf32>
    %c7 = arith.constant 7 : index
    %c0_57 = arith.constant 0 : index
    %c0_58 = arith.constant 0 : index
    %65 = vector.load %arg2[%c7, %c0_57, %c0_58] : memref<9x64x64xbf16, #tpu.memory_space<vmem>>, vector<1x64x64xbf16>
    %66 = vector.shape_cast %65 : vector<1x64x64xbf16> to vector<64x64xbf16>
    %cst_59 = arith.constant dense<0.000000e+00> : vector<64x64xf32>
    %67 = tpu.matmul %66, %9, %cst_59 {dimension_numbers = #tpu.dot_dimension_numbers<[1], [0], [0], [1], [0, 0, 1, 1], [], []>} : vector<64x64xbf16>, vector<64x64xbf16>, vector<64x64xf32> -> vector<64x64xf32>
    %68 = arith.truncf %67 : vector<64x64xf32> to vector<64x64xbf16>
    %c7_60 = arith.constant 7 : index
    %c0_61 = arith.constant 0 : index
    %c0_62 = arith.constant 0 : index
    %69 = vector.load %arg5[%c7_60, %c0_61, %c0_62] : memref<9x64x64xbf16, #tpu.memory_space<vmem>>, vector<1x64x64xbf16>
    %70 = vector.shape_cast %69 : vector<1x64x64xbf16> to vector<64x64xbf16>
    %cst_63 = arith.constant dense<0.000000e+00> : vector<64x64xf32>
    %71 = tpu.matmul %68, %70, %cst_63 {dimension_numbers = #tpu.dot_dimension_numbers<[1], [0], [0], [1], [0, 0, 1, 1], [], []>} : vector<64x64xbf16>, vector<64x64xbf16>, vector<64x64xf32> -> vector<64x64xf32>
    %72 = arith.addf %64, %71 : vector<64x64xf32>
    %c8 = arith.constant 8 : index
    %c0_64 = arith.constant 0 : index
    %c0_65 = arith.constant 0 : index
    %73 = vector.load %arg2[%c8, %c0_64, %c0_65] : memref<9x64x64xbf16, #tpu.memory_space<vmem>>, vector<1x64x64xbf16>
    %74 = vector.shape_cast %73 : vector<1x64x64xbf16> to vector<64x64xbf16>
    %cst_66 = arith.constant dense<0.000000e+00> : vector<64x64xf32>
    %75 = tpu.matmul %74, %9, %cst_66 {dimension_numbers = #tpu.dot_dimension_numbers<[1], [0], [0], [1], [0, 0, 1, 1], [], []>} : vector<64x64xbf16>, vector<64x64xbf16>, vector<64x64xf32> -> vector<64x64xf32>
    %76 = arith.truncf %75 : vector<64x64xf32> to vector<64x64xbf16>
    %c8_67 = arith.constant 8 : index
    %c0_68 = arith.constant 0 : index
    %c0_69 = arith.constant 0 : index
    %77 = vector.load %arg5[%c8_67, %c0_68, %c0_69] : memref<9x64x64xbf16, #tpu.memory_space<vmem>>, vector<1x64x64xbf16>
    %78 = vector.shape_cast %77 : vector<1x64x64xbf16> to vector<64x64xbf16>
    %cst_70 = arith.constant dense<0.000000e+00> : vector<64x64xf32>
    %79 = tpu.matmul %76, %78, %cst_70 {dimension_numbers = #tpu.dot_dimension_numbers<[1], [0], [0], [1], [0, 0, 1, 1], [], []>} : vector<64x64xbf16>, vector<64x64xbf16>, vector<64x64xf32> -> vector<64x64xf32>
    %80 = arith.addf %72, %79 : vector<64x64xf32>
    %c0_71 = arith.constant 0 : index
    %c0_72 = arith.constant 0 : index
    %81 = vector.load %arg6[%c0_71, %c0_72] : memref<1x64xf32, #tpu.memory_space<vmem>>, vector<1x64xf32>
    %82 = vector.broadcast %81 : vector<1x64xf32> to vector<64x64xf32>
    %83 = arith.addf %80, %82 : vector<64x64xf32>
    %cst_73 = arith.constant 0.000000e+00 : f32
    %84 = vector.broadcast %cst_73 : f32 to vector<64x64xf32>
    %85 = arith.maximumf %83, %84 : vector<64x64xf32>
    %86 = arith.truncf %85 : vector<64x64xf32> to vector<64x64xbf16>
    %c0_74 = arith.constant 0 : index
    %c0_75 = arith.constant 0 : index
    %87 = vector.load %arg7[%c0_74, %c0_75] : memref<64x256xbf16, #tpu.memory_space<vmem>>, vector<64x256xbf16>
    %cst_76 = arith.constant dense<0.000000e+00> : vector<64x256xf32>
    %88 = tpu.matmul %86, %87, %cst_76 {dimension_numbers = #tpu.dot_dimension_numbers<[1], [0], [0], [1], [0, 0, 1, 1], [], []>} : vector<64x64xbf16>, vector<64x256xbf16>, vector<64x256xf32> -> vector<64x256xf32>
    %c0_77 = arith.constant 0 : index
    %c0_78 = arith.constant 0 : index
    %89 = vector.load %arg8[%c0_77, %c0_78] : memref<1x256xf32, #tpu.memory_space<vmem>>, vector<1x256xf32>
    %90 = vector.broadcast %89 : vector<1x256xf32> to vector<64x256xf32>
    %91 = arith.addf %88, %90 : vector<64x256xf32>
    %92 = arith.extf %1 : vector<64x256xbf16> to vector<64x256xf32>
    %93 = arith.addf %91, %92 : vector<64x256xf32>
    %cst_79 = arith.constant 0.000000e+00 : f32
    %94 = vector.broadcast %cst_79 : f32 to vector<64x256xf32>
    %95 = arith.maximumf %93, %94 : vector<64x256xf32>
    %96 = arith.truncf %95 : vector<64x256xf32> to vector<64x256xbf16>
    %c0_80 = arith.constant 0 : index
    %c0_81 = arith.constant 0 : index
    %c0_82 = arith.constant 0 : index
    %97 = vector.load %arg9[%c0_80, %c0_81, %c0_82] : memref<1x64x256xbf16, #tpu.memory_space<vmem>>, vector<1x64x256xbf16>
    %98 = vector.shape_cast %97 : vector<1x64x256xbf16> to vector<64x256xbf16>
    %99 = vector.shape_cast %96 : vector<64x256xbf16> to vector<1x64x256xbf16>
    tpu.vector_store %arg9[%c0_80, %c0_81, %c0_82], %99 {strides = array<i32>} : memref<1x64x256xbf16, #tpu.memory_space<vmem>>, vector<1x64x256xbf16>,
    return
  }
  func.func @transform_0(%arg0: i32) -> (i32, i32, i32) {
    %c0_i32 = arith.constant 0 : i32
    %c0_i32_0 = arith.constant 0 : i32
    %c0_i32_1 = arith.constant 0 : i32
    return %arg0, %c0_i32, %c0_i32_0 : i32, i32, i32
  }
  func.func @transform_1(%arg0: i32) -> (i32, i32, i32) {
    %c0_i32 = arith.constant 0 : i32
    %c0_i32_0 = arith.constant 0 : i32
    %c0_i32_1 = arith.constant 0 : i32
    %c0_i32_2 = arith.constant 0 : i32
    return %c0_i32, %c0_i32_0, %c0_i32_1 : i32, i32, i32
  }
  func.func @transform_2(%arg0: i32) -> (i32, i32) {
    %c0_i32 = arith.constant 0 : i32
    %c0_i32_0 = arith.constant 0 : i32
    %c0_i32_1 = arith.constant 0 : i32
    return %c0_i32, %c0_i32_0 : i32, i32
  }
  func.func @transform_3(%arg0: i32) -> (i32, i32) {
    %c0_i32 = arith.constant 0 : i32
    %c0_i32_0 = arith.constant 0 : i32
    %c0_i32_1 = arith.constant 0 : i32
    return %c0_i32, %c0_i32_0 : i32, i32
  }
  func.func @transform_4(%arg0: i32) -> (i32, i32, i32) {
    %c0_i32 = arith.constant 0 : i32
    %c0_i32_0 = arith.constant 0 : i32
    %c0_i32_1 = arith.constant 0 : i32
    %c0_i32_2 = arith.constant 0 : i32
    return %c0_i32, %c0_i32_0, %c0_i32_1 : i32, i32, i32
  }
  func.func @transform_5(%arg0: i32) -> (i32, i32) {
    %c0_i32 = arith.constant 0 : i32
    %c0_i32_0 = arith.constant 0 : i32
    %c0_i32_1 = arith.constant 0 : i32
    return %c0_i32, %c0_i32_0 : i32, i32
  }
  func.func @transform_6(%arg0: i32) -> (i32, i32) {
    %c0_i32 = arith.constant 0 : i32
    %c0_i32_0 = arith.constant 0 : i32
    %c0_i32_1 = arith.constant 0 : i32
    return %c0_i32, %c0_i32_0 : i32, i32
  }
  func.func @transform_7(%arg0: i32) -> (i32, i32) {
    %c0_i32 = arith.constant 0 : i32
    %c0_i32_0 = arith.constant 0 : i32
    %c0_i32_1 = arith.constant 0 : i32
    return %c0_i32, %c0_i32_0 : i32, i32
  }
  func.func @transform_8(%arg0: i32) -> (i32, i32, i32) {
    %c0_i32 = arith.constant 0 : i32
    %c0_i32_0 = arith.constant 0 : i32
    %c0_i32_1 = arith.constant 0 : i32
    return %arg0, %c0_i32, %c0_i32_0 : i32, i32, i32
  }
}

module attributes {stable_mosaic.version = 11 : i64} {
  func.func @_bottleneck_kernel(%arg0: i32, %arg1: memref<1x64x64xbf16, #tpu.memory_space<vmem>>, %arg2: memref<9x64x64xbf16, #tpu.memory_space<vmem>>, %arg3: memref<64x64xbf16, #tpu.memory_space<vmem>>, %arg4: memref<1x64xf32, #tpu.memory_space<vmem>>, %arg5: memref<9x64x64xbf16, #tpu.memory_space<vmem>>, %arg6: memref<1x64xf32, #tpu.memory_space<vmem>>, %arg7: memref<64x256xbf16, #tpu.memory_space<vmem>>, %arg8: memref<1x256xf32, #tpu.memory_space<vmem>>, %arg9: memref<64x256xbf16, #tpu.memory_space<vmem>>, %arg10: memref<1x256xf32, #tpu.memory_space<vmem>>, %arg11: memref<1x64x256xbf16, #tpu.memory_space<vmem>>) attributes {dimension_semantics = [#tpu.dimension_semantics<parallel>], iteration_bounds = array<i64: 2>, scalar_prefetch = 0 : i64, scratch_operands = 0 : i64, tpu.core_type = #tpu.core_type<tc>, window_params = [{transform_indices = @transform_0, window_bounds = array<i64: 1, 64, 64>}, {pipeline_mode = #tpu.pipeline_mode<synchronous>, transform_indices = @transform_1, window_bounds = array<i64: 9, 64, 64>}, {pipeline_mode = #tpu.pipeline_mode<synchronous>, transform_indices = @transform_2, window_bounds = array<i64: 64, 64>}, {pipeline_mode = #tpu.pipeline_mode<synchronous>, transform_indices = @transform_3, window_bounds = array<i64: 1, 64>}, {pipeline_mode = #tpu.pipeline_mode<synchronous>, transform_indices = @transform_4, window_bounds = array<i64: 9, 64, 64>}, {pipeline_mode = #tpu.pipeline_mode<synchronous>, transform_indices = @transform_5, window_bounds = array<i64: 1, 64>}, {pipeline_mode = #tpu.pipeline_mode<synchronous>, transform_indices = @transform_6, window_bounds = array<i64: 64, 256>}, {pipeline_mode = #tpu.pipeline_mode<synchronous>, transform_indices = @transform_7, window_bounds = array<i64: 1, 256>}, {pipeline_mode = #tpu.pipeline_mode<synchronous>, transform_indices = @transform_8, window_bounds = array<i64: 64, 256>}, {pipeline_mode = #tpu.pipeline_mode<synchronous>, transform_indices = @transform_9, window_bounds = array<i64: 1, 256>}, {transform_indices = @transform_10, window_bounds = array<i64: 1, 64, 256>}]} {
    %c0 = arith.constant 0 : index
    %c0_0 = arith.constant 0 : index
    %c0_1 = arith.constant 0 : index
    %0 = vector.load %arg1[%c0, %c0_0, %c0_1] : memref<1x64x64xbf16, #tpu.memory_space<vmem>>, vector<1x64x64xbf16>
    %1 = vector.shape_cast %0 : vector<1x64x64xbf16> to vector<64x64xbf16>
    %c0_2 = arith.constant 0 : index
    %c0_3 = arith.constant 0 : index
    %2 = vector.load %arg3[%c0_2, %c0_3] : memref<64x64xbf16, #tpu.memory_space<vmem>>, vector<64x64xbf16>
    %cst = arith.constant dense<0.000000e+00> : vector<64x64xf32>
    %3 = tpu.matmul %1, %2, %cst {dimension_numbers = #tpu.dot_dimension_numbers<[1], [0], [0], [1], [0, 0, 1, 1], [], []>} : vector<64x64xbf16>, vector<64x64xbf16>, vector<64x64xf32> -> vector<64x64xf32>
    %c0_4 = arith.constant 0 : index
    %c0_5 = arith.constant 0 : index
    %4 = vector.load %arg4[%c0_4, %c0_5] : memref<1x64xf32, #tpu.memory_space<vmem>>, vector<1x64xf32>
    %5 = vector.broadcast %4 : vector<1x64xf32> to vector<64x64xf32>
    %6 = arith.addf %3, %5 : vector<64x64xf32>
    %cst_6 = arith.constant 0.000000e+00 : f32
    %7 = vector.broadcast %cst_6 : f32 to vector<64x64xf32>
    %8 = arith.maximumf %6, %7 : vector<64x64xf32>
    %9 = arith.truncf %8 : vector<64x64xf32> to vector<64x64xbf16>
    %c0_7 = arith.constant 0 : index
    %c0_8 = arith.constant 0 : index
    %c0_9 = arith.constant 0 : index
    %10 = vector.load %arg2[%c0_7, %c0_8, %c0_9] : memref<9x64x64xbf16, #tpu.memory_space<vmem>>, vector<1x64x64xbf16>
    %11 = vector.shape_cast %10 : vector<1x64x64xbf16> to vector<64x64xbf16>
    %cst_10 = arith.constant dense<0.000000e+00> : vector<64x64xf32>
    %12 = tpu.matmul %11, %9, %cst_10 {dimension_numbers = #tpu.dot_dimension_numbers<[1], [0], [0], [1], [0, 0, 1, 1], [], []>} : vector<64x64xbf16>, vector<64x64xbf16>, vector<64x64xf32> -> vector<64x64xf32>
    %13 = arith.truncf %12 : vector<64x64xf32> to vector<64x64xbf16>
    %c0_11 = arith.constant 0 : index
    %c0_12 = arith.constant 0 : index
    %c0_13 = arith.constant 0 : index
    %14 = vector.load %arg5[%c0_11, %c0_12, %c0_13] : memref<9x64x64xbf16, #tpu.memory_space<vmem>>, vector<1x64x64xbf16>
    %15 = vector.shape_cast %14 : vector<1x64x64xbf16> to vector<64x64xbf16>
    %cst_14 = arith.constant dense<0.000000e+00> : vector<64x64xf32>
    %16 = tpu.matmul %13, %15, %cst_14 {dimension_numbers = #tpu.dot_dimension_numbers<[1], [0], [0], [1], [0, 0, 1, 1], [], []>} : vector<64x64xbf16>, vector<64x64xbf16>, vector<64x64xf32> -> vector<64x64xf32>
    %c1 = arith.constant 1 : index
    %c0_15 = arith.constant 0 : index
    %c0_16 = arith.constant 0 : index
    %17 = vector.load %arg2[%c1, %c0_15, %c0_16] : memref<9x64x64xbf16, #tpu.memory_space<vmem>>, vector<1x64x64xbf16>
    %18 = vector.shape_cast %17 : vector<1x64x64xbf16> to vector<64x64xbf16>
    %cst_17 = arith.constant dense<0.000000e+00> : vector<64x64xf32>
    %19 = tpu.matmul %18, %9, %cst_17 {dimension_numbers = #tpu.dot_dimension_numbers<[1], [0], [0], [1], [0, 0, 1, 1], [], []>} : vector<64x64xbf16>, vector<64x64xbf16>, vector<64x64xf32> -> vector<64x64xf32>
    %20 = arith.truncf %19 : vector<64x64xf32> to vector<64x64xbf16>
    %c1_18 = arith.constant 1 : index
    %c0_19 = arith.constant 0 : index
    %c0_20 = arith.constant 0 : index
    %21 = vector.load %arg5[%c1_18, %c0_19, %c0_20] : memref<9x64x64xbf16, #tpu.memory_space<vmem>>, vector<1x64x64xbf16>
    %22 = vector.shape_cast %21 : vector<1x64x64xbf16> to vector<64x64xbf16>
    %cst_21 = arith.constant dense<0.000000e+00> : vector<64x64xf32>
    %23 = tpu.matmul %20, %22, %cst_21 {dimension_numbers = #tpu.dot_dimension_numbers<[1], [0], [0], [1], [0, 0, 1, 1], [], []>} : vector<64x64xbf16>, vector<64x64xbf16>, vector<64x64xf32> -> vector<64x64xf32>
    %24 = arith.addf %16, %23 : vector<64x64xf32>
    %c2 = arith.constant 2 : index
    %c0_22 = arith.constant 0 : index
    %c0_23 = arith.constant 0 : index
    %25 = vector.load %arg2[%c2, %c0_22, %c0_23] : memref<9x64x64xbf16, #tpu.memory_space<vmem>>, vector<1x64x64xbf16>
    %26 = vector.shape_cast %25 : vector<1x64x64xbf16> to vector<64x64xbf16>
    %cst_24 = arith.constant dense<0.000000e+00> : vector<64x64xf32>
    %27 = tpu.matmul %26, %9, %cst_24 {dimension_numbers = #tpu.dot_dimension_numbers<[1], [0], [0], [1], [0, 0, 1, 1], [], []>} : vector<64x64xbf16>, vector<64x64xbf16>, vector<64x64xf32> -> vector<64x64xf32>
    %28 = arith.truncf %27 : vector<64x64xf32> to vector<64x64xbf16>
    %c2_25 = arith.constant 2 : index
    %c0_26 = arith.constant 0 : index
    %c0_27 = arith.constant 0 : index
    %29 = vector.load %arg5[%c2_25, %c0_26, %c0_27] : memref<9x64x64xbf16, #tpu.memory_space<vmem>>, vector<1x64x64xbf16>
    %30 = vector.shape_cast %29 : vector<1x64x64xbf16> to vector<64x64xbf16>
    %cst_28 = arith.constant dense<0.000000e+00> : vector<64x64xf32>
    %31 = tpu.matmul %28, %30, %cst_28 {dimension_numbers = #tpu.dot_dimension_numbers<[1], [0], [0], [1], [0, 0, 1, 1], [], []>} : vector<64x64xbf16>, vector<64x64xbf16>, vector<64x64xf32> -> vector<64x64xf32>
    %32 = arith.addf %24, %31 : vector<64x64xf32>
    %c3 = arith.constant 3 : index
    %c0_29 = arith.constant 0 : index
    %c0_30 = arith.constant 0 : index
    %33 = vector.load %arg2[%c3, %c0_29, %c0_30] : memref<9x64x64xbf16, #tpu.memory_space<vmem>>, vector<1x64x64xbf16>
    %34 = vector.shape_cast %33 : vector<1x64x64xbf16> to vector<64x64xbf16>
    %cst_31 = arith.constant dense<0.000000e+00> : vector<64x64xf32>
    %35 = tpu.matmul %34, %9, %cst_31 {dimension_numbers = #tpu.dot_dimension_numbers<[1], [0], [0], [1], [0, 0, 1, 1], [], []>} : vector<64x64xbf16>, vector<64x64xbf16>, vector<64x64xf32> -> vector<64x64xf32>
    %36 = arith.truncf %35 : vector<64x64xf32> to vector<64x64xbf16>
    %c3_32 = arith.constant 3 : index
    %c0_33 = arith.constant 0 : index
    %c0_34 = arith.constant 0 : index
    %37 = vector.load %arg5[%c3_32, %c0_33, %c0_34] : memref<9x64x64xbf16, #tpu.memory_space<vmem>>, vector<1x64x64xbf16>
    %38 = vector.shape_cast %37 : vector<1x64x64xbf16> to vector<64x64xbf16>
    %cst_35 = arith.constant dense<0.000000e+00> : vector<64x64xf32>
    %39 = tpu.matmul %36, %38, %cst_35 {dimension_numbers = #tpu.dot_dimension_numbers<[1], [0], [0], [1], [0, 0, 1, 1], [], []>} : vector<64x64xbf16>, vector<64x64xbf16>, vector<64x64xf32> -> vector<64x64xf32>
    %40 = arith.addf %32, %39 : vector<64x64xf32>
    %c4 = arith.constant 4 : index
    %c0_36 = arith.constant 0 : index
    %c0_37 = arith.constant 0 : index
    %41 = vector.load %arg2[%c4, %c0_36, %c0_37] : memref<9x64x64xbf16, #tpu.memory_space<vmem>>, vector<1x64x64xbf16>
    %42 = vector.shape_cast %41 : vector<1x64x64xbf16> to vector<64x64xbf16>
    %cst_38 = arith.constant dense<0.000000e+00> : vector<64x64xf32>
    %43 = tpu.matmul %42, %9, %cst_38 {dimension_numbers = #tpu.dot_dimension_numbers<[1], [0], [0], [1], [0, 0, 1, 1], [], []>} : vector<64x64xbf16>, vector<64x64xbf16>, vector<64x64xf32> -> vector<64x64xf32>
    %44 = arith.truncf %43 : vector<64x64xf32> to vector<64x64xbf16>
    %c4_39 = arith.constant 4 : index
    %c0_40 = arith.constant 0 : index
    %c0_41 = arith.constant 0 : index
    %45 = vector.load %arg5[%c4_39, %c0_40, %c0_41] : memref<9x64x64xbf16, #tpu.memory_space<vmem>>, vector<1x64x64xbf16>
    %46 = vector.shape_cast %45 : vector<1x64x64xbf16> to vector<64x64xbf16>
    %cst_42 = arith.constant dense<0.000000e+00> : vector<64x64xf32>
    %47 = tpu.matmul %44, %46, %cst_42 {dimension_numbers = #tpu.dot_dimension_numbers<[1], [0], [0], [1], [0, 0, 1, 1], [], []>} : vector<64x64xbf16>, vector<64x64xbf16>, vector<64x64xf32> -> vector<64x64xf32>
    %48 = arith.addf %40, %47 : vector<64x64xf32>
    %c5 = arith.constant 5 : index
    %c0_43 = arith.constant 0 : index
    %c0_44 = arith.constant 0 : index
    %49 = vector.load %arg2[%c5, %c0_43, %c0_44] : memref<9x64x64xbf16, #tpu.memory_space<vmem>>, vector<1x64x64xbf16>
    %50 = vector.shape_cast %49 : vector<1x64x64xbf16> to vector<64x64xbf16>
    %cst_45 = arith.constant dense<0.000000e+00> : vector<64x64xf32>
    %51 = tpu.matmul %50, %9, %cst_45 {dimension_numbers = #tpu.dot_dimension_numbers<[1], [0], [0], [1], [0, 0, 1, 1], [], []>} : vector<64x64xbf16>, vector<64x64xbf16>, vector<64x64xf32> -> vector<64x64xf32>
    %52 = arith.truncf %51 : vector<64x64xf32> to vector<64x64xbf16>
    %c5_46 = arith.constant 5 : index
    %c0_47 = arith.constant 0 : index
    %c0_48 = arith.constant 0 : index
    %53 = vector.load %arg5[%c5_46, %c0_47, %c0_48] : memref<9x64x64xbf16, #tpu.memory_space<vmem>>, vector<1x64x64xbf16>
    %54 = vector.shape_cast %53 : vector<1x64x64xbf16> to vector<64x64xbf16>
    %cst_49 = arith.constant dense<0.000000e+00> : vector<64x64xf32>
    %55 = tpu.matmul %52, %54, %cst_49 {dimension_numbers = #tpu.dot_dimension_numbers<[1], [0], [0], [1], [0, 0, 1, 1], [], []>} : vector<64x64xbf16>, vector<64x64xbf16>, vector<64x64xf32> -> vector<64x64xf32>
    %56 = arith.addf %48, %55 : vector<64x64xf32>
    %c6 = arith.constant 6 : index
    %c0_50 = arith.constant 0 : index
    %c0_51 = arith.constant 0 : index
    %57 = vector.load %arg2[%c6, %c0_50, %c0_51] : memref<9x64x64xbf16, #tpu.memory_space<vmem>>, vector<1x64x64xbf16>
    %58 = vector.shape_cast %57 : vector<1x64x64xbf16> to vector<64x64xbf16>
    %cst_52 = arith.constant dense<0.000000e+00> : vector<64x64xf32>
    %59 = tpu.matmul %58, %9, %cst_52 {dimension_numbers = #tpu.dot_dimension_numbers<[1], [0], [0], [1], [0, 0, 1, 1], [], []>} : vector<64x64xbf16>, vector<64x64xbf16>, vector<64x64xf32> -> vector<64x64xf32>
    %60 = arith.truncf %59 : vector<64x64xf32> to vector<64x64xbf16>
    %c6_53 = arith.constant 6 : index
    %c0_54 = arith.constant 0 : index
    %c0_55 = arith.constant 0 : index
    %61 = vector.load %arg5[%c6_53, %c0_54, %c0_55] : memref<9x64x64xbf16, #tpu.memory_space<vmem>>, vector<1x64x64xbf16>
    %62 = vector.shape_cast %61 : vector<1x64x64xbf16> to vector<64x64xbf16>
    %cst_56 = arith.constant dense<0.000000e+00> : vector<64x64xf32>
    %63 = tpu.matmul %60, %62, %cst_56 {dimension_numbers = #tpu.dot_dimension_numbers<[1], [0], [0], [1], [0, 0, 1, 1], [], []>} : vector<64x64xbf16>, vector<64x64xbf16>, vector<64x64xf32> -> vector<64x64xf32>
    %64 = arith.addf %56, %63 : vector<64x64xf32>
    %c7 = arith.constant 7 : index
    %c0_57 = arith.constant 0 : index
    %c0_58 = arith.constant 0 : index
    %65 = vector.load %arg2[%c7, %c0_57, %c0_58] : memref<9x64x64xbf16, #tpu.memory_space<vmem>>, vector<1x64x64xbf16>
    %66 = vector.shape_cast %65 : vector<1x64x64xbf16> to vector<64x64xbf16>
    %cst_59 = arith.constant dense<0.000000e+00> : vector<64x64xf32>
    %67 = tpu.matmul %66, %9, %cst_59 {dimension_numbers = #tpu.dot_dimension_numbers<[1], [0], [0], [1], [0, 0, 1, 1], [], []>} : vector<64x64xbf16>, vector<64x64xbf16>, vector<64x64xf32> -> vector<64x64xf32>
    %68 = arith.truncf %67 : vector<64x64xf32> to vector<64x64xbf16>
    %c7_60 = arith.constant 7 : index
    %c0_61 = arith.constant 0 : index
    %c0_62 = arith.constant 0 : index
    %69 = vector.load %arg5[%c7_60, %c0_61, %c0_62] : memref<9x64x64xbf16, #tpu.memory_space<vmem>>, vector<1x64x64xbf16>
    %70 = vector.shape_cast %69 : vector<1x64x64xbf16> to vector<64x64xbf16>
    %cst_63 = arith.constant dense<0.000000e+00> : vector<64x64xf32>
    %71 = tpu.matmul %68, %70, %cst_63 {dimension_numbers = #tpu.dot_dimension_numbers<[1], [0], [0], [1], [0, 0, 1, 1], [], []>} : vector<64x64xbf16>, vector<64x64xbf16>, vector<64x64xf32> -> vector<64x64xf32>
    %72 = arith.addf %64, %71 : vector<64x64xf32>
    %c8 = arith.constant 8 : index
    %c0_64 = arith.constant 0 : index
    %c0_65 = arith.constant 0 : index
    %73 = vector.load %arg2[%c8, %c0_64, %c0_65] : memref<9x64x64xbf16, #tpu.memory_space<vmem>>, vector<1x64x64xbf16>
    %74 = vector.shape_cast %73 : vector<1x64x64xbf16> to vector<64x64xbf16>
    %cst_66 = arith.constant dense<0.000000e+00> : vector<64x64xf32>
    %75 = tpu.matmul %74, %9, %cst_66 {dimension_numbers = #tpu.dot_dimension_numbers<[1], [0], [0], [1], [0, 0, 1, 1], [], []>} : vector<64x64xbf16>, vector<64x64xbf16>, vector<64x64xf32> -> vector<64x64xf32>
    %76 = arith.truncf %75 : vector<64x64xf32> to vector<64x64xbf16>
    %c8_67 = arith.constant 8 : index
    %c0_68 = arith.constant 0 : index
    %c0_69 = arith.constant 0 : index
    %77 = vector.load %arg5[%c8_67, %c0_68, %c0_69] : memref<9x64x64xbf16, #tpu.memory_space<vmem>>, vector<1x64x64xbf16>
    %78 = vector.shape_cast %77 : vector<1x64x64xbf16> to vector<64x64xbf16>
    %cst_70 = arith.constant dense<0.000000e+00> : vector<64x64xf32>
    %79 = tpu.matmul %76, %78, %cst_70 {dimension_numbers = #tpu.dot_dimension_numbers<[1], [0], [0], [1], [0, 0, 1, 1], [], []>} : vector<64x64xbf16>, vector<64x64xbf16>, vector<64x64xf32> -> vector<64x64xf32>
    %80 = arith.addf %72, %79 : vector<64x64xf32>
    %c0_71 = arith.constant 0 : index
    %c0_72 = arith.constant 0 : index
    %81 = vector.load %arg6[%c0_71, %c0_72] : memref<1x64xf32, #tpu.memory_space<vmem>>, vector<1x64xf32>
    %82 = vector.broadcast %81 : vector<1x64xf32> to vector<64x64xf32>
    %83 = arith.addf %80, %82 : vector<64x64xf32>
    %cst_73 = arith.constant 0.000000e+00 : f32
    %84 = vector.broadcast %cst_73 : f32 to vector<64x64xf32>
    %85 = arith.maximumf %83, %84 : vector<64x64xf32>
    %86 = arith.truncf %85 : vector<64x64xf32> to vector<64x64xbf16>
    %c0_74 = arith.constant 0 : index
    %c0_75 = arith.constant 0 : index
    %87 = vector.load %arg7[%c0_74, %c0_75] : memref<64x256xbf16, #tpu.memory_space<vmem>>, vector<64x256xbf16>
    %cst_76 = arith.constant dense<0.000000e+00> : vector<64x256xf32>
    %88 = tpu.matmul %86, %87, %cst_76 {dimension_numbers = #tpu.dot_dimension_numbers<[1], [0], [0], [1], [0, 0, 1, 1], [], []>} : vector<64x64xbf16>, vector<64x256xbf16>, vector<64x256xf32> -> vector<64x256xf32>
    %c0_77 = arith.constant 0 : index
    %c0_78 = arith.constant 0 : index
    %89 = vector.load %arg8[%c0_77, %c0_78] : memref<1x256xf32, #tpu.memory_space<vmem>>, vector<1x256xf32>
    %90 = vector.broadcast %89 : vector<1x256xf32> to vector<64x256xf32>
    %91 = arith.addf %88, %90 : vector<64x256xf32>
    %c0_79 = arith.constant 0 : index
    %c0_80 = arith.constant 0 : index
    %92 = vector.load %arg9[%c0_79, %c0_80] : memref<64x256xbf16, #tpu.memory_space<vmem>>, vector<64x256xbf16>
    %cst_81 = arith.constant dense<0.000000e+00> : vector<64x256xf32>
    %93 = tpu.matmul %1, %92, %cst_81 {dimension_numbers = #tpu.dot_dimension_numbers<[1], [0], [0], [1], [0, 0, 1, 1], [], []>} : vector<64x64xbf16>, vector<64x256xbf16>, vector<64x256xf32> -> vector<64x256xf32>
    %c0_82 = arith.constant 0 : index
    %c0_83 = arith.constant 0 : index
    %94 = vector.load %arg10[%c0_82, %c0_83] : memref<1x256xf32, #tpu.memory_space<vmem>>, vector<1x256xf32>
    %95 = vector.broadcast %94 : vector<1x256xf32> to vector<64x256xf32>
    %96 = arith.addf %93, %95 : vector<64x256xf32>
    %97 = arith.addf %91, %96 : vector<64x256xf32>
    %cst_84 = arith.constant 0.000000e+00 : f32
    %98 = vector.broadcast %cst_84 : f32 to vector<64x256xf32>
    %99 = arith.maximumf %97, %98 : vector<64x256xf32>
    %100 = arith.truncf %99 : vector<64x256xf32> to vector<64x256xbf16>
    %c0_85 = arith.constant 0 : index
    %c0_86 = arith.constant 0 : index
    %c0_87 = arith.constant 0 : index
    %101 = vector.load %arg11[%c0_85, %c0_86, %c0_87] : memref<1x64x256xbf16, #tpu.memory_space<vmem>>, vector<1x64x256xbf16>
    %102 = vector.shape_cast %101 : vector<1x64x256xbf16> to vector<64x256xbf16>
    %103 = vector.shape_cast %100 : vector<64x256xbf16> to vector<1x64x256xbf16>
    tpu.vector_store %arg11[%c0_85, %c0_86, %c0_87], %103 {strides = array<i32>} : memref<1x64x256xbf16, #tpu.memory_space<vmem>>, vector<1x64x256xbf16>,
    return
  }
  func.func @transform_0(%arg0: i32) -> (i32, i32, i32) {
    %c0_i32 = arith.constant 0 : i32
    %c0_i32_0 = arith.constant 0 : i32
    %c0_i32_1 = arith.constant 0 : i32
    return %arg0, %c0_i32, %c0_i32_0 : i32, i32, i32
  }
  func.func @transform_1(%arg0: i32) -> (i32, i32, i32) {
    %c0_i32 = arith.constant 0 : i32
    %c0_i32_0 = arith.constant 0 : i32
    %c0_i32_1 = arith.constant 0 : i32
    %c0_i32_2 = arith.constant 0 : i32
    return %c0_i32, %c0_i32_0, %c0_i32_1 : i32, i32, i32
  }
  func.func @transform_2(%arg0: i32) -> (i32, i32) {
    %c0_i32 = arith.constant 0 : i32
    %c0_i32_0 = arith.constant 0 : i32
    %c0_i32_1 = arith.constant 0 : i32
    return %c0_i32, %c0_i32_0 : i32, i32
  }
  func.func @transform_3(%arg0: i32) -> (i32, i32) {
    %c0_i32 = arith.constant 0 : i32
    %c0_i32_0 = arith.constant 0 : i32
    %c0_i32_1 = arith.constant 0 : i32
    return %c0_i32, %c0_i32_0 : i32, i32
  }
  func.func @transform_4(%arg0: i32) -> (i32, i32, i32) {
    %c0_i32 = arith.constant 0 : i32
    %c0_i32_0 = arith.constant 0 : i32
    %c0_i32_1 = arith.constant 0 : i32
    %c0_i32_2 = arith.constant 0 : i32
    return %c0_i32, %c0_i32_0, %c0_i32_1 : i32, i32, i32
  }
  func.func @transform_5(%arg0: i32) -> (i32, i32) {
    %c0_i32 = arith.constant 0 : i32
    %c0_i32_0 = arith.constant 0 : i32
    %c0_i32_1 = arith.constant 0 : i32
    return %c0_i32, %c0_i32_0 : i32, i32
  }
  func.func @transform_6(%arg0: i32) -> (i32, i32) {
    %c0_i32 = arith.constant 0 : i32
    %c0_i32_0 = arith.constant 0 : i32
    %c0_i32_1 = arith.constant 0 : i32
    return %c0_i32, %c0_i32_0 : i32, i32
  }
  func.func @transform_7(%arg0: i32) -> (i32, i32) {
    %c0_i32 = arith.constant 0 : i32
    %c0_i32_0 = arith.constant 0 : i32
    %c0_i32_1 = arith.constant 0 : i32
    return %c0_i32, %c0_i32_0 : i32, i32
  }
  func.func @transform_8(%arg0: i32) -> (i32, i32) {
    %c0_i32 = arith.constant 0 : i32
    %c0_i32_0 = arith.constant 0 : i32
    %c0_i32_1 = arith.constant 0 : i32
    return %c0_i32, %c0_i32_0 : i32, i32
  }
  func.func @transform_9(%arg0: i32) -> (i32, i32) {
    %c0_i32 = arith.constant 0 : i32
    %c0_i32_0 = arith.constant 0 : i32
    %c0_i32_1 = arith.constant 0 : i32
    return %c0_i32, %c0_i32_0 : i32, i32
  }
  func.func @transform_10(%arg0: i32) -> (i32, i32, i32) {
    %c0_i32 = arith.constant 0 : i32
    %c0_i32_0 = arith.constant 0 : i32
    %c0_i32_1 = arith.constant 0 : i32
    return %arg0, %c0_i32, %c0_i32_0 : i32, i32, i32
  }
}

module attributes {stable_mosaic.version = 11 : i64} {
  func.func @_bottleneck_kernel(%arg0: i32, %arg1: memref<1x64x256xbf16, #tpu.memory_space<vmem>>, %arg2: memref<9x16x64xbf16, #tpu.memory_space<vmem>>, %arg3: memref<256x128xbf16, #tpu.memory_space<vmem>>, %arg4: memref<1x128xf32, #tpu.memory_space<vmem>>, %arg5: memref<9x128x128xbf16, #tpu.memory_space<vmem>>, %arg6: memref<1x128xf32, #tpu.memory_space<vmem>>, %arg7: memref<128x512xbf16, #tpu.memory_space<vmem>>, %arg8: memref<1x512xf32, #tpu.memory_space<vmem>>, %arg9: memref<256x512xbf16, #tpu.memory_space<vmem>>, %arg10: memref<1x512xf32, #tpu.memory_space<vmem>>, %arg11: memref<1x16x512xbf16, #tpu.memory_space<vmem>>) attributes {dimension_semantics = [#tpu.dimension_semantics<parallel>], iteration_bounds = array<i64: 2>, scalar_prefetch = 0 : i64, scratch_operands = 0 : i64, tpu.core_type = #tpu.core_type<tc>, window_params = [{transform_indices = @transform_0, window_bounds = array<i64: 1, 64, 256>}, {pipeline_mode = #tpu.pipeline_mode<synchronous>, transform_indices = @transform_1, window_bounds = array<i64: 9, 16, 64>}, {pipeline_mode = #tpu.pipeline_mode<synchronous>, transform_indices = @transform_2, window_bounds = array<i64: 256, 128>}, {pipeline_mode = #tpu.pipeline_mode<synchronous>, transform_indices = @transform_3, window_bounds = array<i64: 1, 128>}, {pipeline_mode = #tpu.pipeline_mode<synchronous>, transform_indices = @transform_4, window_bounds = array<i64: 9, 128, 128>}, {pipeline_mode = #tpu.pipeline_mode<synchronous>, transform_indices = @transform_5, window_bounds = array<i64: 1, 128>}, {pipeline_mode = #tpu.pipeline_mode<synchronous>, transform_indices = @transform_6, window_bounds = array<i64: 128, 512>}, {pipeline_mode = #tpu.pipeline_mode<synchronous>, transform_indices = @transform_7, window_bounds = array<i64: 1, 512>}, {pipeline_mode = #tpu.pipeline_mode<synchronous>, transform_indices = @transform_8, window_bounds = array<i64: 256, 512>}, {pipeline_mode = #tpu.pipeline_mode<synchronous>, transform_indices = @transform_9, window_bounds = array<i64: 1, 512>}, {transform_indices = @transform_10, window_bounds = array<i64: 1, 16, 512>}]} {
    %c0 = arith.constant 0 : index
    %c0_0 = arith.constant 0 : index
    %c0_1 = arith.constant 0 : index
    %0 = vector.load %arg1[%c0, %c0_0, %c0_1] : memref<1x64x256xbf16, #tpu.memory_space<vmem>>, vector<1x64x256xbf16>
    %1 = vector.shape_cast %0 : vector<1x64x256xbf16> to vector<64x256xbf16>
    %c0_2 = arith.constant 0 : index
    %c0_3 = arith.constant 0 : index
    %2 = vector.load %arg3[%c0_2, %c0_3] : memref<256x128xbf16, #tpu.memory_space<vmem>>, vector<256x128xbf16>
    %cst = arith.constant dense<0.000000e+00> : vector<64x128xf32>
    %3 = tpu.matmul %1, %2, %cst {dimension_numbers = #tpu.dot_dimension_numbers<[1], [0], [0], [1], [0, 0, 1, 1], [], []>} : vector<64x256xbf16>, vector<256x128xbf16>, vector<64x128xf32> -> vector<64x128xf32>
    %c0_4 = arith.constant 0 : index
    %c0_5 = arith.constant 0 : index
    %4 = vector.load %arg4[%c0_4, %c0_5] : memref<1x128xf32, #tpu.memory_space<vmem>>, vector<1x128xf32>
    %5 = vector.broadcast %4 : vector<1x128xf32> to vector<64x128xf32>
    %6 = arith.addf %3, %5 : vector<64x128xf32>
    %cst_6 = arith.constant 0.000000e+00 : f32
    %7 = vector.broadcast %cst_6 : f32 to vector<64x128xf32>
    %8 = arith.maximumf %6, %7 : vector<64x128xf32>
    %9 = arith.truncf %8 : vector<64x128xf32> to vector<64x128xbf16>
    %c0_7 = arith.constant 0 : index
    %c0_8 = arith.constant 0 : index
    %c0_9 = arith.constant 0 : index
    %10 = vector.load %arg2[%c0_7, %c0_8, %c0_9] : memref<9x16x64xbf16, #tpu.memory_space<vmem>>, vector<1x16x64xbf16>
    %11 = vector.shape_cast %10 : vector<1x16x64xbf16> to vector<16x64xbf16>
    %cst_10 = arith.constant dense<0.000000e+00> : vector<16x128xf32>
    %12 = tpu.matmul %11, %9, %cst_10 {dimension_numbers = #tpu.dot_dimension_numbers<[1], [0], [0], [1], [0, 0, 1, 1], [], []>} : vector<16x64xbf16>, vector<64x128xbf16>, vector<16x128xf32> -> vector<16x128xf32>
    %13 = arith.truncf %12 : vector<16x128xf32> to vector<16x128xbf16>
    %c0_11 = arith.constant 0 : index
    %c0_12 = arith.constant 0 : index
    %c0_13 = arith.constant 0 : index
    %14 = vector.load %arg5[%c0_11, %c0_12, %c0_13] : memref<9x128x128xbf16, #tpu.memory_space<vmem>>, vector<1x128x128xbf16>
    %15 = vector.shape_cast %14 : vector<1x128x128xbf16> to vector<128x128xbf16>
    %cst_14 = arith.constant dense<0.000000e+00> : vector<16x128xf32>
    %16 = tpu.matmul %13, %15, %cst_14 {dimension_numbers = #tpu.dot_dimension_numbers<[1], [0], [0], [1], [0, 0, 1, 1], [], []>} : vector<16x128xbf16>, vector<128x128xbf16>, vector<16x128xf32> -> vector<16x128xf32>
    %c1 = arith.constant 1 : index
    %c0_15 = arith.constant 0 : index
    %c0_16 = arith.constant 0 : index
    %17 = vector.load %arg2[%c1, %c0_15, %c0_16] : memref<9x16x64xbf16, #tpu.memory_space<vmem>>, vector<1x16x64xbf16>
    %18 = vector.shape_cast %17 : vector<1x16x64xbf16> to vector<16x64xbf16>
    %cst_17 = arith.constant dense<0.000000e+00> : vector<16x128xf32>
    %19 = tpu.matmul %18, %9, %cst_17 {dimension_numbers = #tpu.dot_dimension_numbers<[1], [0], [0], [1], [0, 0, 1, 1], [], []>} : vector<16x64xbf16>, vector<64x128xbf16>, vector<16x128xf32> -> vector<16x128xf32>
    %20 = arith.truncf %19 : vector<16x128xf32> to vector<16x128xbf16>
    %c1_18 = arith.constant 1 : index
    %c0_19 = arith.constant 0 : index
    %c0_20 = arith.constant 0 : index
    %21 = vector.load %arg5[%c1_18, %c0_19, %c0_20] : memref<9x128x128xbf16, #tpu.memory_space<vmem>>, vector<1x128x128xbf16>
    %22 = vector.shape_cast %21 : vector<1x128x128xbf16> to vector<128x128xbf16>
    %cst_21 = arith.constant dense<0.000000e+00> : vector<16x128xf32>
    %23 = tpu.matmul %20, %22, %cst_21 {dimension_numbers = #tpu.dot_dimension_numbers<[1], [0], [0], [1], [0, 0, 1, 1], [], []>} : vector<16x128xbf16>, vector<128x128xbf16>, vector<16x128xf32> -> vector<16x128xf32>
    %24 = arith.addf %16, %23 : vector<16x128xf32>
    %c2 = arith.constant 2 : index
    %c0_22 = arith.constant 0 : index
    %c0_23 = arith.constant 0 : index
    %25 = vector.load %arg2[%c2, %c0_22, %c0_23] : memref<9x16x64xbf16, #tpu.memory_space<vmem>>, vector<1x16x64xbf16>
    %26 = vector.shape_cast %25 : vector<1x16x64xbf16> to vector<16x64xbf16>
    %cst_24 = arith.constant dense<0.000000e+00> : vector<16x128xf32>
    %27 = tpu.matmul %26, %9, %cst_24 {dimension_numbers = #tpu.dot_dimension_numbers<[1], [0], [0], [1], [0, 0, 1, 1], [], []>} : vector<16x64xbf16>, vector<64x128xbf16>, vector<16x128xf32> -> vector<16x128xf32>
    %28 = arith.truncf %27 : vector<16x128xf32> to vector<16x128xbf16>
    %c2_25 = arith.constant 2 : index
    %c0_26 = arith.constant 0 : index
    %c0_27 = arith.constant 0 : index
    %29 = vector.load %arg5[%c2_25, %c0_26, %c0_27] : memref<9x128x128xbf16, #tpu.memory_space<vmem>>, vector<1x128x128xbf16>
    %30 = vector.shape_cast %29 : vector<1x128x128xbf16> to vector<128x128xbf16>
    %cst_28 = arith.constant dense<0.000000e+00> : vector<16x128xf32>
    %31 = tpu.matmul %28, %30, %cst_28 {dimension_numbers = #tpu.dot_dimension_numbers<[1], [0], [0], [1], [0, 0, 1, 1], [], []>} : vector<16x128xbf16>, vector<128x128xbf16>, vector<16x128xf32> -> vector<16x128xf32>
    %32 = arith.addf %24, %31 : vector<16x128xf32>
    %c3 = arith.constant 3 : index
    %c0_29 = arith.constant 0 : index
    %c0_30 = arith.constant 0 : index
    %33 = vector.load %arg2[%c3, %c0_29, %c0_30] : memref<9x16x64xbf16, #tpu.memory_space<vmem>>, vector<1x16x64xbf16>
    %34 = vector.shape_cast %33 : vector<1x16x64xbf16> to vector<16x64xbf16>
    %cst_31 = arith.constant dense<0.000000e+00> : vector<16x128xf32>
    %35 = tpu.matmul %34, %9, %cst_31 {dimension_numbers = #tpu.dot_dimension_numbers<[1], [0], [0], [1], [0, 0, 1, 1], [], []>} : vector<16x64xbf16>, vector<64x128xbf16>, vector<16x128xf32> -> vector<16x128xf32>
    %36 = arith.truncf %35 : vector<16x128xf32> to vector<16x128xbf16>
    %c3_32 = arith.constant 3 : index
    %c0_33 = arith.constant 0 : index
    %c0_34 = arith.constant 0 : index
    %37 = vector.load %arg5[%c3_32, %c0_33, %c0_34] : memref<9x128x128xbf16, #tpu.memory_space<vmem>>, vector<1x128x128xbf16>
    %38 = vector.shape_cast %37 : vector<1x128x128xbf16> to vector<128x128xbf16>
    %cst_35 = arith.constant dense<0.000000e+00> : vector<16x128xf32>
    %39 = tpu.matmul %36, %38, %cst_35 {dimension_numbers = #tpu.dot_dimension_numbers<[1], [0], [0], [1], [0, 0, 1, 1], [], []>} : vector<16x128xbf16>, vector<128x128xbf16>, vector<16x128xf32> -> vector<16x128xf32>
    %40 = arith.addf %32, %39 : vector<16x128xf32>
    %c4 = arith.constant 4 : index
    %c0_36 = arith.constant 0 : index
    %c0_37 = arith.constant 0 : index
    %41 = vector.load %arg2[%c4, %c0_36, %c0_37] : memref<9x16x64xbf16, #tpu.memory_space<vmem>>, vector<1x16x64xbf16>
    %42 = vector.shape_cast %41 : vector<1x16x64xbf16> to vector<16x64xbf16>
    %cst_38 = arith.constant dense<0.000000e+00> : vector<16x128xf32>
    %43 = tpu.matmul %42, %9, %cst_38 {dimension_numbers = #tpu.dot_dimension_numbers<[1], [0], [0], [1], [0, 0, 1, 1], [], []>} : vector<16x64xbf16>, vector<64x128xbf16>, vector<16x128xf32> -> vector<16x128xf32>
    %44 = arith.truncf %43 : vector<16x128xf32> to vector<16x128xbf16>
    %c4_39 = arith.constant 4 : index
    %c0_40 = arith.constant 0 : index
    %c0_41 = arith.constant 0 : index
    %45 = vector.load %arg5[%c4_39, %c0_40, %c0_41] : memref<9x128x128xbf16, #tpu.memory_space<vmem>>, vector<1x128x128xbf16>
    %46 = vector.shape_cast %45 : vector<1x128x128xbf16> to vector<128x128xbf16>
    %cst_42 = arith.constant dense<0.000000e+00> : vector<16x128xf32>
    %47 = tpu.matmul %44, %46, %cst_42 {dimension_numbers = #tpu.dot_dimension_numbers<[1], [0], [0], [1], [0, 0, 1, 1], [], []>} : vector<16x128xbf16>, vector<128x128xbf16>, vector<16x128xf32> -> vector<16x128xf32>
    %48 = arith.addf %40, %47 : vector<16x128xf32>
    %c5 = arith.constant 5 : index
    %c0_43 = arith.constant 0 : index
    %c0_44 = arith.constant 0 : index
    %49 = vector.load %arg2[%c5, %c0_43, %c0_44] : memref<9x16x64xbf16, #tpu.memory_space<vmem>>, vector<1x16x64xbf16>
    %50 = vector.shape_cast %49 : vector<1x16x64xbf16> to vector<16x64xbf16>
    %cst_45 = arith.constant dense<0.000000e+00> : vector<16x128xf32>
    %51 = tpu.matmul %50, %9, %cst_45 {dimension_numbers = #tpu.dot_dimension_numbers<[1], [0], [0], [1], [0, 0, 1, 1], [], []>} : vector<16x64xbf16>, vector<64x128xbf16>, vector<16x128xf32> -> vector<16x128xf32>
    %52 = arith.truncf %51 : vector<16x128xf32> to vector<16x128xbf16>
    %c5_46 = arith.constant 5 : index
    %c0_47 = arith.constant 0 : index
    %c0_48 = arith.constant 0 : index
    %53 = vector.load %arg5[%c5_46, %c0_47, %c0_48] : memref<9x128x128xbf16, #tpu.memory_space<vmem>>, vector<1x128x128xbf16>
    %54 = vector.shape_cast %53 : vector<1x128x128xbf16> to vector<128x128xbf16>
    %cst_49 = arith.constant dense<0.000000e+00> : vector<16x128xf32>
    %55 = tpu.matmul %52, %54, %cst_49 {dimension_numbers = #tpu.dot_dimension_numbers<[1], [0], [0], [1], [0, 0, 1, 1], [], []>} : vector<16x128xbf16>, vector<128x128xbf16>, vector<16x128xf32> -> vector<16x128xf32>
    %56 = arith.addf %48, %55 : vector<16x128xf32>
    %c6 = arith.constant 6 : index
    %c0_50 = arith.constant 0 : index
    %c0_51 = arith.constant 0 : index
    %57 = vector.load %arg2[%c6, %c0_50, %c0_51] : memref<9x16x64xbf16, #tpu.memory_space<vmem>>, vector<1x16x64xbf16>
    %58 = vector.shape_cast %57 : vector<1x16x64xbf16> to vector<16x64xbf16>
    %cst_52 = arith.constant dense<0.000000e+00> : vector<16x128xf32>
    %59 = tpu.matmul %58, %9, %cst_52 {dimension_numbers = #tpu.dot_dimension_numbers<[1], [0], [0], [1], [0, 0, 1, 1], [], []>} : vector<16x64xbf16>, vector<64x128xbf16>, vector<16x128xf32> -> vector<16x128xf32>
    %60 = arith.truncf %59 : vector<16x128xf32> to vector<16x128xbf16>
    %c6_53 = arith.constant 6 : index
    %c0_54 = arith.constant 0 : index
    %c0_55 = arith.constant 0 : index
    %61 = vector.load %arg5[%c6_53, %c0_54, %c0_55] : memref<9x128x128xbf16, #tpu.memory_space<vmem>>, vector<1x128x128xbf16>
    %62 = vector.shape_cast %61 : vector<1x128x128xbf16> to vector<128x128xbf16>
    %cst_56 = arith.constant dense<0.000000e+00> : vector<16x128xf32>
    %63 = tpu.matmul %60, %62, %cst_56 {dimension_numbers = #tpu.dot_dimension_numbers<[1], [0], [0], [1], [0, 0, 1, 1], [], []>} : vector<16x128xbf16>, vector<128x128xbf16>, vector<16x128xf32> -> vector<16x128xf32>
    %64 = arith.addf %56, %63 : vector<16x128xf32>
    %c7 = arith.constant 7 : index
    %c0_57 = arith.constant 0 : index
    %c0_58 = arith.constant 0 : index
    %65 = vector.load %arg2[%c7, %c0_57, %c0_58] : memref<9x16x64xbf16, #tpu.memory_space<vmem>>, vector<1x16x64xbf16>
    %66 = vector.shape_cast %65 : vector<1x16x64xbf16> to vector<16x64xbf16>
    %cst_59 = arith.constant dense<0.000000e+00> : vector<16x128xf32>
    %67 = tpu.matmul %66, %9, %cst_59 {dimension_numbers = #tpu.dot_dimension_numbers<[1], [0], [0], [1], [0, 0, 1, 1], [], []>} : vector<16x64xbf16>, vector<64x128xbf16>, vector<16x128xf32> -> vector<16x128xf32>
    %68 = arith.truncf %67 : vector<16x128xf32> to vector<16x128xbf16>
    %c7_60 = arith.constant 7 : index
    %c0_61 = arith.constant 0 : index
    %c0_62 = arith.constant 0 : index
    %69 = vector.load %arg5[%c7_60, %c0_61, %c0_62] : memref<9x128x128xbf16, #tpu.memory_space<vmem>>, vector<1x128x128xbf16>
    %70 = vector.shape_cast %69 : vector<1x128x128xbf16> to vector<128x128xbf16>
    %cst_63 = arith.constant dense<0.000000e+00> : vector<16x128xf32>
    %71 = tpu.matmul %68, %70, %cst_63 {dimension_numbers = #tpu.dot_dimension_numbers<[1], [0], [0], [1], [0, 0, 1, 1], [], []>} : vector<16x128xbf16>, vector<128x128xbf16>, vector<16x128xf32> -> vector<16x128xf32>
    %72 = arith.addf %64, %71 : vector<16x128xf32>
    %c8 = arith.constant 8 : index
    %c0_64 = arith.constant 0 : index
    %c0_65 = arith.constant 0 : index
    %73 = vector.load %arg2[%c8, %c0_64, %c0_65] : memref<9x16x64xbf16, #tpu.memory_space<vmem>>, vector<1x16x64xbf16>
    %74 = vector.shape_cast %73 : vector<1x16x64xbf16> to vector<16x64xbf16>
    %cst_66 = arith.constant dense<0.000000e+00> : vector<16x128xf32>
    %75 = tpu.matmul %74, %9, %cst_66 {dimension_numbers = #tpu.dot_dimension_numbers<[1], [0], [0], [1], [0, 0, 1, 1], [], []>} : vector<16x64xbf16>, vector<64x128xbf16>, vector<16x128xf32> -> vector<16x128xf32>
    %76 = arith.truncf %75 : vector<16x128xf32> to vector<16x128xbf16>
    %c8_67 = arith.constant 8 : index
    %c0_68 = arith.constant 0 : index
    %c0_69 = arith.constant 0 : index
    %77 = vector.load %arg5[%c8_67, %c0_68, %c0_69] : memref<9x128x128xbf16, #tpu.memory_space<vmem>>, vector<1x128x128xbf16>
    %78 = vector.shape_cast %77 : vector<1x128x128xbf16> to vector<128x128xbf16>
    %cst_70 = arith.constant dense<0.000000e+00> : vector<16x128xf32>
    %79 = tpu.matmul %76, %78, %cst_70 {dimension_numbers = #tpu.dot_dimension_numbers<[1], [0], [0], [1], [0, 0, 1, 1], [], []>} : vector<16x128xbf16>, vector<128x128xbf16>, vector<16x128xf32> -> vector<16x128xf32>
    %80 = arith.addf %72, %79 : vector<16x128xf32>
    %c0_71 = arith.constant 0 : index
    %c0_72 = arith.constant 0 : index
    %81 = vector.load %arg6[%c0_71, %c0_72] : memref<1x128xf32, #tpu.memory_space<vmem>>, vector<1x128xf32>
    %82 = vector.broadcast %81 : vector<1x128xf32> to vector<16x128xf32>
    %83 = arith.addf %80, %82 : vector<16x128xf32>
    %cst_73 = arith.constant 0.000000e+00 : f32
    %84 = vector.broadcast %cst_73 : f32 to vector<16x128xf32>
    %85 = arith.maximumf %83, %84 : vector<16x128xf32>
    %86 = arith.truncf %85 : vector<16x128xf32> to vector<16x128xbf16>
    %c0_74 = arith.constant 0 : index
    %c0_75 = arith.constant 0 : index
    %87 = vector.load %arg7[%c0_74, %c0_75] : memref<128x512xbf16, #tpu.memory_space<vmem>>, vector<128x512xbf16>
    %cst_76 = arith.constant dense<0.000000e+00> : vector<16x512xf32>
    %88 = tpu.matmul %86, %87, %cst_76 {dimension_numbers = #tpu.dot_dimension_numbers<[1], [0], [0], [1], [0, 0, 1, 1], [], []>} : vector<16x128xbf16>, vector<128x512xbf16>, vector<16x512xf32> -> vector<16x512xf32>
    %c0_77 = arith.constant 0 : index
    %c0_78 = arith.constant 0 : index
    %89 = vector.load %arg8[%c0_77, %c0_78] : memref<1x512xf32, #tpu.memory_space<vmem>>, vector<1x512xf32>
    %90 = vector.broadcast %89 : vector<1x512xf32> to vector<16x512xf32>
    %91 = arith.addf %88, %90 : vector<16x512xf32>
    %c4_79 = arith.constant 4 : index
    %c0_80 = arith.constant 0 : index
    %c0_81 = arith.constant 0 : index
    %92 = vector.load %arg2[%c4_79, %c0_80, %c0_81] : memref<9x16x64xbf16, #tpu.memory_space<vmem>>, vector<1x16x64xbf16>
    %93 = vector.shape_cast %92 : vector<1x16x64xbf16> to vector<16x64xbf16>
    %cst_82 = arith.constant dense<0.000000e+00> : vector<16x256xf32>
    %94 = tpu.matmul %93, %1, %cst_82 {dimension_numbers = #tpu.dot_dimension_numbers<[1], [0], [0], [1], [0, 0, 1, 1], [], []>} : vector<16x64xbf16>, vector<64x256xbf16>, vector<16x256xf32> -> vector<16x256xf32>
    %95 = arith.truncf %94 : vector<16x256xf32> to vector<16x256xbf16>
    %c0_83 = arith.constant 0 : index
    %c0_84 = arith.constant 0 : index
    %96 = vector.load %arg9[%c0_83, %c0_84] : memref<256x512xbf16, #tpu.memory_space<vmem>>, vector<256x512xbf16>
    %cst_85 = arith.constant dense<0.000000e+00> : vector<16x512xf32>
    %97 = tpu.matmul %95, %96, %cst_85 {dimension_numbers = #tpu.dot_dimension_numbers<[1], [0], [0], [1], [0, 0, 1, 1], [], []>} : vector<16x256xbf16>, vector<256x512xbf16>, vector<16x512xf32> -> vector<16x512xf32>
    %c0_86 = arith.constant 0 : index
    %c0_87 = arith.constant 0 : index
    %98 = vector.load %arg10[%c0_86, %c0_87] : memref<1x512xf32, #tpu.memory_space<vmem>>, vector<1x512xf32>
    %99 = vector.broadcast %98 : vector<1x512xf32> to vector<16x512xf32>
    %100 = arith.addf %97, %99 : vector<16x512xf32>
    %101 = arith.addf %91, %100 : vector<16x512xf32>
    %cst_88 = arith.constant 0.000000e+00 : f32
    %102 = vector.broadcast %cst_88 : f32 to vector<16x512xf32>
    %103 = arith.maximumf %101, %102 : vector<16x512xf32>
    %104 = arith.truncf %103 : vector<16x512xf32> to vector<16x512xbf16>
    %c0_89 = arith.constant 0 : index
    %c0_90 = arith.constant 0 : index
    %c0_91 = arith.constant 0 : index
    %105 = vector.load %arg11[%c0_89, %c0_90, %c0_91] : memref<1x16x512xbf16, #tpu.memory_space<vmem>>, vector<1x16x512xbf16>
    %106 = vector.shape_cast %105 : vector<1x16x512xbf16> to vector<16x512xbf16>
    %107 = vector.shape_cast %104 : vector<16x512xbf16> to vector<1x16x512xbf16>
    tpu.vector_store %arg11[%c0_89, %c0_90, %c0_91], %107 {strides = array<i32>} : memref<1x16x512xbf16, #tpu.memory_space<vmem>>, vector<1x16x512xbf16>,
    return
  }
  func.func @transform_0(%arg0: i32) -> (i32, i32, i32) {
    %c0_i32 = arith.constant 0 : i32
    %c0_i32_0 = arith.constant 0 : i32
    %c0_i32_1 = arith.constant 0 : i32
    return %arg0, %c0_i32, %c0_i32_0 : i32, i32, i32
  }
  func.func @transform_1(%arg0: i32) -> (i32, i32, i32) {
    %c0_i32 = arith.constant 0 : i32
    %c0_i32_0 = arith.constant 0 : i32
    %c0_i32_1 = arith.constant 0 : i32
    %c0_i32_2 = arith.constant 0 : i32
    return %c0_i32, %c0_i32_0, %c0_i32_1 : i32, i32, i32
  }
  func.func @transform_2(%arg0: i32) -> (i32, i32) {
    %c0_i32 = arith.constant 0 : i32
    %c0_i32_0 = arith.constant 0 : i32
    %c0_i32_1 = arith.constant 0 : i32
    return %c0_i32, %c0_i32_0 : i32, i32
  }
  func.func @transform_3(%arg0: i32) -> (i32, i32) {
    %c0_i32 = arith.constant 0 : i32
    %c0_i32_0 = arith.constant 0 : i32
    %c0_i32_1 = arith.constant 0 : i32
    return %c0_i32, %c0_i32_0 : i32, i32
  }
  func.func @transform_4(%arg0: i32) -> (i32, i32, i32) {
    %c0_i32 = arith.constant 0 : i32
    %c0_i32_0 = arith.constant 0 : i32
    %c0_i32_1 = arith.constant 0 : i32
    %c0_i32_2 = arith.constant 0 : i32
    return %c0_i32, %c0_i32_0, %c0_i32_1 : i32, i32, i32
  }
  func.func @transform_5(%arg0: i32) -> (i32, i32) {
    %c0_i32 = arith.constant 0 : i32
    %c0_i32_0 = arith.constant 0 : i32
    %c0_i32_1 = arith.constant 0 : i32
    return %c0_i32, %c0_i32_0 : i32, i32
  }
  func.func @transform_6(%arg0: i32) -> (i32, i32) {
    %c0_i32 = arith.constant 0 : i32
    %c0_i32_0 = arith.constant 0 : i32
    %c0_i32_1 = arith.constant 0 : i32
    return %c0_i32, %c0_i32_0 : i32, i32
  }
  func.func @transform_7(%arg0: i32) -> (i32, i32) {
    %c0_i32 = arith.constant 0 : i32
    %c0_i32_0 = arith.constant 0 : i32
    %c0_i32_1 = arith.constant 0 : i32
    return %c0_i32, %c0_i32_0 : i32, i32
  }
  func.func @transform_8(%arg0: i32) -> (i32, i32) {
    %c0_i32 = arith.constant 0 : i32
    %c0_i32_0 = arith.constant 0 : i32
    %c0_i32_1 = arith.constant 0 : i32
    return %c0_i32, %c0_i32_0 : i32, i32
  }
  func.func @transform_9(%arg0: i32) -> (i32, i32) {
    %c0_i32 = arith.constant 0 : i32
    %c0_i32_0 = arith.constant 0 : i32
    %c0_i32_1 = arith.constant 0 : i32
    return %c0_i32, %c0_i32_0 : i32, i32
  }
  func.func @transform_10(%arg0: i32) -> (i32, i32, i32) {
    %c0_i32 = arith.constant 0 : i32
    %c0_i32_0 = arith.constant 0 : i32
    %c0_i32_1 = arith.constant 0 : i32
    return %arg0, %c0_i32, %c0_i32_0 : i32, i32, i32
  }
}

module attributes {stable_mosaic.version = 11 : i64} {
  func.func @_bottleneck_kernel(%arg0: i32, %arg1: memref<1x16x512xbf16, #tpu.memory_space<vmem>>, %arg2: memref<9x16x16xbf16, #tpu.memory_space<vmem>>, %arg3: memref<512x128xbf16, #tpu.memory_space<vmem>>, %arg4: memref<1x128xf32, #tpu.memory_space<vmem>>, %arg5: memref<9x128x128xbf16, #tpu.memory_space<vmem>>, %arg6: memref<1x128xf32, #tpu.memory_space<vmem>>, %arg7: memref<128x512xbf16, #tpu.memory_space<vmem>>, %arg8: memref<1x512xf32, #tpu.memory_space<vmem>>, %arg9: memref<1x16x512xbf16, #tpu.memory_space<vmem>>) attributes {dimension_semantics = [#tpu.dimension_semantics<parallel>], iteration_bounds = array<i64: 2>, scalar_prefetch = 0 : i64, scratch_operands = 0 : i64, tpu.core_type = #tpu.core_type<tc>, window_params = [{transform_indices = @transform_0, window_bounds = array<i64: 1, 16, 512>}, {pipeline_mode = #tpu.pipeline_mode<synchronous>, transform_indices = @transform_1, window_bounds = array<i64: 9, 16, 16>}, {pipeline_mode = #tpu.pipeline_mode<synchronous>, transform_indices = @transform_2, window_bounds = array<i64: 512, 128>}, {pipeline_mode = #tpu.pipeline_mode<synchronous>, transform_indices = @transform_3, window_bounds = array<i64: 1, 128>}, {pipeline_mode = #tpu.pipeline_mode<synchronous>, transform_indices = @transform_4, window_bounds = array<i64: 9, 128, 128>}, {pipeline_mode = #tpu.pipeline_mode<synchronous>, transform_indices = @transform_5, window_bounds = array<i64: 1, 128>}, {pipeline_mode = #tpu.pipeline_mode<synchronous>, transform_indices = @transform_6, window_bounds = array<i64: 128, 512>}, {pipeline_mode = #tpu.pipeline_mode<synchronous>, transform_indices = @transform_7, window_bounds = array<i64: 1, 512>}, {transform_indices = @transform_8, window_bounds = array<i64: 1, 16, 512>}]} {
    %c0 = arith.constant 0 : index
    %c0_0 = arith.constant 0 : index
    %c0_1 = arith.constant 0 : index
    %0 = vector.load %arg1[%c0, %c0_0, %c0_1] : memref<1x16x512xbf16, #tpu.memory_space<vmem>>, vector<1x16x512xbf16>
    %1 = vector.shape_cast %0 : vector<1x16x512xbf16> to vector<16x512xbf16>
    %c0_2 = arith.constant 0 : index
    %c0_3 = arith.constant 0 : index
    %2 = vector.load %arg3[%c0_2, %c0_3] : memref<512x128xbf16, #tpu.memory_space<vmem>>, vector<512x128xbf16>
    %cst = arith.constant dense<0.000000e+00> : vector<16x128xf32>
    %3 = tpu.matmul %1, %2, %cst {dimension_numbers = #tpu.dot_dimension_numbers<[1], [0], [0], [1], [0, 0, 1, 1], [], []>} : vector<16x512xbf16>, vector<512x128xbf16>, vector<16x128xf32> -> vector<16x128xf32>
    %c0_4 = arith.constant 0 : index
    %c0_5 = arith.constant 0 : index
    %4 = vector.load %arg4[%c0_4, %c0_5] : memref<1x128xf32, #tpu.memory_space<vmem>>, vector<1x128xf32>
    %5 = vector.broadcast %4 : vector<1x128xf32> to vector<16x128xf32>
    %6 = arith.addf %3, %5 : vector<16x128xf32>
    %cst_6 = arith.constant 0.000000e+00 : f32
    %7 = vector.broadcast %cst_6 : f32 to vector<16x128xf32>
    %8 = arith.maximumf %6, %7 : vector<16x128xf32>
    %9 = arith.truncf %8 : vector<16x128xf32> to vector<16x128xbf16>
    %c0_7 = arith.constant 0 : index
    %c0_8 = arith.constant 0 : index
    %c0_9 = arith.constant 0 : index
    %10 = vector.load %arg2[%c0_7, %c0_8, %c0_9] : memref<9x16x16xbf16, #tpu.memory_space<vmem>>, vector<1x16x16xbf16>
    %11 = vector.shape_cast %10 : vector<1x16x16xbf16> to vector<16x16xbf16>
    %cst_10 = arith.constant dense<0.000000e+00> : vector<16x128xf32>
    %12 = tpu.matmul %11, %9, %cst_10 {dimension_numbers = #tpu.dot_dimension_numbers<[1], [0], [0], [1], [0, 0, 1, 1], [], []>} : vector<16x16xbf16>, vector<16x128xbf16>, vector<16x128xf32> -> vector<16x128xf32>
    %13 = arith.truncf %12 : vector<16x128xf32> to vector<16x128xbf16>
    %c0_11 = arith.constant 0 : index
    %c0_12 = arith.constant 0 : index
    %c0_13 = arith.constant 0 : index
    %14 = vector.load %arg5[%c0_11, %c0_12, %c0_13] : memref<9x128x128xbf16, #tpu.memory_space<vmem>>, vector<1x128x128xbf16>
    %15 = vector.shape_cast %14 : vector<1x128x128xbf16> to vector<128x128xbf16>
    %cst_14 = arith.constant dense<0.000000e+00> : vector<16x128xf32>
    %16 = tpu.matmul %13, %15, %cst_14 {dimension_numbers = #tpu.dot_dimension_numbers<[1], [0], [0], [1], [0, 0, 1, 1], [], []>} : vector<16x128xbf16>, vector<128x128xbf16>, vector<16x128xf32> -> vector<16x128xf32>
    %c1 = arith.constant 1 : index
    %c0_15 = arith.constant 0 : index
    %c0_16 = arith.constant 0 : index
    %17 = vector.load %arg2[%c1, %c0_15, %c0_16] : memref<9x16x16xbf16, #tpu.memory_space<vmem>>, vector<1x16x16xbf16>
    %18 = vector.shape_cast %17 : vector<1x16x16xbf16> to vector<16x16xbf16>
    %cst_17 = arith.constant dense<0.000000e+00> : vector<16x128xf32>
    %19 = tpu.matmul %18, %9, %cst_17 {dimension_numbers = #tpu.dot_dimension_numbers<[1], [0], [0], [1], [0, 0, 1, 1], [], []>} : vector<16x16xbf16>, vector<16x128xbf16>, vector<16x128xf32> -> vector<16x128xf32>
    %20 = arith.truncf %19 : vector<16x128xf32> to vector<16x128xbf16>
    %c1_18 = arith.constant 1 : index
    %c0_19 = arith.constant 0 : index
    %c0_20 = arith.constant 0 : index
    %21 = vector.load %arg5[%c1_18, %c0_19, %c0_20] : memref<9x128x128xbf16, #tpu.memory_space<vmem>>, vector<1x128x128xbf16>
    %22 = vector.shape_cast %21 : vector<1x128x128xbf16> to vector<128x128xbf16>
    %cst_21 = arith.constant dense<0.000000e+00> : vector<16x128xf32>
    %23 = tpu.matmul %20, %22, %cst_21 {dimension_numbers = #tpu.dot_dimension_numbers<[1], [0], [0], [1], [0, 0, 1, 1], [], []>} : vector<16x128xbf16>, vector<128x128xbf16>, vector<16x128xf32> -> vector<16x128xf32>
    %24 = arith.addf %16, %23 : vector<16x128xf32>
    %c2 = arith.constant 2 : index
    %c0_22 = arith.constant 0 : index
    %c0_23 = arith.constant 0 : index
    %25 = vector.load %arg2[%c2, %c0_22, %c0_23] : memref<9x16x16xbf16, #tpu.memory_space<vmem>>, vector<1x16x16xbf16>
    %26 = vector.shape_cast %25 : vector<1x16x16xbf16> to vector<16x16xbf16>
    %cst_24 = arith.constant dense<0.000000e+00> : vector<16x128xf32>
    %27 = tpu.matmul %26, %9, %cst_24 {dimension_numbers = #tpu.dot_dimension_numbers<[1], [0], [0], [1], [0, 0, 1, 1], [], []>} : vector<16x16xbf16>, vector<16x128xbf16>, vector<16x128xf32> -> vector<16x128xf32>
    %28 = arith.truncf %27 : vector<16x128xf32> to vector<16x128xbf16>
    %c2_25 = arith.constant 2 : index
    %c0_26 = arith.constant 0 : index
    %c0_27 = arith.constant 0 : index
    %29 = vector.load %arg5[%c2_25, %c0_26, %c0_27] : memref<9x128x128xbf16, #tpu.memory_space<vmem>>, vector<1x128x128xbf16>
    %30 = vector.shape_cast %29 : vector<1x128x128xbf16> to vector<128x128xbf16>
    %cst_28 = arith.constant dense<0.000000e+00> : vector<16x128xf32>
    %31 = tpu.matmul %28, %30, %cst_28 {dimension_numbers = #tpu.dot_dimension_numbers<[1], [0], [0], [1], [0, 0, 1, 1], [], []>} : vector<16x128xbf16>, vector<128x128xbf16>, vector<16x128xf32> -> vector<16x128xf32>
    %32 = arith.addf %24, %31 : vector<16x128xf32>
    %c3 = arith.constant 3 : index
    %c0_29 = arith.constant 0 : index
    %c0_30 = arith.constant 0 : index
    %33 = vector.load %arg2[%c3, %c0_29, %c0_30] : memref<9x16x16xbf16, #tpu.memory_space<vmem>>, vector<1x16x16xbf16>
    %34 = vector.shape_cast %33 : vector<1x16x16xbf16> to vector<16x16xbf16>
    %cst_31 = arith.constant dense<0.000000e+00> : vector<16x128xf32>
    %35 = tpu.matmul %34, %9, %cst_31 {dimension_numbers = #tpu.dot_dimension_numbers<[1], [0], [0], [1], [0, 0, 1, 1], [], []>} : vector<16x16xbf16>, vector<16x128xbf16>, vector<16x128xf32> -> vector<16x128xf32>
    %36 = arith.truncf %35 : vector<16x128xf32> to vector<16x128xbf16>
    %c3_32 = arith.constant 3 : index
    %c0_33 = arith.constant 0 : index
    %c0_34 = arith.constant 0 : index
    %37 = vector.load %arg5[%c3_32, %c0_33, %c0_34] : memref<9x128x128xbf16, #tpu.memory_space<vmem>>, vector<1x128x128xbf16>
    %38 = vector.shape_cast %37 : vector<1x128x128xbf16> to vector<128x128xbf16>
    %cst_35 = arith.constant dense<0.000000e+00> : vector<16x128xf32>
    %39 = tpu.matmul %36, %38, %cst_35 {dimension_numbers = #tpu.dot_dimension_numbers<[1], [0], [0], [1], [0, 0, 1, 1], [], []>} : vector<16x128xbf16>, vector<128x128xbf16>, vector<16x128xf32> -> vector<16x128xf32>
    %40 = arith.addf %32, %39 : vector<16x128xf32>
    %c4 = arith.constant 4 : index
    %c0_36 = arith.constant 0 : index
    %c0_37 = arith.constant 0 : index
    %41 = vector.load %arg2[%c4, %c0_36, %c0_37] : memref<9x16x16xbf16, #tpu.memory_space<vmem>>, vector<1x16x16xbf16>
    %42 = vector.shape_cast %41 : vector<1x16x16xbf16> to vector<16x16xbf16>
    %cst_38 = arith.constant dense<0.000000e+00> : vector<16x128xf32>
    %43 = tpu.matmul %42, %9, %cst_38 {dimension_numbers = #tpu.dot_dimension_numbers<[1], [0], [0], [1], [0, 0, 1, 1], [], []>} : vector<16x16xbf16>, vector<16x128xbf16>, vector<16x128xf32> -> vector<16x128xf32>
    %44 = arith.truncf %43 : vector<16x128xf32> to vector<16x128xbf16>
    %c4_39 = arith.constant 4 : index
    %c0_40 = arith.constant 0 : index
    %c0_41 = arith.constant 0 : index
    %45 = vector.load %arg5[%c4_39, %c0_40, %c0_41] : memref<9x128x128xbf16, #tpu.memory_space<vmem>>, vector<1x128x128xbf16>
    %46 = vector.shape_cast %45 : vector<1x128x128xbf16> to vector<128x128xbf16>
    %cst_42 = arith.constant dense<0.000000e+00> : vector<16x128xf32>
    %47 = tpu.matmul %44, %46, %cst_42 {dimension_numbers = #tpu.dot_dimension_numbers<[1], [0], [0], [1], [0, 0, 1, 1], [], []>} : vector<16x128xbf16>, vector<128x128xbf16>, vector<16x128xf32> -> vector<16x128xf32>
    %48 = arith.addf %40, %47 : vector<16x128xf32>
    %c5 = arith.constant 5 : index
    %c0_43 = arith.constant 0 : index
    %c0_44 = arith.constant 0 : index
    %49 = vector.load %arg2[%c5, %c0_43, %c0_44] : memref<9x16x16xbf16, #tpu.memory_space<vmem>>, vector<1x16x16xbf16>
    %50 = vector.shape_cast %49 : vector<1x16x16xbf16> to vector<16x16xbf16>
    %cst_45 = arith.constant dense<0.000000e+00> : vector<16x128xf32>
    %51 = tpu.matmul %50, %9, %cst_45 {dimension_numbers = #tpu.dot_dimension_numbers<[1], [0], [0], [1], [0, 0, 1, 1], [], []>} : vector<16x16xbf16>, vector<16x128xbf16>, vector<16x128xf32> -> vector<16x128xf32>
    %52 = arith.truncf %51 : vector<16x128xf32> to vector<16x128xbf16>
    %c5_46 = arith.constant 5 : index
    %c0_47 = arith.constant 0 : index
    %c0_48 = arith.constant 0 : index
    %53 = vector.load %arg5[%c5_46, %c0_47, %c0_48] : memref<9x128x128xbf16, #tpu.memory_space<vmem>>, vector<1x128x128xbf16>
    %54 = vector.shape_cast %53 : vector<1x128x128xbf16> to vector<128x128xbf16>
    %cst_49 = arith.constant dense<0.000000e+00> : vector<16x128xf32>
    %55 = tpu.matmul %52, %54, %cst_49 {dimension_numbers = #tpu.dot_dimension_numbers<[1], [0], [0], [1], [0, 0, 1, 1], [], []>} : vector<16x128xbf16>, vector<128x128xbf16>, vector<16x128xf32> -> vector<16x128xf32>
    %56 = arith.addf %48, %55 : vector<16x128xf32>
    %c6 = arith.constant 6 : index
    %c0_50 = arith.constant 0 : index
    %c0_51 = arith.constant 0 : index
    %57 = vector.load %arg2[%c6, %c0_50, %c0_51] : memref<9x16x16xbf16, #tpu.memory_space<vmem>>, vector<1x16x16xbf16>
    %58 = vector.shape_cast %57 : vector<1x16x16xbf16> to vector<16x16xbf16>
    %cst_52 = arith.constant dense<0.000000e+00> : vector<16x128xf32>
    %59 = tpu.matmul %58, %9, %cst_52 {dimension_numbers = #tpu.dot_dimension_numbers<[1], [0], [0], [1], [0, 0, 1, 1], [], []>} : vector<16x16xbf16>, vector<16x128xbf16>, vector<16x128xf32> -> vector<16x128xf32>
    %60 = arith.truncf %59 : vector<16x128xf32> to vector<16x128xbf16>
    %c6_53 = arith.constant 6 : index
    %c0_54 = arith.constant 0 : index
    %c0_55 = arith.constant 0 : index
    %61 = vector.load %arg5[%c6_53, %c0_54, %c0_55] : memref<9x128x128xbf16, #tpu.memory_space<vmem>>, vector<1x128x128xbf16>
    %62 = vector.shape_cast %61 : vector<1x128x128xbf16> to vector<128x128xbf16>
    %cst_56 = arith.constant dense<0.000000e+00> : vector<16x128xf32>
    %63 = tpu.matmul %60, %62, %cst_56 {dimension_numbers = #tpu.dot_dimension_numbers<[1], [0], [0], [1], [0, 0, 1, 1], [], []>} : vector<16x128xbf16>, vector<128x128xbf16>, vector<16x128xf32> -> vector<16x128xf32>
    %64 = arith.addf %56, %63 : vector<16x128xf32>
    %c7 = arith.constant 7 : index
    %c0_57 = arith.constant 0 : index
    %c0_58 = arith.constant 0 : index
    %65 = vector.load %arg2[%c7, %c0_57, %c0_58] : memref<9x16x16xbf16, #tpu.memory_space<vmem>>, vector<1x16x16xbf16>
    %66 = vector.shape_cast %65 : vector<1x16x16xbf16> to vector<16x16xbf16>
    %cst_59 = arith.constant dense<0.000000e+00> : vector<16x128xf32>
    %67 = tpu.matmul %66, %9, %cst_59 {dimension_numbers = #tpu.dot_dimension_numbers<[1], [0], [0], [1], [0, 0, 1, 1], [], []>} : vector<16x16xbf16>, vector<16x128xbf16>, vector<16x128xf32> -> vector<16x128xf32>
    %68 = arith.truncf %67 : vector<16x128xf32> to vector<16x128xbf16>
    %c7_60 = arith.constant 7 : index
    %c0_61 = arith.constant 0 : index
    %c0_62 = arith.constant 0 : index
    %69 = vector.load %arg5[%c7_60, %c0_61, %c0_62] : memref<9x128x128xbf16, #tpu.memory_space<vmem>>, vector<1x128x128xbf16>
    %70 = vector.shape_cast %69 : vector<1x128x128xbf16> to vector<128x128xbf16>
    %cst_63 = arith.constant dense<0.000000e+00> : vector<16x128xf32>
    %71 = tpu.matmul %68, %70, %cst_63 {dimension_numbers = #tpu.dot_dimension_numbers<[1], [0], [0], [1], [0, 0, 1, 1], [], []>} : vector<16x128xbf16>, vector<128x128xbf16>, vector<16x128xf32> -> vector<16x128xf32>
    %72 = arith.addf %64, %71 : vector<16x128xf32>
    %c8 = arith.constant 8 : index
    %c0_64 = arith.constant 0 : index
    %c0_65 = arith.constant 0 : index
    %73 = vector.load %arg2[%c8, %c0_64, %c0_65] : memref<9x16x16xbf16, #tpu.memory_space<vmem>>, vector<1x16x16xbf16>
    %74 = vector.shape_cast %73 : vector<1x16x16xbf16> to vector<16x16xbf16>
    %cst_66 = arith.constant dense<0.000000e+00> : vector<16x128xf32>
    %75 = tpu.matmul %74, %9, %cst_66 {dimension_numbers = #tpu.dot_dimension_numbers<[1], [0], [0], [1], [0, 0, 1, 1], [], []>} : vector<16x16xbf16>, vector<16x128xbf16>, vector<16x128xf32> -> vector<16x128xf32>
    %76 = arith.truncf %75 : vector<16x128xf32> to vector<16x128xbf16>
    %c8_67 = arith.constant 8 : index
    %c0_68 = arith.constant 0 : index
    %c0_69 = arith.constant 0 : index
    %77 = vector.load %arg5[%c8_67, %c0_68, %c0_69] : memref<9x128x128xbf16, #tpu.memory_space<vmem>>, vector<1x128x128xbf16>
    %78 = vector.shape_cast %77 : vector<1x128x128xbf16> to vector<128x128xbf16>
    %cst_70 = arith.constant dense<0.000000e+00> : vector<16x128xf32>
    %79 = tpu.matmul %76, %78, %cst_70 {dimension_numbers = #tpu.dot_dimension_numbers<[1], [0], [0], [1], [0, 0, 1, 1], [], []>} : vector<16x128xbf16>, vector<128x128xbf16>, vector<16x128xf32> -> vector<16x128xf32>
    %80 = arith.addf %72, %79 : vector<16x128xf32>
    %c0_71 = arith.constant 0 : index
    %c0_72 = arith.constant 0 : index
    %81 = vector.load %arg6[%c0_71, %c0_72] : memref<1x128xf32, #tpu.memory_space<vmem>>, vector<1x128xf32>
    %82 = vector.broadcast %81 : vector<1x128xf32> to vector<16x128xf32>
    %83 = arith.addf %80, %82 : vector<16x128xf32>
    %cst_73 = arith.constant 0.000000e+00 : f32
    %84 = vector.broadcast %cst_73 : f32 to vector<16x128xf32>
    %85 = arith.maximumf %83, %84 : vector<16x128xf32>
    %86 = arith.truncf %85 : vector<16x128xf32> to vector<16x128xbf16>
    %c0_74 = arith.constant 0 : index
    %c0_75 = arith.constant 0 : index
    %87 = vector.load %arg7[%c0_74, %c0_75] : memref<128x512xbf16, #tpu.memory_space<vmem>>, vector<128x512xbf16>
    %cst_76 = arith.constant dense<0.000000e+00> : vector<16x512xf32>
    %88 = tpu.matmul %86, %87, %cst_76 {dimension_numbers = #tpu.dot_dimension_numbers<[1], [0], [0], [1], [0, 0, 1, 1], [], []>} : vector<16x128xbf16>, vector<128x512xbf16>, vector<16x512xf32> -> vector<16x512xf32>
    %c0_77 = arith.constant 0 : index
    %c0_78 = arith.constant 0 : index
    %89 = vector.load %arg8[%c0_77, %c0_78] : memref<1x512xf32, #tpu.memory_space<vmem>>, vector<1x512xf32>
    %90 = vector.broadcast %89 : vector<1x512xf32> to vector<16x512xf32>
    %91 = arith.addf %88, %90 : vector<16x512xf32>
    %92 = arith.extf %1 : vector<16x512xbf16> to vector<16x512xf32>
    %93 = arith.addf %91, %92 : vector<16x512xf32>
    %cst_79 = arith.constant 0.000000e+00 : f32
    %94 = vector.broadcast %cst_79 : f32 to vector<16x512xf32>
    %95 = arith.maximumf %93, %94 : vector<16x512xf32>
    %96 = arith.truncf %95 : vector<16x512xf32> to vector<16x512xbf16>
    %c0_80 = arith.constant 0 : index
    %c0_81 = arith.constant 0 : index
    %c0_82 = arith.constant 0 : index
    %97 = vector.load %arg9[%c0_80, %c0_81, %c0_82] : memref<1x16x512xbf16, #tpu.memory_space<vmem>>, vector<1x16x512xbf16>
    %98 = vector.shape_cast %97 : vector<1x16x512xbf16> to vector<16x512xbf16>
    %99 = vector.shape_cast %96 : vector<16x512xbf16> to vector<1x16x512xbf16>
    tpu.vector_store %arg9[%c0_80, %c0_81, %c0_82], %99 {strides = array<i32>} : memref<1x16x512xbf16, #tpu.memory_space<vmem>>, vector<1x16x512xbf16>,
    return
  }
  func.func @transform_0(%arg0: i32) -> (i32, i32, i32) {
    %c0_i32 = arith.constant 0 : i32
    %c0_i32_0 = arith.constant 0 : i32
    %c0_i32_1 = arith.constant 0 : i32
    return %arg0, %c0_i32, %c0_i32_0 : i32, i32, i32
  }
  func.func @transform_1(%arg0: i32) -> (i32, i32, i32) {
    %c0_i32 = arith.constant 0 : i32
    %c0_i32_0 = arith.constant 0 : i32
    %c0_i32_1 = arith.constant 0 : i32
    %c0_i32_2 = arith.constant 0 : i32
    return %c0_i32, %c0_i32_0, %c0_i32_1 : i32, i32, i32
  }
  func.func @transform_2(%arg0: i32) -> (i32, i32) {
    %c0_i32 = arith.constant 0 : i32
    %c0_i32_0 = arith.constant 0 : i32
    %c0_i32_1 = arith.constant 0 : i32
    return %c0_i32, %c0_i32_0 : i32, i32
  }
  func.func @transform_3(%arg0: i32) -> (i32, i32) {
    %c0_i32 = arith.constant 0 : i32
    %c0_i32_0 = arith.constant 0 : i32
    %c0_i32_1 = arith.constant 0 : i32
    return %c0_i32, %c0_i32_0 : i32, i32
  }
  func.func @transform_4(%arg0: i32) -> (i32, i32, i32) {
    %c0_i32 = arith.constant 0 : i32
    %c0_i32_0 = arith.constant 0 : i32
    %c0_i32_1 = arith.constant 0 : i32
    %c0_i32_2 = arith.constant 0 : i32
    return %c0_i32, %c0_i32_0, %c0_i32_1 : i32, i32, i32
  }
  func.func @transform_5(%arg0: i32) -> (i32, i32) {
    %c0_i32 = arith.constant 0 : i32
    %c0_i32_0 = arith.constant 0 : i32
    %c0_i32_1 = arith.constant 0 : i32
    return %c0_i32, %c0_i32_0 : i32, i32
  }
  func.func @transform_6(%arg0: i32) -> (i32, i32) {
    %c0_i32 = arith.constant 0 : i32
    %c0_i32_0 = arith.constant 0 : i32
    %c0_i32_1 = arith.constant 0 : i32
    return %c0_i32, %c0_i32_0 : i32, i32
  }
  func.func @transform_7(%arg0: i32) -> (i32, i32) {
    %c0_i32 = arith.constant 0 : i32
    %c0_i32_0 = arith.constant 0 : i32
    %c0_i32_1 = arith.constant 0 : i32
    return %c0_i32, %c0_i32_0 : i32, i32
  }
  func.func @transform_8(%arg0: i32) -> (i32, i32, i32) {
    %c0_i32 = arith.constant 0 : i32
    %c0_i32_0 = arith.constant 0 : i32
    %c0_i32_1 = arith.constant 0 : i32
    return %arg0, %c0_i32, %c0_i32_0 : i32, i32, i32
  }
}

module attributes {stable_mosaic.version = 11 : i64} {
  func.func @_bottleneck_kernel(%arg0: i32, %arg1: memref<1x16x512xbf16, #tpu.memory_space<vmem>>, %arg2: memref<9x16x16xbf16, #tpu.memory_space<vmem>>, %arg3: memref<512x128xbf16, #tpu.memory_space<vmem>>, %arg4: memref<1x128xf32, #tpu.memory_space<vmem>>, %arg5: memref<9x128x128xbf16, #tpu.memory_space<vmem>>, %arg6: memref<1x128xf32, #tpu.memory_space<vmem>>, %arg7: memref<128x512xbf16, #tpu.memory_space<vmem>>, %arg8: memref<1x512xf32, #tpu.memory_space<vmem>>, %arg9: memref<1x1x512xf32, #tpu.memory_space<vmem>>) attributes {dimension_semantics = [#tpu.dimension_semantics<parallel>], iteration_bounds = array<i64: 2>, scalar_prefetch = 0 : i64, scratch_operands = 0 : i64, tpu.core_type = #tpu.core_type<tc>, window_params = [{transform_indices = @transform_0, window_bounds = array<i64: 1, 16, 512>}, {pipeline_mode = #tpu.pipeline_mode<synchronous>, transform_indices = @transform_1, window_bounds = array<i64: 9, 16, 16>}, {pipeline_mode = #tpu.pipeline_mode<synchronous>, transform_indices = @transform_2, window_bounds = array<i64: 512, 128>}, {pipeline_mode = #tpu.pipeline_mode<synchronous>, transform_indices = @transform_3, window_bounds = array<i64: 1, 128>}, {pipeline_mode = #tpu.pipeline_mode<synchronous>, transform_indices = @transform_4, window_bounds = array<i64: 9, 128, 128>}, {pipeline_mode = #tpu.pipeline_mode<synchronous>, transform_indices = @transform_5, window_bounds = array<i64: 1, 128>}, {pipeline_mode = #tpu.pipeline_mode<synchronous>, transform_indices = @transform_6, window_bounds = array<i64: 128, 512>}, {pipeline_mode = #tpu.pipeline_mode<synchronous>, transform_indices = @transform_7, window_bounds = array<i64: 1, 512>}, {transform_indices = @transform_8, window_bounds = array<i64: 1, 1, 512>}]} {
    %c0 = arith.constant 0 : index
    %c0_0 = arith.constant 0 : index
    %c0_1 = arith.constant 0 : index
    %0 = vector.load %arg1[%c0, %c0_0, %c0_1] : memref<1x16x512xbf16, #tpu.memory_space<vmem>>, vector<1x16x512xbf16>
    %1 = vector.shape_cast %0 : vector<1x16x512xbf16> to vector<16x512xbf16>
    %c0_2 = arith.constant 0 : index
    %c0_3 = arith.constant 0 : index
    %2 = vector.load %arg3[%c0_2, %c0_3] : memref<512x128xbf16, #tpu.memory_space<vmem>>, vector<512x128xbf16>
    %cst = arith.constant dense<0.000000e+00> : vector<16x128xf32>
    %3 = tpu.matmul %1, %2, %cst {dimension_numbers = #tpu.dot_dimension_numbers<[1], [0], [0], [1], [0, 0, 1, 1], [], []>} : vector<16x512xbf16>, vector<512x128xbf16>, vector<16x128xf32> -> vector<16x128xf32>
    %c0_4 = arith.constant 0 : index
    %c0_5 = arith.constant 0 : index
    %4 = vector.load %arg4[%c0_4, %c0_5] : memref<1x128xf32, #tpu.memory_space<vmem>>, vector<1x128xf32>
    %5 = vector.broadcast %4 : vector<1x128xf32> to vector<16x128xf32>
    %6 = arith.addf %3, %5 : vector<16x128xf32>
    %cst_6 = arith.constant 0.000000e+00 : f32
    %7 = vector.broadcast %cst_6 : f32 to vector<16x128xf32>
    %8 = arith.maximumf %6, %7 : vector<16x128xf32>
    %9 = arith.truncf %8 : vector<16x128xf32> to vector<16x128xbf16>
    %c0_7 = arith.constant 0 : index
    %c0_8 = arith.constant 0 : index
    %c0_9 = arith.constant 0 : index
    %10 = vector.load %arg2[%c0_7, %c0_8, %c0_9] : memref<9x16x16xbf16, #tpu.memory_space<vmem>>, vector<1x16x16xbf16>
    %11 = vector.shape_cast %10 : vector<1x16x16xbf16> to vector<16x16xbf16>
    %cst_10 = arith.constant dense<0.000000e+00> : vector<16x128xf32>
    %12 = tpu.matmul %11, %9, %cst_10 {dimension_numbers = #tpu.dot_dimension_numbers<[1], [0], [0], [1], [0, 0, 1, 1], [], []>} : vector<16x16xbf16>, vector<16x128xbf16>, vector<16x128xf32> -> vector<16x128xf32>
    %13 = arith.truncf %12 : vector<16x128xf32> to vector<16x128xbf16>
    %c0_11 = arith.constant 0 : index
    %c0_12 = arith.constant 0 : index
    %c0_13 = arith.constant 0 : index
    %14 = vector.load %arg5[%c0_11, %c0_12, %c0_13] : memref<9x128x128xbf16, #tpu.memory_space<vmem>>, vector<1x128x128xbf16>
    %15 = vector.shape_cast %14 : vector<1x128x128xbf16> to vector<128x128xbf16>
    %cst_14 = arith.constant dense<0.000000e+00> : vector<16x128xf32>
    %16 = tpu.matmul %13, %15, %cst_14 {dimension_numbers = #tpu.dot_dimension_numbers<[1], [0], [0], [1], [0, 0, 1, 1], [], []>} : vector<16x128xbf16>, vector<128x128xbf16>, vector<16x128xf32> -> vector<16x128xf32>
    %c1 = arith.constant 1 : index
    %c0_15 = arith.constant 0 : index
    %c0_16 = arith.constant 0 : index
    %17 = vector.load %arg2[%c1, %c0_15, %c0_16] : memref<9x16x16xbf16, #tpu.memory_space<vmem>>, vector<1x16x16xbf16>
    %18 = vector.shape_cast %17 : vector<1x16x16xbf16> to vector<16x16xbf16>
    %cst_17 = arith.constant dense<0.000000e+00> : vector<16x128xf32>
    %19 = tpu.matmul %18, %9, %cst_17 {dimension_numbers = #tpu.dot_dimension_numbers<[1], [0], [0], [1], [0, 0, 1, 1], [], []>} : vector<16x16xbf16>, vector<16x128xbf16>, vector<16x128xf32> -> vector<16x128xf32>
    %20 = arith.truncf %19 : vector<16x128xf32> to vector<16x128xbf16>
    %c1_18 = arith.constant 1 : index
    %c0_19 = arith.constant 0 : index
    %c0_20 = arith.constant 0 : index
    %21 = vector.load %arg5[%c1_18, %c0_19, %c0_20] : memref<9x128x128xbf16, #tpu.memory_space<vmem>>, vector<1x128x128xbf16>
    %22 = vector.shape_cast %21 : vector<1x128x128xbf16> to vector<128x128xbf16>
    %cst_21 = arith.constant dense<0.000000e+00> : vector<16x128xf32>
    %23 = tpu.matmul %20, %22, %cst_21 {dimension_numbers = #tpu.dot_dimension_numbers<[1], [0], [0], [1], [0, 0, 1, 1], [], []>} : vector<16x128xbf16>, vector<128x128xbf16>, vector<16x128xf32> -> vector<16x128xf32>
    %24 = arith.addf %16, %23 : vector<16x128xf32>
    %c2 = arith.constant 2 : index
    %c0_22 = arith.constant 0 : index
    %c0_23 = arith.constant 0 : index
    %25 = vector.load %arg2[%c2, %c0_22, %c0_23] : memref<9x16x16xbf16, #tpu.memory_space<vmem>>, vector<1x16x16xbf16>
    %26 = vector.shape_cast %25 : vector<1x16x16xbf16> to vector<16x16xbf16>
    %cst_24 = arith.constant dense<0.000000e+00> : vector<16x128xf32>
    %27 = tpu.matmul %26, %9, %cst_24 {dimension_numbers = #tpu.dot_dimension_numbers<[1], [0], [0], [1], [0, 0, 1, 1], [], []>} : vector<16x16xbf16>, vector<16x128xbf16>, vector<16x128xf32> -> vector<16x128xf32>
    %28 = arith.truncf %27 : vector<16x128xf32> to vector<16x128xbf16>
    %c2_25 = arith.constant 2 : index
    %c0_26 = arith.constant 0 : index
    %c0_27 = arith.constant 0 : index
    %29 = vector.load %arg5[%c2_25, %c0_26, %c0_27] : memref<9x128x128xbf16, #tpu.memory_space<vmem>>, vector<1x128x128xbf16>
    %30 = vector.shape_cast %29 : vector<1x128x128xbf16> to vector<128x128xbf16>
    %cst_28 = arith.constant dense<0.000000e+00> : vector<16x128xf32>
    %31 = tpu.matmul %28, %30, %cst_28 {dimension_numbers = #tpu.dot_dimension_numbers<[1], [0], [0], [1], [0, 0, 1, 1], [], []>} : vector<16x128xbf16>, vector<128x128xbf16>, vector<16x128xf32> -> vector<16x128xf32>
    %32 = arith.addf %24, %31 : vector<16x128xf32>
    %c3 = arith.constant 3 : index
    %c0_29 = arith.constant 0 : index
    %c0_30 = arith.constant 0 : index
    %33 = vector.load %arg2[%c3, %c0_29, %c0_30] : memref<9x16x16xbf16, #tpu.memory_space<vmem>>, vector<1x16x16xbf16>
    %34 = vector.shape_cast %33 : vector<1x16x16xbf16> to vector<16x16xbf16>
    %cst_31 = arith.constant dense<0.000000e+00> : vector<16x128xf32>
    %35 = tpu.matmul %34, %9, %cst_31 {dimension_numbers = #tpu.dot_dimension_numbers<[1], [0], [0], [1], [0, 0, 1, 1], [], []>} : vector<16x16xbf16>, vector<16x128xbf16>, vector<16x128xf32> -> vector<16x128xf32>
    %36 = arith.truncf %35 : vector<16x128xf32> to vector<16x128xbf16>
    %c3_32 = arith.constant 3 : index
    %c0_33 = arith.constant 0 : index
    %c0_34 = arith.constant 0 : index
    %37 = vector.load %arg5[%c3_32, %c0_33, %c0_34] : memref<9x128x128xbf16, #tpu.memory_space<vmem>>, vector<1x128x128xbf16>
    %38 = vector.shape_cast %37 : vector<1x128x128xbf16> to vector<128x128xbf16>
    %cst_35 = arith.constant dense<0.000000e+00> : vector<16x128xf32>
    %39 = tpu.matmul %36, %38, %cst_35 {dimension_numbers = #tpu.dot_dimension_numbers<[1], [0], [0], [1], [0, 0, 1, 1], [], []>} : vector<16x128xbf16>, vector<128x128xbf16>, vector<16x128xf32> -> vector<16x128xf32>
    %40 = arith.addf %32, %39 : vector<16x128xf32>
    %c4 = arith.constant 4 : index
    %c0_36 = arith.constant 0 : index
    %c0_37 = arith.constant 0 : index
    %41 = vector.load %arg2[%c4, %c0_36, %c0_37] : memref<9x16x16xbf16, #tpu.memory_space<vmem>>, vector<1x16x16xbf16>
    %42 = vector.shape_cast %41 : vector<1x16x16xbf16> to vector<16x16xbf16>
    %cst_38 = arith.constant dense<0.000000e+00> : vector<16x128xf32>
    %43 = tpu.matmul %42, %9, %cst_38 {dimension_numbers = #tpu.dot_dimension_numbers<[1], [0], [0], [1], [0, 0, 1, 1], [], []>} : vector<16x16xbf16>, vector<16x128xbf16>, vector<16x128xf32> -> vector<16x128xf32>
    %44 = arith.truncf %43 : vector<16x128xf32> to vector<16x128xbf16>
    %c4_39 = arith.constant 4 : index
    %c0_40 = arith.constant 0 : index
    %c0_41 = arith.constant 0 : index
    %45 = vector.load %arg5[%c4_39, %c0_40, %c0_41] : memref<9x128x128xbf16, #tpu.memory_space<vmem>>, vector<1x128x128xbf16>
    %46 = vector.shape_cast %45 : vector<1x128x128xbf16> to vector<128x128xbf16>
    %cst_42 = arith.constant dense<0.000000e+00> : vector<16x128xf32>
    %47 = tpu.matmul %44, %46, %cst_42 {dimension_numbers = #tpu.dot_dimension_numbers<[1], [0], [0], [1], [0, 0, 1, 1], [], []>} : vector<16x128xbf16>, vector<128x128xbf16>, vector<16x128xf32> -> vector<16x128xf32>
    %48 = arith.addf %40, %47 : vector<16x128xf32>
    %c5 = arith.constant 5 : index
    %c0_43 = arith.constant 0 : index
    %c0_44 = arith.constant 0 : index
    %49 = vector.load %arg2[%c5, %c0_43, %c0_44] : memref<9x16x16xbf16, #tpu.memory_space<vmem>>, vector<1x16x16xbf16>
    %50 = vector.shape_cast %49 : vector<1x16x16xbf16> to vector<16x16xbf16>
    %cst_45 = arith.constant dense<0.000000e+00> : vector<16x128xf32>
    %51 = tpu.matmul %50, %9, %cst_45 {dimension_numbers = #tpu.dot_dimension_numbers<[1], [0], [0], [1], [0, 0, 1, 1], [], []>} : vector<16x16xbf16>, vector<16x128xbf16>, vector<16x128xf32> -> vector<16x128xf32>
    %52 = arith.truncf %51 : vector<16x128xf32> to vector<16x128xbf16>
    %c5_46 = arith.constant 5 : index
    %c0_47 = arith.constant 0 : index
    %c0_48 = arith.constant 0 : index
    %53 = vector.load %arg5[%c5_46, %c0_47, %c0_48] : memref<9x128x128xbf16, #tpu.memory_space<vmem>>, vector<1x128x128xbf16>
    %54 = vector.shape_cast %53 : vector<1x128x128xbf16> to vector<128x128xbf16>
    %cst_49 = arith.constant dense<0.000000e+00> : vector<16x128xf32>
    %55 = tpu.matmul %52, %54, %cst_49 {dimension_numbers = #tpu.dot_dimension_numbers<[1], [0], [0], [1], [0, 0, 1, 1], [], []>} : vector<16x128xbf16>, vector<128x128xbf16>, vector<16x128xf32> -> vector<16x128xf32>
    %56 = arith.addf %48, %55 : vector<16x128xf32>
    %c6 = arith.constant 6 : index
    %c0_50 = arith.constant 0 : index
    %c0_51 = arith.constant 0 : index
    %57 = vector.load %arg2[%c6, %c0_50, %c0_51] : memref<9x16x16xbf16, #tpu.memory_space<vmem>>, vector<1x16x16xbf16>
    %58 = vector.shape_cast %57 : vector<1x16x16xbf16> to vector<16x16xbf16>
    %cst_52 = arith.constant dense<0.000000e+00> : vector<16x128xf32>
    %59 = tpu.matmul %58, %9, %cst_52 {dimension_numbers = #tpu.dot_dimension_numbers<[1], [0], [0], [1], [0, 0, 1, 1], [], []>} : vector<16x16xbf16>, vector<16x128xbf16>, vector<16x128xf32> -> vector<16x128xf32>
    %60 = arith.truncf %59 : vector<16x128xf32> to vector<16x128xbf16>
    %c6_53 = arith.constant 6 : index
    %c0_54 = arith.constant 0 : index
    %c0_55 = arith.constant 0 : index
    %61 = vector.load %arg5[%c6_53, %c0_54, %c0_55] : memref<9x128x128xbf16, #tpu.memory_space<vmem>>, vector<1x128x128xbf16>
    %62 = vector.shape_cast %61 : vector<1x128x128xbf16> to vector<128x128xbf16>
    %cst_56 = arith.constant dense<0.000000e+00> : vector<16x128xf32>
    %63 = tpu.matmul %60, %62, %cst_56 {dimension_numbers = #tpu.dot_dimension_numbers<[1], [0], [0], [1], [0, 0, 1, 1], [], []>} : vector<16x128xbf16>, vector<128x128xbf16>, vector<16x128xf32> -> vector<16x128xf32>
    %64 = arith.addf %56, %63 : vector<16x128xf32>
    %c7 = arith.constant 7 : index
    %c0_57 = arith.constant 0 : index
    %c0_58 = arith.constant 0 : index
    %65 = vector.load %arg2[%c7, %c0_57, %c0_58] : memref<9x16x16xbf16, #tpu.memory_space<vmem>>, vector<1x16x16xbf16>
    %66 = vector.shape_cast %65 : vector<1x16x16xbf16> to vector<16x16xbf16>
    %cst_59 = arith.constant dense<0.000000e+00> : vector<16x128xf32>
    %67 = tpu.matmul %66, %9, %cst_59 {dimension_numbers = #tpu.dot_dimension_numbers<[1], [0], [0], [1], [0, 0, 1, 1], [], []>} : vector<16x16xbf16>, vector<16x128xbf16>, vector<16x128xf32> -> vector<16x128xf32>
    %68 = arith.truncf %67 : vector<16x128xf32> to vector<16x128xbf16>
    %c7_60 = arith.constant 7 : index
    %c0_61 = arith.constant 0 : index
    %c0_62 = arith.constant 0 : index
    %69 = vector.load %arg5[%c7_60, %c0_61, %c0_62] : memref<9x128x128xbf16, #tpu.memory_space<vmem>>, vector<1x128x128xbf16>
    %70 = vector.shape_cast %69 : vector<1x128x128xbf16> to vector<128x128xbf16>
    %cst_63 = arith.constant dense<0.000000e+00> : vector<16x128xf32>
    %71 = tpu.matmul %68, %70, %cst_63 {dimension_numbers = #tpu.dot_dimension_numbers<[1], [0], [0], [1], [0, 0, 1, 1], [], []>} : vector<16x128xbf16>, vector<128x128xbf16>, vector<16x128xf32> -> vector<16x128xf32>
    %72 = arith.addf %64, %71 : vector<16x128xf32>
    %c8 = arith.constant 8 : index
    %c0_64 = arith.constant 0 : index
    %c0_65 = arith.constant 0 : index
    %73 = vector.load %arg2[%c8, %c0_64, %c0_65] : memref<9x16x16xbf16, #tpu.memory_space<vmem>>, vector<1x16x16xbf16>
    %74 = vector.shape_cast %73 : vector<1x16x16xbf16> to vector<16x16xbf16>
    %cst_66 = arith.constant dense<0.000000e+00> : vector<16x128xf32>
    %75 = tpu.matmul %74, %9, %cst_66 {dimension_numbers = #tpu.dot_dimension_numbers<[1], [0], [0], [1], [0, 0, 1, 1], [], []>} : vector<16x16xbf16>, vector<16x128xbf16>, vector<16x128xf32> -> vector<16x128xf32>
    %76 = arith.truncf %75 : vector<16x128xf32> to vector<16x128xbf16>
    %c8_67 = arith.constant 8 : index
    %c0_68 = arith.constant 0 : index
    %c0_69 = arith.constant 0 : index
    %77 = vector.load %arg5[%c8_67, %c0_68, %c0_69] : memref<9x128x128xbf16, #tpu.memory_space<vmem>>, vector<1x128x128xbf16>
    %78 = vector.shape_cast %77 : vector<1x128x128xbf16> to vector<128x128xbf16>
    %cst_70 = arith.constant dense<0.000000e+00> : vector<16x128xf32>
    %79 = tpu.matmul %76, %78, %cst_70 {dimension_numbers = #tpu.dot_dimension_numbers<[1], [0], [0], [1], [0, 0, 1, 1], [], []>} : vector<16x128xbf16>, vector<128x128xbf16>, vector<16x128xf32> -> vector<16x128xf32>
    %80 = arith.addf %72, %79 : vector<16x128xf32>
    %c0_71 = arith.constant 0 : index
    %c0_72 = arith.constant 0 : index
    %81 = vector.load %arg6[%c0_71, %c0_72] : memref<1x128xf32, #tpu.memory_space<vmem>>, vector<1x128xf32>
    %82 = vector.broadcast %81 : vector<1x128xf32> to vector<16x128xf32>
    %83 = arith.addf %80, %82 : vector<16x128xf32>
    %cst_73 = arith.constant 0.000000e+00 : f32
    %84 = vector.broadcast %cst_73 : f32 to vector<16x128xf32>
    %85 = arith.maximumf %83, %84 : vector<16x128xf32>
    %86 = arith.truncf %85 : vector<16x128xf32> to vector<16x128xbf16>
    %c0_74 = arith.constant 0 : index
    %c0_75 = arith.constant 0 : index
    %87 = vector.load %arg7[%c0_74, %c0_75] : memref<128x512xbf16, #tpu.memory_space<vmem>>, vector<128x512xbf16>
    %cst_76 = arith.constant dense<0.000000e+00> : vector<16x512xf32>
    %88 = tpu.matmul %86, %87, %cst_76 {dimension_numbers = #tpu.dot_dimension_numbers<[1], [0], [0], [1], [0, 0, 1, 1], [], []>} : vector<16x128xbf16>, vector<128x512xbf16>, vector<16x512xf32> -> vector<16x512xf32>
    %c0_77 = arith.constant 0 : index
    %c0_78 = arith.constant 0 : index
    %89 = vector.load %arg8[%c0_77, %c0_78] : memref<1x512xf32, #tpu.memory_space<vmem>>, vector<1x512xf32>
    %90 = vector.broadcast %89 : vector<1x512xf32> to vector<16x512xf32>
    %91 = arith.addf %88, %90 : vector<16x512xf32>
    %92 = arith.extf %1 : vector<16x512xbf16> to vector<16x512xf32>
    %93 = arith.addf %91, %92 : vector<16x512xf32>
    %cst_79 = arith.constant 0.000000e+00 : f32
    %94 = vector.broadcast %cst_79 : f32 to vector<16x512xf32>
    %95 = arith.maximumf %93, %94 : vector<16x512xf32>
    %cst_80 = arith.constant dense<0.000000e+00> : vector<512xf32>
    %96 = vector.multi_reduction <add>, %95, %cst_80 [0] : vector<16x512xf32> to vector<512xf32>
    %97 = vector.shape_cast %96 : vector<512xf32> to vector<1x512xf32>
    %cst_81 = arith.constant 1.600000e+01 : f32
    %98 = vector.broadcast %cst_81 : f32 to vector<1x512xf32>
    %99 = arith.divf %97, %98 : vector<1x512xf32>
    %c0_82 = arith.constant 0 : index
    %c0_83 = arith.constant 0 : index
    %c0_84 = arith.constant 0 : index
    %100 = vector.load %arg9[%c0_82, %c0_83, %c0_84] : memref<1x1x512xf32, #tpu.memory_space<vmem>>, vector<1x1x512xf32>
    %101 = vector.shape_cast %100 : vector<1x1x512xf32> to vector<1x512xf32>
    %102 = vector.shape_cast %99 : vector<1x512xf32> to vector<1x1x512xf32>
    tpu.vector_store %arg9[%c0_82, %c0_83, %c0_84], %102 {strides = array<i32>} : memref<1x1x512xf32, #tpu.memory_space<vmem>>, vector<1x1x512xf32>,
    return
  }
  func.func @transform_0(%arg0: i32) -> (i32, i32, i32) {
    %c0_i32 = arith.constant 0 : i32
    %c0_i32_0 = arith.constant 0 : i32
    %c0_i32_1 = arith.constant 0 : i32
    return %arg0, %c0_i32, %c0_i32_0 : i32, i32, i32
  }
  func.func @transform_1(%arg0: i32) -> (i32, i32, i32) {
    %c0_i32 = arith.constant 0 : i32
    %c0_i32_0 = arith.constant 0 : i32
    %c0_i32_1 = arith.constant 0 : i32
    %c0_i32_2 = arith.constant 0 : i32
    return %c0_i32, %c0_i32_0, %c0_i32_1 : i32, i32, i32
  }
  func.func @transform_2(%arg0: i32) -> (i32, i32) {
    %c0_i32 = arith.constant 0 : i32
    %c0_i32_0 = arith.constant 0 : i32
    %c0_i32_1 = arith.constant 0 : i32
    return %c0_i32, %c0_i32_0 : i32, i32
  }
  func.func @transform_3(%arg0: i32) -> (i32, i32) {
    %c0_i32 = arith.constant 0 : i32
    %c0_i32_0 = arith.constant 0 : i32
    %c0_i32_1 = arith.constant 0 : i32
    return %c0_i32, %c0_i32_0 : i32, i32
  }
  func.func @transform_4(%arg0: i32) -> (i32, i32, i32) {
    %c0_i32 = arith.constant 0 : i32
    %c0_i32_0 = arith.constant 0 : i32
    %c0_i32_1 = arith.constant 0 : i32
    %c0_i32_2 = arith.constant 0 : i32
    return %c0_i32, %c0_i32_0, %c0_i32_1 : i32, i32, i32
  }
  func.func @transform_5(%arg0: i32) -> (i32, i32) {
    %c0_i32 = arith.constant 0 : i32
    %c0_i32_0 = arith.constant 0 : i32
    %c0_i32_1 = arith.constant 0 : i32
    return %c0_i32, %c0_i32_0 : i32, i32
  }
  func.func @transform_6(%arg0: i32) -> (i32, i32) {
    %c0_i32 = arith.constant 0 : i32
    %c0_i32_0 = arith.constant 0 : i32
    %c0_i32_1 = arith.constant 0 : i32
    return %c0_i32, %c0_i32_0 : i32, i32
  }
  func.func @transform_7(%arg0: i32) -> (i32, i32) {
    %c0_i32 = arith.constant 0 : i32
    %c0_i32_0 = arith.constant 0 : i32
    %c0_i32_1 = arith.constant 0 : i32
    return %c0_i32, %c0_i32_0 : i32, i32
  }
  func.func @transform_8(%arg0: i32) -> (i32, i32, i32) {
    %c0_i32 = arith.constant 0 : i32
    %c0_i32_0 = arith.constant 0 : i32
    %c0_i32_1 = arith.constant 0 : i32
    return %arg0, %c0_i32, %c0_i32_0 : i32, i32, i32
  }
}

</mosaic_0001>

<bundles_post_ra>
// kernel: vae_recon_encoder_forward.8
= control target key start
LH: loop header
LB: loop body
LE: loop exit
PB: predicated region body
PF: predicated region fallthrough
CT: control target
= control target key end

     0   :  { %s2566_s15 = smov 0   ;;  %s3206_s0 = inlined_call_operand.vmem [shape: bf16[2,256,27], index: 0, kind: input, shape index: {}]   ;;  %s3207_s1 = inlined_call_operand.vmem [shape: bf16[27,64], index: 1, kind: input, shape index: {}]   ;;  %s3208_s2 = inlined_call_operand.vmem [shape: f32[1,64], index: 2, kind: input, shape index: {}]   ;;  %s3209_s3 = inlined_call_operand.vmem [shape: bf16[9,64,256], index: 3, kind: input, shape index: {}]   ;;  %s3210_s4 = inlined_call_operand.vmem [shape: bf16[2,64,64], index: 4, kind: output, shape index: {}]  }
   0x1 LB: > { %s1783_s16 = sadd.s32 4294967295, %s2538_s15   ;;  %p1787_p0 = scmp.ge.s32.totalorder %s2538_s15, 1  ;;  %s2538_s15 = sphi %s2566_s15, %s14_s15  }
   0x2   : > { %p162_p1 = scmp.lt.s32.totalorder %s2538_s15, 3 }
   0x4   : > { %p163_p2 = pnand %p1787_p0, %p162_p1 }
   0x5   : > { %v2406_v0 = vld [vmem:[%s3207_s1] sm:$0xff] (!%p163_p2)   ;;  %vm382_vm0 = vcmask (!%p163_p2), 1044480   ;;  %v2407_v1 = vld [vmem:[%s3207_s1 + $0x8] sm:$0x3f] (!%p163_p2)   ;;  %vm383_vm1 = vcmask (!%p163_p2), 1045504   ;;  %p188_p3 = scmp.lt.s32.totalorder (!%p163_p2), %s1783_s16, 1 }
   0x6   : > { %166 = sbr.rel (%p163_p2) target bundleno = 679 (0x2a7), region = 36  ;;  %2361 = vmatprep.subr.bf16.mxu0 (!%p163_p2), %v2406_v0  ;;  %v2540_v2 = vmov (!%p163_p2), 65535   ;;  %vm333_vm2 = vcmask (!%p163_p2), 220160   ;;  %v2426_v22 = vld [vmem:[%s3209_s3 + $0x4] ss:$8 sps:$4 sm:$0xff] (!%p163_p2)   ;;  %vm1719_vm3 = vcmask (!%p163_p2), 519168  }
   0x7   : > { %2362 = vmatpush3.bf16.msra.mxu0 (!%p163_p2), %v2406_v0  ;;  %v384_v3 = vsel (!%p163_p2), %vm382_vm0, 4294967295, %v2540_v2  ;;  %v2429_v23 = vld [vmem:[%s3209_s3 + $0x84] ss:$8 sps:$4 sm:$0xff] (!%p163_p2)   ;;  %678 = vmatprep.mubr.bf16.mxu1 (!%p163_p2), %v2426_v22  ;;  %v2629_v24 = vld [vmem:[%s3208_s2] ss:$0 sm:$0xff] (!%p163_p2) }
   0x8   : > { %v385_v4 = vsel (!%p163_p2), %vm383_vm1, %v384_v3, 0 }
   0x9   : > { %v387_v5 = vand.u32 (!%p163_p2), %v2407_v1, %v385_v4 }
   0xb   : > { %2363 = vmatprep.subr.bf16.mxu0 (!%p163_p2), %v387_v5 }
   0xc   : > { %2364 = vmatpush3.bf16.msra.mxu0 (!%p163_p2), %v387_v5 }
   0xd   : > { %s3212_s16 = smov (!%p188_p3, %s1783_s16), 1 }
   0xe   : > { %s1973_s21 = sshll.u32 %s3212_s16, 7  ;;  %s1974_s27 = sshll.u32 %s3212_s16, 5 }
   0xf   : > { %s2586_s24 = scalar_lea.vmem %s3206_s0, %s1973_s21  ;;  %s3181_s30 = scalar_lea.vmem %s3210_s4, %s1974_s27 }
  0x10   : > { %v2408_v6 = vld [vmem:[%s2586_s24] sm:$0xff]   ;;  %v2409_v7 = vld [vmem:[%s2586_s24 + $0x8] sm:$0xff]   ;;  %v2410_v8 = vld [vmem:[%s2586_s24 + $0x10] sm:$0xff]  }
  0x11   : > { %2365 = vmatprep.mubr.msk.bf16.mxu0 %vm333_vm2, %v2408_v6  ;;  %v2411_v9 = vld [vmem:[%s2586_s24 + $0x18] sm:$0xff]   ;;  %v2412_v10 = vld [vmem:[%s2586_s24 + $0x20] sm:$0xff]   ;;  %v2413_v11 = vld [vmem:[%s2586_s24 + $0x28] sm:$0xff]  }
  0x12   : > { %2366 = vmatmul.mubr.msk.bf16.vlgmr.msra.gmra.mrb[0].mxu0 %vm333_vm2, %v2409_v7  ;;  %v2414_v12 = vld [vmem:[%s2586_s24 + $0x30] sm:$0xff]   ;;  %v2415_v13 = vld [vmem:[%s2586_s24 + $0x38] sm:$0xff]   ;;  %v2416_v14 = vld [vmem:[%s2586_s24 + $0x40] sm:$0xff]  }
  0x13   : > { %2369 = vmatprep.mubr.msk.bf16.mxu0 %vm333_vm2, %v2410_v8  ;;  %v2417_v15 = vld [vmem:[%s2586_s24 + $0x48] sm:$0xff]   ;;  %v2418_v16 = vld [vmem:[%s2586_s24 + $0x50] sm:$0xff]   ;;  %v2419_v17 = vld [vmem:[%s2586_s24 + $0x58] sm:$0xff]  }
  0x14   : > { %v2420_v18 = vld [vmem:[%s2586_s24 + $0x60] sm:$0xff]   ;;  %v2421_v19 = vld [vmem:[%s2586_s24 + $0x68] sm:$0xff]   ;;  %v2422_v20 = vld [vmem:[%s2586_s24 + $0x70] sm:$0xff]  }
  0x15   : > { %v2423_v21 = vld [vmem:[%s2586_s24 + $0x78] sm:$0xff]  }
  0x1a   : > { %2370 = vmatmul.mubr.msk.bf16.gmra.mrb[4].mxu0 %vm333_vm2, %v2411_v9 }
  0x1b   : > { %2373 = vmatprep.mubr.msk.bf16.mxu0 %vm333_vm2, %v2412_v10 }
  0x22   : > { %2374 = vmatmul.mubr.msk.bf16.gmra.mrb[8].mxu0 %vm333_vm2, %v2413_v11 }
  0x23   : > { %2377 = vmatprep.mubr.msk.bf16.mxu0 %vm333_vm2, %v2414_v12 }
  0x2a   : > { %2378 = vmatmul.mubr.msk.bf16.gmra.mrb[12].mxu0 %vm333_vm2, %v2415_v13 }
  0x2b   : > { %2381 = vmatprep.mubr.msk.bf16.mxu0 %vm333_vm2, %v2416_v14 }
  0x32   : > { %2382 = vmatmul.mubr.msk.bf16.gmra.mrb[16].mxu0 %vm333_vm2, %v2417_v15 }
  0x33   : > { %2385 = vmatprep.mubr.msk.bf16.mxu0 %vm333_vm2, %v2418_v16 }
  0x3a   : > { %2386 = vmatmul.mubr.msk.bf16.gmra.mrb[20].mxu0 %vm333_vm2, %v2419_v17 }
  0x3b   : > { %2389 = vmatprep.mubr.msk.bf16.mxu0 %vm333_vm2, %v2420_v18 }
  0x42   : > { %2390 = vmatmul.mubr.msk.bf16.gmra.mrb[24].mxu0 %vm333_vm2, %v2421_v19 }
  0x43   : > { %2393 = vmatprep.mubr.msk.bf16.mxu0 %vm333_vm2, %v2422_v20 }
  0x4a   : > { %2394 = vmatmul.mubr.msk.bf16.gmra.mrb[28].mxu0 %vm333_vm2, %v2423_v21 }
  0x4b   : > { %914 = vmatprep.mubr.bf16.mxu0 %v2429_v23 }
  0xe5   : > { %v2367_v25 = vpop.f32.mrb[0].mxu0 }
  0xe6   : > { %v432_v26 = vadd.f32 %v2367_v25, %v2629_v24  ;;  %v423_v27 = vpop.f32.mrb[1].mxu0 }
  0xe7   : > { %v424_v28 = vadd.f32 %v2629_v24, %v423_v27  ;;  %v2368_v29 = vpop.f32.mrb[2].mxu0 }
  0xe8   : > { %v435_v30 = vadd.f32 %v2368_v29, %v2629_v24  ;;  %v426_v31 = vpop.f32.mrb[3].mxu0  ;;  %v552_v33 = vmax.f32 %v432_v26, 0.0 }
  0xe9   : > { %v427_v32 = vadd.f32 %v2629_v24, %v426_v31  ;;  %v550_v35 = vmax.f32 %v424_v28, 0.0 }
  0xea   : > { %v553_v34 = vmax.f32 %v435_v30, 0.0 }
  0xeb   : > { %v551_v36 = vmax.f32 %v427_v32, 0.0 }
  0xec   : > { %v2635_v37 = vpack.c.bf16 %v553_v34, %v552_v33 }
  0xed   : > { %v2637_v38 = vpack.c.bf16 %v551_v36, %v550_v35  ;;  %v2371_v39 = vpop.f32.mrb[4].mxu0 }
  0xee   : > { %v448_v40 = vadd.f32 %v2371_v39, %v2629_v24  ;;  %v439_v41 = vpop.f32.mrb[5].mxu0 }
  0xef   : > { %v440_v42 = vadd.f32 %v2629_v24, %v439_v41  ;;  %v2372_v43 = vpop.f32.mrb[6].mxu0 }
  0xf0   : > { %v451_v44 = vadd.f32 %v2372_v43, %v2629_v24  ;;  %v442_v45 = vpop.f32.mrb[7].mxu0  ;;  %v556_v47 = vmax.f32 %v448_v40, 0.0 }
  0xf1   : > { %v443_v46 = vadd.f32 %v2629_v24, %v442_v45  ;;  %v554_v49 = vmax.f32 %v440_v42, 0.0 }
  0xf2   : > { %v557_v48 = vmax.f32 %v451_v44, 0.0 }
  0xf3   : > { %v555_v50 = vmax.f32 %v443_v46, 0.0 }
  0xf4   : > { %v2643_v51 = vpack.c.bf16 %v557_v48, %v556_v47 }
  0xf5   : > { %v2645_v52 = vpack.c.bf16 %v555_v50, %v554_v49  ;;  %v2375_v53 = vpop.f32.mrb[8].mxu0 }
  0xf6   : > { %v464_v54 = vadd.f32 %v2375_v53, %v2629_v24  ;;  %v455_v55 = vpop.f32.mrb[9].mxu0 }
  0xf7   : > { %v456_v56 = vadd.f32 %v2629_v24, %v455_v55  ;;  %v2376_v57 = vpop.f32.mrb[10].mxu0 }
  0xf8   : > { %v467_v58 = vadd.f32 %v2376_v57, %v2629_v24  ;;  %v458_v59 = vpop.f32.mrb[11].mxu0  ;;  %v560_v61 = vmax.f32 %v464_v54, 0.0 }
  0xf9   : > { %v459_v60 = vadd.f32 %v2629_v24, %v458_v59  ;;  %v558_v63 = vmax.f32 %v456_v56, 0.0 }
  0xfa   : > { %v561_v62 = vmax.f32 %v467_v58, 0.0 }
  0xfb   : > { %v559_v0 = vmax.f32 %v459_v60, 0.0 }
  0xfc   : > { %v2651_v1 = vpack.c.bf16 %v561_v62, %v560_v61 }
  0xfd   : > { %v2653_v2 = vpack.c.bf16 %v559_v0, %v558_v63  ;;  %v2379_v3 = vpop.f32.mrb[12].mxu0 }
  0xfe   : > { %v480_v4 = vadd.f32 %v2379_v3, %v2629_v24  ;;  %v471_v5 = vpop.f32.mrb[13].mxu0 }
  0xff   : > { %v472_v6 = vadd.f32 %v2629_v24, %v471_v5  ;;  %v2380_v7 = vpop.f32.mrb[14].mxu0 }
 0x100   : > { %v483_v8 = vadd.f32 %v2380_v7, %v2629_v24  ;;  %v474_v9 = vpop.f32.mrb[15].mxu0  ;;  %v564_v11 = vmax.f32 %v480_v4, 0.0 }
 0x101   : > { %v475_v10 = vadd.f32 %v2629_v24, %v474_v9  ;;  %v562_v13 = vmax.f32 %v472_v6, 0.0 }
 0x102   : > { %v565_v12 = vmax.f32 %v483_v8, 0.0 }
 0x103   : > { %v563_v14 = vmax.f32 %v475_v10, 0.0 }
 0x104   : > { %v2659_v15 = vpack.c.bf16 %v565_v12, %v564_v11 }
 0x105   : > { %v2661_v16 = vpack.c.bf16 %v563_v14, %v562_v13  ;;  %v2383_v17 = vpop.f32.mrb[16].mxu0 }
 0x106   : > { %v496_v18 = vadd.f32 %v2383_v17, %v2629_v24  ;;  %v487_v19 = vpop.f32.mrb[17].mxu0 }
 0x107   : > { %v488_v20 = vadd.f32 %v2629_v24, %v487_v19  ;;  %v2384_v21 = vpop.f32.mrb[18].mxu0  ;;  %v2430_v19 = vld [vmem:[%s3209_s3 + $0x14] ss:$8 sps:$4 sm:$0xff]  }
 0x108   : > { %v499_v22 = vadd.f32 %v2384_v21, %v2629_v24  ;;  %v490_v23 = vpop.f32.mrb[19].mxu0  ;;  %v568_v26 = vmax.f32 %v496_v18, 0.0  ;;  %v2427_v18 = vld [vmem:[%s3209_s3 + $0x80] ss:$8 sps:$4 sm:$0xff]   ;;  %v2432_v21 = vld [vmem:[%s3209_s3 + $0x10] ss:$8 sps:$4 sm:$0xff]  }
 0x109   : > { %v491_v25 = vadd.f32 %v2629_v24, %v490_v23  ;;  %v566_v28 = vmax.f32 %v488_v20, 0.0  ;;  %v2433_v20 = vld [vmem:[%s3209_s3 + $0x94] ss:$8 sps:$4 sm:$0xff]   ;;  %v2436_v23 = vld [vmem:[%s3209_s3 + $0x24] ss:$8 sps:$4 sm:$0xff]  }
 0x10a   : > { %v569_v27 = vmax.f32 %v499_v22, 0.0  ;;  %v2435_v22 = vld [vmem:[%s3209_s3 + $0x90] ss:$8 sps:$4 sm:$0xff]  }
 0x10b   : > { %v567_v29 = vmax.f32 %v491_v25, 0.0  ;;  %v2439_v25 = vld [vmem:[%s3209_s3 + $0xa4] ss:$8 sps:$4 sm:$0xff]  }
 0x10c   : > { %v2667_v30 = vpack.c.bf16 %v569_v27, %v568_v26  ;;  %v2438_v26 = vld [vmem:[%s3209_s3 + $0x20] ss:$8 sps:$4 sm:$0xff]  }
 0x10d   : > { %v2669_v31 = vpack.c.bf16 %v567_v29, %v566_v28  ;;  %v2387_v32 = vpop.f32.mrb[20].mxu0  ;;  %v2441_v27 = vld [vmem:[%s3209_s3 + $0xa0] ss:$8 sps:$4 sm:$0xff]   ;;  %v2442_v28 = vld [vmem:[%s3209_s3 + $0x34] ss:$8 sps:$4 sm:$0xff]  }
 0x10e   : > { %v512_v33 = vadd.f32 %v2387_v32, %v2629_v24  ;;  %v503_v34 = vpop.f32.mrb[21].mxu0  ;;  %v2445_v29 = vld [vmem:[%s3209_s3 + $0xb4] ss:$8 sps:$4 sm:$0xff]   ;;  %v2444_v32 = vld [vmem:[%s3209_s3 + $0x30] ss:$8 sps:$4 sm:$0xff]  }
 0x10f   : > { %v504_v35 = vadd.f32 %v2629_v24, %v503_v34  ;;  %v2388_v36 = vpop.f32.mrb[22].mxu0  ;;  %2001 = vmatprep.subr.bf16.mxu1 %v2669_v31  ;;  %2081 = vmatprep.subr.bf16.mxu0 %v2669_v31  ;;  %v2450_v34 = vld [vmem:[%s3209_s3 + $0x44] ss:$8 sps:$4 sm:$0xff]  }
 0x110   : > { %v515_v39 = vadd.f32 %v2388_v36, %v2629_v24  ;;  %v506_v40 = vpop.f32.mrb[23].mxu0  ;;  %2002 = vmatpush3.bf16.msra.mxu1 %v2637_v38  ;;  %2082 = vmatpush3.bf16.msra.mxu0 %v2637_v38  ;;  %v572_v42 = vmax.f32 %v512_v33, 0.0  ;;  %v2447_v33 = vld [vmem:[%s3209_s3 + $0xb0] ss:$8 sps:$4 sm:$0xff]   ;;  %v2448_v36 = vld [vmem:[%s3209_s3 + $0x40] ss:$8 sps:$4 sm:$0xff]  }
 0x111   : > { %v507_v41 = vadd.f32 %v2629_v24, %v506_v40  ;;  %2003 = vmatprep.subr.bf16.mxu1 %v2667_v30  ;;  %2083 = vmatprep.subr.bf16.mxu0 %v2667_v30  ;;  %v570_v44 = vmax.f32 %v504_v35, 0.0  ;;  %v2453_v35 = vld [vmem:[%s3209_s3 + $0x104] ss:$8 sps:$4 sm:$0xff]   ;;  %v2454_v40 = vld [vmem:[%s3209_s3 + $0x54] ss:$8 sps:$4 sm:$0xff]  }
 0x112   : > { %v573_v43 = vmax.f32 %v515_v39, 0.0  ;;  %v2451_v39 = vld [vmem:[%s3209_s3 + $0x100] ss:$8 sps:$4 sm:$0xff]  }
 0x113   : > { %v571_v45 = vmax.f32 %v507_v41, 0.0  ;;  %v2457_v41 = vld [vmem:[%s3209_s3 + $0x114] ss:$8 sps:$4 sm:$0xff]  }
 0x114   : > { %v2681_v46 = vpack.c.bf16 %v573_v43, %v572_v42  ;;  %2004 = vmatpush3.bf16.msra.mxu1 %v2635_v37  ;;  %2084 = vmatpush3.bf16.msra.mxu0 %v2635_v37  ;;  %v2456_v42 = vld [vmem:[%s3209_s3 + $0x50] ss:$8 sps:$4 sm:$0xff]  }
 0x115   : > { %v2685_v47 = vpack.c.bf16 %v571_v45, %v570_v44  ;;  %v2391_v48 = vpop.f32.mrb[24].mxu0  ;;  %v2459_v43 = vld [vmem:[%s3209_s3 + $0x110] ss:$8 sps:$4 sm:$0xff]   ;;  %v2460_v44 = vld [vmem:[%s3209_s3 + $0x64] ss:$8 sps:$4 sm:$0xff]  }
 0x116   : > { %v528_v49 = vadd.f32 %v2391_v48, %v2629_v24  ;;  %v519_v50 = vpop.f32.mrb[25].mxu0  ;;  %v2463_v45 = vld [vmem:[%s3209_s3 + $0x124] ss:$8 sps:$4 sm:$0xff]   ;;  %v2462_v48 = vld [vmem:[%s3209_s3 + $0x60] ss:$8 sps:$4 sm:$0xff]  }
 0x117   : > { %v520_v53 = vadd.f32 %v2629_v24, %v519_v50  ;;  %v2392_v54 = vpop.f32.mrb[26].mxu0  ;;  %2005 = vmatprep.subr.bf16.mxu1 %v2685_v47  ;;  %2085 = vmatprep.subr.bf16.mxu0 %v2685_v47  ;;  %v2466_v50 = vld [vmem:[%s3209_s3 + $0x74] ss:$8 sps:$4 sm:$0xff]  }
 0x118   : > { %v531_v55 = vadd.f32 %v2392_v54, %v2629_v24  ;;  %v522_v56 = vpop.f32.mrb[27].mxu0  ;;  %2006 = vmatpush3.bf16.msra.mxu1 %v2645_v52  ;;  %2086 = vmatpush3.bf16.msra.mxu0 %v2645_v52  ;;  %v576_v58 = vmax.f32 %v528_v49, 0.0  ;;  %v2465_v49 = vld [vmem:[%s3209_s3 + $0x120] ss:$8 sps:$4 sm:$0xff]   ;;  %v2468_v54 = vld [vmem:[%s3209_s3 + $0x70] ss:$8 sps:$4 sm:$0xff]  }
 0x119   : > { %v523_v57 = vadd.f32 %v2629_v24, %v522_v56  ;;  %2007 = vmatprep.subr.bf16.mxu1 %v2681_v46  ;;  %2087 = vmatprep.subr.bf16.mxu0 %v2681_v46  ;;  %v574_v60 = vmax.f32 %v520_v53, 0.0  ;;  %v2469_v53 = vld [vmem:[%s3209_s3 + $0x134] ss:$8 sps:$4 sm:$0xff]   ;;  %v2474_v56 = vld [vmem:[%s3209_s3 + $0xc4] ss:$8 sps:$4 sm:$0xff]  }
 0x11a   : > { %v577_v59 = vmax.f32 %v531_v55, 0.0  ;;  %v2471_v55 = vld [vmem:[%s3209_s3 + $0x130] ss:$8 sps:$4 sm:$0xff]  }
 0x11b   : > { %v575_v61 = vmax.f32 %v523_v57, 0.0  ;;  %v2477_v57 = vld [vmem:[%s3209_s3 + $0x184] ss:$8 sps:$4 sm:$0xff]  }
 0x11c   : > { %v2697_v62 = vpack.c.bf16 %v577_v59, %v576_v58  ;;  %2008 = vmatpush3.bf16.msra.mxu1 %v2643_v51  ;;  %2088 = vmatpush3.bf16.msra.mxu0 %v2643_v51  ;;  %v2472_v58 = vld [vmem:[%s3209_s3 + $0xc0] ss:$8 sps:$4 sm:$0xff]  }
 0x11d   : > { %v2701_v63 = vpack.c.bf16 %v575_v61, %v574_v60  ;;  %v2395_v0 = vpop.f32.mrb[28].mxu0  ;;  %v2475_v59 = vld [vmem:[%s3209_s3 + $0x180] ss:$8 sps:$4 sm:$0xff]   ;;  %v2478_v60 = vld [vmem:[%s3209_s3 + $0xd4] ss:$8 sps:$4 sm:$0xff]  }
 0x11e   : > { %v544_v3 = vadd.f32 %v2395_v0, %v2629_v24  ;;  %v535_v4 = vpop.f32.mrb[29].mxu0  ;;  %v2492_v61 = vld [vmem:[%s3209_s3 + $0x194] ss:$8 sps:$4 sm:$0xff]   ;;  %v2480_v0 = vld [vmem:[%s3209_s3 + $0xd0] ss:$8 sps:$4 sm:$0xff]  }
 0x11f   : > { %v536_v5 = vadd.f32 %v2629_v24, %v535_v4  ;;  %v2396_v6 = vpop.f32.mrb[30].mxu0  ;;  %2009 = vmatprep.subr.bf16.mxu1 %v2701_v63  ;;  %2089 = vmatprep.subr.bf16.mxu0 %v2701_v63  ;;  %v2481_v4 = vld [vmem:[%s3209_s3 + $0xe4] ss:$8 sps:$4 sm:$0xff]  }
 0x120   : > { %v547_v7 = vadd.f32 %v2396_v6, %v2629_v24  ;;  %v538_v8 = vpop.f32.mrb[31].mxu0  ;;  %2010 = vmatpush3.bf16.msra.mxu1 %v2653_v2  ;;  %2090 = vmatpush3.bf16.msra.mxu0 %v2653_v2  ;;  %v580_v10 = vmax.f32 %v544_v3, 0.0  ;;  %v2495_v3 = vld [vmem:[%s3209_s3 + $0x190] ss:$8 sps:$4 sm:$0xff]   ;;  %v2483_v6 = vld [vmem:[%s3209_s3 + $0xe0] ss:$8 sps:$4 sm:$0xff]  }
 0x121   : > { %v539_v9 = vadd.f32 %v2629_v24, %v538_v8  ;;  %2011 = vmatprep.subr.bf16.mxu1 %v2697_v62  ;;  %2091 = vmatprep.subr.bf16.mxu0 %v2697_v62  ;;  %v578_v12 = vmax.f32 %v536_v5, 0.0  ;;  %v2424_v24 = vld [vmem:[%s3209_s3] ss:$8 sps:$4 sm:$0xff]   ;;  %v2498_v5 = vld [vmem:[%s3209_s3 + $0x1a4] ss:$8 sps:$4 sm:$0xff]  }
 0x122   : > { %v581_v11 = vmax.f32 %v547_v7, 0.0  ;;  %v2501_v7 = vld [vmem:[%s3209_s3 + $0x1a0] ss:$8 sps:$4 sm:$0xff]   ;;  %v2484_v8 = vld [vmem:[%s3209_s3 + $0xf4] ss:$8 sps:$4 sm:$0xff]  }
 0x123   : > { %v579_v13 = vmax.f32 %v539_v9, 0.0  ;;  %v2504_v9 = vld [vmem:[%s3209_s3 + $0x1b4] ss:$8 sps:$4 sm:$0xff]  }
 0x124   : > { %v2713_v14 = vpack.c.bf16 %v581_v11, %v580_v10  ;;  %2012 = vmatpush3.bf16.msra.mxu1 %v2651_v1  ;;  %2092 = vmatpush3.bf16.msra.mxu0 %v2651_v1  ;;  %v2486_v10 = vld [vmem:[%s3209_s3 + $0xf0] ss:$8 sps:$4 sm:$0xff]  }
 0x125   : > { %v2717_v17 = vpack.c.bf16 %v579_v13, %v578_v12  ;;  %v2507_v11 = vld [vmem:[%s3209_s3 + $0x1b0] ss:$8 sps:$4 sm:$0xff]   ;;  %v2489_v12 = vld [vmem:[%s3209_s3 + $0x144] ss:$8 sps:$4 sm:$0xff]  }
 0x126   : > { %v2513_v13 = vld [vmem:[%s3209_s3 + $0x204] ss:$8 sps:$4 sm:$0xff]  }
 0x127   : > { %2013 = vmatprep.subr.bf16.mxu1 %v2717_v17  ;;  %2093 = vmatprep.subr.bf16.mxu0 %v2717_v17 }
 0x128   : > { %2014 = vmatpush3.bf16.msra.mxu1 %v2661_v16  ;;  %2094 = vmatpush3.bf16.msra.mxu0 %v2661_v16 }
 0x129   : > { %2015 = vmatprep.subr.bf16.mxu1 %v2713_v14  ;;  %2095 = vmatprep.subr.bf16.mxu0 %v2713_v14 }
 0x12c   : > { %2016 = vmatpush3.bf16.msra.mxu1 %v2659_v15  ;;  %2096 = vmatpush3.bf16.msra.mxu0 %v2659_v15 }
 0x12d   : > { %2041 = vmatprep.subr.bf16.mxu1 %v2669_v31  ;;  %2161 = vmatprep.subr.bf16.mxu0 %v2669_v31 }
 0x12f   : > { %679 = vmatmul.mubr.bf16.vlgmr.msra.gmra.mrb[0].mxu1 %v2424_v24  ;;  %915 = vmatmul.mubr.bf16.vlgmr.msra.gmra.mrb[32].mxu0 %v2427_v18  ;;  %v2487_v24 = vld [vmem:[%s3209_s3 + $0x140] ss:$8 sps:$4 sm:$0xff]  }
 0x130   : > { %2042 = vmatpush3.bf16.msra.mxu1 %v2637_v38  ;;  %2162 = vmatpush3.bf16.msra.mxu0 %v2637_v38  ;;  %v2511_v18 = vld [vmem:[%s3209_s3 + $0x200] ss:$8 sps:$4 sm:$0xff]  }
 0x131   : > { %2043 = vmatprep.subr.bf16.mxu1 %v2667_v30  ;;  %2163 = vmatprep.subr.bf16.mxu0 %v2667_v30 }
 0x132   : > { %686 = vmatprep.mubr.bf16.mxu1 %v2430_v19  ;;  %922 = vmatprep.mubr.bf16.mxu0 %v2433_v20  ;;  %v2490_v19 = vld [vmem:[%s3209_s3 + $0x154] ss:$8 sps:$4 sm:$0xff]  }
 0x133   : > { %v2516_v20 = vld [vmem:[%s3209_s3 + $0x214] ss:$8 sps:$4 sm:$0xff]  }
 0x134   : > { %2044 = vmatpush3.bf16.msra.mxu1 %v2635_v37  ;;  %2164 = vmatpush3.bf16.msra.mxu0 %v2635_v37 }
 0x135   : > { %2045 = vmatprep.subr.bf16.mxu1 %v2685_v47  ;;  %2165 = vmatprep.subr.bf16.mxu0 %v2685_v47 }
 0x137   : > { %687 = vmatmul.mubr.bf16.gmra.mrb[4].mxu1 %v2432_v21  ;;  %923 = vmatmul.mubr.bf16.gmra.mrb[36].mxu0 %v2435_v22  ;;  %v2494_v21 = vld [vmem:[%s3209_s3 + $0x150] ss:$8 sps:$4 sm:$0xff]   ;;  %v2496_v22 = vld [vmem:[%s3209_s3 + $0x164] ss:$8 sps:$4 sm:$0xff]  }
 0x138   : > { %2046 = vmatpush3.bf16.msra.mxu1 %v2645_v52  ;;  %2166 = vmatpush3.bf16.msra.mxu0 %v2645_v52 }
 0x139   : > { %2047 = vmatprep.subr.bf16.mxu1 %v2681_v46  ;;  %2167 = vmatprep.subr.bf16.mxu0 %v2681_v46 }
 0x13a   : > { %694 = vmatprep.mubr.bf16.mxu1 %v2436_v23  ;;  %930 = vmatprep.mubr.bf16.mxu0 %v2439_v25 }
 0x13c   : > { %2048 = vmatpush3.bf16.msra.mxu1 %v2643_v51  ;;  %2168 = vmatpush3.bf16.msra.mxu0 %v2643_v51 }
 0x13d   : > { %2049 = vmatprep.subr.bf16.mxu1 %v2701_v63  ;;  %2169 = vmatprep.subr.bf16.mxu0 %v2701_v63 }
 0x13f   : > { %695 = vmatmul.mubr.bf16.gmra.mrb[8].mxu1 %v2438_v26  ;;  %931 = vmatmul.mubr.bf16.gmra.mrb[40].mxu0 %v2441_v27 }
 0x140   : > { %2050 = vmatpush3.bf16.msra.mxu1 %v2653_v2  ;;  %2170 = vmatpush3.bf16.msra.mxu0 %v2653_v2 }
 0x141   : > { %2051 = vmatprep.subr.bf16.mxu1 %v2697_v62  ;;  %2171 = vmatprep.subr.bf16.mxu0 %v2697_v62 }
 0x142   : > { %702 = vmatprep.mubr.bf16.mxu1 %v2442_v28  ;;  %938 = vmatprep.mubr.bf16.mxu0 %v2445_v29 }
 0x144   : > { %2052 = vmatpush3.bf16.msra.mxu1 %v2651_v1  ;;  %2172 = vmatpush3.bf16.msra.mxu0 %v2651_v1 }
 0x145   : > { %2053 = vmatprep.subr.bf16.mxu1 %v2717_v17  ;;  %2173 = vmatprep.subr.bf16.mxu0 %v2717_v17 }
 0x147   : > { %703 = vmatmul.mubr.bf16.gmra.mrb[12].mxu1 %v2444_v32  ;;  %939 = vmatmul.mubr.bf16.gmra.mrb[44].mxu0 %v2447_v33 }
 0x148   : > { %2054 = vmatpush3.bf16.msra.mxu1 %v2661_v16  ;;  %2174 = vmatpush3.bf16.msra.mxu0 %v2661_v16 }
 0x149   : > { %2055 = vmatprep.subr.bf16.mxu1 %v2713_v14  ;;  %2175 = vmatprep.subr.bf16.mxu0 %v2713_v14 }
 0x14a   : > { %792 = vmatprep.mubr.bf16.mxu1 %v2450_v34  ;;  %1158 = vmatprep.mubr.bf16.mxu0 %v2453_v35 }
 0x14c   : > { %2056 = vmatpush3.bf16.msra.mxu1 %v2659_v15  ;;  %2176 = vmatpush3.bf16.msra.mxu0 %v2659_v15 }
 0x14d   : > { %2121 = vmatprep.subr.bf16.mxu1 %v2669_v31  ;;  %2241 = vmatprep.subr.bf16.mxu0 %v2669_v31 }
 0x14f   : > { %793 = vmatmul.mubr.bf16.vlgmr.msra.gmra.mrb[16].mxu1 %v2448_v36  ;;  %1159 = vmatmul.mubr.bf16.vlgmr.msra.gmra.mrb[48].mxu0 %v2451_v39 }
 0x150   : > { %2122 = vmatpush3.bf16.msra.mxu1 %v2637_v38  ;;  %2242 = vmatpush3.bf16.msra.mxu0 %v2637_v38 }
 0x151   : > { %2123 = vmatprep.subr.bf16.mxu1 %v2667_v30  ;;  %2243 = vmatprep.subr.bf16.mxu0 %v2667_v30 }
 0x152   : > { %800 = vmatprep.mubr.bf16.mxu1 %v2454_v40  ;;  %1166 = vmatprep.mubr.bf16.mxu0 %v2457_v41 }
 0x154   : > { %2124 = vmatpush3.bf16.msra.mxu1 %v2635_v37  ;;  %2244 = vmatpush3.bf16.msra.mxu0 %v2635_v37 }
 0x155   : > { %2125 = vmatprep.subr.bf16.mxu1 %v2685_v47  ;;  %2245 = vmatprep.subr.bf16.mxu0 %v2685_v47 }
 0x157   : > { %801 = vmatmul.mubr.bf16.gmra.mrb[20].mxu1 %v2456_v42  ;;  %1167 = vmatmul.mubr.bf16.gmra.mrb[52].mxu0 %v2459_v43 }
 0x158   : > { %2126 = vmatpush3.bf16.msra.mxu1 %v2645_v52  ;;  %2246 = vmatpush3.bf16.msra.mxu0 %v2645_v52 }
 0x159   : > { %2127 = vmatprep.subr.bf16.mxu1 %v2681_v46  ;;  %2247 = vmatprep.subr.bf16.mxu0 %v2681_v46 }
 0x15a   : > { %808 = vmatprep.mubr.bf16.mxu1 %v2460_v44  ;;  %1174 = vmatprep.mubr.bf16.mxu0 %v2463_v45 }
 0x15c   : > { %2128 = vmatpush3.bf16.msra.mxu1 %v2643_v51  ;;  %2248 = vmatpush3.bf16.msra.mxu0 %v2643_v51 }
 0x15d   : > { %2129 = vmatprep.subr.bf16.mxu1 %v2701_v63  ;;  %2249 = vmatprep.subr.bf16.mxu0 %v2701_v63 }
 0x15f   : > { %809 = vmatmul.mubr.bf16.gmra.mrb[24].mxu1 %v2462_v48  ;;  %1175 = vmatmul.mubr.bf16.gmra.mrb[56].mxu0 %v2465_v49 }
 0x160   : > { %2130 = vmatpush3.bf16.msra.mxu1 %v2653_v2  ;;  %2250 = vmatpush3.bf16.msra.mxu0 %v2653_v2 }
 0x161   : > { %2131 = vmatprep.subr.bf16.mxu1 %v2697_v62  ;;  %2251 = vmatprep.subr.bf16.mxu0 %v2697_v62 }
 0x162   : > { %816 = vmatprep.mubr.bf16.mxu1 %v2466_v50  ;;  %1182 = vmatprep.mubr.bf16.mxu0 %v2469_v53 }
 0x164   : > { %2132 = vmatpush3.bf16.msra.mxu1 %v2651_v1  ;;  %2252 = vmatpush3.bf16.msra.mxu0 %v2651_v1 }
 0x165   : > { %2133 = vmatprep.subr.bf16.mxu1 %v2717_v17  ;;  %2253 = vmatprep.subr.bf16.mxu0 %v2717_v17 }
 0x167   : > { %817 = vmatmul.mubr.bf16.gmra.mrb[28].mxu1 %v2468_v54  ;;  %1183 = vmatmul.mubr.bf16.gmra.mrb[60].mxu0 %v2471_v55 }
 0x168   : > { %2134 = vmatpush3.bf16.msra.mxu1 %v2661_v16  ;;  %2254 = vmatpush3.bf16.msra.mxu0 %v2661_v16 }
 0x169   : > { %2135 = vmatprep.subr.bf16.mxu1 %v2713_v14  ;;  %2255 = vmatprep.subr.bf16.mxu0 %v2713_v14 }
 0x16a   : > { %1036 = vmatprep.mubr.bf16.mxu1 %v2474_v56  ;;  %1402 = vmatprep.mubr.bf16.mxu0 %v2477_v57 }
 0x16c   : > { %2136 = vmatpush3.bf16.msra.mxu1 %v2659_v15  ;;  %2256 = vmatpush3.bf16.msra.mxu0 %v2659_v15 }
 0x16d   : > { %2201 = vmatprep.subr.bf16.mxu1 %v2669_v31  ;;  %2321 = vmatprep.subr.bf16.mxu0 %v2669_v31 }
 0x16f   : > { %1037 = vmatmul.mubr.bf16.vlgmr.msra.gmra.mrb[32].mxu1 %v2472_v58  ;;  %1403 = vmatmul.mubr.bf16.vlgmr.msra.gmra.mrb[64].mxu0 %v2475_v59 }
 0x170   : > { %2202 = vmatpush3.bf16.msra.mxu1 %v2637_v38  ;;  %2322 = vmatpush3.bf16.msra.mxu0 %v2637_v38 }
 0x171   : > { %2203 = vmatprep.subr.bf16.mxu1 %v2667_v30  ;;  %2323 = vmatprep.subr.bf16.mxu0 %v2667_v30 }
 0x172   : > { %1044 = vmatprep.mubr.bf16.mxu1 %v2478_v60  ;;  %1410 = vmatprep.mubr.bf16.mxu0 %v2492_v61 }
 0x174   : > { %2204 = vmatpush3.bf16.msra.mxu1 %v2635_v37  ;;  %2324 = vmatpush3.bf16.msra.mxu0 %v2635_v37 }
 0x175   : > { %2205 = vmatprep.subr.bf16.mxu1 %v2685_v47  ;;  %2325 = vmatprep.subr.bf16.mxu0 %v2685_v47 }
 0x177   : > { %1045 = vmatmul.mubr.bf16.gmra.mrb[36].mxu1 %v2480_v0  ;;  %1411 = vmatmul.mubr.bf16.gmra.mrb[68].mxu0 %v2495_v3 }
 0x178   : > { %2206 = vmatpush3.bf16.msra.mxu1 %v2645_v52  ;;  %2326 = vmatpush3.bf16.msra.mxu0 %v2645_v52 }
 0x179   : > { %2207 = vmatprep.subr.bf16.mxu1 %v2681_v46  ;;  %2327 = vmatprep.subr.bf16.mxu0 %v2681_v46 }
 0x17a   : > { %1052 = vmatprep.mubr.bf16.mxu1 %v2481_v4  ;;  %1418 = vmatprep.mubr.bf16.mxu0 %v2498_v5 }
 0x17c   : > { %2208 = vmatpush3.bf16.msra.mxu1 %v2643_v51  ;;  %2328 = vmatpush3.bf16.msra.mxu0 %v2643_v51 }
 0x17d   : > { %2209 = vmatprep.subr.bf16.mxu1 %v2701_v63  ;;  %2329 = vmatprep.subr.bf16.mxu0 %v2701_v63 }
 0x17f   : > { %1053 = vmatmul.mubr.bf16.gmra.mrb[40].mxu1 %v2483_v6  ;;  %1419 = vmatmul.mubr.bf16.gmra.mrb[72].mxu0 %v2501_v7 }
 0x180   : > { %2210 = vmatpush3.bf16.msra.mxu1 %v2653_v2  ;;  %2330 = vmatpush3.bf16.msra.mxu0 %v2653_v2 }
 0x181   : > { %2211 = vmatprep.subr.bf16.mxu1 %v2697_v62  ;;  %2331 = vmatprep.subr.bf16.mxu0 %v2697_v62 }
 0x182   : > { %1060 = vmatprep.mubr.bf16.mxu1 %v2484_v8  ;;  %1426 = vmatprep.mubr.bf16.mxu0 %v2504_v9 }
 0x184   : > { %2212 = vmatpush3.bf16.msra.mxu1 %v2651_v1  ;;  %2332 = vmatpush3.bf16.msra.mxu0 %v2651_v1 }
 0x185   : > { %2213 = vmatprep.subr.bf16.mxu1 %v2717_v17  ;;  %2333 = vmatprep.subr.bf16.mxu0 %v2717_v17 }
 0x187   : > { %1061 = vmatmul.mubr.bf16.gmra.mrb[44].mxu1 %v2486_v10  ;;  %1427 = vmatmul.mubr.bf16.gmra.mrb[76].mxu0 %v2507_v11 }
 0x188   : > { %2214 = vmatpush3.bf16.msra.mxu1 %v2661_v16  ;;  %2334 = vmatpush3.bf16.msra.mxu0 %v2661_v16 }
 0x189   : > { %2215 = vmatprep.subr.bf16.mxu1 %v2713_v14  ;;  %2335 = vmatprep.subr.bf16.mxu0 %v2713_v14 }
 0x18a   : > { %1280 = vmatprep.mubr.bf16.mxu1 %v2489_v12  ;;  %1646 = vmatprep.mubr.bf16.mxu0 %v2513_v13 }
 0x18c   : > { %2216 = vmatpush3.bf16.msra.mxu1 %v2659_v15  ;;  %2336 = vmatpush3.bf16.msra.mxu0 %v2659_v15 }
 0x18d   : > { %2281 = vmatprep.subr.bf16.mxu1 %v2669_v31  ;;  %v2519_v31 = vld [vmem:[%s3209_s3 + $0x210] ss:$8 sps:$4 sm:$0xff]  }
 0x18f   : > { %1281 = vmatmul.mubr.bf16.vlgmr.msra.gmra.mrb[48].mxu1 %v2487_v24  ;;  %1647 = vmatmul.mubr.bf16.vlgmr.msra.gmra.mrb[80].mxu0 %v2511_v18 }
 0x190   : > { %2282 = vmatpush3.bf16.msra.mxu1 %v2637_v38  ;;  %1288 = vmatprep.mubr.bf16.mxu1 %v2490_v19  ;;  %v2522_v38 = vld [vmem:[%s3209_s3 + $0x224] ss:$8 sps:$4 sm:$0xff]  }
 0x191   : > { %2283 = vmatprep.subr.bf16.mxu1 %v2667_v30  ;;  %1654 = vmatprep.mubr.bf16.mxu0 %v2516_v20  ;;  %v2525_v30 = vld [vmem:[%s3209_s3 + $0x220] ss:$8 sps:$4 sm:$0xff]  }
 0x194   : > { %2284 = vmatpush3.bf16.msra.mxu1 %v2635_v37  ;;  %v2500_v37 = vld [vmem:[%s3209_s3 + $0x160] ss:$8 sps:$4 sm:$0xff]  }
 0x195   : > { %2285 = vmatprep.subr.bf16.mxu1 %v2685_v47  ;;  %v2502_v47 = vld [vmem:[%s3209_s3 + $0x174] ss:$8 sps:$4 sm:$0xff]  }
 0x197   : > { %1289 = vmatmul.mubr.bf16.gmra.mrb[52].mxu1 %v2494_v21  ;;  %1655 = vmatmul.mubr.bf16.gmra.mrb[84].mxu0 %v2519_v31 }
 0x198   : > { %2286 = vmatpush3.bf16.msra.mxu1 %v2645_v52  ;;  %1296 = vmatprep.mubr.bf16.mxu1 %v2496_v22  ;;  %v2528_v52 = vld [vmem:[%s3209_s3 + $0x234] ss:$8 sps:$4 sm:$0xff]  }
 0x199   : > { %2287 = vmatprep.subr.bf16.mxu1 %v2681_v46  ;;  %1662 = vmatprep.mubr.bf16.mxu0 %v2522_v38  ;;  %v2531_v46 = vld [vmem:[%s3209_s3 + $0x230] ss:$8 sps:$4 sm:$0xff]  }
 0x19c   : > { %2288 = vmatpush3.bf16.msra.mxu1 %v2643_v51  ;;  %v2506_v51 = vld [vmem:[%s3209_s3 + $0x170] ss:$8 sps:$4 sm:$0xff]  }
 0x19d   : > { %2289 = vmatprep.subr.bf16.mxu1 %v2701_v63  ;;  %v2510_v63 = vld [vmem:[%s3209_s3 + $0x1c4] ss:$8 sps:$4 sm:$0xff]  }
 0x19f   : > { %1297 = vmatmul.mubr.bf16.gmra.mrb[56].mxu1 %v2500_v37  ;;  %1663 = vmatmul.mubr.bf16.gmra.mrb[88].mxu0 %v2525_v30 }
 0x1a0   : > { %2290 = vmatpush3.bf16.msra.mxu1 %v2653_v2  ;;  %1304 = vmatprep.mubr.bf16.mxu1 %v2502_v47  ;;  %v2508_v2 = vld [vmem:[%s3209_s3 + $0x1c0] ss:$8 sps:$4 sm:$0xff]  }
 0x1a1   : > { %2291 = vmatprep.subr.bf16.mxu1 %v2697_v62  ;;  %1670 = vmatprep.mubr.bf16.mxu0 %v2528_v52  ;;  %v2518_v62 = vld [vmem:[%s3209_s3 + $0x1d0] ss:$8 sps:$4 sm:$0xff]  }
 0x1a4   : > { %2292 = vmatpush3.bf16.msra.mxu1 %v2651_v1  ;;  %v2514_v1 = vld [vmem:[%s3209_s3 + $0x1d4] ss:$8 sps:$4 sm:$0xff]  }
 0x1a5   : > { %2293 = vmatprep.subr.bf16.mxu1 %v2717_v17  ;;  %v2530_v17 = vld [vmem:[%s3209_s3 + $0x1f0] ss:$8 sps:$4 sm:$0xff]  }
 0x1a7   : > { %1305 = vmatmul.mubr.bf16.gmra.mrb[60].mxu1 %v2506_v51  ;;  %1671 = vmatmul.mubr.bf16.gmra.mrb[92].mxu0 %v2531_v46 }
 0x1a8   : > { %2294 = vmatpush3.bf16.msra.mxu1 %v2661_v16  ;;  %1524 = vmatprep.mubr.bf16.mxu1 %v2510_v63  ;;  %v2520_v16 = vld [vmem:[%s3209_s3 + $0x1e4] ss:$8 sps:$4 sm:$0xff]  }
 0x1a9   : > { %2295 = vmatprep.subr.bf16.mxu1 %v2713_v14  ;;  %v2526_v14 = vld [vmem:[%s3209_s3 + $0x1f4] ss:$8 sps:$4 sm:$0xff]  }
 0x1ac   : > { %2296 = vmatpush3.bf16.msra.mxu1 %v2659_v15  ;;  %v2524_v15 = vld [vmem:[%s3209_s3 + $0x1e0] ss:$8 sps:$4 sm:$0xff]  }
 0x1af   : > { %1525 = vmatmul.mubr.bf16.vlgmr.msra.gmra.mrb[64].mxu1 %v2508_v2 }
 0x1b0   : > { %1532 = vmatprep.mubr.bf16.mxu1 %v2514_v1 }
 0x1b7   : > { %1533 = vmatmul.mubr.bf16.gmra.mrb[68].mxu1 %v2518_v62 }
 0x1b8   : > { %1540 = vmatprep.mubr.bf16.mxu1 %v2520_v16 }
 0x1bf   : > { %1541 = vmatmul.mubr.bf16.gmra.mrb[72].mxu1 %v2524_v15 }
 0x1c0   : > { %1548 = vmatprep.mubr.bf16.mxu1 %v2526_v14 }
 0x1c7   : > { %1549 = vmatmul.mubr.bf16.gmra.mrb[76].mxu1 %v2530_v17 }
 0x202   : > { %v2017_v23 = vpop.f32.mrb[0].mxu1  ;;  %v2097_v25 = vpop.f32.mrb[32].mxu0 }
 0x203   : > { %v2018_v26 = vpop.f32.mrb[1].mxu1  ;;  %v2098_v27 = vpop.f32.mrb[33].mxu0 }
 0x204   : > { %v2019_v28 = vadd.f32 %v2018_v26, %v2017_v23  ;;  %v2020_v29 = vpop.f32.mrb[2].mxu1  ;;  %v2099_v32 = vadd.f32 %v2098_v27, %v2097_v25  ;;  %v2100_v33 = vpop.f32.mrb[34].mxu0 }
 0x205   : > { %v2021_v34 = vpop.f32.mrb[3].mxu1  ;;  %v2101_v35 = vpop.f32.mrb[35].mxu0 }
 0x206   : > { %v2022_v36 = vadd.f32 %v2021_v34, %v2020_v29  ;;  %v2102_v39 = vadd.f32 %v2101_v35, %v2100_v33 }
 0x20a   : > { %v2023_v40 = vpop.f32.mrb[4].mxu1  ;;  %v2103_v41 = vpop.f32.mrb[36].mxu0 }
 0x20b   : > { %v2024_v42 = vpop.f32.mrb[5].mxu1  ;;  %v2104_v43 = vpop.f32.mrb[37].mxu0 }
 0x20c   : > { %v2025_v44 = vadd.f32 %v2024_v42, %v2023_v40  ;;  %v2026_v45 = vpop.f32.mrb[6].mxu1  ;;  %v2105_v48 = vadd.f32 %v2104_v43, %v2103_v41  ;;  %v2106_v49 = vpop.f32.mrb[38].mxu0 }
 0x20d   : > { %v2027_v50 = vpop.f32.mrb[7].mxu1  ;;  %v2107_v53 = vpop.f32.mrb[39].mxu0 }
 0x20e   : > { %v2028_v54 = vadd.f32 %v2027_v50, %v2026_v45  ;;  %v2108_v55 = vadd.f32 %v2107_v53, %v2106_v49 }
 0x212   : > { %v2029_v56 = vpop.f32.mrb[8].mxu1  ;;  %v2109_v57 = vpop.f32.mrb[40].mxu0 }
 0x213   : > { %v2030_v58 = vpop.f32.mrb[9].mxu1  ;;  %v2110_v59 = vpop.f32.mrb[41].mxu0 }
 0x214   : > { %v3049_v60 = vadd.f32 %v2030_v58, %v2029_v56  ;;  %v2032_v61 = vpop.f32.mrb[10].mxu1  ;;  %v3051_v0 = vadd.f32 %v2110_v59, %v2109_v57  ;;  %v2112_v3 = vpop.f32.mrb[42].mxu0 }
 0x215   : > { %v2033_v4 = vpop.f32.mrb[11].mxu1  ;;  %v2113_v5 = vpop.f32.mrb[43].mxu0 }
 0x216   : > { %v2034_v6 = vadd.f32 %v2033_v4, %v2032_v61  ;;  %v2114_v7 = vadd.f32 %v2113_v5, %v2112_v3 }
 0x21a   : > { %v2035_v8 = vpop.f32.mrb[12].mxu1  ;;  %v2115_v9 = vpop.f32.mrb[44].mxu0 }
 0x21b   : > { %v2036_v10 = vpop.f32.mrb[13].mxu1  ;;  %v2116_v11 = vpop.f32.mrb[45].mxu0 }
 0x21c   : > { %v3053_v12 = vadd.f32 %v2036_v10, %v2035_v8  ;;  %v2038_v13 = vpop.f32.mrb[14].mxu1  ;;  %v3055_v24 = vadd.f32 %v2116_v11, %v2115_v9  ;;  %v2118_v18 = vpop.f32.mrb[46].mxu0 }
 0x21d   : > { %v2039_v19 = vpop.f32.mrb[15].mxu1  ;;  %v2119_v20 = vpop.f32.mrb[47].mxu0 }
 0x21e   : > { %v3057_v21 = vadd.f32 %v2039_v19, %v2038_v13  ;;  %v3059_v31 = vadd.f32 %v2119_v20, %v2118_v18 }
 0x222   : > { %v2057_v22 = vpop.f32.mrb[16].mxu1  ;;  %v2177_v38 = vpop.f32.mrb[48].mxu0 }
 0x223   : > { %v2058_v37 = vpop.f32.mrb[17].mxu1  ;;  %v2178_v30 = vpop.f32.mrb[49].mxu0 }
 0x224   : > { %v2059_v47 = vadd.f32 %v2058_v37, %v2057_v22  ;;  %v2060_v52 = vpop.f32.mrb[18].mxu1  ;;  %v3061_v51 = vadd.f32 %v2178_v30, %v2177_v38  ;;  %v2180_v46 = vpop.f32.mrb[50].mxu0 }
 0x225   : > { %v2061_v63 = vpop.f32.mrb[19].mxu1  ;;  %v2181_v2 = vpop.f32.mrb[51].mxu0 }
 0x226   : > { %v825_v1 = vmax.f32 %v2019_v28, %v2059_v47  ;;  %v2062_v62 = vadd.f32 %v2061_v63, %v2060_v52  ;;  %v3063_v16 = vadd.f32 %v2181_v2, %v2180_v46 }
 0x228   : > { %v3065_v15 = vmax.f32 %v825_v1, %v2099_v32  ;;  %v826_v14 = vmax.f32 %v2022_v36, %v2062_v62 }
 0x22a   : > { %v3067_v17 = vmax.f32 %v826_v14, %v2102_v39  ;;  %v2063_v23 = vpop.f32.mrb[20].mxu1  ;;  %v2183_v25 = vpop.f32.mrb[52].mxu0 }
 0x22b   : > { %v2064_v26 = vpop.f32.mrb[21].mxu1  ;;  %v2184_v27 = vpop.f32.mrb[53].mxu0 }
 0x22c   : > { %v2065_v29 = vadd.f32 %v2064_v26, %v2063_v23  ;;  %v2066_v33 = vpop.f32.mrb[22].mxu1  ;;  %v3069_v34 = vadd.f32 %v2184_v27, %v2183_v25  ;;  %v2186_v35 = vpop.f32.mrb[54].mxu0 }
 0x22d   : > { %v2067_v40 = vpop.f32.mrb[23].mxu1  ;;  %v2187_v41 = vpop.f32.mrb[55].mxu0 }
 0x22e   : > { %v827_v28 = vmax.f32 %v2025_v44, %v2065_v29  ;;  %v2068_v42 = vadd.f32 %v2067_v40, %v2066_v33  ;;  %v3071_v43 = vadd.f32 %v2187_v41, %v2186_v35 }
 0x230   : > { %v3073_v32 = vmax.f32 %v827_v28, %v2105_v48  ;;  %v828_v36 = vmax.f32 %v2028_v54, %v2068_v42 }
 0x232   : > { %v3075_v39 = vmax.f32 %v828_v36, %v2108_v55  ;;  %v2069_v45 = vpop.f32.mrb[24].mxu1  ;;  %v2189_v49 = vpop.f32.mrb[56].mxu0 }
 0x233   : > { %v2070_v50 = vpop.f32.mrb[25].mxu1  ;;  %v2190_v53 = vpop.f32.mrb[57].mxu0 }
 0x234   : > { %v2071_v56 = vadd.f32 %v2070_v50, %v2069_v45  ;;  %v2072_v57 = vpop.f32.mrb[26].mxu1  ;;  %v3077_v58 = vadd.f32 %v2190_v53, %v2189_v49  ;;  %v2192_v59 = vpop.f32.mrb[58].mxu0 }
 0x235   : > { %v2073_v61 = vpop.f32.mrb[27].mxu1  ;;  %v2193_v3 = vpop.f32.mrb[59].mxu0 }
 0x236   : > { %v829_v44 = vmax.f32 %v3049_v60, %v2071_v56  ;;  %v2074_v4 = vadd.f32 %v2073_v61, %v2072_v57  ;;  %v3080_v5 = vadd.f32 %v2193_v3, %v2192_v59 }
 0x238   : > { %v3083_v48 = vmax.f32 %v829_v44, %v3051_v0  ;;  %v830_v54 = vmax.f32 %v2034_v6, %v2074_v4 }
 0x23a   : > { %v3085_v55 = vmax.f32 %v830_v54, %v2114_v7  ;;  %v2075_v8 = vpop.f32.mrb[28].mxu1  ;;  %v2195_v9 = vpop.f32.mrb[60].mxu0 }
 0x23b   : > { %v2076_v10 = vpop.f32.mrb[29].mxu1  ;;  %v2196_v11 = vpop.f32.mrb[61].mxu0 }
 0x23c   : > { %v2077_v13 = vadd.f32 %v2076_v10, %v2075_v8  ;;  %v2078_v18 = vpop.f32.mrb[30].mxu1  ;;  %v3087_v19 = vadd.f32 %v2196_v11, %v2195_v9  ;;  %v2198_v20 = vpop.f32.mrb[62].mxu0 }
 0x23d   : > { %v2079_v22 = vpop.f32.mrb[31].mxu1  ;;  %v2199_v60 = vpop.f32.mrb[63].mxu0 }
 0x23e   : > { %v831_v38 = vmax.f32 %v3053_v12, %v2077_v13  ;;  %v2080_v37 = vadd.f32 %v2079_v22, %v2078_v18  ;;  %v3090_v30 = vadd.f32 %v2199_v60, %v2198_v20 }
 0x240   : > { %v3093_v0 = vmax.f32 %v831_v38, %v3055_v24  ;;  %v832_v6 = vmax.f32 %v3057_v21, %v2080_v37 }
 0x242   : > { %v3097_v7 = vmax.f32 %v832_v6, %v3059_v31  ;;  %v2137_v47 = vpop.f32.mrb[32].mxu1  ;;  %v2257_v52 = vpop.f32.mrb[64].mxu0 }
 0x243   : > { %v2138_v46 = vpop.f32.mrb[33].mxu1  ;;  %v2258_v63 = vpop.f32.mrb[65].mxu0 }
 0x244   : > { %v2139_v2 = vadd.f32 %v2138_v46, %v2137_v47  ;;  %v2140_v1 = vpop.f32.mrb[34].mxu1  ;;  %v3099_v62 = vadd.f32 %v2258_v63, %v2257_v52  ;;  %v2260_v12 = vpop.f32.mrb[66].mxu0 }
 0x245   : > { %v2141_v14 = vpop.f32.mrb[35].mxu1  ;;  %v2261_v23 = vpop.f32.mrb[67].mxu0 }
 0x246   : > { %v1069_v25 = vmax.f32 %v3065_v15, %v2139_v2  ;;  %v2142_v24 = vadd.f32 %v2141_v14, %v2140_v1  ;;  %v3102_v26 = vadd.f32 %v2261_v23, %v2260_v12 }
 0x248   : > { %v3105_v21 = vmax.f32 %v1069_v25, %v3061_v51  ;;  %v1070_v31 = vmax.f32 %v3067_v17, %v2142_v24 }
 0x24a   : > { %v3109_v27 = vmax.f32 %v1070_v31, %v3063_v16  ;;  %v2143_v29 = vpop.f32.mrb[36].mxu1  ;;  %v2263_v33 = vpop.f32.mrb[68].mxu0 }
 0x24b   : > { %v2144_v35 = vpop.f32.mrb[37].mxu1  ;;  %v2264_v40 = vpop.f32.mrb[69].mxu0 }
 0x24c   : > { %v2145_v41 = vadd.f32 %v2144_v35, %v2143_v29  ;;  %v2146_v28 = vpop.f32.mrb[38].mxu1  ;;  %v3111_v42 = vadd.f32 %v2264_v40, %v2263_v33  ;;  %v2266_v15 = vpop.f32.mrb[70].mxu0 }
 0x24d   : > { %v2147_v36 = vpop.f32.mrb[39].mxu1  ;;  %v2267_v45 = vpop.f32.mrb[71].mxu0 }
 0x24e   : > { %v1071_v49 = vmax.f32 %v3073_v32, %v2145_v41  ;;  %v2148_v51 = vadd.f32 %v2147_v36, %v2146_v28  ;;  %v3114_v50 = vadd.f32 %v2267_v45, %v2266_v15 }
 0x250   : > { %v3117_v17 = vmax.f32 %v1071_v49, %v3069_v34  ;;  %v1072_v16 = vmax.f32 %v3075_v39, %v2148_v51 }
 0x252   : > { %v3121_v53 = vmax.f32 %v1072_v16, %v3071_v43  ;;  %v2149_v56 = vpop.f32.mrb[40].mxu1  ;;  %v2269_v57 = vpop.f32.mrb[72].mxu0 }
 0x253   : > { %v2150_v59 = vpop.f32.mrb[41].mxu1  ;;  %v2270_v61 = vpop.f32.mrb[73].mxu0 }
 0x254   : > { %v2151_v3 = vadd.f32 %v2150_v59, %v2149_v56  ;;  %v2152_v44 = vpop.f32.mrb[42].mxu1  ;;  %v3123_v4 = vadd.f32 %v2270_v61, %v2269_v57  ;;  %v2272_v32 = vpop.f32.mrb[74].mxu0 }
 0x255   : > { %v2153_v54 = vpop.f32.mrb[43].mxu1  ;;  %v2273_v8 = vpop.f32.mrb[75].mxu0 }
 0x256   : > { %v1073_v9 = vmax.f32 %v3083_v48, %v2151_v3  ;;  %v2154_v34 = vadd.f32 %v2153_v54, %v2152_v44  ;;  %v3126_v10 = vadd.f32 %v2273_v8, %v2272_v32 }
 0x258   : > { %v3129_v39 = vmax.f32 %v1073_v9, %v3077_v58  ;;  %v1074_v43 = vmax.f32 %v3085_v55, %v2154_v34 }
 0x25a   : > { %v3133_v11 = vmax.f32 %v1074_v43, %v3080_v5  ;;  %v2155_v13 = vpop.f32.mrb[44].mxu1  ;;  %v2275_v18 = vpop.f32.mrb[76].mxu0 }
 0x25b   : > { %v2156_v20 = vpop.f32.mrb[45].mxu1  ;;  %v2276_v22 = vpop.f32.mrb[77].mxu0 }
 0x25c   : > { %v2157_v60 = vadd.f32 %v2156_v20, %v2155_v13  ;;  %v2158_v38 = vpop.f32.mrb[46].mxu1  ;;  %v3135_v37 = vadd.f32 %v2276_v22, %v2275_v18  ;;  %v2278_v48 = vpop.f32.mrb[78].mxu0 }
 0x25d   : > { %v2159_v6 = vpop.f32.mrb[47].mxu1  ;;  %v2279_v47 = vpop.f32.mrb[79].mxu0 }
 0x25e   : > { %v1075_v52 = vmax.f32 %v3093_v0, %v2157_v60  ;;  %v2160_v58 = vadd.f32 %v2159_v6, %v2158_v38  ;;  %v3138_v46 = vadd.f32 %v2279_v47, %v2278_v48 }
 0x260   : > { %v3141_v55 = vmax.f32 %v1075_v52, %v3087_v19  ;;  %v1076_v5 = vmax.f32 %v3097_v7, %v2160_v58 }
 0x262   : > { %v3145_v63 = vmax.f32 %v1076_v5, %v3090_v30  ;;  %v2217_v2 = vpop.f32.mrb[48].mxu1  ;;  %v2337_v1 = vpop.f32.mrb[80].mxu0 }
 0x263   : > { %v2218_v12 = vpop.f32.mrb[49].mxu1  ;;  %v2338_v14 = vpop.f32.mrb[81].mxu0 }
 0x264   : > { %v2219_v23 = vadd.f32 %v2218_v12, %v2217_v2  ;;  %v2220_v25 = vpop.f32.mrb[50].mxu1  ;;  %v3147_v24 = vadd.f32 %v2338_v14, %v2337_v1  ;;  %v2340_v0 = vpop.f32.mrb[82].mxu0 }
 0x265   : > { %v2221_v31 = vpop.f32.mrb[51].mxu1  ;;  %v2341_v29 = vpop.f32.mrb[83].mxu0 }
 0x266   : > { %v1313_v33 = vmax.f32 %v3105_v21, %v2219_v23  ;;  %v2222_v19 = vadd.f32 %v2221_v31, %v2220_v25  ;;  %v3150_v35 = vadd.f32 %v2341_v29, %v2340_v0 }
 0x268   : > { %v1435_v7 = vmax.f32 %v1313_v33, %v3099_v62  ;;  %v1314_v30 = vmax.f32 %v3109_v27, %v2222_v19 }
 0x26a   : > { %v3155_v40 = vmax.f32 %v1314_v30, %v3102_v26  ;;  %v2223_v41 = vpop.f32.mrb[52].mxu1  ;;  %v2343_v28 = vpop.f32.mrb[84].mxu0 }
 0x26b   : > { %v2224_v15 = vpop.f32.mrb[53].mxu1  ;;  %v2344_v36 = vpop.f32.mrb[85].mxu0 }
 0x26c   : > { %v2225_v45 = vadd.f32 %v2224_v15, %v2223_v41  ;;  %v2226_v49 = vpop.f32.mrb[54].mxu1  ;;  %v3157_v51 = vadd.f32 %v2344_v36, %v2343_v28  ;;  %v2346_v16 = vpop.f32.mrb[86].mxu0 }
 0x26d   : > { %v2227_v21 = vpop.f32.mrb[55].mxu1  ;;  %v2347_v56 = vpop.f32.mrb[87].mxu0 }
 0x26e   : > { %v1315_v57 = vmax.f32 %v3117_v17, %v2225_v45  ;;  %v2228_v59 = vadd.f32 %v2227_v21, %v2226_v49  ;;  %v3160_v62 = vadd.f32 %v2347_v56, %v2346_v16 }
 0x270   : > { %v1437_v27 = vmax.f32 %v1315_v57, %v3111_v42  ;;  %v1316_v26 = vmax.f32 %v3121_v53, %v2228_v59 }
 0x272   : > { %v1438_v61 = vmax.f32 %v1316_v26, %v3114_v50  ;;  %v2229_v3 = vpop.f32.mrb[56].mxu1  ;;  %v2349_v44 = vpop.f32.mrb[88].mxu0 }
 0x273   : > { %v2230_v32 = vpop.f32.mrb[57].mxu1  ;;  %v2350_v54 = vpop.f32.mrb[89].mxu0 }
 0x274   : > { %v2231_v8 = vadd.f32 %v2230_v32, %v2229_v3  ;;  %v2232_v9 = vpop.f32.mrb[58].mxu1  ;;  %v3165_v34 = vadd.f32 %v2350_v54, %v2349_v44  ;;  %v2352_v43 = vpop.f32.mrb[90].mxu0 }
 0x275   : > { %v2233_v13 = vpop.f32.mrb[59].mxu1  ;;  %v2353_v17 = vpop.f32.mrb[91].mxu0 }
 0x276   : > { %v1317_v18 = vmax.f32 %v3129_v39, %v2231_v8  ;;  %v2234_v20 = vadd.f32 %v2233_v13, %v2232_v9  ;;  %v2354_v22 = vadd.f32 %v2353_v17, %v2352_v43 }
 0x278   : > { %v1439_v42 = vmax.f32 %v1317_v18, %v3123_v4  ;;  %v1318_v53 = vmax.f32 %v3133_v11, %v2234_v20 }
 0x27a   : > { %v1440_v50 = vmax.f32 %v1318_v53, %v3126_v10  ;;  %v2235_v60 = vpop.f32.mrb[60].mxu1  ;;  %v2355_v38 = vpop.f32.mrb[92].mxu0 }
 0x27b   : > { %v2236_v48 = vpop.f32.mrb[61].mxu1  ;;  %v2356_v6 = vpop.f32.mrb[93].mxu0 }
 0x27c   : > { %v2237_v47 = vadd.f32 %v2236_v48, %v2235_v60  ;;  %v2238_v52 = vpop.f32.mrb[62].mxu1  ;;  %v2357_v58 = vadd.f32 %v2356_v6, %v2355_v38  ;;  %v2358_v5 = vpop.f32.mrb[94].mxu0 }
 0x27d   : > { %v2239_v2 = vpop.f32.mrb[63].mxu1  ;;  %v2359_v1 = vpop.f32.mrb[95].mxu0 }
 0x27e   : > { %v1319_v39 = vmax.f32 %v3141_v55, %v2237_v47  ;;  %v2240_v12 = vadd.f32 %v2239_v2, %v2238_v52  ;;  %v2360_v14 = vadd.f32 %v2359_v1, %v2358_v5 }
 0x280   : > { %v1441_v4 = vmax.f32 %v1319_v39, %v3135_v37  ;;  %v1320_v11 = vmax.f32 %v3145_v63, %v2240_v12 }
 0x282   : > { %v1442_v10 = vmax.f32 %v1320_v11, %v3138_v46  ;;  %v2297_v23 = vpop.f32.mrb[64].mxu1 }
 0x283   : > { %v2298_v25 = vpop.f32.mrb[65].mxu1 }
 0x284   : > { %v2299_v0 = vadd.f32 %v2298_v25, %v2297_v23  ;;  %v2300_v31 = vpop.f32.mrb[66].mxu1 }
 0x285   : > { %v2301_v29 = vpop.f32.mrb[67].mxu1 }
 0x286   : > { %v1557_v33 = vmax.f32 %v1435_v7, %v2299_v0  ;;  %v2302_v19 = vadd.f32 %v2301_v29, %v2300_v31 }
 0x288   : > { %v1679_v30 = vmax.f32 %v1557_v33, %v3147_v24  ;;  %v1558_v55 = vmax.f32 %v3155_v40, %v2302_v19 }
 0x28a   : > { %v1975_v37 = vpack.c.bf16 %v1679_v30, %v1679_v30  ;;  %v1680_v46 = vmax.f32 %v1558_v55, %v3150_v35  ;;  %v2303_v63 = vpop.f32.mrb[68].mxu1 }
 0x28b   : > { %v2304_v7 = vpop.f32.mrb[69].mxu1 }
 0x28c   : > { %1720 = vst.msk [vmem:[%s3181_s30] sm:$0xf] %vm1719_vm3, %v1975_v37  ;;  %v1976_v41 = vpack.c.bf16 %v1680_v46, %v1680_v46  ;;  %v2305_v24 = vadd.f32 %v2304_v7, %v2303_v63  ;;  %v2306_v28 = vpop.f32.mrb[70].mxu1 }
 0x28d   : > { %v2307_v40 = vpop.f32.mrb[71].mxu1 }
 0x28e   : > { %1721 = vst.msk [vmem:[%s3181_s30 + $0x4] sm:$0xf] %vm1719_vm3, %v1976_v41  ;;  %v1559_v15 = vmax.f32 %v1437_v27, %v2305_v24  ;;  %v2308_v36 = vadd.f32 %v2307_v40, %v2306_v28 }
 0x290   : > { %v1681_v45 = vmax.f32 %v1559_v15, %v3157_v51  ;;  %v1560_v49 = vmax.f32 %v1438_v61, %v2308_v36 }
 0x292   : > { %v1977_v16 = vpack.c.bf16 %v1681_v45, %v1681_v45  ;;  %v1682_v35 = vmax.f32 %v1560_v49, %v3160_v62  ;;  %v2309_v21 = vpop.f32.mrb[72].mxu1 }
 0x293   : > { %v2310_v56 = vpop.f32.mrb[73].mxu1 }
 0x294   : > { %1722 = vst.msk [vmem:[%s3181_s30 + $0x8] sm:$0xf] %vm1719_vm3, %v1977_v16  ;;  %v1978_v57 = vpack.c.bf16 %v1682_v35, %v1682_v35  ;;  %v2311_v59 = vadd.f32 %v2310_v56, %v2309_v21  ;;  %v2312_v26 = vpop.f32.mrb[74].mxu1 }
 0x295   : > { %v2313_v3 = vpop.f32.mrb[75].mxu1 }
 0x296   : > { %1723 = vst.msk [vmem:[%s3181_s30 + $0xc] sm:$0xf] %vm1719_vm3, %v1978_v57  ;;  %v1561_v27 = vmax.f32 %v1439_v42, %v2311_v59  ;;  %v2314_v44 = vadd.f32 %v2313_v3, %v2312_v26 }
 0x298   : > { %v1683_v51 = vmax.f32 %v1561_v27, %v3165_v34  ;;  %v1562_v61 = vmax.f32 %v1440_v50, %v2314_v44 }
 0x29a   : > { %v1979_v32 = vpack.c.bf16 %v1683_v51, %v1683_v51  ;;  %v1684_v62 = vmax.f32 %v1562_v61, %v2354_v22  ;;  %v2315_v54 = vpop.f32.mrb[76].mxu1 }
 0x29b   : > { %v2316_v8 = vpop.f32.mrb[77].mxu1 }
 0x29c   : > { %1724 = vst.msk [vmem:[%s3181_s30 + $0x10] sm:$0xf] %vm1719_vm3, %v1979_v32  ;;  %v1980_v9 = vpack.c.bf16 %v1684_v62, %v1684_v62  ;;  %v2317_v43 = vadd.f32 %v2316_v8, %v2315_v54  ;;  %v2318_v13 = vpop.f32.mrb[78].mxu1 }
 0x29d   : > { %v2319_v17 = vpop.f32.mrb[79].mxu1 }
 0x29e   : > { %1725 = vst.msk [vmem:[%s3181_s30 + $0x14] sm:$0xf] %vm1719_vm3, %v1980_v9  ;;  %v1563_v18 = vmax.f32 %v1441_v4, %v2317_v43  ;;  %v2320_v20 = vadd.f32 %v2319_v17, %v2318_v13 }
 0x2a0   : > { %v1685_v42 = vmax.f32 %v1563_v18, %v2357_v58  ;;  %v1564_v53 = vmax.f32 %v1442_v10, %v2320_v20 }
 0x2a2   : > { %v1981_v34 = vpack.c.bf16 %v1685_v42, %v1685_v42  ;;  %v1686_v50 = vmax.f32 %v1564_v53, %v2360_v14 }
 0x2a4   : > { %1726 = vst.msk [vmem:[%s3181_s30 + $0x18] sm:$0xf] %vm1719_vm3, %v1981_v34  ;;  %v1982_v22 = vpack.c.bf16 %v1686_v50, %v1686_v50 }
 0x2a6   : > { %1727 = vst.msk [vmem:[%s3181_s30 + $0x1c] sm:$0xf] %vm1719_vm3, %v1982_v22 }
 0x2a7 PF: > { %s14_s15 = sadd.s32 1, %s2538_s15  }
 0x2a8   : > { %p11_p4 = scmp.ge.s32.totalorder %s14_s15, 4  }
 0x2aa   :  { %13 = sbr.rel (!%p11_p4) target bundleno = 1 (0x1), region = 74 }

// kernel: vae_recon_encoder_forward.10
= control target key start
LH: loop header
LB: loop body
LE: loop exit
PB: predicated region body
PF: predicated region fallthrough
CT: control target
= control target key end

     0   :  { %s3995_s27 = smov 0   ;;  %s4773_s0 = inlined_call_operand.vmem [shape: bf16[2,64,256], index: 0, kind: input, shape index: {}]   ;;  %s4774_s1 = inlined_call_operand.vmem [shape: bf16[9,64,64], index: 1, kind: input, shape index: {}]   ;;  %s4775_s2 = inlined_call_operand.vmem [shape: bf16[256,64], index: 2, kind: input, shape index: {}]   ;;  %s4776_s3 = inlined_call_operand.vmem [shape: f32[1,64], index: 3, kind: input, shape index: {}, may-alias: {3,5}]   ;;  %s4777_s4 = inlined_call_operand.vmem [shape: bf16[9,64,64], index: 4, kind: input, shape index: {}]   ;;  %s4778_s5 = inlined_call_operand.vmem [shape: f32[1,64], index: 5, kind: input, shape index: {}, may-alias: {3,5}]   ;;  %s4779_s6 = inlined_call_operand.vmem [shape: bf16[64,256], index: 6, kind: input, shape index: {}]   ;;  %s4780_s7 = inlined_call_operand.vmem [shape: f32[1,256], index: 7, kind: input, shape index: {}]   ;;  %s4781_s8 = inlined_call_operand.vmem [shape: bf16[2,64,256], index: 8, kind: output, shape index: {}]  }
   0x1 LB: > { %s2933_s28 = sadd.s32 4294967295, %s3947_s27   ;;  %p2937_p0 = scmp.ge.s32.totalorder %s3947_s27, 1  ;;  %s3947_s27 = sphi %s3995_s27, %s18_s27  }
   0x2   : > { %p262_p1 = scmp.lt.s32.totalorder %s3947_s27, 3 }
   0x4   : > { %p263_p2 = pnand %p2937_p0, %p262_p1 }
   0x5   : > { %v3825_v0 = vld [vmem:[%s4775_s2 + $0x40] sm:$0xff] (!%p263_p2)   ;;  %v3827_v2 = vld [vmem:[%s4775_s2 + $0x48] sm:$0xff] (!%p263_p2)   ;;  %p296_p3 = scmp.lt.s32.totalorder (!%p263_p2), %s2933_s28, 1  ;;  %v3829_v4 = vld [vmem:[%s4775_s2 + $0x50] sm:$0xff] (!%p263_p2)   ;;  %vm595_vm0 = vcmask (!%p263_p2), 523264  }
   0x6   : > { %266 = sbr.rel (%p263_p2) target bundleno = 1112 (0x458), region = 52  ;;  %v3826_v1 = vld [vmem:[%s4775_s2] sm:$0xff] (!%p263_p2)   ;;  %3272 = vmatprep.subr.bf16.mxu0 (!%p263_p2), %v3825_v0  ;;  %v3828_v3 = vld [vmem:[%s4775_s2 + $0x8] sm:$0xff] (!%p263_p2)   ;;  %v3830_v5 = vld [vmem:[%s4775_s2 + $0x10] sm:$0xff] (!%p263_p2)  }
   0x7   : > { %3273 = vmatpush3.bf16.msra.mxu0 (!%p263_p2), %v3826_v1  ;;  %v3831_v6 = vld [vmem:[%s4775_s2 + $0x58] sm:$0xff] (!%p263_p2)   ;;  %v3833_v8 = vld [vmem:[%s4775_s2 + $0x60] sm:$0xff] (!%p263_p2)   ;;  %v3835_v10 = vld [vmem:[%s4775_s2 + $0x68] sm:$0xff] (!%p263_p2)  }
   0x8   : > { %3274 = vmatprep.subr.bf16.mxu0 (!%p263_p2), %v3827_v2  ;;  %v3832_v7 = vld [vmem:[%s4775_s2 + $0x18] sm:$0xff] (!%p263_p2)   ;;  %v3834_v9 = vld [vmem:[%s4775_s2 + $0x20] sm:$0xff] (!%p263_p2)   ;;  %v3836_v14 = vld [vmem:[%s4775_s2 + $0x28] sm:$0xff] (!%p263_p2)  }
   0x9   : > { %v3837_v15 = vld [vmem:[%s4775_s2 + $0x70] sm:$0xff] (!%p263_p2)   ;;  %v3839_v17 = vld [vmem:[%s4775_s2 + $0x78] sm:$0xff] (!%p263_p2)   ;;  %v3849_v32 = vld [vmem:[%s4774_s1] sm:$0xff] (!%p263_p2)  }
   0xa   : > { %v3838_v16 = vld [vmem:[%s4775_s2 + $0x30] sm:$0xff] (!%p263_p2)   ;;  %v3840_v18 = vld [vmem:[%s4775_s2 + $0x38] sm:$0xff] (!%p263_p2)   ;;  %v3851_v33 = vld [vmem:[%s4774_s1 + $0x40] sm:$0xff] (!%p263_p2)   ;;  %3464 = vmatprep.mubr.msk.bf16.mxu1 (!%p263_p2), %vm595_vm0, %v3849_v32 }
   0xb   : > { %3275 = vmatpush3.bf16.msra.mxu0 (!%p263_p2), %v3828_v3  ;;  %v2942_v35 = vld [vmem:[%s4776_s3] ss:$0 sm:$0xff] (!%p263_p2)  ;;  %v3868_v32 = vld [vmem:[%s4774_s1 + $0x98] sm:$0xff] (!%p263_p2)  }
   0xc   : > { %3276 = vmatprep.subr.bf16.mxu0 (!%p263_p2), %v3829_v4 }
   0xd   : > { %s4783_s28 = smov (!%p296_p3, %s2933_s28), 1 }
   0xe   : > { %s3262_s21 = sshll.u32 %s4783_s28, 6 }
   0xf   : > { %3277 = vmatpush3.bf16.msra.mxu0 %v3830_v5  ;;  %s4038_s30 = scalar_lea.vmem %s4773_s0, %s3262_s21  ;;  %s4744_s11 = scalar_lea.vmem %s4781_s8, %s3262_s21 }
  0x10   : > { %3278 = vmatprep.subr.bf16.mxu0 %v3831_v6  ;;  %v307_v11 = vld [vmem:[%s4038_s30] sm:$0xff]  ;;  %v308_v12 = vld [vmem:[%s4038_s30 + $0x8] sm:$0xff]  ;;  %v309_v19 = vld [vmem:[%s4038_s30 + $0x10] sm:$0xff] }
  0x11   : > { %v2944_v13 = vcombine.high %v307_v11, %v308_v12  ;;  %v310_v20 = vld [vmem:[%s4038_s30 + $0x18] sm:$0xff]  ;;  %v2943_v21 = vcombine.low %v307_v11, %v308_v12  ;;  %v311_v23 = vld [vmem:[%s4038_s30 + $0x20] sm:$0xff]  ;;  %v312_v24 = vld [vmem:[%s4038_s30 + $0x28] sm:$0xff] }
  0x12   : > { %v2946_v22 = vcombine.high %v309_v19, %v310_v20  ;;  %v2945_v25 = vcombine.low %v309_v19, %v310_v20  ;;  %v2948_v26 = vcombine.high %v311_v23, %v312_v24  ;;  %v313_v27 = vld [vmem:[%s4038_s30 + $0x30] sm:$0xff]  ;;  %v314_v28 = vld [vmem:[%s4038_s30 + $0x38] sm:$0xff]  ;;  %v2947_v29 = vcombine.low %v311_v23, %v312_v24  ;;  %v3858_v23 = vld [vmem:[%s4774_s1 + $0x28] sm:$0xff]  }
  0x13   : > { %3279 = vmatpush3.bf16.msra.mxu0 %v3832_v7  ;;  %522 = vmatprep.mubr.bf16.mxu0 %v2944_v13  ;;  %v2950_v30 = vcombine.high %v313_v27, %v314_v28  ;;  %v2949_v31 = vcombine.low %v313_v27, %v314_v28  ;;  %v3854_v19 = vld [vmem:[%s4774_s1 + $0x18] sm:$0xff]   ;;  %v3860_v24 = vld [vmem:[%s4774_s1 + $0x68] sm:$0xff]  }
  0x14   : > { %3280 = vmatprep.subr.bf16.mxu0 %v3833_v8  ;;  %v3856_v20 = vld [vmem:[%s4774_s1 + $0x58] sm:$0xff]  }
  0x15   : > { %v3862_v27 = vld [vmem:[%s4774_s1 + $0x38] sm:$0xff]  }
  0x16   : > { %v3864_v28 = vld [vmem:[%s4774_s1 + $0x78] sm:$0xff]  }
  0x17   : > { %3281 = vmatpush3.bf16.msra.mxu0 %v3834_v9 }
  0x18   : > { %3282 = vmatprep.subr.bf16.mxu0 %v3835_v10 }
  0x1b   : > { %3283 = vmatpush3.bf16.msra.mxu0 %v3836_v14 }
  0x1c   : > { %3284 = vmatprep.subr.bf16.mxu0 %v3837_v15  ;;  %v3850_v15 = vld [vmem:[%s4774_s1 + $0x8] sm:$0xff]  }
  0x1f   : > { %3285 = vmatpush3.bf16.msra.mxu0 %v3838_v16  ;;  %v3852_v16 = vld [vmem:[%s4774_s1 + $0x48] sm:$0xff]  }
  0x20   : > { %3286 = vmatprep.subr.bf16.mxu0 %v3839_v17  ;;  %v3853_v17 = vld [vmem:[%s4774_s1 + $0x10] sm:$0xff]  }
  0x23   : > { %3287 = vmatpush3.bf16.msra.mxu0 %v3840_v18  ;;  %v3855_v18 = vld [vmem:[%s4774_s1 + $0x50] sm:$0xff]  }
  0x26   : > { %523 = vmatmul.mubr.bf16.vlgmr.msra.gmra.mrb[0].mxu0 %v2943_v21  ;;  %v3857_v21 = vld [vmem:[%s4774_s1 + $0x20] sm:$0xff]  }
  0x27   : > { %530 = vmatprep.mubr.bf16.mxu0 %v2946_v22  ;;  %v3859_v22 = vld [vmem:[%s4774_s1 + $0x60] sm:$0xff]  }
  0x2e   : > { %531 = vmatmul.mubr.bf16.gmra.mrb[4].mxu0 %v2945_v25  ;;  %v3861_v25 = vld [vmem:[%s4774_s1 + $0x30] sm:$0xff]  }
  0x2f   : > { %538 = vmatprep.mubr.bf16.mxu0 %v2948_v26  ;;  %v3863_v26 = vld [vmem:[%s4774_s1 + $0x70] sm:$0xff]  }
  0x36   : > { %539 = vmatmul.mubr.bf16.gmra.mrb[8].mxu0 %v2947_v29  ;;  %v3865_v29 = vld [vmem:[%s4774_s1 + $0x80] sm:$0xff]  }
  0x37   : > { %546 = vmatprep.mubr.bf16.mxu0 %v2950_v30  ;;  %v3866_v30 = vld [vmem:[%s4774_s1 + $0x88] sm:$0xff]  }
  0x3e   : > { %547 = vmatmul.mubr.bf16.gmra.mrb[12].mxu0 %v2949_v31  ;;  %v3867_v31 = vld [vmem:[%s4774_s1 + $0x90] sm:$0xff]  }
  0x3f   : > { %3528 = vmatprep.mubr.msk.bf16.mxu0 %vm595_vm0, %v3851_v33  ;;  %v3869_v33 = vld [vmem:[%s4774_s1 + $0xa0] sm:$0xff]  }
  0xf9   : > { %v3288_v34 = vpop.f32.mrb[0].mxu0 }
  0xfa   : > { %v3289_v36 = vpop.f32.mrb[1].mxu0 }
  0xfb   : > { %v3290_v37 = vadd.f32 %v3289_v36, %v3288_v34  ;;  %v3291_v38 = vpop.f32.mrb[2].mxu0  ;;  %v3870_v34 = vld [vmem:[%s4774_s1 + $0xa8] sm:$0xff]   ;;  %v3872_v36 = vld [vmem:[%s4774_s1 + $0xb8] sm:$0xff]  }
  0xfc   : > { %v3292_v39 = vpop.f32.mrb[3].mxu0 }
  0xfd   : > { %v525_v40 = vadd.f32 %v3290_v37, %v2942_v35  ;;  %v3293_v41 = vadd.f32 %v3292_v39, %v3291_v38  ;;  %v3873_v37 = vld [vmem:[%s4774_s1 + $0xc0] sm:$0xff]   ;;  %v3874_v38 = vld [vmem:[%s4774_s1 + $0xc8] sm:$0xff]   ;;  %v3875_v39 = vld [vmem:[%s4774_s1 + $0xd0] sm:$0xff]  }
  0xff   : > { %v528_v42 = vadd.f32 %v3293_v41, %v2942_v35  ;;  %v555_v43 = vmax.f32 %v525_v40, 0.0  ;;  %v3876_v40 = vld [vmem:[%s4774_s1 + $0xd8] sm:$0xff]   ;;  %v3877_v41 = vld [vmem:[%s4774_s1 + $0xe0] sm:$0xff]  }
 0x101   : > { %v556_v44 = vmax.f32 %v528_v42, 0.0  ;;  %v3294_v45 = vpop.f32.mrb[4].mxu0  ;;  %v3878_v42 = vld [vmem:[%s4774_s1 + $0xe8] sm:$0xff]  }
 0x102   : > { %v3295_v46 = vpop.f32.mrb[5].mxu0 }
 0x103   : > { %v4080_v47 = vpack.c.bf16 %v556_v44, %v555_v43  ;;  %v3296_v48 = vadd.f32 %v3295_v46, %v3294_v45  ;;  %v3297_v49 = vpop.f32.mrb[6].mxu0  ;;  %v3879_v43 = vld [vmem:[%s4774_s1 + $0xf0] sm:$0xff]   ;;  %v3880_v44 = vld [vmem:[%s4774_s1 + $0xf8] sm:$0xff]   ;;  %v3881_v45 = vld [vmem:[%s4774_s1 + $0x100] sm:$0xff]  }
 0x104   : > { %v3298_v50 = vpop.f32.mrb[7].mxu0  ;;  %v3885_v46 = vld [vmem:[%s4777_s4 + $0x20] sm:$0xff]  }
 0x105   : > { %v533_v51 = vadd.f32 %v3296_v48, %v2942_v35  ;;  %v3299_v52 = vadd.f32 %v3298_v50, %v3297_v49  ;;  %3456 = vmatprep.subr.bf16.mxu1 %v4080_v47  ;;  %3520 = vmatprep.subr.bf16.mxu0 %v4080_v47  ;;  %v3886_v48 = vld [vmem:[%s4777_s4 + $0x28] sm:$0xff]   ;;  %v3883_v49 = vld [vmem:[%s4774_s1 + $0x110] sm:$0xff]  }
 0x106   : > { %3457 = vmatpush3.bf16.msra.mxu1 %v4080_v47  ;;  %3521 = vmatpush3.bf16.msra.mxu0 %v4080_v47  ;;  %v3887_v50 = vld [vmem:[%s4777_s4 + $0x30] sm:$0xff]  }
 0x107   : > { %v536_v53 = vadd.f32 %v3299_v52, %v2942_v35  ;;  %v557_v54 = vmax.f32 %v533_v51, 0.0  ;;  %v3884_v51 = vld [vmem:[%s4774_s1 + $0x118] sm:$0xff]  }
 0x108   : > { %v3888_v52 = vld [vmem:[%s4777_s4 + $0x38] sm:$0xff]  }
 0x109   : > { %v558_v55 = vmax.f32 %v536_v53, 0.0  ;;  %v3300_v56 = vpop.f32.mrb[8].mxu0  ;;  %v3889_v53 = vld [vmem:[%s4777_s4] sm:$0xff]  }
 0x10a   : > { %v3301_v57 = vpop.f32.mrb[9].mxu0 }
 0x10b   : > { %v4086_v58 = vpack.c.bf16 %v558_v55, %v557_v54  ;;  %v3302_v59 = vadd.f32 %v3301_v57, %v3300_v56  ;;  %v3303_v60 = vpop.f32.mrb[10].mxu0 }
 0x10c   : > { %v3304_v61 = vpop.f32.mrb[11].mxu0 }
 0x10d   : > { %v541_v62 = vadd.f32 %v3302_v59, %v2942_v35  ;;  %v3305_v63 = vadd.f32 %v3304_v61, %v3303_v60  ;;  %3458 = vmatprep.subr.bf16.mxu1 %v4086_v58  ;;  %3522 = vmatprep.subr.bf16.mxu0 %v4086_v58 }
 0x10e   : > { %3459 = vmatpush3.bf16.msra.mxu1 %v4086_v58  ;;  %3523 = vmatpush3.bf16.msra.mxu0 %v4086_v58 }
 0x10f   : > { %v544_v0 = vadd.f32 %v3305_v63, %v2942_v35  ;;  %v559_v1 = vmax.f32 %v541_v62, 0.0 }
 0x111   : > { %v560_v2 = vmax.f32 %v544_v0, 0.0  ;;  %v3306_v3 = vpop.f32.mrb[12].mxu0 }
 0x112   : > { %v3307_v4 = vpop.f32.mrb[13].mxu0 }
 0x113   : > { %v4092_v5 = vpack.c.bf16 %v560_v2, %v559_v1  ;;  %v3308_v6 = vadd.f32 %v3307_v4, %v3306_v3  ;;  %v3309_v7 = vpop.f32.mrb[14].mxu0 }
 0x114   : > { %v3310_v8 = vpop.f32.mrb[15].mxu0 }
 0x115   : > { %v549_v9 = vadd.f32 %v3308_v6, %v2942_v35  ;;  %v3311_v10 = vadd.f32 %v3310_v8, %v3309_v7  ;;  %3460 = vmatprep.subr.bf16.mxu1 %v4092_v5  ;;  %3524 = vmatprep.subr.bf16.mxu0 %v4092_v5 }
 0x116   : > { %3461 = vmatpush3.bf16.msra.mxu1 %v4092_v5  ;;  %3525 = vmatpush3.bf16.msra.mxu0 %v4092_v5 }
 0x117   : > { %v552_v11 = vadd.f32 %v3311_v10, %v2942_v35  ;;  %v561_v12 = vmax.f32 %v549_v9, 0.0  ;;  %v3871_v35 = vld [vmem:[%s4774_s1 + $0xb0] sm:$0xff]  }
 0x119   : > { %v562_v13 = vmax.f32 %v552_v11, 0.0 }
 0x11b   : > { %v4098_v14 = vpack.c.bf16 %v562_v13, %v561_v12 }
 0x11d   : > { %3462 = vmatprep.subr.bf16.mxu1 %v4098_v14  ;;  %3526 = vmatprep.subr.bf16.mxu0 %v4098_v14 }
 0x11e   : > { %3463 = vmatpush3.bf16.msra.mxu1 %v4098_v14  ;;  %3527 = vmatpush3.bf16.msra.mxu0 %v4098_v14 }
 0x11f   : > { %3472 = vmatprep.subr.bf16.mxu1 %v4080_v47  ;;  %3552 = vmatprep.subr.bf16.mxu0 %v4080_v47 }
 0x121   : > { %3465 = vmatmul.mubr.msk.bf16.vlgmr.msra.gmra.mrb[0].mxu1 %vm595_vm0, %v3850_v15  ;;  %3529 = vmatmul.mubr.msk.bf16.vlgmr.msra.gmra.mrb[16].mxu0 %vm595_vm0, %v3852_v16 }
 0x122   : > { %3473 = vmatpush3.bf16.msra.mxu1 %v4080_v47  ;;  %3553 = vmatpush3.bf16.msra.mxu0 %v4080_v47 }
 0x123   : > { %3474 = vmatprep.subr.bf16.mxu1 %v4086_v58  ;;  %3554 = vmatprep.subr.bf16.mxu0 %v4086_v58 }
 0x124   : > { %3468 = vmatprep.mubr.msk.bf16.mxu1 %vm595_vm0, %v3853_v17  ;;  %3532 = vmatprep.mubr.msk.bf16.mxu0 %vm595_vm0, %v3855_v18 }
 0x126   : > { %3475 = vmatpush3.bf16.msra.mxu1 %v4086_v58  ;;  %3555 = vmatpush3.bf16.msra.mxu0 %v4086_v58 }
 0x127   : > { %3476 = vmatprep.subr.bf16.mxu1 %v4092_v5  ;;  %3556 = vmatprep.subr.bf16.mxu0 %v4092_v5 }
 0x129   : > { %3469 = vmatmul.mubr.msk.bf16.gmra.mrb[4].mxu1 %vm595_vm0, %v3854_v19  ;;  %3533 = vmatmul.mubr.msk.bf16.gmra.mrb[20].mxu0 %vm595_vm0, %v3856_v20 }
 0x12a   : > { %3477 = vmatpush3.bf16.msra.mxu1 %v4092_v5  ;;  %3557 = vmatpush3.bf16.msra.mxu0 %v4092_v5 }
 0x12b   : > { %3478 = vmatprep.subr.bf16.mxu1 %v4098_v14  ;;  %3558 = vmatprep.subr.bf16.mxu0 %v4098_v14 }
 0x12c   : > { %3480 = vmatprep.mubr.msk.bf16.mxu1 %vm595_vm0, %v3857_v21  ;;  %3560 = vmatprep.mubr.msk.bf16.mxu0 %vm595_vm0, %v3859_v22 }
 0x12e   : > { %3479 = vmatpush3.bf16.msra.mxu1 %v4098_v14  ;;  %3559 = vmatpush3.bf16.msra.mxu0 %v4098_v14 }
 0x12f   : > { %3584 = vmatprep.subr.bf16.mxu0 %v4080_v47  ;;  %3488 = vmatprep.subr.bf16.mxu1 %v3885_v46 }
 0x131   : > { %3481 = vmatmul.mubr.msk.bf16.vlgmr.msra.gmra.mrb[8].mxu1 %vm595_vm0, %v3858_v23  ;;  %3561 = vmatmul.mubr.msk.bf16.vlgmr.msra.gmra.mrb[24].mxu0 %vm595_vm0, %v3860_v24 }
 0x132   : > { %3585 = vmatpush3.bf16.msra.mxu0 %v4080_v47  ;;  %3484 = vmatprep.mubr.msk.bf16.mxu1 %vm595_vm0, %v3861_v25 }
 0x133   : > { %3586 = vmatprep.subr.bf16.mxu0 %v4086_v58  ;;  %3564 = vmatprep.mubr.msk.bf16.mxu0 %vm595_vm0, %v3863_v26  ;;  %v3890_v26 = vld [vmem:[%s4777_s4 + $0x8] sm:$0xff]  }
 0x134   : > { %3489 = vmatpush3.bf16.msra.mxu1 %v3885_v46 }
 0x135   : > { %3490 = vmatprep.subr.bf16.mxu1 %v3886_v48 }
 0x136   : > { %3587 = vmatpush3.bf16.msra.mxu0 %v4086_v58 }
 0x137   : > { %3588 = vmatprep.subr.bf16.mxu0 %v4092_v5 }
 0x138   : > { %3491 = vmatpush3.bf16.msra.mxu1 %v3886_v48  ;;  %v4420_v48 = vld [vmem:[%s4779_s6 + $0x10] ss:$8 sps:$4 sm:$0xff]  }
 0x139   : > { %3485 = vmatmul.mubr.msk.bf16.gmra.mrb[12].mxu1 %vm595_vm0, %v3862_v27  ;;  %3565 = vmatmul.mubr.msk.bf16.gmra.mrb[28].mxu0 %vm595_vm0, %v3864_v28 }
 0x13a   : > { %3589 = vmatpush3.bf16.msra.mxu0 %v4092_v5  ;;  %3592 = vmatprep.mubr.msk.bf16.mxu0 %vm595_vm0, %v3865_v29 }
 0x13b   : > { %3590 = vmatprep.subr.bf16.mxu0 %v4098_v14  ;;  %3492 = vmatprep.subr.bf16.mxu1 %v3887_v50 }
 0x13c   : > { %3493 = vmatpush3.bf16.msra.mxu1 %v3887_v50 }
 0x13d   : > { %3494 = vmatprep.subr.bf16.mxu1 %v3888_v52 }
 0x13e   : > { %3591 = vmatpush3.bf16.msra.mxu0 %v4098_v14 }
 0x13f   : > { %3616 = vmatprep.subr.bf16.mxu0 %v4080_v47 }
 0x140   : > { %3495 = vmatpush3.bf16.msra.mxu1 %v3888_v52  ;;  %v3894_v52 = vld [vmem:[%s4777_s4 + $0x48] sm:$0xff]  }
 0x141   : > { %3593 = vmatmul.mubr.msk.bf16.vlgmr.msra.gmra.mrb[32].mxu0 %vm595_vm0, %v3866_v30  ;;  %3504 = vmatprep.subr.bf16.mxu1 %v3889_v53  ;;  %v3891_v30 = vld [vmem:[%s4777_s4 + $0x10] sm:$0xff]  }
 0x142   : > { %3617 = vmatpush3.bf16.msra.mxu0 %v4080_v47  ;;  %3596 = vmatprep.mubr.msk.bf16.mxu0 %vm595_vm0, %v3867_v31 }
 0x143   : > { %3618 = vmatprep.subr.bf16.mxu0 %v4086_v58 }
 0x146   : > { %3619 = vmatpush3.bf16.msra.mxu0 %v4086_v58 }
 0x147   : > { %3620 = vmatprep.subr.bf16.mxu0 %v4092_v5 }
 0x149   : > { %3597 = vmatmul.mubr.msk.bf16.gmra.mrb[36].mxu0 %vm595_vm0, %v3868_v32 }
 0x14a   : > { %3621 = vmatpush3.bf16.msra.mxu0 %v4092_v5  ;;  %3624 = vmatprep.mubr.msk.bf16.mxu0 %vm595_vm0, %v3869_v33 }
 0x14b   : > { %3622 = vmatprep.subr.bf16.mxu0 %v4098_v14 }
 0x14e   : > { %3623 = vmatpush3.bf16.msra.mxu0 %v4098_v14 }
 0x14f   : > { %3648 = vmatprep.subr.bf16.mxu0 %v4080_v47 }
 0x151   : > { %3625 = vmatmul.mubr.msk.bf16.vlgmr.msra.gmra.mrb[40].mxu0 %vm595_vm0, %v3870_v34 }
 0x152   : > { %3649 = vmatpush3.bf16.msra.mxu0 %v4080_v47  ;;  %3628 = vmatprep.mubr.msk.bf16.mxu0 %vm595_vm0, %v3871_v35 }
 0x153   : > { %3650 = vmatprep.subr.bf16.mxu0 %v4086_v58 }
 0x156   : > { %3651 = vmatpush3.bf16.msra.mxu0 %v4086_v58 }
 0x157   : > { %3652 = vmatprep.subr.bf16.mxu0 %v4092_v5 }
 0x159   : > { %3629 = vmatmul.mubr.msk.bf16.gmra.mrb[44].mxu0 %vm595_vm0, %v3872_v36 }
 0x15a   : > { %3653 = vmatpush3.bf16.msra.mxu0 %v4092_v5  ;;  %3656 = vmatprep.mubr.msk.bf16.mxu0 %vm595_vm0, %v3873_v37 }
 0x15b   : > { %3654 = vmatprep.subr.bf16.mxu0 %v4098_v14 }
 0x15e   : > { %3655 = vmatpush3.bf16.msra.mxu0 %v4098_v14 }
 0x15f   : > { %3680 = vmatprep.subr.bf16.mxu0 %v4080_v47 }
 0x161   : > { %3657 = vmatmul.mubr.msk.bf16.vlgmr.msra.gmra.mrb[48].mxu0 %vm595_vm0, %v3874_v38 }
 0x162   : > { %3681 = vmatpush3.bf16.msra.mxu0 %v4080_v47  ;;  %3660 = vmatprep.mubr.msk.bf16.mxu0 %vm595_vm0, %v3875_v39 }
 0x163   : > { %3682 = vmatprep.subr.bf16.mxu0 %v4086_v58 }
 0x166   : > { %3683 = vmatpush3.bf16.msra.mxu0 %v4086_v58 }
 0x167   : > { %3684 = vmatprep.subr.bf16.mxu0 %v4092_v5 }
 0x169   : > { %3661 = vmatmul.mubr.msk.bf16.gmra.mrb[52].mxu0 %vm595_vm0, %v3876_v40  ;;  %v3892_v40 = vld [vmem:[%s4777_s4 + $0x18] sm:$0xff]  }
 0x16a   : > { %3685 = vmatpush3.bf16.msra.mxu0 %v4092_v5  ;;  %3688 = vmatprep.mubr.msk.bf16.mxu0 %vm595_vm0, %v3877_v41  ;;  %v4393_v41 = vld [vmem:[%s4779_s6] ss:$8 sps:$4 sm:$0xff]  }
 0x16b   : > { %3686 = vmatprep.subr.bf16.mxu0 %v4098_v14 }
 0x16e   : > { %3687 = vmatpush3.bf16.msra.mxu0 %v4098_v14 }
 0x16f   : > { %3712 = vmatprep.subr.bf16.mxu0 %v4080_v47 }
 0x171   : > { %3689 = vmatmul.mubr.msk.bf16.vlgmr.msra.gmra.mrb[56].mxu0 %vm595_vm0, %v3878_v42  ;;  %v4398_v42 = vld [vmem:[%s4779_s6 + $0x4] ss:$8 sps:$4 sm:$0xff]  }
 0x172   : > { %3713 = vmatpush3.bf16.msra.mxu0 %v4080_v47  ;;  %3692 = vmatprep.mubr.msk.bf16.mxu0 %vm595_vm0, %v3879_v43  ;;  %v3882_v47 = vld [vmem:[%s4774_s1 + $0x108] sm:$0xff]  }
 0x173   : > { %3714 = vmatprep.subr.bf16.mxu0 %v4086_v58 }
 0x176   : > { %3715 = vmatpush3.bf16.msra.mxu0 %v4086_v58 }
 0x177   : > { %3716 = vmatprep.subr.bf16.mxu0 %v4092_v5 }
 0x179   : > { %3693 = vmatmul.mubr.msk.bf16.gmra.mrb[60].mxu0 %vm595_vm0, %v3880_v44  ;;  %v4406_v44 = vld [vmem:[%s4779_s6 + $0x14] ss:$8 sps:$4 sm:$0xff]  }
 0x17a   : > { %3717 = vmatpush3.bf16.msra.mxu0 %v4092_v5  ;;  %3720 = vmatprep.mubr.msk.bf16.mxu0 %vm595_vm0, %v3881_v45  ;;  %v3893_v45 = vld [vmem:[%s4777_s4 + $0x40] sm:$0xff]  }
 0x17b   : > { %3718 = vmatprep.subr.bf16.mxu0 %v4098_v14 }
 0x17e   : > { %3719 = vmatpush3.bf16.msra.mxu0 %v4098_v14 }
 0x17f   : > { %2701 = vmatprep.subr.bf16.mxu0 %v4398_v42 }
 0x181   : > { %3721 = vmatmul.mubr.msk.bf16.vlgmr.msra.gmra.mrb[64].mxu0 %vm595_vm0, %v3882_v47 }
 0x182   : > { %3724 = vmatprep.mubr.msk.bf16.mxu0 %vm595_vm0, %v3883_v49  ;;  %2702 = vmatpush1.bf16.msra.mxu0 %v4393_v41 }
 0x183   : > { %2703 = vmatprep.subr.bf16.mxu0 %v4406_v44 }
 0x186   : > { %2704 = vmatpush1.bf16.msra.mxu0 %v4420_v48 }
 0x189   : > { %3725 = vmatmul.mubr.msk.bf16.gmra.mrb[68].mxu0 %vm595_vm0, %v3884_v51 }
 0x1f4   : > { %v4311_v54 = vpop.f32.mrb[0].mxu1  ;;  %v4313_v55 = vpop.f32.mrb[16].mxu0 }
 0x1f5   : > { %v642_v56 = vpop.f32.mrb[1].mxu1  ;;  %v4315_v57 = vpop.f32.mrb[17].mxu0 }
 0x1f6   : > { %v4317_v58 = vpop.f32.mrb[2].mxu1  ;;  %v4319_v59 = vpop.f32.mrb[18].mxu0 }
 0x1f7   : > { %v674_v60 = vpack.c.bf16 %v4317_v58, %v4311_v54  ;;  %v645_v61 = vpop.f32.mrb[3].mxu1  ;;  %v1113_v62 = vpack.c.bf16 %v4319_v59, %v4313_v55  ;;  %v4325_v63 = vpop.f32.mrb[19].mxu0 }
 0x1f8   : > { %v673_v0 = vpack.c.bf16 %v645_v61, %v642_v56  ;;  %v1112_v1 = vpack.c.bf16 %v4325_v63, %v4315_v57  ;;  %v3895_v56 = vld [vmem:[%s4777_s4 + $0x50] sm:$0xff]   ;;  %v3898_v63 = vld [vmem:[%s4777_s4 + $0x68] sm:$0xff]  }
 0x1fc   : > { %v4329_v2 = vpop.f32.mrb[4].mxu1  ;;  %v4331_v3 = vpop.f32.mrb[20].mxu0 }
 0x1fd   : > { %v4333_v4 = vpop.f32.mrb[5].mxu1  ;;  %v4335_v5 = vpop.f32.mrb[21].mxu0 }
 0x1fe   : > { %v4337_v6 = vpop.f32.mrb[6].mxu1  ;;  %v4339_v7 = vpop.f32.mrb[22].mxu0 }
 0x1ff   : > { %v676_v8 = vpack.c.bf16 %v4337_v6, %v4329_v2  ;;  %v4343_v9 = vpop.f32.mrb[7].mxu1  ;;  %v1115_v10 = vpack.c.bf16 %v4339_v7, %v4331_v3  ;;  %v4347_v11 = vpop.f32.mrb[23].mxu0 }
 0x200   : > { %v675_v12 = vpack.c.bf16 %v4343_v9, %v4333_v4  ;;  %v1114_v13 = vpack.c.bf16 %v4347_v11, %v4335_v5  ;;  %v3900_v5 = vld [vmem:[%s4777_s4 + $0x78] sm:$0xff]  }
 0x204   : > { %v3482_v14 = vpop.f32.mrb[8].mxu1  ;;  %v4353_v15 = vpop.f32.mrb[24].mxu0 }
 0x205   : > { %v760_v16 = vpop.f32.mrb[9].mxu1  ;;  %v4355_v17 = vpop.f32.mrb[25].mxu0 }
 0x206   : > { %v3483_v18 = vpop.f32.mrb[10].mxu1  ;;  %v4357_v19 = vpop.f32.mrb[26].mxu0 }
 0x207   : > { %v792_v20 = vpack.c.bf16 %v3483_v18, %v3482_v14  ;;  %v763_v21 = vpop.f32.mrb[11].mxu1  ;;  %v1341_v22 = vpack.c.bf16 %v4357_v19, %v4353_v15  ;;  %v4361_v23 = vpop.f32.mrb[27].mxu0 }
 0x208   : > { %v791_v24 = vpack.c.bf16 %v763_v21, %v760_v16  ;;  %v1340_v25 = vpack.c.bf16 %v4361_v23, %v4355_v17  ;;  %v3902_v17 = vld [vmem:[%s4777_s4 + $0x88] sm:$0xff]  }
 0x20a   : > { %3496 = vmatprep.mubr.msk.bf16.mxu1 %vm595_vm0, %v791_v24 }
 0x20b   : > { %3497 = vmatmul.mubr.msk.bf16.vlgmr.msra.gmra.mrb[16].mxu1 %vm595_vm0, %v792_v20 }
 0x20c   : > { %v3486_v27 = vpop.f32.mrb[12].mxu1  ;;  %3505 = vmatpush3.bf16.msra.mxu1 %v3889_v53  ;;  %v4370_v28 = vpop.f32.mrb[28].mxu0 }
 0x20d   : > { %v776_v29 = vpop.f32.mrb[13].mxu1  ;;  %3506 = vmatprep.subr.bf16.mxu1 %v3890_v26  ;;  %v4375_v31 = vpop.f32.mrb[29].mxu0 }
 0x20e   : > { %v3487_v32 = vpop.f32.mrb[14].mxu1  ;;  %v4377_v33 = vpop.f32.mrb[30].mxu0 }
 0x20f   : > { %v794_v34 = vpack.c.bf16 %v3487_v32, %v3486_v27  ;;  %v779_v35 = vpop.f32.mrb[15].mxu1  ;;  %v1343_v36 = vpack.c.bf16 %v4377_v33, %v4370_v28  ;;  %v4381_v37 = vpop.f32.mrb[31].mxu0 }
 0x210   : > { %v793_v38 = vpack.c.bf16 %v779_v35, %v776_v29  ;;  %3507 = vmatpush3.bf16.msra.mxu1 %v3890_v26  ;;  %v1342_v39 = vpack.c.bf16 %v4381_v37, %v4375_v31  ;;  %v3904_v29 = vld [vmem:[%s4777_s4 + $0x98] sm:$0xff]   ;;  %v3905_v31 = vld [vmem:[%s4777_s4 + $0xa0] sm:$0xff]  }
 0x211   : > { %3508 = vmatprep.subr.bf16.mxu1 %v3891_v30 }
 0x212   : > { %3500 = vmatprep.mubr.msk.bf16.mxu1 %vm595_vm0, %v793_v38  ;;  %v3907_v38 = vld [vmem:[%s4777_s4 + $0xb0] sm:$0xff]  }
 0x213   : > { %3501 = vmatmul.mubr.msk.bf16.gmra.mrb[20].mxu1 %vm595_vm0, %v794_v34 }
 0x214   : > { %3509 = vmatpush3.bf16.msra.mxu1 %v3891_v30  ;;  %3512 = vmatprep.mubr.msk.bf16.mxu1 %vm595_vm0, %v673_v0  ;;  %v4401_v43 = vpop.f32.mrb[32].mxu0 }
 0x215   : > { %3510 = vmatprep.subr.bf16.mxu1 %v3892_v40  ;;  %v4411_v46 = vpop.f32.mrb[33].mxu0 }
 0x216   : > { %v4414_v47 = vpop.f32.mrb[34].mxu0 }
 0x217   : > { %v1569_v49 = vpack.c.bf16 %v4414_v47, %v4401_v43  ;;  %v4424_v50 = vpop.f32.mrb[35].mxu0  ;;  %v3908_v47 = vld [vmem:[%s4777_s4 + $0xb8] sm:$0xff]  }
 0x218   : > { %3511 = vmatpush3.bf16.msra.mxu1 %v3892_v40  ;;  %v1568_v51 = vpack.c.bf16 %v4424_v50, %v4411_v46  ;;  %v3909_v50 = vld [vmem:[%s4777_s4 + $0xc0] sm:$0xff]  }
 0x219   : > { %3536 = vmatprep.subr.bf16.mxu1 %v3893_v45 }
 0x21b   : > { %3513 = vmatmul.mubr.msk.bf16.vlgmr.msra.gmra.mrb[16].mxu1 %vm595_vm0, %v674_v60  ;;  %v3896_v60 = vld [vmem:[%s4777_s4 + $0x58] sm:$0xff]  }
 0x21c   : > { %3516 = vmatprep.mubr.msk.bf16.mxu1 %vm595_vm0, %v675_v12  ;;  %3537 = vmatpush3.bf16.msra.mxu1 %v3893_v45  ;;  %v4438_v53 = vpop.f32.mrb[36].mxu0  ;;  %v3897_v12 = vld [vmem:[%s4777_s4 + $0x60] sm:$0xff]  }
 0x21d   : > { %3538 = vmatprep.subr.bf16.mxu1 %v3894_v52  ;;  %v4443_v61 = vpop.f32.mrb[37].mxu0 }
 0x21e   : > { %v4445_v0 = vpop.f32.mrb[38].mxu0 }
 0x21f   : > { %v1571_v4 = vpack.c.bf16 %v4445_v0, %v4438_v53  ;;  %v4449_v54 = vpop.f32.mrb[39].mxu0  ;;  %v3910_v0 = vld [vmem:[%s4777_s4 + $0xc8] sm:$0xff]  }
 0x220   : > { %3539 = vmatpush3.bf16.msra.mxu1 %v3894_v52  ;;  %v1570_v58 = vpack.c.bf16 %v4449_v54, %v4443_v61  ;;  %v3911_v54 = vld [vmem:[%s4777_s4 + $0xd0] sm:$0xff]  }
 0x221   : > { %3540 = vmatprep.subr.bf16.mxu1 %v3895_v56 }
 0x223   : > { %3517 = vmatmul.mubr.msk.bf16.gmra.mrb[20].mxu1 %vm595_vm0, %v676_v8  ;;  %v3899_v8 = vld [vmem:[%s4777_s4 + $0x70] sm:$0xff]  }
 0x224   : > { %3541 = vmatpush3.bf16.msra.mxu1 %v3895_v56  ;;  %3544 = vmatprep.mubr.msk.bf16.mxu1 %vm595_vm0, %v1112_v1  ;;  %v4464_v9 = vpop.f32.mrb[40].mxu0 }
 0x225   : > { %3542 = vmatprep.subr.bf16.mxu1 %v3896_v60  ;;  %v4469_v14 = vpop.f32.mrb[41].mxu0 }
 0x226   : > { %v4471_v16 = vpop.f32.mrb[42].mxu0 }
 0x227   : > { %v1797_v2 = vpack.c.bf16 %v4471_v16, %v4464_v9  ;;  %v4475_v6 = vpop.f32.mrb[43].mxu0  ;;  %v3912_v16 = vld [vmem:[%s4777_s4 + $0xd8] sm:$0xff]  }
 0x228   : > { %3543 = vmatpush3.bf16.msra.mxu1 %v3896_v60  ;;  %v1796_v57 = vpack.c.bf16 %v4475_v6, %v4469_v14  ;;  %v3914_v6 = vld [vmem:[%s4777_s4 + $0xe8] sm:$0xff]  }
 0x229   : > { %3568 = vmatprep.subr.bf16.mxu1 %v3897_v12 }
 0x22b   : > { %3545 = vmatmul.mubr.msk.bf16.vlgmr.msra.gmra.mrb[16].mxu1 %vm595_vm0, %v1113_v62 }
 0x22c   : > { %3569 = vmatpush3.bf16.msra.mxu1 %v3897_v12  ;;  %3548 = vmatprep.mubr.msk.bf16.mxu1 %vm595_vm0, %v1114_v13  ;;  %v4490_v1 = vpop.f32.mrb[44].mxu0  ;;  %v3901_v13 = vld [vmem:[%s4777_s4 + $0x80] sm:$0xff]  }
 0x22d   : > { %3570 = vmatprep.subr.bf16.mxu1 %v3898_v63  ;;  %v4495_v18 = vpop.f32.mrb[45].mxu0 }
 0x22e   : > { %v4497_v20 = vpop.f32.mrb[46].mxu0 }
 0x22f   : > { %v1799_v55 = vpack.c.bf16 %v4497_v20, %v4490_v1  ;;  %v4501_v59 = vpop.f32.mrb[47].mxu0  ;;  %v3917_v1 = vld [vmem:[%s4777_s4 + $0x100] sm:$0xff]   ;;  %v3920_v20 = vld [vmem:[%s4777_s4 + $0x118] sm:$0xff]  }
 0x230   : > { %3571 = vmatpush3.bf16.msra.mxu1 %v3898_v63  ;;  %v1798_v62 = vpack.c.bf16 %v4501_v59, %v4495_v18  ;;  %v3916_v63 = vld [vmem:[%s4777_s4 + $0xf8] sm:$0xff]   ;;  %v3919_v18 = vld [vmem:[%s4777_s4 + $0x110] sm:$0xff]   ;;  %v3239_v59 = vld [vmem:[%s4778_s5] ss:$0 sm:$0xff] }
 0x231   : > { %3572 = vmatprep.subr.bf16.mxu1 %v3899_v8 }
 0x233   : > { %3549 = vmatmul.mubr.msk.bf16.gmra.mrb[20].mxu1 %vm595_vm0, %v1115_v10 }
 0x234   : > { %3573 = vmatpush3.bf16.msra.mxu1 %v3899_v8  ;;  %3576 = vmatprep.mubr.msk.bf16.mxu1 %vm595_vm0, %v1340_v25  ;;  %v4516_v11 = vpop.f32.mrb[48].mxu0  ;;  %v3903_v25 = vld [vmem:[%s4777_s4 + $0x90] sm:$0xff]   ;;  %v3918_v8 = vld [vmem:[%s4777_s4 + $0x108] sm:$0xff]  }
 0x235   : > { %3574 = vmatprep.subr.bf16.mxu1 %v3900_v5  ;;  %v4521_v21 = vpop.f32.mrb[49].mxu0 }
 0x236   : > { %v4523_v24 = vpop.f32.mrb[50].mxu0 }
 0x237   : > { %v2025_v3 = vpack.c.bf16 %v4523_v24, %v4516_v11  ;;  %v4527_v7 = vpop.f32.mrb[51].mxu0 }
 0x238   : > { %3575 = vmatpush3.bf16.msra.mxu1 %v3900_v5  ;;  %v2024_v10 = vpack.c.bf16 %v4527_v7, %v4521_v21 }
 0x239   : > { %3600 = vmatprep.subr.bf16.mxu1 %v3901_v13 }
 0x23b   : > { %3577 = vmatmul.mubr.msk.bf16.vlgmr.msra.gmra.mrb[16].mxu1 %vm595_vm0, %v1341_v22 }
 0x23c   : > { %3601 = vmatpush3.bf16.msra.mxu1 %v3901_v13  ;;  %3580 = vmatprep.mubr.msk.bf16.mxu1 %vm595_vm0, %v1342_v39  ;;  %v4542_v23 = vpop.f32.mrb[52].mxu0 }
 0x23d   : > { %3602 = vmatprep.subr.bf16.mxu1 %v3902_v17  ;;  %v4547_v26 = vpop.f32.mrb[53].mxu0 }
 0x23e   : > { %v4549_v27 = vpop.f32.mrb[54].mxu0 }
 0x23f   : > { %v2027_v15 = vpack.c.bf16 %v4549_v27, %v4542_v23  ;;  %v4553_v19 = vpop.f32.mrb[55].mxu0 }
 0x240   : > { %3603 = vmatpush3.bf16.msra.mxu1 %v3902_v17  ;;  %v2026_v22 = vpack.c.bf16 %v4553_v19, %v4547_v26 }
 0x241   : > { %3604 = vmatprep.subr.bf16.mxu1 %v3903_v25 }
 0x243   : > { %3581 = vmatmul.mubr.msk.bf16.gmra.mrb[20].mxu1 %vm595_vm0, %v1343_v36  ;;  %v3906_v36 = vld [vmem:[%s4777_s4 + $0xa8] sm:$0xff]  }
 0x244   : > { %3605 = vmatpush3.bf16.msra.mxu1 %v3903_v25  ;;  %3608 = vmatprep.mubr.msk.bf16.mxu1 %vm595_vm0, %v1568_v51  ;;  %v4568_v30 = vpop.f32.mrb[56].mxu0 }
 0x245   : > { %3606 = vmatprep.subr.bf16.mxu1 %v3904_v29  ;;  %v4573_v32 = vpop.f32.mrb[57].mxu0 }
 0x246   : > { %v4575_v34 = vpop.f32.mrb[58].mxu0 }
 0x247   : > { %v2253_v28 = vpack.c.bf16 %v4575_v34, %v4568_v30  ;;  %v4579_v33 = vpop.f32.mrb[59].mxu0 }
 0x248   : > { %3607 = vmatpush3.bf16.msra.mxu1 %v3904_v29  ;;  %v2252_v35 = vpack.c.bf16 %v4579_v33, %v4573_v32 }
 0x249   : > { %3632 = vmatprep.subr.bf16.mxu1 %v3905_v31 }
 0x24b   : > { %3609 = vmatmul.mubr.msk.bf16.vlgmr.msra.gmra.mrb[16].mxu1 %vm595_vm0, %v1569_v49 }
 0x24c   : > { %3633 = vmatpush3.bf16.msra.mxu1 %v3905_v31  ;;  %3612 = vmatprep.mubr.msk.bf16.mxu1 %vm595_vm0, %v1570_v58  ;;  %v4594_v37 = vpop.f32.mrb[60].mxu0 }
 0x24d   : > { %3634 = vmatprep.subr.bf16.mxu1 %v3906_v36  ;;  %v4599_v39 = vpop.f32.mrb[61].mxu0 }
 0x24e   : > { %v4601_v40 = vpop.f32.mrb[62].mxu0 }
 0x24f   : > { %v2255_v43 = vpack.c.bf16 %v4601_v40, %v4594_v37  ;;  %v2240_v45 = vpop.f32.mrb[63].mxu0 }
 0x250   : > { %3635 = vmatpush3.bf16.msra.mxu1 %v3906_v36  ;;  %v2254_v46 = vpack.c.bf16 %v2240_v45, %v4599_v39  ;;  %v2639_v39 = vlaneseq  ;;  %v2637_v45 = vld [vmem:[%s4780_s7] sm:$0x3] }
 0x251   : > { %3636 = vmatprep.subr.bf16.mxu1 %v3907_v38 }
 0x252   : > { %v2640_v40 = vshrl.u32 %v2639_v39, 7 }
 0x253   : > { %3613 = vmatmul.mubr.msk.bf16.gmra.mrb[20].mxu1 %vm595_vm0, %v1571_v4 }
 0x254   : > { %3637 = vmatpush3.bf16.msra.mxu1 %v3907_v38  ;;  %3640 = vmatprep.mubr.msk.bf16.mxu1 %vm595_vm0, %v1796_v57  ;;  %v4617_v49 = vpop.f32.mrb[64].mxu0  ;;  %v3915_v57 = vld [vmem:[%s4777_s4 + $0xf0] sm:$0xff]  }
 0x255   : > { %3638 = vmatprep.subr.bf16.mxu1 %v3908_v47  ;;  %v2449_v51 = vpop.f32.mrb[65].mxu0 }
 0x256   : > { %v3723_v52 = vpop.f32.mrb[66].mxu0 }
 0x257   : > { %v2481_v56 = vpack.c.bf16 %v3723_v52, %v4617_v49  ;;  %v2452_v53 = vpop.f32.mrb[67].mxu0 }
 0x258   : > { %3639 = vmatpush3.bf16.msra.mxu1 %v3908_v47  ;;  %v2480_v61 = vpack.c.bf16 %v2452_v53, %v2449_v51 }
 0x259   : > { %3664 = vmatprep.subr.bf16.mxu1 %v3909_v50 }
 0x25b   : > { %3641 = vmatmul.mubr.msk.bf16.vlgmr.msra.gmra.mrb[16].mxu1 %vm595_vm0, %v1797_v2  ;;  %v3913_v2 = vld [vmem:[%s4777_s4 + $0xe0] sm:$0xff]  }
 0x25c   : > { %3665 = vmatpush3.bf16.msra.mxu1 %v3909_v50  ;;  %3644 = vmatprep.mubr.msk.bf16.mxu1 %vm595_vm0, %v1798_v62  ;;  %v3726_v4 = vpop.f32.mrb[68].mxu0  ;;  %v3933_v50 = vld [vmem:[%s4038_s30] sm:$0xff] }
 0x25d   : > { %3666 = vmatprep.subr.bf16.mxu1 %v3910_v0  ;;  %v2465_v58 = vpop.f32.mrb[69].mxu0  ;;  %v2774_v51 = vunpack.c.l.bf16 %v3933_v50 }
 0x25e   : > { %v3727_v60 = vpop.f32.mrb[70].mxu0 }
 0x25f   : > { %v2483_v12 = vpack.c.bf16 %v3727_v60, %v3726_v4  ;;  %v2468_v14 = vpop.f32.mrb[71].mxu0 }
 0x260   : > { %3667 = vmatpush3.bf16.msra.mxu1 %v3910_v0  ;;  %v2482_v9 = vpack.c.bf16 %v2468_v14, %v2465_v58  ;;  %v3934_v0 = vld [vmem:[%s4038_s30 + $0x8] sm:$0xff] }
 0x261   : > { %3668 = vmatprep.subr.bf16.mxu1 %v3911_v54  ;;  %v2776_v4 = vunpack.c.l.bf16 %v3934_v0  ;;  %v2777_v60 = vunpack.c.h.bf16 %v3934_v0  ;;  %v3939_v0 = vld [vmem:[%s4038_s30 + $0x20] sm:$0xff] }
 0x263   : > { %3645 = vmatmul.mubr.msk.bf16.gmra.mrb[20].mxu1 %vm595_vm0, %v1799_v55  ;;  %v3929_v55 = vld [vmem:[%s4779_s6 + $0x24] ss:$8 sps:$4 sm:$0xff]  }
 0x264   : > { %3669 = vmatpush3.bf16.msra.mxu1 %v3911_v54  ;;  %3672 = vmatprep.mubr.msk.bf16.mxu1 %vm595_vm0, %v2024_v10 }
 0x265   : > { %3670 = vmatprep.subr.bf16.mxu1 %v3912_v16  ;;  %2705 = vmatprep.subr.bf16.mxu0 %v3929_v55 }
 0x268   : > { %3671 = vmatpush3.bf16.msra.mxu1 %v3912_v16 }
 0x269   : > { %3696 = vmatprep.subr.bf16.mxu1 %v3913_v2 }
 0x26b   : > { %3673 = vmatmul.mubr.msk.bf16.vlgmr.msra.gmra.mrb[16].mxu1 %vm595_vm0, %v2025_v3 }
 0x26c   : > { %3697 = vmatpush3.bf16.msra.mxu1 %v3913_v2  ;;  %3676 = vmatprep.mubr.msk.bf16.mxu1 %vm595_vm0, %v2026_v22 }
 0x26d   : > { %3698 = vmatprep.subr.bf16.mxu1 %v3914_v6 }
 0x270   : > { %3699 = vmatpush3.bf16.msra.mxu1 %v3914_v6 }
 0x271   : > { %3700 = vmatprep.subr.bf16.mxu1 %v3915_v57 }
 0x273   : > { %3677 = vmatmul.mubr.msk.bf16.gmra.mrb[20].mxu1 %vm595_vm0, %v2027_v15 }
 0x274   : > { %3701 = vmatpush3.bf16.msra.mxu1 %v3915_v57  ;;  %3704 = vmatprep.mubr.msk.bf16.mxu1 %vm595_vm0, %v2252_v35 }
 0x275   : > { %3702 = vmatprep.subr.bf16.mxu1 %v3916_v63 }
 0x278   : > { %3703 = vmatpush3.bf16.msra.mxu1 %v3916_v63 }
 0x279   : > { %3728 = vmatprep.subr.bf16.mxu1 %v3917_v1 }
 0x27b   : > { %3705 = vmatmul.mubr.msk.bf16.vlgmr.msra.gmra.mrb[16].mxu1 %vm595_vm0, %v2253_v28 }
 0x27c   : > { %3729 = vmatpush3.bf16.msra.mxu1 %v3917_v1  ;;  %3708 = vmatprep.mubr.msk.bf16.mxu1 %vm595_vm0, %v2254_v46  ;;  %v2645_v46 = vsub.s32 1, %v2640_v40 }
 0x27d   : > { %3730 = vmatprep.subr.bf16.mxu1 %v3918_v8 }
 0x27e   : > { %v4729_v49 = vrot.slane %v2637_v45, %v2645_v46 }
 0x280   : > { %3731 = vmatpush3.bf16.msra.mxu1 %v3918_v8  ;;  %v3935_v8 = vld [vmem:[%s4038_s30 + $0x30] sm:$0xff] }
 0x281   : > { %3732 = vmatprep.subr.bf16.mxu1 %v3919_v18 }
 0x283   : > { %3709 = vmatmul.mubr.msk.bf16.gmra.mrb[20].mxu1 %vm595_vm0, %v2255_v43  ;;  %v2641_v43 = vsub.s32 0, %v2640_v40 }
 0x284   : > { %3733 = vmatpush3.bf16.msra.mxu1 %v3919_v18  ;;  %3736 = vmatprep.mubr.msk.bf16.mxu1 %vm595_vm0, %v2480_v61  ;;  %v2786_v18 = vunpack.c.l.bf16 %v3935_v8 }
 0x285   : > { %3734 = vmatprep.subr.bf16.mxu1 %v3920_v20  ;;  %v4727_v47 = vrot.slane %v2637_v45, %v2641_v43 }
 0x288   : > { %3735 = vmatpush3.bf16.msra.mxu1 %v3920_v20  ;;  %v3936_v20 = vld [vmem:[%s4038_s30 + $0x10] sm:$0xff] }
 0x289   : > { %3744 = vmatprep.subr.bf16.mxu1 %v4398_v42  ;;  %v3927_v42 = vld [vmem:[%s4779_s6 + $0x20] ss:$8 sps:$4 sm:$0xff]  }
 0x28a   : > { %2706 = vmatpush1.bf16.msra.mxu0 %v3927_v42 }
 0x28b   : > { %3737 = vmatmul.mubr.msk.bf16.vlgmr.msra.gmra.mrb[16].mxu1 %vm595_vm0, %v2481_v56  ;;  %v2775_v56 = vunpack.c.h.bf16 %v3933_v50 }
 0x28c   : > { %3740 = vmatprep.mubr.msk.bf16.mxu1 %vm595_vm0, %v2482_v9  ;;  %3748 = vmatpush1.bf16.msra.mxu1 %v4393_v41  ;;  %v3932_v41 = vld [vmem:[%s4779_s6 + $0x34] ss:$8 sps:$4 sm:$0xff]  }
 0x28d   : > { %3745 = vmatprep.subr.bf16.mxu1 %v4406_v44  ;;  %v3930_v44 = vld [vmem:[%s4779_s6 + $0x30] ss:$8 sps:$4 sm:$0xff]   ;;  %2707 = vmatprep.subr.bf16.mxu0 %v3932_v41 }
 0x28e   : > { %2708 = vmatpush1.bf16.msra.mxu0 %v3930_v44 }
 0x290   : > { %3749 = vmatpush1.bf16.msra.mxu1 %v4420_v48  ;;  %v3949_v48 = vmov 0  }
 0x291   : > { %3746 = vmatprep.subr.bf16.mxu1 %v3929_v55  ;;  %2733 = vmatprep.mubr.bf16.mxu0 %v3949_v48  ;;  %v2778_v55 = vunpack.c.l.bf16 %v3936_v20 }
 0x293   : > { %3741 = vmatmul.mubr.msk.bf16.gmra.mrb[20].mxu1 %vm595_vm0, %v2483_v12 }
 0x294   : > { %3750 = vmatpush1.bf16.msra.mxu1 %v3927_v42  ;;  %2763 = vmatprep.mubr.bf16.mxu1 %v3949_v48 }
 0x295   : > { %3747 = vmatprep.subr.bf16.mxu1 %v3932_v41 }
 0x298   : > { %3751 = vmatpush1.bf16.msra.mxu1 %v3930_v44  ;;  %v2787_v44 = vunpack.c.h.bf16 %v3935_v8 }
 0x35e   : > { %v3738_v62 = vpop.f32.mrb[16].mxu1 }
 0x35f   : > { %v2611_v5 = vadd.f32 %v3738_v62, %v3239_v59  ;;  %v2563_v11 = vpop.f32.mrb[17].mxu1 }
 0x360   : > { %v2609_v13 = vadd.f32 %v3239_v59, %v2563_v11  ;;  %v3739_v21 = vpop.f32.mrb[18].mxu1 }
 0x361   : > { %v2612_v24 = vadd.f32 %v3739_v21, %v3239_v59  ;;  %v2566_v3 = vpop.f32.mrb[19].mxu1  ;;  %v2619_v10 = vmax.f32 %v2611_v5, 0.0 }
 0x362   : > { %v2610_v7 = vadd.f32 %v3239_v59, %v2566_v3  ;;  %v2617_v23 = vmax.f32 %v2609_v13, 0.0  ;;  %v3938_v3 = vld [vmem:[%s4038_s30 + $0x18] sm:$0xff] }
 0x363   : > { %v2620_v17 = vmax.f32 %v2612_v24, 0.0 }
 0x364   : > { %v2618_v25 = vmax.f32 %v2610_v7, 0.0  ;;  %v2780_v7 = vunpack.c.l.bf16 %v3938_v3 }
 0x365   : > { %v2626_v26 = vpack.c.bf16 %v2620_v17, %v2619_v10 }
 0x366   : > { %v2625_v27 = vpack.c.bf16 %v2618_v25, %v2617_v23  ;;  %v3742_v15 = vpop.f32.mrb[20].mxu1 }
 0x367   : > { %v2615_v19 = vadd.f32 %v3742_v15, %v3239_v59  ;;  %v2579_v22 = vpop.f32.mrb[21].mxu1 }
 0x368   : > { %v2613_v29 = vadd.f32 %v3239_v59, %v2579_v22  ;;  %v3743_v30 = vpop.f32.mrb[22].mxu1  ;;  %3248 = vmatmul.mubr.msk.bf16.vlgmr.msra.gmra.mrb[72].mxu0 %vm595_vm0, %v2625_v27  ;;  %v2781_v27 = vunpack.c.h.bf16 %v3938_v3 }
 0x369   : > { %v2616_v31 = vadd.f32 %v3743_v30, %v3239_v59  ;;  %v2582_v32 = vpop.f32.mrb[23].mxu1  ;;  %2743 = vmatprep.mubr.bf16.mxu0 %v3949_v48  ;;  %v2623_v28 = vmax.f32 %v2615_v19, 0.0 }
 0x36a   : > { %v2614_v34 = vadd.f32 %v3239_v59, %v2582_v32  ;;  %v2621_v35 = vmax.f32 %v2613_v29, 0.0  ;;  %v3937_v59 = vld [vmem:[%s4038_s30 + $0x38] sm:$0xff] }
 0x36b   : > { %v2624_v33 = vmax.f32 %v2616_v31, 0.0  ;;  %v2788_v62 = vunpack.c.l.bf16 %v3937_v59 }
 0x36c   : > { %v2622_v36 = vmax.f32 %v2614_v34, 0.0 }
 0x36d   : > { %v2628_v37 = vpack.c.bf16 %v2624_v33, %v2623_v28 }
 0x36e   : > { %v2627_v38 = vpack.c.bf16 %v2622_v36, %v2621_v35 }
 0x36f   : > { %3251 = vmatmul.mubr.msk.bf16.vlgmr.msra.gmra.mrb[24].mxu1 %vm595_vm0, %v2628_v37 }
 0x370   : > { %3249 = vmatmul.mubr.msk.bf16.gmra.mrb[76].mxu0 %vm595_vm0, %v2626_v26  ;;  %v2789_v26 = vunpack.c.h.bf16 %v3937_v59 }
 0x371   : > { %2753 = vmatprep.mubr.bf16.mxu0 %v3949_v48  ;;  %v2779_v48 = vunpack.c.h.bf16 %v3936_v20 }
 0x378   : > { %3250 = vmatmul.mubr.msk.bf16.gmra.mrb[80].mxu0 %vm595_vm0, %v2627_v38 }
 0x43b   : > { %v2735_v52 = vpop.f32.mrb[72].mxu0 }
 0x43c   : > { %v2736_v53 = vadd.f32 %v2735_v52, %v4727_v47  ;;  %v2737_v61 = vpop.f32.mrb[73].mxu0 }
 0x43d   : > { %v2738_v54 = vadd.f32 %v2737_v61, %v4729_v49  ;;  %v2739_v58 = vpop.f32.mrb[74].mxu0 }
 0x43e   : > { %v2790_v12 = vadd.f32 %v2774_v51, %v2736_v53  ;;  %v2740_v14 = vadd.f32 %v2739_v58, %v4727_v47  ;;  %v2741_v9 = vpop.f32.mrb[75].mxu0 }
 0x43f   : > { %v2791_v16 = vadd.f32 %v2775_v56, %v2738_v54  ;;  %v2742_v2 = vadd.f32 %v2741_v9, %v4729_v49 }
 0x440   : > { %v2806_v6 = vmax.f32 %v2790_v12, 0.0  ;;  %v2792_v57 = vadd.f32 %v2776_v4, %v2740_v14  ;;  %v2782_v4 = vunpack.c.l.bf16 %v3939_v0  ;;  %v2783_v12 = vunpack.c.h.bf16 %v3939_v0 }
 0x441   : > { %v2807_v63 = vmax.f32 %v2791_v16, 0.0  ;;  %v2793_v1 = vadd.f32 %v2777_v60, %v2742_v2  ;;  %v3940_v2 = vld [vmem:[%s4038_s30 + $0x28] sm:$0xff] }
 0x442   : > { %v2808_v42 = vmax.f32 %v2792_v57, 0.0  ;;  %v2765_v41 = vpop.f32.mrb[24].mxu1  ;;  %v2785_v8 = vunpack.c.h.bf16 %v3940_v2 }
 0x443   : > { %v3264_v5 = vpack.c.bf16 %v2807_v63, %v2806_v6  ;;  %v2809_v11 = vmax.f32 %v2793_v1, 0.0  ;;  %v2766_v13 = vadd.f32 %v2765_v41, %v4727_v47  ;;  %v2745_v21 = vpop.f32.mrb[76].mxu0  ;;  %v2767_v24 = vpop.f32.mrb[25].mxu1  ;;  %v2784_v6 = vunpack.c.l.bf16 %v3940_v2 }
 0x444   : > { %v2746_v10 = vadd.f32 %v2745_v21, %v4727_v47  ;;  %v2768_v17 = vadd.f32 %v2767_v24, %v4729_v49  ;;  %v2747_v23 = vpop.f32.mrb[77].mxu0  ;;  %v2769_v25 = vpop.f32.mrb[26].mxu1 }
 0x445   : > { %2870 = vst [vmem:[%s4744_s11] sm:$0xff] %v3264_v5  ;;  %v3265_v15 = vpack.c.bf16 %v2809_v11, %v2808_v42  ;;  %v2802_v19 = vadd.f32 %v2786_v18, %v2766_v13  ;;  %v2748_v22 = vadd.f32 %v2747_v23, %v4729_v49  ;;  %v2770_v29 = vadd.f32 %v2769_v25, %v4727_v47  ;;  %v2749_v30 = vpop.f32.mrb[78].mxu0  ;;  %v2771_v31 = vpop.f32.mrb[27].mxu1 }
 0x446   : > { %v2794_v32 = vadd.f32 %v2778_v55, %v2746_v10  ;;  %v2803_v34 = vadd.f32 %v2787_v44, %v2768_v17  ;;  %v2750_v28 = vadd.f32 %v2749_v30, %v4727_v47  ;;  %v2772_v33 = vadd.f32 %v2771_v31, %v4729_v49  ;;  %v2751_v35 = vpop.f32.mrb[79].mxu0 }
 0x447   : > { %2871 = vst [vmem:[%s4744_s11 + $0x8] sm:$0xff] %v3265_v15  ;;  %v2818_v36 = vmax.f32 %v2802_v19, 0.0  ;;  %v2795_v37 = vadd.f32 %v2779_v48, %v2748_v22  ;;  %v2804_v38 = vadd.f32 %v2788_v62, %v2770_v29  ;;  %v2752_v39 = vadd.f32 %v2751_v35, %v4729_v49 }
 0x448   : > { %v2810_v40 = vmax.f32 %v2794_v32, 0.0  ;;  %v2819_v43 = vmax.f32 %v2803_v34, 0.0  ;;  %v2796_v45 = vadd.f32 %v2780_v7, %v2750_v28  ;;  %v2805_v46 = vadd.f32 %v2789_v26, %v2772_v33 }
 0x449   : > { %v2811_v50 = vmax.f32 %v2795_v37, 0.0  ;;  %v2820_v51 = vmax.f32 %v2804_v38, 0.0  ;;  %v2797_v52 = vadd.f32 %v2781_v27, %v2752_v39 }
 0x44a   : > { %v3270_v56 = vpack.c.bf16 %v2819_v43, %v2818_v36  ;;  %v2812_v53 = vmax.f32 %v2796_v45, 0.0  ;;  %v2821_v61 = vmax.f32 %v2805_v46, 0.0 }
 0x44b   : > { %v3266_v54 = vpack.c.bf16 %v2811_v50, %v2810_v40  ;;  %v2813_v58 = vmax.f32 %v2797_v52, 0.0  ;;  %v2755_v60 = vpop.f32.mrb[80].mxu0 }
 0x44c   : > { %2876 = vst [vmem:[%s4744_s11 + $0x30] sm:$0xff] %v3270_v56  ;;  %v3271_v14 = vpack.c.bf16 %v2821_v61, %v2820_v51  ;;  %v2756_v9 = vadd.f32 %v2755_v60, %v4727_v47  ;;  %v2757_v16 = vpop.f32.mrb[81].mxu0 }
 0x44d   : > { %2872 = vst [vmem:[%s4744_s11 + $0x10] sm:$0xff] %v3266_v54  ;;  %v3267_v57 = vpack.c.bf16 %v2813_v58, %v2812_v53  ;;  %v2758_v63 = vadd.f32 %v2757_v16, %v4729_v49  ;;  %v2759_v1 = vpop.f32.mrb[82].mxu0 }
 0x44e   : > { %2877 = vst [vmem:[%s4744_s11 + $0x38] sm:$0xff] %v3271_v14  ;;  %v2798_v18 = vadd.f32 %v2782_v4, %v2756_v9  ;;  %v2760_v20 = vadd.f32 %v2759_v1, %v4727_v47  ;;  %v2761_v55 = vpop.f32.mrb[83].mxu0 }
 0x44f   : > { %2873 = vst [vmem:[%s4744_s11 + $0x18] sm:$0xff] %v3267_v57  ;;  %v2799_v42 = vadd.f32 %v2783_v12, %v2758_v63  ;;  %v2762_v41 = vadd.f32 %v2761_v55, %v4729_v49 }
 0x450   : > { %v2814_v44 = vmax.f32 %v2798_v18, 0.0  ;;  %v2800_v48 = vadd.f32 %v2784_v6, %v2760_v20 }
 0x451   : > { %v2815_v59 = vmax.f32 %v2799_v42, 0.0  ;;  %v2801_v62 = vadd.f32 %v2785_v8, %v2762_v41 }
 0x452   : > { %v2816_v5 = vmax.f32 %v2800_v48, 0.0 }
 0x453   : > { %v3268_v11 = vpack.c.bf16 %v2815_v59, %v2814_v44  ;;  %v2817_v13 = vmax.f32 %v2801_v62, 0.0 }
 0x455   : > { %2874 = vst [vmem:[%s4744_s11 + $0x20] sm:$0xff] %v3268_v11  ;;  %v3269_v21 = vpack.c.bf16 %v2817_v13, %v2816_v5 }
 0x457   : > { %2875 = vst [vmem:[%s4744_s11 + $0x28] sm:$0xff] %v3269_v21 }
 0x458 PF: > { %s18_s27 = sadd.s32 1, %s3947_s27  }
 0x459   : > { %p15_p4 = scmp.ge.s32.totalorder %s18_s27, 4  }
 0x45b   :  { %17 = sbr.rel (!%p15_p4) target bundleno = 1 (0x1), region = 98 }

// kernel: vae_recon_encoder_forward.9
= control target key start
LH: loop header
LB: loop body
LE: loop exit
PB: predicated region body
PF: predicated region fallthrough
CT: control target
= control target key end

     0   :  { %s4096_s13 = smov 0   ;;  %s4645_s0 = inlined_call_operand.vmem [shape: bf16[2,64,64], index: 0, kind: input, shape index: {}]   ;;  %s4646_s1 = inlined_call_operand.vmem [shape: bf16[9,64,64], index: 1, kind: input, shape index: {}]   ;;  %s4647_s2 = inlined_call_operand.vmem [shape: bf16[64,64], index: 2, kind: input, shape index: {}]   ;;  %s4648_s3 = inlined_call_operand.vmem [shape: f32[1,64], index: 3, kind: input, shape index: {}, may-alias: {3,5}]   ;;  %s4649_s4 = inlined_call_operand.vmem [shape: bf16[9,64,64], index: 4, kind: input, shape index: {}]   ;;  %s4650_s5 = inlined_call_operand.vmem [shape: f32[1,64], index: 5, kind: input, shape index: {}, may-alias: {3,5}]   ;;  %s4651_s6 = inlined_call_operand.vmem [shape: bf16[64,256], index: 6, kind: input, shape index: {}]   ;;  %s4652_s7 = inlined_call_operand.vmem [shape: f32[1,256], index: 7, kind: input, shape index: {}, may-alias: {7,9}]   ;;  %s4653_s8 = inlined_call_operand.vmem [shape: bf16[64,256], index: 8, kind: input, shape index: {}]   ;;  %s4654_s9 = inlined_call_operand.vmem [shape: f32[1,256], index: 9, kind: input, shape index: {}, may-alias: {7,9}]   ;;  %s4655_s10 = inlined_call_operand.vmem [shape: bf16[2,64,256], index: 10, kind: output, shape index: {}]  }
   0x1 LB: > { %s3000_s14 = sadd.s32 4294967295, %s4038_s13   ;;  %p3004_p0 = scmp.ge.s32.totalorder %s4038_s13, 1  ;;  %s4038_s13 = sphi %s4096_s13, %s20_s13  }
   0x2   : > { %p312_p1 = scmp.lt.s32.totalorder %s4038_s13, 3 }
   0x4   : > { %p313_p2 = pnand %p3004_p0, %p312_p1 }
   0x5   : > { %v3924_v0 = vld [vmem:[%s4647_s2] sm:$0xff] (!%p313_p2)   ;;  %p350_p3 = scmp.lt.s32.totalorder (!%p313_p2), %s3000_s14, 1  ;;  %v3925_v1 = vld [vmem:[%s4647_s2 + $0x8] sm:$0xff] (!%p313_p2)   ;;  %v3926_v2 = vld [vmem:[%s4647_s2 + $0x10] sm:$0xff] (!%p313_p2)   ;;  %vm428_vm0 = vcmask (!%p313_p2), 523264  }
   0x6   : > { %316 = sbr.rel (%p313_p2) target bundleno = 1080 (0x438), region = 60  ;;  %3491 = vmatprep.subr.bf16.mxu0 (!%p313_p2), %v3924_v0  ;;  %v3927_v4 = vld [vmem:[%s4647_s2 + $0x18] sm:$0xff] (!%p313_p2)   ;;  %v3932_v8 = vld [vmem:[%s4646_s1 + $0x20] sm:$0xff] (!%p313_p2)   ;;  %v3933_v40 = vld [vmem:[%s4646_s1 + $0x28] sm:$0xff] (!%p313_p2)  }
   0x7   : > { %3492 = vmatpush3.bf16.msra.mxu0 (!%p313_p2), %v3924_v0  ;;  %v3936_v9 = vld [vmem:[%s4646_s1] sm:$0xff] (!%p313_p2)   ;;  %v3937_v41 = vld [vmem:[%s4646_s1 + $0x8] sm:$0xff] (!%p313_p2)   ;;  %v3934_v42 = vld [vmem:[%s4646_s1 + $0x30] sm:$0xff] (!%p313_p2)  }
   0x8   : > { %3493 = vmatprep.subr.bf16.mxu0 (!%p313_p2), %v3925_v1  ;;  %3515 = vmatprep.mubr.msk.bf16.mxu1 (!%p313_p2), %vm428_vm0, %v3936_v9  ;;  %v3009_v10 = vld [vmem:[%s4648_s3] ss:$0 sm:$0xff] (!%p313_p2)  ;;  %v3940_v43 = vld [vmem:[%s4646_s1 + $0x10] sm:$0xff] (!%p313_p2)   ;;  %v3969_v44 = vld [vmem:[%s4649_s4 + $0x28] sm:$0xff] (!%p313_p2)  }
   0x9   : > { %v3968_v39 = vld [vmem:[%s4649_s4 + $0x20] sm:$0xff] (!%p313_p2)   ;;  %v3935_v45 = vld [vmem:[%s4646_s1 + $0x38] sm:$0xff] (!%p313_p2)   ;;  %v3970_v48 = vld [vmem:[%s4649_s4 + $0x30] sm:$0xff] (!%p313_p2)  }
   0xa   : > { %v3941_v46 = vld [vmem:[%s4646_s1 + $0x18] sm:$0xff] (!%p313_p2)   ;;  %v3938_v47 = vld [vmem:[%s4646_s1 + $0x40] sm:$0xff] (!%p313_p2)   ;;  %v3939_v49 = vld [vmem:[%s4646_s1 + $0x48] sm:$0xff] (!%p313_p2)  }
   0xb   : > { %3494 = vmatpush3.bf16.msra.mxu0 (!%p313_p2), %v3925_v1  ;;  %v3942_v50 = vld [vmem:[%s4646_s1 + $0x50] sm:$0xff] (!%p313_p2)   ;;  %v3943_v51 = vld [vmem:[%s4646_s1 + $0x58] sm:$0xff] (!%p313_p2)   ;;  %v3944_v52 = vld [vmem:[%s4646_s1 + $0x60] sm:$0xff] (!%p313_p2)  }
   0xc   : > { %3495 = vmatprep.subr.bf16.mxu0 (!%p313_p2), %v3926_v2  ;;  %v3945_v53 = vld [vmem:[%s4646_s1 + $0x68] sm:$0xff] (!%p313_p2)   ;;  %v3946_v54 = vld [vmem:[%s4646_s1 + $0x70] sm:$0xff] (!%p313_p2)   ;;  %v3947_v55 = vld [vmem:[%s4646_s1 + $0x78] sm:$0xff] (!%p313_p2)  }
   0xd   : > { %s4657_s14 = smov (!%p350_p3, %s3000_s14), 1  ;;  %v3948_v56 = vld [vmem:[%s4646_s1 + $0x80] sm:$0xff]   ;;  %v3949_v57 = vld [vmem:[%s4646_s1 + $0x88] sm:$0xff]   ;;  %v3950_v58 = vld [vmem:[%s4646_s1 + $0x90] sm:$0xff]  }
   0xe   : > { %s3329_s21 = sshll.u32 %s4657_s14, 5  ;;  %v3951_v59 = vld [vmem:[%s4646_s1 + $0x98] sm:$0xff]   ;;  %v3952_v60 = vld [vmem:[%s4646_s1 + $0xa0] sm:$0xff]   ;;  %v3953_v61 = vld [vmem:[%s4646_s1 + $0xa8] sm:$0xff]   ;;  %s3330_s22 = sshll.u32 %s4657_s14, 6 }
   0xf   : > { %s4119_s24 = scalar_lea.vmem %s4645_s0, %s3329_s21  ;;  %3496 = vmatpush3.bf16.msra.mxu0 %v3926_v2  ;;  %v3954_v62 = vld [vmem:[%s4646_s1 + $0xb0] sm:$0xff]   ;;  %v3955_v63 = vld [vmem:[%s4646_s1 + $0xb8] sm:$0xff]   ;;  %v3956_v0 = vld [vmem:[%s4646_s1 + $0xc0] sm:$0xff]   ;;  %s4608_s26 = scalar_lea.vmem %s4655_s10, %s3330_s22 }
  0x10   : > { %v3928_v3 = vld [vmem:[%s4119_s24] sm:$0xff]   ;;  %3497 = vmatprep.subr.bf16.mxu0 %v3927_v4  ;;  %v3929_v5 = vld [vmem:[%s4119_s24 + $0x8] sm:$0xff]   ;;  %v3930_v6 = vld [vmem:[%s4119_s24 + $0x10] sm:$0xff]  }
  0x11   : > { %3499 = vmatprep.mubr.msk.bf16.mxu0 %vm428_vm0, %v3928_v3  ;;  %v3931_v7 = vld [vmem:[%s4119_s24 + $0x18] sm:$0xff]   ;;  %v3957_v1 = vld [vmem:[%s4646_s1 + $0xc8] sm:$0xff]   ;;  %v3958_v2 = vld [vmem:[%s4646_s1 + $0xd0] sm:$0xff]  }
  0x12   : > { %v3959_v3 = vld [vmem:[%s4646_s1 + $0xd8] sm:$0xff]  }
  0x13   : > { %3498 = vmatpush3.bf16.msra.mxu0 %v3927_v4  ;;  %v3971_v4 = vld [vmem:[%s4649_s4 + $0x38] sm:$0xff]  }
  0x14   : > { %v3963_v9 = vld [vmem:[%s4646_s1 + $0xf8] sm:$0xff]  }
  0x16   : > { %3500 = vmatmul.mubr.msk.bf16.vlgmr.msra.gmra.mrb[0].mxu0 %vm428_vm0, %v3929_v5  ;;  %v3960_v5 = vld [vmem:[%s4646_s1 + $0xe0] sm:$0xff]  }
  0x17   : > { %3503 = vmatprep.mubr.msk.bf16.mxu0 %vm428_vm0, %v3930_v6  ;;  %v3972_v6 = vld [vmem:[%s4649_s4] sm:$0xff]  }
  0x1e   : > { %3504 = vmatmul.mubr.msk.bf16.gmra.mrb[4].mxu0 %vm428_vm0, %v3931_v7  ;;  %v3961_v7 = vld [vmem:[%s4646_s1 + $0xe8] sm:$0xff]  }
  0x1f   : > { %3531 = vmatprep.mubr.msk.bf16.mxu0 %vm428_vm0, %v3932_v8  ;;  %v3962_v8 = vld [vmem:[%s4646_s1 + $0xf0] sm:$0xff]  }
  0xe9   : > { %v3501_v11 = vpop.f32.mrb[0].mxu0 }
  0xea   : > { %v484_v12 = vadd.f32 %v3501_v11, %v3009_v10  ;;  %v475_v13 = vpop.f32.mrb[1].mxu0  ;;  %v3965_v11 = vld [vmem:[%s4646_s1 + $0x108] sm:$0xff]  }
  0xeb   : > { %v476_v14 = vadd.f32 %v3009_v10, %v475_v13  ;;  %v3502_v15 = vpop.f32.mrb[2].mxu0  ;;  %v3967_v13 = vld [vmem:[%s4646_s1 + $0x118] sm:$0xff]  }
  0xec   : > { %v487_v16 = vadd.f32 %v3502_v15, %v3009_v10  ;;  %v478_v17 = vpop.f32.mrb[3].mxu0  ;;  %v508_v19 = vmax.f32 %v484_v12, 0.0  ;;  %v3966_v12 = vld [vmem:[%s4646_s1 + $0x110] sm:$0xff]  }
  0xed   : > { %v479_v18 = vadd.f32 %v3009_v10, %v478_v17  ;;  %v506_v21 = vmax.f32 %v476_v14, 0.0 }
  0xee   : > { %v509_v20 = vmax.f32 %v487_v16, 0.0 }
  0xef   : > { %v507_v22 = vmax.f32 %v479_v18, 0.0 }
  0xf0   : > { %v4143_v23 = vpack.c.bf16 %v509_v20, %v508_v19 }
  0xf1   : > { %v4145_v24 = vpack.c.bf16 %v507_v22, %v506_v21  ;;  %v3505_v25 = vpop.f32.mrb[4].mxu0 }
  0xf2   : > { %v500_v26 = vadd.f32 %v3505_v25, %v3009_v10  ;;  %v491_v27 = vpop.f32.mrb[5].mxu0 }
  0xf3   : > { %v492_v28 = vadd.f32 %v3009_v10, %v491_v27  ;;  %v3506_v29 = vpop.f32.mrb[6].mxu0  ;;  %3507 = vmatprep.subr.bf16.mxu1 %v4145_v24  ;;  %3523 = vmatprep.subr.bf16.mxu0 %v4145_v24 }
  0xf4   : > { %v503_v30 = vadd.f32 %v3506_v29, %v3009_v10  ;;  %v494_v31 = vpop.f32.mrb[7].mxu0  ;;  %3508 = vmatpush3.bf16.msra.mxu1 %v4145_v24  ;;  %3524 = vmatpush3.bf16.msra.mxu0 %v4145_v24  ;;  %v512_v33 = vmax.f32 %v500_v26, 0.0  ;;  %v3973_v26 = vld [vmem:[%s4649_s4 + $0x8] sm:$0xff]  }
  0xf5   : > { %v495_v32 = vadd.f32 %v3009_v10, %v494_v31  ;;  %3509 = vmatprep.subr.bf16.mxu1 %v4143_v23  ;;  %3525 = vmatprep.subr.bf16.mxu0 %v4143_v23  ;;  %v510_v35 = vmax.f32 %v492_v28, 0.0  ;;  %v3964_v10 = vld [vmem:[%s4646_s1 + $0x100] sm:$0xff]  }
  0xf6   : > { %v513_v34 = vmax.f32 %v503_v30, 0.0  ;;  %v3974_v30 = vld [vmem:[%s4649_s4 + $0x10] sm:$0xff]  }
  0xf7   : > { %v511_v36 = vmax.f32 %v495_v32, 0.0 }
  0xf8   : > { %v4153_v37 = vpack.c.bf16 %v513_v34, %v512_v33  ;;  %3510 = vmatpush3.bf16.msra.mxu1 %v4143_v23  ;;  %3526 = vmatpush3.bf16.msra.mxu0 %v4143_v23 }
  0xf9   : > { %v4157_v38 = vpack.c.bf16 %v511_v36, %v510_v35 }
  0xfb   : > { %3511 = vmatprep.subr.bf16.mxu1 %v4157_v38  ;;  %3527 = vmatprep.subr.bf16.mxu0 %v4157_v38 }
  0xfc   : > { %3512 = vmatpush3.bf16.msra.mxu1 %v4157_v38  ;;  %3528 = vmatpush3.bf16.msra.mxu0 %v4157_v38 }
  0xfd   : > { %3513 = vmatprep.subr.bf16.mxu1 %v4153_v37  ;;  %3529 = vmatprep.subr.bf16.mxu0 %v4153_v37 }
 0x100   : > { %3514 = vmatpush3.bf16.msra.mxu1 %v4153_v37  ;;  %3530 = vmatpush3.bf16.msra.mxu0 %v4153_v37 }
 0x101   : > { %3571 = vmatprep.subr.bf16.mxu0 %v4145_v24  ;;  %3539 = vmatprep.subr.bf16.mxu1 %v3968_v39 }
 0x103   : > { %3532 = vmatmul.mubr.msk.bf16.vlgmr.msra.gmra.mrb[8].mxu0 %vm428_vm0, %v3933_v40  ;;  %3516 = vmatmul.mubr.msk.bf16.vlgmr.msra.gmra.mrb[0].mxu1 %vm428_vm0, %v3937_v41  ;;  %v3975_v40 = vld [vmem:[%s4649_s4 + $0x18] sm:$0xff]   ;;  %v4004_v41 = vld [vmem:[%s4651_s6] ss:$8 sps:$4 sm:$0xff]  }
 0x104   : > { %3572 = vmatpush3.bf16.msra.mxu0 %v4145_v24  ;;  %3535 = vmatprep.mubr.msk.bf16.mxu0 %vm428_vm0, %v3934_v42  ;;  %v4006_v42 = vld [vmem:[%s4651_s6 + $0x4] ss:$8 sps:$4 sm:$0xff]  }
 0x105   : > { %3573 = vmatprep.subr.bf16.mxu0 %v4143_v23  ;;  %3519 = vmatprep.mubr.msk.bf16.mxu1 %vm428_vm0, %v3940_v43 }
 0x106   : > { %3540 = vmatpush3.bf16.msra.mxu1 %v3968_v39 }
 0x107   : > { %3541 = vmatprep.subr.bf16.mxu1 %v3969_v44 }
 0x108   : > { %3574 = vmatpush3.bf16.msra.mxu0 %v4143_v23 }
 0x109   : > { %3575 = vmatprep.subr.bf16.mxu0 %v4157_v38 }
 0x10a   : > { %3542 = vmatpush3.bf16.msra.mxu1 %v3969_v44  ;;  %v4009_v44 = vld [vmem:[%s4651_s6 + $0x14] ss:$8 sps:$4 sm:$0xff]  }
 0x10b   : > { %3536 = vmatmul.mubr.msk.bf16.gmra.mrb[12].mxu0 %vm428_vm0, %v3935_v45  ;;  %3520 = vmatmul.mubr.msk.bf16.gmra.mrb[4].mxu1 %vm428_vm0, %v3941_v46  ;;  %v3976_v45 = vld [vmem:[%s4649_s4 + $0x40] sm:$0xff]  }
 0x10c   : > { %3576 = vmatpush3.bf16.msra.mxu0 %v4157_v38  ;;  %3579 = vmatprep.mubr.msk.bf16.mxu0 %vm428_vm0, %v3938_v47 }
 0x10d   : > { %3577 = vmatprep.subr.bf16.mxu0 %v4153_v37  ;;  %3543 = vmatprep.subr.bf16.mxu1 %v3970_v48 }
 0x10e   : > { %3544 = vmatpush3.bf16.msra.mxu1 %v3970_v48  ;;  %v4007_v48 = vld [vmem:[%s4651_s6 + $0x10] ss:$8 sps:$4 sm:$0xff]  }
 0x10f   : > { %3545 = vmatprep.subr.bf16.mxu1 %v3971_v4 }
 0x110   : > { %3578 = vmatpush3.bf16.msra.mxu0 %v4153_v37 }
 0x111   : > { %3603 = vmatprep.subr.bf16.mxu0 %v4145_v24 }
 0x112   : > { %3546 = vmatpush3.bf16.msra.mxu1 %v3971_v4  ;;  %v3981_v4 = vld [vmem:[%s4649_s4 + $0x68] sm:$0xff]  }
 0x113   : > { %3580 = vmatmul.mubr.msk.bf16.vlgmr.msra.gmra.mrb[16].mxu0 %vm428_vm0, %v3939_v49  ;;  %3555 = vmatprep.subr.bf16.mxu1 %v3972_v6 }
 0x114   : > { %3604 = vmatpush3.bf16.msra.mxu0 %v4145_v24  ;;  %3583 = vmatprep.mubr.msk.bf16.mxu0 %vm428_vm0, %v3942_v50 }
 0x115   : > { %3605 = vmatprep.subr.bf16.mxu0 %v4143_v23 }
 0x118   : > { %3606 = vmatpush3.bf16.msra.mxu0 %v4143_v23 }
 0x119   : > { %3607 = vmatprep.subr.bf16.mxu0 %v4157_v38 }
 0x11b   : > { %3584 = vmatmul.mubr.msk.bf16.gmra.mrb[20].mxu0 %vm428_vm0, %v3943_v51 }
 0x11c   : > { %3608 = vmatpush3.bf16.msra.mxu0 %v4157_v38  ;;  %3611 = vmatprep.mubr.msk.bf16.mxu0 %vm428_vm0, %v3944_v52  ;;  %v3977_v52 = vld [vmem:[%s4649_s4 + $0x48] sm:$0xff]  }
 0x11d   : > { %3609 = vmatprep.subr.bf16.mxu0 %v4153_v37 }
 0x120   : > { %3610 = vmatpush3.bf16.msra.mxu0 %v4153_v37 }
 0x121   : > { %3635 = vmatprep.subr.bf16.mxu0 %v4145_v24 }
 0x123   : > { %3612 = vmatmul.mubr.msk.bf16.vlgmr.msra.gmra.mrb[24].mxu0 %vm428_vm0, %v3945_v53 }
 0x124   : > { %3636 = vmatpush3.bf16.msra.mxu0 %v4145_v24  ;;  %3615 = vmatprep.mubr.msk.bf16.mxu0 %vm428_vm0, %v3946_v54  ;;  %v3978_v54 = vld [vmem:[%s4649_s4 + $0x50] sm:$0xff]  }
 0x125   : > { %3637 = vmatprep.subr.bf16.mxu0 %v4143_v23 }
 0x128   : > { %3638 = vmatpush3.bf16.msra.mxu0 %v4143_v23 }
 0x129   : > { %3639 = vmatprep.subr.bf16.mxu0 %v4157_v38 }
 0x12b   : > { %3616 = vmatmul.mubr.msk.bf16.gmra.mrb[28].mxu0 %vm428_vm0, %v3947_v55 }
 0x12c   : > { %3640 = vmatpush3.bf16.msra.mxu0 %v4157_v38  ;;  %3643 = vmatprep.mubr.msk.bf16.mxu0 %vm428_vm0, %v3948_v56 }
 0x12d   : > { %3641 = vmatprep.subr.bf16.mxu0 %v4153_v37 }
 0x130   : > { %3642 = vmatpush3.bf16.msra.mxu0 %v4153_v37 }
 0x131   : > { %3667 = vmatprep.subr.bf16.mxu0 %v4145_v24 }
 0x133   : > { %3644 = vmatmul.mubr.msk.bf16.vlgmr.msra.gmra.mrb[32].mxu0 %vm428_vm0, %v3949_v57 }
 0x134   : > { %3668 = vmatpush3.bf16.msra.mxu0 %v4145_v24  ;;  %3647 = vmatprep.mubr.msk.bf16.mxu0 %vm428_vm0, %v3950_v58 }
 0x135   : > { %3669 = vmatprep.subr.bf16.mxu0 %v4143_v23 }
 0x138   : > { %3670 = vmatpush3.bf16.msra.mxu0 %v4143_v23 }
 0x139   : > { %3671 = vmatprep.subr.bf16.mxu0 %v4157_v38 }
 0x13b   : > { %3648 = vmatmul.mubr.msk.bf16.gmra.mrb[36].mxu0 %vm428_vm0, %v3951_v59 }
 0x13c   : > { %3672 = vmatpush3.bf16.msra.mxu0 %v4157_v38  ;;  %3675 = vmatprep.mubr.msk.bf16.mxu0 %vm428_vm0, %v3952_v60  ;;  %v3979_v60 = vld [vmem:[%s4649_s4 + $0x58] sm:$0xff]  }
 0x13d   : > { %3673 = vmatprep.subr.bf16.mxu0 %v4153_v37 }
 0x140   : > { %3674 = vmatpush3.bf16.msra.mxu0 %v4153_v37 }
 0x141   : > { %3699 = vmatprep.subr.bf16.mxu0 %v4145_v24 }
 0x143   : > { %3676 = vmatmul.mubr.msk.bf16.vlgmr.msra.gmra.mrb[40].mxu0 %vm428_vm0, %v3953_v61 }
 0x144   : > { %3700 = vmatpush3.bf16.msra.mxu0 %v4145_v24  ;;  %3679 = vmatprep.mubr.msk.bf16.mxu0 %vm428_vm0, %v3954_v62  ;;  %v3980_v62 = vld [vmem:[%s4649_s4 + $0x60] sm:$0xff]  }
 0x145   : > { %3701 = vmatprep.subr.bf16.mxu0 %v4143_v23 }
 0x148   : > { %3702 = vmatpush3.bf16.msra.mxu0 %v4143_v23 }
 0x149   : > { %3703 = vmatprep.subr.bf16.mxu0 %v4157_v38 }
 0x14b   : > { %3680 = vmatmul.mubr.msk.bf16.gmra.mrb[44].mxu0 %vm428_vm0, %v3955_v63 }
 0x14c   : > { %3704 = vmatpush3.bf16.msra.mxu0 %v4157_v38  ;;  %3707 = vmatprep.mubr.msk.bf16.mxu0 %vm428_vm0, %v3956_v0 }
 0x14d   : > { %3705 = vmatprep.subr.bf16.mxu0 %v4153_v37 }
 0x150   : > { %3706 = vmatpush3.bf16.msra.mxu0 %v4153_v37 }
 0x151   : > { %3731 = vmatprep.subr.bf16.mxu0 %v4145_v24 }
 0x153   : > { %3708 = vmatmul.mubr.msk.bf16.vlgmr.msra.gmra.mrb[48].mxu0 %vm428_vm0, %v3957_v1 }
 0x154   : > { %3732 = vmatpush3.bf16.msra.mxu0 %v4145_v24  ;;  %3711 = vmatprep.mubr.msk.bf16.mxu0 %vm428_vm0, %v3958_v2 }
 0x155   : > { %3733 = vmatprep.subr.bf16.mxu0 %v4143_v23 }
 0x158   : > { %3734 = vmatpush3.bf16.msra.mxu0 %v4143_v23 }
 0x159   : > { %3735 = vmatprep.subr.bf16.mxu0 %v4157_v38 }
 0x15b   : > { %3712 = vmatmul.mubr.msk.bf16.gmra.mrb[52].mxu0 %vm428_vm0, %v3959_v3 }
 0x15c   : > { %3736 = vmatpush3.bf16.msra.mxu0 %v4157_v38  ;;  %3739 = vmatprep.mubr.msk.bf16.mxu0 %vm428_vm0, %v3960_v5 }
 0x15d   : > { %3737 = vmatprep.subr.bf16.mxu0 %v4153_v37 }
 0x160   : > { %3738 = vmatpush3.bf16.msra.mxu0 %v4153_v37 }
 0x161   : > { %3763 = vmatprep.subr.bf16.mxu0 %v4145_v24 }
 0x163   : > { %3740 = vmatmul.mubr.msk.bf16.vlgmr.msra.gmra.mrb[56].mxu0 %vm428_vm0, %v3961_v7 }
 0x164   : > { %3764 = vmatpush3.bf16.msra.mxu0 %v4145_v24  ;;  %3743 = vmatprep.mubr.msk.bf16.mxu0 %vm428_vm0, %v3962_v8 }
 0x165   : > { %3765 = vmatprep.subr.bf16.mxu0 %v4143_v23 }
 0x168   : > { %3766 = vmatpush3.bf16.msra.mxu0 %v4143_v23 }
 0x169   : > { %3767 = vmatprep.subr.bf16.mxu0 %v4157_v38 }
 0x16b   : > { %3744 = vmatmul.mubr.msk.bf16.gmra.mrb[60].mxu0 %vm428_vm0, %v3963_v9 }
 0x16c   : > { %3768 = vmatpush3.bf16.msra.mxu0 %v4157_v38  ;;  %3771 = vmatprep.mubr.msk.bf16.mxu0 %vm428_vm0, %v3964_v10 }
 0x16d   : > { %3769 = vmatprep.subr.bf16.mxu0 %v4153_v37 }
 0x170   : > { %3770 = vmatpush3.bf16.msra.mxu0 %v4153_v37 }
 0x171   : > { %2651 = vmatprep.subr.bf16.mxu0 %v4006_v42 }
 0x173   : > { %3772 = vmatmul.mubr.msk.bf16.vlgmr.msra.gmra.mrb[64].mxu0 %vm428_vm0, %v3965_v11 }
 0x174   : > { %3775 = vmatprep.mubr.msk.bf16.mxu0 %vm428_vm0, %v3966_v12  ;;  %2652 = vmatpush1.bf16.msra.mxu0 %v4004_v41  ;;  %v3983_v12 = vld [vmem:[%s4649_s4 + $0x78] sm:$0xff]  }
 0x175   : > { %2653 = vmatprep.subr.bf16.mxu0 %v4009_v44  ;;  %v3991_v44 = vld [vmem:[%s4649_s4 + $0xb8] sm:$0xff]  }
 0x178   : > { %2654 = vmatpush1.bf16.msra.mxu0 %v4007_v48 }
 0x17b   : > { %3776 = vmatmul.mubr.msk.bf16.gmra.mrb[68].mxu0 %vm428_vm0, %v3967_v13 }
 0x1d6   : > { %v3533_v14 = vpop.f32.mrb[8].mxu0  ;;  %v3517_v15 = vpop.f32.mrb[0].mxu1 }
 0x1d7   : > { %v710_v16 = vpop.f32.mrb[9].mxu0  ;;  %v592_v17 = vpop.f32.mrb[1].mxu1 }
 0x1d8   : > { %v3534_v18 = vpop.f32.mrb[10].mxu0  ;;  %v3518_v19 = vpop.f32.mrb[2].mxu1 }
 0x1d9   : > { %v742_v20 = vpack.c.bf16 %v3534_v18, %v3533_v14  ;;  %v713_v21 = vpop.f32.mrb[11].mxu0  ;;  %v624_v22 = vpack.c.bf16 %v3518_v19, %v3517_v15  ;;  %v595_v23 = vpop.f32.mrb[3].mxu1  ;;  %v3984_v14 = vld [vmem:[%s4649_s4 + $0x80] sm:$0xff]  }
 0x1da   : > { %v741_v24 = vpack.c.bf16 %v713_v21, %v710_v16  ;;  %v623_v25 = vpack.c.bf16 %v595_v23, %v592_v17 }
 0x1dc   : > { %3547 = vmatprep.mubr.msk.bf16.mxu1 %vm428_vm0, %v741_v24 }
 0x1dd   : > { %3548 = vmatmul.mubr.msk.bf16.vlgmr.msra.gmra.mrb[8].mxu1 %vm428_vm0, %v742_v20  ;;  %v3985_v20 = vld [vmem:[%s4649_s4 + $0x88] sm:$0xff]  }
 0x1de   : > { %v3537_v27 = vpop.f32.mrb[12].mxu0  ;;  %3556 = vmatpush3.bf16.msra.mxu1 %v3972_v6  ;;  %v3521_v28 = vpop.f32.mrb[4].mxu1  ;;  %v3982_v6 = vld [vmem:[%s4649_s4 + $0x70] sm:$0xff]  }
 0x1df   : > { %v726_v29 = vpop.f32.mrb[13].mxu0  ;;  %3557 = vmatprep.subr.bf16.mxu1 %v3973_v26  ;;  %v608_v31 = vpop.f32.mrb[5].mxu1 }
 0x1e0   : > { %v3538_v32 = vpop.f32.mrb[14].mxu0  ;;  %v3522_v33 = vpop.f32.mrb[6].mxu1 }
 0x1e1   : > { %v744_v34 = vpack.c.bf16 %v3538_v32, %v3537_v27  ;;  %v729_v35 = vpop.f32.mrb[15].mxu0  ;;  %v626_v36 = vpack.c.bf16 %v3522_v33, %v3521_v28  ;;  %v611_v37 = vpop.f32.mrb[7].mxu1  ;;  %v3987_v28 = vld [vmem:[%s4649_s4 + $0x98] sm:$0xff]  }
 0x1e2   : > { %v743_v38 = vpack.c.bf16 %v729_v35, %v726_v29  ;;  %3558 = vmatpush3.bf16.msra.mxu1 %v3973_v26  ;;  %v625_v39 = vpack.c.bf16 %v611_v37, %v608_v31 }
 0x1e3   : > { %3559 = vmatprep.subr.bf16.mxu1 %v3974_v30 }
 0x1e4   : > { %3551 = vmatprep.mubr.msk.bf16.mxu1 %vm428_vm0, %v743_v38  ;;  %v3990_v38 = vld [vmem:[%s4649_s4 + $0xb0] sm:$0xff]  }
 0x1e5   : > { %3552 = vmatmul.mubr.msk.bf16.gmra.mrb[12].mxu1 %vm428_vm0, %v744_v34 }
 0x1e6   : > { %3560 = vmatpush3.bf16.msra.mxu1 %v3974_v30  ;;  %3563 = vmatprep.mubr.msk.bf16.mxu1 %vm428_vm0, %v623_v25  ;;  %v3581_v43 = vpop.f32.mrb[16].mxu0  ;;  %v3988_v30 = vld [vmem:[%s4649_s4 + $0xa0] sm:$0xff]  }
 0x1e7   : > { %3561 = vmatprep.subr.bf16.mxu1 %v3975_v40  ;;  %v1031_v46 = vpop.f32.mrb[17].mxu0 }
 0x1e8   : > { %v3582_v47 = vpop.f32.mrb[18].mxu0 }
 0x1e9   : > { %v1063_v49 = vpack.c.bf16 %v3582_v47, %v3581_v43  ;;  %v1034_v50 = vpop.f32.mrb[19].mxu0 }
 0x1ea   : > { %3562 = vmatpush3.bf16.msra.mxu1 %v3975_v40  ;;  %v1062_v51 = vpack.c.bf16 %v1034_v50, %v1031_v46  ;;  %v3992_v46 = vld [vmem:[%s4649_s4 + $0xc0] sm:$0xff]  }
 0x1eb   : > { %3587 = vmatprep.subr.bf16.mxu1 %v3976_v45 }
 0x1ed   : > { %3564 = vmatmul.mubr.msk.bf16.vlgmr.msra.gmra.mrb[8].mxu1 %vm428_vm0, %v624_v22  ;;  %v3986_v22 = vld [vmem:[%s4649_s4 + $0x90] sm:$0xff]  }
 0x1ee   : > { %3588 = vmatpush3.bf16.msra.mxu1 %v3976_v45  ;;  %3567 = vmatprep.mubr.msk.bf16.mxu1 %vm428_vm0, %v625_v39  ;;  %v3585_v53 = vpop.f32.mrb[20].mxu0 }
 0x1ef   : > { %3589 = vmatprep.subr.bf16.mxu1 %v3977_v52  ;;  %v1047_v55 = vpop.f32.mrb[21].mxu0 }
 0x1f0   : > { %v3586_v56 = vpop.f32.mrb[22].mxu0 }
 0x1f1   : > { %v1065_v57 = vpack.c.bf16 %v3586_v56, %v3585_v53  ;;  %v1050_v58 = vpop.f32.mrb[23].mxu0 }
 0x1f2   : > { %3590 = vmatpush3.bf16.msra.mxu1 %v3977_v52  ;;  %v1064_v59 = vpack.c.bf16 %v1050_v58, %v1047_v55  ;;  %v3993_v52 = vld [vmem:[%s4649_s4 + $0xc8] sm:$0xff]  }
 0x1f3   : > { %3591 = vmatprep.subr.bf16.mxu1 %v3978_v54 }
 0x1f5   : > { %3568 = vmatmul.mubr.msk.bf16.gmra.mrb[12].mxu1 %vm428_vm0, %v626_v36  ;;  %v3989_v36 = vld [vmem:[%s4649_s4 + $0xa8] sm:$0xff]  }
 0x1f6   : > { %3592 = vmatpush3.bf16.msra.mxu1 %v3978_v54  ;;  %3595 = vmatprep.mubr.msk.bf16.mxu1 %vm428_vm0, %v1062_v51  ;;  %v3613_v61 = vpop.f32.mrb[24].mxu0  ;;  %v3994_v54 = vld [vmem:[%s4649_s4 + $0xd0] sm:$0xff]  }
 0x1f7   : > { %3593 = vmatprep.subr.bf16.mxu1 %v3979_v60  ;;  %v1259_v63 = vpop.f32.mrb[25].mxu0 }
 0x1f8   : > { %v3614_v0 = vpop.f32.mrb[26].mxu0 }
 0x1f9   : > { %v1291_v1 = vpack.c.bf16 %v3614_v0, %v3613_v61  ;;  %v1262_v2 = vpop.f32.mrb[27].mxu0 }
 0x1fa   : > { %3594 = vmatpush3.bf16.msra.mxu1 %v3979_v60  ;;  %v1290_v3 = vpack.c.bf16 %v1262_v2, %v1259_v63  ;;  %v3995_v60 = vld [vmem:[%s4649_s4 + $0xd8] sm:$0xff]  }
 0x1fb   : > { %3619 = vmatprep.subr.bf16.mxu1 %v3980_v62 }
 0x1fd   : > { %3596 = vmatmul.mubr.msk.bf16.vlgmr.msra.gmra.mrb[8].mxu1 %vm428_vm0, %v1063_v49 }
 0x1fe   : > { %3620 = vmatpush3.bf16.msra.mxu1 %v3980_v62  ;;  %3599 = vmatprep.mubr.msk.bf16.mxu1 %vm428_vm0, %v1064_v59  ;;  %v3617_v5 = vpop.f32.mrb[28].mxu0  ;;  %v3996_v62 = vld [vmem:[%s4649_s4 + $0xe0] sm:$0xff]  }
 0x1ff   : > { %3621 = vmatprep.subr.bf16.mxu1 %v3981_v4  ;;  %v1275_v7 = vpop.f32.mrb[29].mxu0 }
 0x200   : > { %v3618_v8 = vpop.f32.mrb[30].mxu0 }
 0x201   : > { %v1293_v9 = vpack.c.bf16 %v3618_v8, %v3617_v5  ;;  %v1278_v10 = vpop.f32.mrb[31].mxu0 }
 0x202   : > { %3622 = vmatpush3.bf16.msra.mxu1 %v3981_v4  ;;  %v1292_v11 = vpack.c.bf16 %v1278_v10, %v1275_v7  ;;  %v3997_v4 = vld [vmem:[%s4649_s4 + $0xe8] sm:$0xff]  }
 0x203   : > { %3623 = vmatprep.subr.bf16.mxu1 %v3982_v6 }
 0x205   : > { %3600 = vmatmul.mubr.msk.bf16.gmra.mrb[12].mxu1 %vm428_vm0, %v1065_v57 }
 0x206   : > { %3624 = vmatpush3.bf16.msra.mxu1 %v3982_v6  ;;  %3627 = vmatprep.mubr.msk.bf16.mxu1 %vm428_vm0, %v1290_v3  ;;  %v3645_v13 = vpop.f32.mrb[32].mxu0  ;;  %v3998_v6 = vld [vmem:[%s4649_s4 + $0xf0] sm:$0xff]  }
 0x207   : > { %3625 = vmatprep.subr.bf16.mxu1 %v3983_v12  ;;  %v1487_v15 = vpop.f32.mrb[33].mxu0 }
 0x208   : > { %v3646_v16 = vpop.f32.mrb[34].mxu0 }
 0x209   : > { %v1519_v17 = vpack.c.bf16 %v3646_v16, %v3645_v13  ;;  %v1490_v18 = vpop.f32.mrb[35].mxu0 }
 0x20a   : > { %3626 = vmatpush3.bf16.msra.mxu1 %v3983_v12  ;;  %v1518_v19 = vpack.c.bf16 %v1490_v18, %v1487_v15  ;;  %v3999_v12 = vld [vmem:[%s4649_s4 + $0xf8] sm:$0xff]  }
 0x20b   : > { %3651 = vmatprep.subr.bf16.mxu1 %v3984_v14 }
 0x20d   : > { %3628 = vmatmul.mubr.msk.bf16.vlgmr.msra.gmra.mrb[8].mxu1 %vm428_vm0, %v1291_v1 }
 0x20e   : > { %3652 = vmatpush3.bf16.msra.mxu1 %v3984_v14  ;;  %3631 = vmatprep.mubr.msk.bf16.mxu1 %vm428_vm0, %v1292_v11  ;;  %v3649_v21 = vpop.f32.mrb[36].mxu0  ;;  %v4000_v14 = vld [vmem:[%s4649_s4 + $0x100] sm:$0xff]  }
 0x20f   : > { %3653 = vmatprep.subr.bf16.mxu1 %v3985_v20  ;;  %v1503_v23 = vpop.f32.mrb[37].mxu0 }
 0x210   : > { %v3650_v24 = vpop.f32.mrb[38].mxu0 }
 0x211   : > { %v1521_v25 = vpack.c.bf16 %v3650_v24, %v3649_v21  ;;  %v1506_v26 = vpop.f32.mrb[39].mxu0 }
 0x212   : > { %3654 = vmatpush3.bf16.msra.mxu1 %v3985_v20  ;;  %v1520_v27 = vpack.c.bf16 %v1506_v26, %v1503_v23  ;;  %v4001_v20 = vld [vmem:[%s4649_s4 + $0x108] sm:$0xff]  }
 0x213   : > { %3655 = vmatprep.subr.bf16.mxu1 %v3986_v22 }
 0x215   : > { %3632 = vmatmul.mubr.msk.bf16.gmra.mrb[12].mxu1 %vm428_vm0, %v1293_v9 }
 0x216   : > { %3656 = vmatpush3.bf16.msra.mxu1 %v3986_v22  ;;  %3659 = vmatprep.mubr.msk.bf16.mxu1 %vm428_vm0, %v1518_v19  ;;  %v3677_v29 = vpop.f32.mrb[40].mxu0  ;;  %v4002_v22 = vld [vmem:[%s4649_s4 + $0x110] sm:$0xff]  }
 0x217   : > { %3657 = vmatprep.subr.bf16.mxu1 %v3987_v28  ;;  %v1715_v31 = vpop.f32.mrb[41].mxu0 }
 0x218   : > { %v3678_v32 = vpop.f32.mrb[42].mxu0 }
 0x219   : > { %v1747_v33 = vpack.c.bf16 %v3678_v32, %v3677_v29  ;;  %v1718_v34 = vpop.f32.mrb[43].mxu0  ;;  %v4012_v29 = vld [vmem:[%s4651_s6 + $0x24] ss:$8 sps:$4 sm:$0xff]  }
 0x21a   : > { %3658 = vmatpush3.bf16.msra.mxu1 %v3987_v28  ;;  %v1746_v35 = vpack.c.bf16 %v1718_v34, %v1715_v31  ;;  %v4003_v28 = vld [vmem:[%s4649_s4 + $0x118] sm:$0xff]   ;;  %2655 = vmatprep.subr.bf16.mxu0 %v4012_v29  ;;  %v4018_v32 = vld [vmem:[%s4653_s8 + $0x4] ss:$8 sps:$4 sm:$0xff]   ;;  %v4016_v34 = vld [vmem:[%s4653_s8] ss:$8 sps:$4 sm:$0xff]  }
 0x21b   : > { %3683 = vmatprep.subr.bf16.mxu1 %v3988_v30  ;;  %v4015_v31 = vld [vmem:[%s4651_s6 + $0x34] ss:$8 sps:$4 sm:$0xff]  }
 0x21d   : > { %3660 = vmatmul.mubr.msk.bf16.vlgmr.msra.gmra.mrb[8].mxu1 %vm428_vm0, %v1519_v17 }
 0x21e   : > { %3684 = vmatpush3.bf16.msra.mxu1 %v3988_v30  ;;  %3663 = vmatprep.mubr.msk.bf16.mxu1 %vm428_vm0, %v1520_v27  ;;  %v3681_v37 = vpop.f32.mrb[44].mxu0  ;;  %v4010_v30 = vld [vmem:[%s4651_s6 + $0x20] ss:$8 sps:$4 sm:$0xff]  }
 0x21f   : > { %3685 = vmatprep.subr.bf16.mxu1 %v3989_v36  ;;  %v1731_v39 = vpop.f32.mrb[45].mxu0  ;;  %2656 = vmatpush1.bf16.msra.mxu0 %v4010_v30 }
 0x220   : > { %v3682_v40 = vpop.f32.mrb[46].mxu0  ;;  %2657 = vmatprep.subr.bf16.mxu0 %v4015_v31 }
 0x221   : > { %v1749_v41 = vpack.c.bf16 %v3682_v40, %v3681_v37  ;;  %v1734_v42 = vpop.f32.mrb[47].mxu0  ;;  %v4019_v37 = vld [vmem:[%s4653_s8 + $0x10] ss:$8 sps:$4 sm:$0xff]   ;;  %v4027_v40 = vld [vmem:[%s4653_s8 + $0x34] ss:$8 sps:$4 sm:$0xff]  }
 0x222   : > { %3686 = vmatpush3.bf16.msra.mxu1 %v3989_v36  ;;  %v1748_v43 = vpack.c.bf16 %v1734_v42, %v1731_v39  ;;  %v4040_v36 = vmov 0   ;;  %v4022_v39 = vld [vmem:[%s4653_s8 + $0x20] ss:$8 sps:$4 sm:$0xff]  }
 0x223   : > { %3687 = vmatprep.subr.bf16.mxu1 %v3990_v38  ;;  %2683 = vmatprep.mubr.bf16.mxu0 %v4040_v36  ;;  %v4028_v42 = vld [vmem:[%s4119_s24 + $0x8] sm:$0xff]  }
 0x225   : > { %3664 = vmatmul.mubr.msk.bf16.gmra.mrb[12].mxu1 %vm428_vm0, %v1521_v25 }
 0x226   : > { %3688 = vmatpush3.bf16.msra.mxu1 %v3990_v38  ;;  %3691 = vmatprep.mubr.msk.bf16.mxu1 %vm428_vm0, %v1746_v35  ;;  %v3709_v45 = vpop.f32.mrb[48].mxu0  ;;  %v4021_v35 = vld [vmem:[%s4653_s8 + $0x14] ss:$8 sps:$4 sm:$0xff]   ;;  %v4024_v38 = vld [vmem:[%s4653_s8 + $0x24] ss:$8 sps:$4 sm:$0xff]  }
 0x227   : > { %3689 = vmatprep.subr.bf16.mxu1 %v3991_v44  ;;  %v1943_v47 = vpop.f32.mrb[49].mxu0 }
 0x228   : > { %v3710_v48 = vpop.f32.mrb[50].mxu0 }
 0x229   : > { %v1975_v49 = vpack.c.bf16 %v3710_v48, %v3709_v45  ;;  %v1946_v50 = vpop.f32.mrb[51].mxu0  ;;  %v3294_v45 = vld [vmem:[%s4650_s5] ss:$0 sm:$0xff] }
 0x22a   : > { %3690 = vmatpush3.bf16.msra.mxu1 %v3991_v44  ;;  %v1974_v51 = vpack.c.bf16 %v1946_v50, %v1943_v47  ;;  %v4030_v44 = vld [vmem:[%s4119_s24 + $0x18] sm:$0xff]  }
 0x22b   : > { %3715 = vmatprep.subr.bf16.mxu1 %v3992_v46 }
 0x22d   : > { %3692 = vmatmul.mubr.msk.bf16.vlgmr.msra.gmra.mrb[8].mxu1 %vm428_vm0, %v1747_v33  ;;  %v4013_v33 = vld [vmem:[%s4651_s6 + $0x30] ss:$8 sps:$4 sm:$0xff]  }
 0x22e   : > { %3716 = vmatpush3.bf16.msra.mxu1 %v3992_v46  ;;  %3695 = vmatprep.mubr.msk.bf16.mxu1 %vm428_vm0, %v1748_v43  ;;  %v3713_v53 = vpop.f32.mrb[52].mxu0  ;;  %v4029_v43 = vld [vmem:[%s4119_s24 + $0x10] sm:$0xff]  }
 0x22f   : > { %3717 = vmatprep.subr.bf16.mxu1 %v3993_v52  ;;  %v1959_v55 = vpop.f32.mrb[53].mxu0  ;;  %2658 = vmatpush1.bf16.msra.mxu0 %v4013_v33 }
 0x230   : > { %v3714_v56 = vpop.f32.mrb[54].mxu0  ;;  %2784 = vmatprep.subr.bf16.mxu0 %v4018_v32 }
 0x231   : > { %v1977_v57 = vpack.c.bf16 %v3714_v56, %v3713_v53  ;;  %v1962_v58 = vpop.f32.mrb[55].mxu0 }
 0x232   : > { %3718 = vmatpush3.bf16.msra.mxu1 %v3993_v52  ;;  %v1976_v59 = vpack.c.bf16 %v1962_v58, %v1959_v55 }
 0x233   : > { %3719 = vmatprep.subr.bf16.mxu1 %v3994_v54 }
 0x235   : > { %3696 = vmatmul.mubr.msk.bf16.gmra.mrb[12].mxu1 %vm428_vm0, %v1749_v41  ;;  %v4025_v41 = vld [vmem:[%s4653_s8 + $0x30] ss:$8 sps:$4 sm:$0xff]  }
 0x236   : > { %3720 = vmatpush3.bf16.msra.mxu1 %v3994_v54  ;;  %3723 = vmatprep.mubr.msk.bf16.mxu1 %vm428_vm0, %v1974_v51  ;;  %v3741_v61 = vpop.f32.mrb[56].mxu0 }
 0x237   : > { %3721 = vmatprep.subr.bf16.mxu1 %v3995_v60  ;;  %v2171_v63 = vpop.f32.mrb[57].mxu0 }
 0x238   : > { %v3742_v0 = vpop.f32.mrb[58].mxu0 }
 0x239   : > { %v2203_v1 = vpack.c.bf16 %v3742_v0, %v3741_v61  ;;  %v2174_v2 = vpop.f32.mrb[59].mxu0 }
 0x23a   : > { %3722 = vmatpush3.bf16.msra.mxu1 %v3995_v60  ;;  %v2202_v3 = vpack.c.bf16 %v2174_v2, %v2171_v63 }
 0x23b   : > { %3747 = vmatprep.subr.bf16.mxu1 %v3996_v62 }
 0x23d   : > { %3724 = vmatmul.mubr.msk.bf16.vlgmr.msra.gmra.mrb[8].mxu1 %vm428_vm0, %v1975_v49 }
 0x23e   : > { %3748 = vmatpush3.bf16.msra.mxu1 %v3996_v62  ;;  %3727 = vmatprep.mubr.msk.bf16.mxu1 %vm428_vm0, %v1976_v59  ;;  %v3745_v5 = vpop.f32.mrb[60].mxu0 }
 0x23f   : > { %3749 = vmatprep.subr.bf16.mxu1 %v3997_v4  ;;  %v2187_v7 = vpop.f32.mrb[61].mxu0 }
 0x240   : > { %v3746_v8 = vpop.f32.mrb[62].mxu0 }
 0x241   : > { %v2205_v9 = vpack.c.bf16 %v3746_v8, %v3745_v5  ;;  %v2190_v10 = vpop.f32.mrb[63].mxu0 }
 0x242   : > { %3750 = vmatpush3.bf16.msra.mxu1 %v3997_v4  ;;  %v2204_v11 = vpack.c.bf16 %v2190_v10, %v2187_v7  ;;  %v4031_v10 = vld [vmem:[%s4119_s24] sm:$0xff]  }
 0x243   : > { %3751 = vmatprep.subr.bf16.mxu1 %v3998_v6 }
 0x245   : > { %3728 = vmatmul.mubr.msk.bf16.gmra.mrb[12].mxu1 %vm428_vm0, %v1977_v57 }
 0x246   : > { %3752 = vmatpush3.bf16.msra.mxu1 %v3998_v6  ;;  %3755 = vmatprep.mubr.msk.bf16.mxu1 %vm428_vm0, %v2202_v3  ;;  %v3773_v13 = vpop.f32.mrb[64].mxu0 }
 0x247   : > { %3753 = vmatprep.subr.bf16.mxu1 %v3999_v12  ;;  %v2399_v15 = vpop.f32.mrb[65].mxu0 }
 0x248   : > { %v3774_v16 = vpop.f32.mrb[66].mxu0 }
 0x249   : > { %v2431_v17 = vpack.c.bf16 %v3774_v16, %v3773_v13  ;;  %v2402_v18 = vpop.f32.mrb[67].mxu0 }
 0x24a   : > { %3754 = vmatpush3.bf16.msra.mxu1 %v3999_v12  ;;  %v2430_v19 = vpack.c.bf16 %v2402_v18, %v2399_v15 }
 0x24b   : > { %3779 = vmatprep.subr.bf16.mxu1 %v4000_v14 }
 0x24d   : > { %3756 = vmatmul.mubr.msk.bf16.vlgmr.msra.gmra.mrb[8].mxu1 %vm428_vm0, %v2203_v1 }
 0x24e   : > { %3780 = vmatpush3.bf16.msra.mxu1 %v4000_v14  ;;  %3759 = vmatprep.mubr.msk.bf16.mxu1 %vm428_vm0, %v2204_v11  ;;  %v3777_v21 = vpop.f32.mrb[68].mxu0 }
 0x24f   : > { %3781 = vmatprep.subr.bf16.mxu1 %v4001_v20  ;;  %v2415_v23 = vpop.f32.mrb[69].mxu0 }
 0x250   : > { %v3778_v24 = vpop.f32.mrb[70].mxu0 }
 0x251   : > { %v2433_v25 = vpack.c.bf16 %v3778_v24, %v3777_v21  ;;  %v2418_v26 = vpop.f32.mrb[71].mxu0 }
 0x252   : > { %3782 = vmatpush3.bf16.msra.mxu1 %v4001_v20  ;;  %v2432_v27 = vpack.c.bf16 %v2418_v26, %v2415_v23  ;;  %v2589_v23 = vlaneseq  ;;  %v2587_v26 = vld [vmem:[%s4652_s7] sm:$0x3] }
 0x253   : > { %3783 = vmatprep.subr.bf16.mxu1 %v4002_v22 }
 0x254   : > { %v2590_v24 = vshrl.u32 %v2589_v23, 7 }
 0x255   : > { %3760 = vmatmul.mubr.msk.bf16.gmra.mrb[12].mxu1 %vm428_vm0, %v2205_v9 }
 0x256   : > { %3784 = vmatpush3.bf16.msra.mxu1 %v4002_v22  ;;  %3787 = vmatprep.mubr.msk.bf16.mxu1 %vm428_vm0, %v2430_v19 }
 0x257   : > { %3785 = vmatprep.subr.bf16.mxu1 %v4003_v28 }
 0x25a   : > { %3786 = vmatpush3.bf16.msra.mxu1 %v4003_v28  ;;  %v2732_v28 = vld [vmem:[%s4654_s9] sm:$0x3] }
 0x25b   : > { %3795 = vmatprep.subr.bf16.mxu1 %v4018_v32 }
 0x25d   : > { %3788 = vmatmul.mubr.msk.bf16.vlgmr.msra.gmra.mrb[8].mxu1 %vm428_vm0, %v2431_v17 }
 0x25e   : > { %3791 = vmatprep.mubr.msk.bf16.mxu1 %vm428_vm0, %v2432_v27  ;;  %3799 = vmatpush1.bf16.msra.mxu1 %v4016_v34  ;;  %v2595_v27 = vsub.s32 1, %v2590_v24 }
 0x25f   : > { %3796 = vmatprep.subr.bf16.mxu1 %v4021_v35 }
 0x260   : > { %v4590_v30 = vrot.slane %v2587_v26, %v2595_v27  ;;  %v4594_v33 = vrot.slane %v2732_v28, %v2595_v27 }
 0x262   : > { %3800 = vmatpush1.bf16.msra.mxu1 %v4019_v37 }
 0x263   : > { %3797 = vmatprep.subr.bf16.mxu1 %v4024_v38 }
 0x265   : > { %3792 = vmatmul.mubr.msk.bf16.gmra.mrb[12].mxu1 %vm428_vm0, %v2433_v25  ;;  %v2591_v25 = vsub.s32 0, %v2590_v24 }
 0x266   : > { %2826 = vmatprep.mubr.bf16.mxu1 %v4040_v36  ;;  %3801 = vmatpush1.bf16.msra.mxu1 %v4022_v39 }
 0x267   : > { %3798 = vmatprep.subr.bf16.mxu1 %v4027_v40  ;;  %v4588_v29 = vrot.slane %v2587_v26, %v2591_v25  ;;  %v4592_v31 = vrot.slane %v2732_v28, %v2591_v25 }
 0x26a   : > { %3802 = vmatpush1.bf16.msra.mxu1 %v4025_v41 }
 0x26d   : > { %3316 = vmatmul.mubr.msk.bf16.vlgmr.msra.gmra.mrb[16].mxu1 %vm428_vm0, %v4028_v42 }
 0x26e   : > { %2836 = vmatprep.mubr.bf16.mxu1 %v4040_v36 }
 0x275   : > { %3317 = vmatmul.mubr.msk.bf16.gmra.mrb[20].mxu1 %vm428_vm0, %v4029_v43 }
 0x276   : > { %2846 = vmatprep.mubr.bf16.mxu1 %v4040_v36 }
 0x27d   : > { %3318 = vmatmul.mubr.msk.bf16.gmra.mrb[24].mxu1 %vm428_vm0, %v4030_v44 }
 0x330   : > { %v3789_v46 = vpop.f32.mrb[8].mxu1 }
 0x331   : > { %v2561_v47 = vadd.f32 %v3789_v46, %v3294_v45  ;;  %v2513_v48 = vpop.f32.mrb[9].mxu1 }
 0x332   : > { %v2559_v49 = vadd.f32 %v3294_v45, %v2513_v48  ;;  %v3790_v50 = vpop.f32.mrb[10].mxu1 }
 0x333   : > { %v2562_v51 = vadd.f32 %v3790_v50, %v3294_v45  ;;  %v2516_v52 = vpop.f32.mrb[11].mxu1  ;;  %v2569_v54 = vmax.f32 %v2561_v47, 0.0 }
 0x334   : > { %v2560_v53 = vadd.f32 %v3294_v45, %v2516_v52  ;;  %v2567_v56 = vmax.f32 %v2559_v49, 0.0 }
 0x335   : > { %v2570_v55 = vmax.f32 %v2562_v51, 0.0 }
 0x336   : > { %v2568_v57 = vmax.f32 %v2560_v53, 0.0 }
 0x337   : > { %v2576_v58 = vpack.c.bf16 %v2570_v55, %v2569_v54 }
 0x338   : > { %v2575_v59 = vpack.c.bf16 %v2568_v57, %v2567_v56  ;;  %v3793_v60 = vpop.f32.mrb[12].mxu1 }
 0x339   : > { %v2565_v61 = vadd.f32 %v3793_v60, %v3294_v45  ;;  %v2529_v62 = vpop.f32.mrb[13].mxu1 }
 0x33a   : > { %v2563_v63 = vadd.f32 %v3294_v45, %v2529_v62  ;;  %v3794_v0 = vpop.f32.mrb[14].mxu1  ;;  %3303 = vmatmul.mubr.msk.bf16.vlgmr.msra.gmra.mrb[72].mxu0 %vm428_vm0, %v2575_v59 }
 0x33b   : > { %v2566_v1 = vadd.f32 %v3794_v0, %v3294_v45  ;;  %v2532_v2 = vpop.f32.mrb[15].mxu1  ;;  %2785 = vmatpush1.bf16.msra.mxu0 %v4016_v34  ;;  %2693 = vmatprep.mubr.bf16.mxu0 %v4040_v36  ;;  %v2573_v4 = vmax.f32 %v2565_v61, 0.0 }
 0x33c   : > { %v2564_v3 = vadd.f32 %v3294_v45, %v2532_v2  ;;  %2786 = vmatprep.subr.bf16.mxu0 %v4021_v35  ;;  %v2571_v6 = vmax.f32 %v2563_v63, 0.0 }
 0x33d   : > { %v2574_v5 = vmax.f32 %v2566_v1, 0.0 }
 0x33e   : > { %v2572_v7 = vmax.f32 %v2564_v3, 0.0 }
 0x33f   : > { %v2578_v8 = vpack.c.bf16 %v2574_v5, %v2573_v4  ;;  %2787 = vmatpush1.bf16.msra.mxu0 %v4019_v37 }
 0x340   : > { %v2577_v9 = vpack.c.bf16 %v2572_v7, %v2571_v6  ;;  %2788 = vmatprep.subr.bf16.mxu0 %v4024_v38  ;;  %v2828_v11 = vpop.f32.mrb[16].mxu1 }
 0x341   : > { %v2830_v12 = vpop.f32.mrb[17].mxu1 }
 0x342   : > { %3304 = vmatmul.mubr.msk.bf16.gmra.mrb[76].mxu0 %vm428_vm0, %v2576_v58  ;;  %v2832_v13 = vpop.f32.mrb[18].mxu1 }
 0x343   : > { %2703 = vmatprep.mubr.bf16.mxu0 %v4040_v36  ;;  %2789 = vmatpush1.bf16.msra.mxu0 %v4022_v39  ;;  %v2834_v14 = vpop.f32.mrb[19].mxu1 }
 0x344   : > { %2790 = vmatprep.subr.bf16.mxu0 %v4027_v40 }
 0x347   : > { %2791 = vmatpush1.bf16.msra.mxu0 %v4025_v41 }
 0x348   : > { %v2838_v15 = vpop.f32.mrb[20].mxu1 }
 0x349   : > { %v2840_v16 = vpop.f32.mrb[21].mxu1 }
 0x34a   : > { %3305 = vmatmul.mubr.msk.bf16.gmra.mrb[80].mxu0 %vm428_vm0, %v2577_v9  ;;  %v2842_v17 = vpop.f32.mrb[22].mxu1 }
 0x34b   : > { %2713 = vmatprep.mubr.bf16.mxu0 %v4040_v36  ;;  %v2844_v18 = vpop.f32.mrb[23].mxu1 }
 0x350   : > { %v4574_v19 = vpop.f32.mrb[24].mxu1 }
 0x351   : > { %v4576_v20 = vpop.f32.mrb[25].mxu1 }
 0x352   : > { %3306 = vmatmul.mubr.msk.bf16.gmra.mrb[84].mxu0 %vm428_vm0, %v2578_v8  ;;  %v4578_v21 = vpop.f32.mrb[26].mxu1 }
 0x353   : > { %2816 = vmatprep.mubr.bf16.mxu0 %v4040_v36  ;;  %v4580_v22 = vpop.f32.mrb[27].mxu1 }
 0x35a   : > { %3315 = vmatmul.mubr.msk.bf16.vlgmr.msra.gmra.mrb[72].mxu0 %vm428_vm0, %v4031_v10 }
 0x415   : > { %v2695_v32 = vpop.f32.mrb[76].mxu0 }
 0x416   : > { %v2696_v34 = vadd.f32 %v2695_v32, %v4588_v29  ;;  %v2697_v35 = vpop.f32.mrb[77].mxu0  ;;  %v3803_v32 = vadd.f32 %v4592_v31, %v4588_v29 }
 0x417   : > { %v2698_v36 = vadd.f32 %v2697_v35, %v4590_v30  ;;  %v2699_v37 = vpop.f32.mrb[78].mxu0 }
 0x418   : > { %v2700_v38 = vadd.f32 %v2699_v37, %v4588_v29  ;;  %v2701_v39 = vpop.f32.mrb[79].mxu0  ;;  %v3812_v40 = vadd.f32 %v4592_v31, %v2696_v34 }
 0x419   : > { %v2702_v41 = vadd.f32 %v2701_v39, %v4590_v30  ;;  %v3815_v42 = vadd.f32 %v4594_v33, %v2698_v36  ;;  %v3805_v36 = vadd.f32 %v4594_v33, %v4590_v30 }
 0x41a   : > { %v3813_v43 = vadd.f32 %v3812_v40, %v2828_v11  ;;  %v3818_v44 = vadd.f32 %v4592_v31, %v2700_v38 }
 0x41b   : > { %v3816_v45 = vadd.f32 %v3815_v42, %v2830_v12  ;;  %v3821_v46 = vadd.f32 %v4594_v33, %v2702_v41 }
 0x41c   : > { %v2877_v47 = vmax.f32 %v3813_v43, 0.0  ;;  %v3819_v48 = vadd.f32 %v3818_v44, %v2832_v13 }
 0x41d   : > { %v2878_v49 = vmax.f32 %v3816_v45, 0.0  ;;  %v3822_v50 = vadd.f32 %v3821_v46, %v2834_v14  ;;  %v2705_v51 = vpop.f32.mrb[80].mxu0 }
 0x41e   : > { %v2879_v52 = vmax.f32 %v3819_v48, 0.0  ;;  %v2706_v53 = vadd.f32 %v2705_v51, %v4588_v29  ;;  %v2707_v54 = vpop.f32.mrb[81].mxu0 }
 0x41f   : > { %v3333_v55 = vpack.c.bf16 %v2878_v49, %v2877_v47  ;;  %v2880_v56 = vmax.f32 %v3822_v50, 0.0  ;;  %v2708_v57 = vadd.f32 %v2707_v54, %v4590_v30  ;;  %v2709_v58 = vpop.f32.mrb[82].mxu0 }
 0x420   : > { %v2710_v59 = vadd.f32 %v2709_v58, %v4588_v29  ;;  %v2711_v60 = vpop.f32.mrb[83].mxu0  ;;  %v3824_v61 = vadd.f32 %v4592_v31, %v2706_v53 }
 0x421   : > { %2939 = vst [vmem:[%s4608_s26 + $0x10] sm:$0xff] %v3333_v55  ;;  %v3334_v62 = vpack.c.bf16 %v2880_v56, %v2879_v52  ;;  %v2712_v63 = vadd.f32 %v2711_v60, %v4590_v30  ;;  %v3827_v0 = vadd.f32 %v4594_v33, %v2708_v57 }
 0x422   : > { %v3825_v1 = vadd.f32 %v3824_v61, %v2838_v15  ;;  %v3830_v2 = vadd.f32 %v4592_v31, %v2710_v59 }
 0x423   : > { %2940 = vst [vmem:[%s4608_s26 + $0x18] sm:$0xff] %v3334_v62  ;;  %v3828_v3 = vadd.f32 %v3827_v0, %v2840_v16  ;;  %v3833_v4 = vadd.f32 %v4594_v33, %v2712_v63 }
 0x424   : > { %v2881_v5 = vmax.f32 %v3825_v1, 0.0  ;;  %v3831_v6 = vadd.f32 %v3830_v2, %v2842_v17 }
 0x425   : > { %v2882_v7 = vmax.f32 %v3828_v3, 0.0  ;;  %v3834_v8 = vadd.f32 %v3833_v4, %v2844_v18  ;;  %v2715_v9 = vpop.f32.mrb[84].mxu0 }
 0x426   : > { %v2883_v10 = vmax.f32 %v3831_v6, 0.0  ;;  %v2716_v11 = vadd.f32 %v2715_v9, %v4588_v29  ;;  %v2717_v12 = vpop.f32.mrb[85].mxu0 }
 0x427   : > { %v3335_v13 = vpack.c.bf16 %v2882_v7, %v2881_v5  ;;  %v2884_v14 = vmax.f32 %v3834_v8, 0.0  ;;  %v2718_v15 = vadd.f32 %v2717_v12, %v4590_v30  ;;  %v2719_v23 = vpop.f32.mrb[86].mxu0 }
 0x428   : > { %v2720_v16 = vadd.f32 %v2719_v23, %v4588_v29  ;;  %v2721_v24 = vpop.f32.mrb[87].mxu0  ;;  %v3836_v25 = vadd.f32 %v4592_v31, %v2716_v11 }
 0x429   : > { %2941 = vst [vmem:[%s4608_s26 + $0x20] sm:$0xff] %v3335_v13  ;;  %v3336_v17 = vpack.c.bf16 %v2884_v14, %v2883_v10  ;;  %v2722_v18 = vadd.f32 %v2721_v24, %v4590_v30  ;;  %v3839_v26 = vadd.f32 %v4594_v33, %v2718_v15 }
 0x42a   : > { %v3837_v27 = vadd.f32 %v3836_v25, %v4574_v19  ;;  %v3842_v28 = vadd.f32 %v4592_v31, %v2720_v16 }
 0x42b   : > { %2942 = vst [vmem:[%s4608_s26 + $0x28] sm:$0xff] %v3336_v17  ;;  %v3840_v34 = vadd.f32 %v3839_v26, %v4576_v20  ;;  %v3845_v35 = vadd.f32 %v4594_v33, %v2722_v18 }
 0x42c   : > { %v2885_v37 = vmax.f32 %v3837_v27, 0.0  ;;  %v3843_v38 = vadd.f32 %v3842_v28, %v4578_v21 }
 0x42d   : > { %v2886_v39 = vmax.f32 %v3840_v34, 0.0  ;;  %v3846_v19 = vadd.f32 %v3845_v35, %v4580_v22  ;;  %v2818_v40 = vpop.f32.mrb[72].mxu0 }
 0x42e   : > { %v2887_v41 = vmax.f32 %v3843_v38, 0.0  ;;  %v3804_v42 = vadd.f32 %v3803_v32, %v2818_v40  ;;  %v2820_v29 = vpop.f32.mrb[73].mxu0 }
 0x42f   : > { %v3337_v31 = vpack.c.bf16 %v2886_v39, %v2885_v37  ;;  %v2888_v20 = vmax.f32 %v3846_v19, 0.0  ;;  %v3806_v43 = vadd.f32 %v3805_v36, %v2820_v29  ;;  %v2822_v44 = vpop.f32.mrb[74].mxu0 }
 0x430   : > { %v2873_v45 = vmax.f32 %v3804_v42, 0.0  ;;  %v3808_v30 = vadd.f32 %v3803_v32, %v2822_v44  ;;  %v2824_v33 = vpop.f32.mrb[75].mxu0 }
 0x431   : > { %2943 = vst [vmem:[%s4608_s26 + $0x30] sm:$0xff] %v3337_v31  ;;  %v3338_v46 = vpack.c.bf16 %v2888_v20, %v2887_v41  ;;  %v2874_v21 = vmax.f32 %v3806_v43, 0.0  ;;  %v3810_v47 = vadd.f32 %v3805_v36, %v2824_v33 }
 0x432   : > { %v2875_v48 = vmax.f32 %v3808_v30, 0.0 }
 0x433   : > { %2944 = vst [vmem:[%s4608_s26 + $0x38] sm:$0xff] %v3338_v46  ;;  %v3331_v22 = vpack.c.bf16 %v2874_v21, %v2873_v45  ;;  %v2876_v49 = vmax.f32 %v3810_v47, 0.0 }
 0x435   : > { %2937 = vst [vmem:[%s4608_s26] sm:$0xff] %v3331_v22  ;;  %v3332_v50 = vpack.c.bf16 %v2876_v49, %v2875_v48 }
 0x437   : > { %2938 = vst [vmem:[%s4608_s26 + $0x8] sm:$0xff] %v3332_v50 }
 0x438 PF: > { %s20_s13 = sadd.s32 1, %s4038_s13  }
 0x439   : > { %p17_p4 = scmp.ge.s32.totalorder %s20_s13, 4  }
 0x43b   :  { %19 = sbr.rel (!%p17_p4) target bundleno = 1 (0x1), region = 106 }

// kernel: vae_recon_encoder_forward.12
= control target key start
LH: loop header
LB: loop body
LE: loop exit
PB: predicated region body
PF: predicated region fallthrough
CT: control target
= control target key end

     0   :  { %s4207_s13 = smov 0   ;;  %s5057_s0 = inlined_call_operand.vmem [shape: bf16[2,64,256], index: 0, kind: input, shape index: {}]   ;;  %s5058_s1 = inlined_call_operand.vmem [shape: bf16[9,16,64], index: 1, kind: input, shape index: {}]   ;;  %s5059_s2 = inlined_call_operand.vmem [shape: bf16[256,128], index: 2, kind: input, shape index: {}]   ;;  %s5060_s3 = inlined_call_operand.vmem [shape: f32[1,128], index: 3, kind: input, shape index: {}, may-alias: {3,5}]   ;;  %s5061_s4 = inlined_call_operand.vmem [shape: bf16[9,128,128], index: 4, kind: input, shape index: {}]   ;;  %s5062_s5 = inlined_call_operand.vmem [shape: f32[1,128], index: 5, kind: input, shape index: {}, may-alias: {3,5}]   ;;  %s5063_s6 = inlined_call_operand.vmem [shape: bf16[128,512], index: 6, kind: input, shape index: {}]   ;;  %s5064_s7 = inlined_call_operand.vmem [shape: f32[1,512], index: 7, kind: input, shape index: {}, may-alias: {7,9}]   ;;  %s5065_s8 = inlined_call_operand.vmem [shape: bf16[256,512], index: 8, kind: input, shape index: {}]   ;;  %s5066_s9 = inlined_call_operand.vmem [shape: f32[1,512], index: 9, kind: input, shape index: {}, may-alias: {7,9}]   ;;  %s5067_s10 = inlined_call_operand.vmem [shape: bf16[2,16,512], index: 10, kind: output, shape index: {}]  }
   0x1 LB: > { %s3013_s14 = sadd.s32 4294967295, %s4147_s13   ;;  %p3017_p0 = scmp.ge.s32.totalorder %s4147_s13, 1  ;;  %s4147_s13 = sphi %s4207_s13, %s20_s13  }
   0x2   : > { %p312_p1 = scmp.lt.s32.totalorder %s4147_s13, 3 }
   0x4   : > { %p313_p2 = pnand %p3017_p0, %p312_p1 }
   0x5   : > { %v3880_v0 = vld [vmem:[%s5059_s2 + $0x40] sm:$0xff] (!%p313_p2)   ;;  %v3882_v2 = vld [vmem:[%s5059_s2 + $0x48] sm:$0xff] (!%p313_p2)   ;;  %p350_p3 = scmp.lt.s32.totalorder (!%p313_p2), %s3013_s14, 1  ;;  %v3884_v4 = vld [vmem:[%s5059_s2 + $0x50] sm:$0xff] (!%p313_p2)   ;;  %v4149_v24 = vmov (!%p313_p2), 0.0   ;;  %vm4150_vm0 = vmmov (!%p313_p2), 0  }
   0x6   : > { %316 = sbr.rel (%p313_p2) target bundleno = 2126 (0x84e), region = 60  ;;  %v3881_v1 = vld [vmem:[%s5059_s2] sm:$0xff] (!%p313_p2)   ;;  %3391 = vmatprep.subr.bf16.mxu0 (!%p313_p2), %v3880_v0  ;;  %v3883_v3 = vld [vmem:[%s5059_s2 + $0x8] sm:$0xff] (!%p313_p2)   ;;  %v3885_v5 = vld [vmem:[%s5059_s2 + $0x10] sm:$0xff] (!%p313_p2)   ;;  %3557 = vmatprep.subr.bf16.mxu1 (!%p313_p2), %v4149_v24  ;;  %vm628_vm1 = vcmask (!%p313_p2), 523264  }
   0x7   : > { %3392 = vmatpush3.bf16.msra.mxu0 (!%p313_p2), %v3881_v1  ;;  %v3886_v6 = vld [vmem:[%s5059_s2 + $0x58] sm:$0xff] (!%p313_p2)   ;;  %v3888_v8 = vld [vmem:[%s5059_s2 + $0x60] sm:$0xff] (!%p313_p2)   ;;  %v3890_v10 = vld [vmem:[%s5059_s2 + $0x68] sm:$0xff] (!%p313_p2)   ;;  %3565 = vmatprep.mubr.msk.bf16.mxu1 (!%p313_p2), %vm4150_vm0, %v4149_v24 }
   0x8   : > { %3393 = vmatprep.subr.bf16.mxu0 (!%p313_p2), %v3882_v2  ;;  %v3887_v7 = vld [vmem:[%s5059_s2 + $0x18] sm:$0xff] (!%p313_p2)   ;;  %v3889_v9 = vld [vmem:[%s5059_s2 + $0x20] sm:$0xff] (!%p313_p2)   ;;  %v3891_v12 = vld [vmem:[%s5059_s2 + $0x28] sm:$0xff] (!%p313_p2)  }
   0x9   : > { %v3892_v13 = vld [vmem:[%s5059_s2 + $0x70] sm:$0xff] (!%p313_p2)   ;;  %v3894_v15 = vld [vmem:[%s5059_s2 + $0x78] sm:$0xff] (!%p313_p2)   ;;  %v3914_v25 = vld [vmem:[%s5061_s4 + $0x40] sm:$0xff] (!%p313_p2)  }
   0xa   : > { %v3893_v14 = vld [vmem:[%s5059_s2 + $0x30] sm:$0xff] (!%p313_p2)   ;;  %v3895_v16 = vld [vmem:[%s5059_s2 + $0x38] sm:$0xff] (!%p313_p2)   ;;  %v3916_v26 = vld [vmem:[%s5061_s4 + $0x48] sm:$0xff] (!%p313_p2)  }
   0xb   : > { %3394 = vmatpush3.bf16.msra.mxu0 (!%p313_p2), %v3883_v3  ;;  %v3918_v27 = vld [vmem:[%s5061_s4 + $0x50] sm:$0xff] (!%p313_p2)   ;;  %v3022_v29 = vld [vmem:[%s5060_s3] ss:$0 sm:$0xff] (!%p313_p2) }
   0xc   : > { %3395 = vmatprep.subr.bf16.mxu0 (!%p313_p2), %v3884_v4 }
   0xd   : > { %s5069_s14 = smov (!%p350_p3, %s3013_s14), 1 }
   0xe   : > { %s3385_s11 = sshll.u32 %s5069_s14, 6  ;;  %s3386_s12 = sshll.u32 %s5069_s14, 5 }
   0xf   : > { %3396 = vmatpush3.bf16.msra.mxu0 %v3885_v5  ;;  %s4248_s18 = scalar_lea.vmem %s5057_s0, %s3385_s11  ;;  %s359_s17 = scalar_lea.vmem %s5067_s10, %s3386_s12 }
  0x10   : > { %3397 = vmatprep.subr.bf16.mxu0 %v3886_v6  ;;  %v3898_v11 = vld [vmem:[%s4248_s18 + $0x4] ss:$8 sps:$4 sm:$0xff]   ;;  %v3896_v17 = vld [vmem:[%s4248_s18] ss:$8 sps:$4 sm:$0xff]   ;;  %v3899_v18 = vld [vmem:[%s4248_s18 + $0x14] ss:$8 sps:$4 sm:$0xff]  }
  0x11   : > { %576 = vmatprep.mubr.bf16.mxu0 %v3898_v11  ;;  %v3901_v19 = vld [vmem:[%s4248_s18 + $0x10] ss:$8 sps:$4 sm:$0xff]   ;;  %v3902_v20 = vld [vmem:[%s4248_s18 + $0x24] ss:$8 sps:$4 sm:$0xff]   ;;  %v3904_v21 = vld [vmem:[%s4248_s18 + $0x20] ss:$8 sps:$4 sm:$0xff]  }
  0x12   : > { %v3905_v22 = vld [vmem:[%s4248_s18 + $0x34] ss:$8 sps:$4 sm:$0xff]   ;;  %v3907_v23 = vld [vmem:[%s4248_s18 + $0x30] ss:$8 sps:$4 sm:$0xff]   ;;  %v3910_v11 = vld [vmem:[%s5061_s4] sm:$0xff]  }
  0x13   : > { %3398 = vmatpush3.bf16.msra.mxu0 %v3887_v7 }
  0x14   : > { %3399 = vmatprep.subr.bf16.mxu0 %v3888_v8 }
  0x17   : > { %3400 = vmatpush3.bf16.msra.mxu0 %v3889_v9  ;;  %v3908_v9 = vld [vmem:[%s5058_s1] sm:$0xff]  }
  0x18   : > { %3401 = vmatprep.subr.bf16.mxu0 %v3890_v10  ;;  %v3909_v10 = vld [vmem:[%s5058_s1 + $0x8] sm:$0xff]  }
  0x1b   : > { %3402 = vmatpush3.bf16.msra.mxu0 %v3891_v12  ;;  %v3911_v12 = vld [vmem:[%s5061_s4 + $0x8] sm:$0xff]  }
  0x1c   : > { %3403 = vmatprep.subr.bf16.mxu0 %v3892_v13  ;;  %v3912_v13 = vld [vmem:[%s5061_s4 + $0x10] sm:$0xff]  }
  0x1f   : > { %3404 = vmatpush3.bf16.msra.mxu0 %v3893_v14  ;;  %v3913_v14 = vld [vmem:[%s5061_s4 + $0x18] sm:$0xff]  }
  0x20   : > { %3405 = vmatprep.subr.bf16.mxu0 %v3894_v15  ;;  %v3915_v15 = vld [vmem:[%s5061_s4 + $0x20] sm:$0xff]  }
  0x23   : > { %3406 = vmatpush3.bf16.msra.mxu0 %v3895_v16  ;;  %v3917_v16 = vld [vmem:[%s5061_s4 + $0x28] sm:$0xff]  }
  0x24   : > { %3581 = vmatprep.subr.bf16.mxu0 %v4149_v24 }
  0x26   : > { %577 = vmatmul.mubr.bf16.vlgmr.msra.gmra.mrb[0].mxu0 %v3896_v17  ;;  %v3919_v17 = vld [vmem:[%s5061_s4 + $0x30] sm:$0xff]  }
  0x27   : > { %584 = vmatprep.mubr.bf16.mxu0 %v3899_v18  ;;  %3582 = vmatpush3.bf16.msra.mxu0 %v3914_v25  ;;  %v3920_v18 = vld [vmem:[%s5061_s4 + $0x58] sm:$0xff]  }
  0x28   : > { %3583 = vmatprep.subr.bf16.mxu0 %v4149_v24 }
  0x2b   : > { %3584 = vmatpush3.bf16.msra.mxu0 %v3916_v26 }
  0x2c   : > { %3585 = vmatprep.subr.bf16.mxu0 %v4149_v24 }
  0x2e   : > { %585 = vmatmul.mubr.bf16.gmra.mrb[4].mxu0 %v3901_v19  ;;  %v3921_v19 = vld [vmem:[%s5061_s4 + $0x38] sm:$0xff]  }
  0x2f   : > { %592 = vmatprep.mubr.bf16.mxu0 %v3902_v20  ;;  %3586 = vmatpush3.bf16.msra.mxu0 %v3918_v27  ;;  %v3922_v20 = vld [vmem:[%s5061_s4 + $0x60] sm:$0xff]  }
  0x30   : > { %3587 = vmatprep.subr.bf16.mxu0 %v4149_v24 }
  0x33   : > { %3588 = vmatpush3.bf16.msra.mxu0 %v3920_v18  ;;  %v3949_v18 = vld [vmem:[%s5061_s4 + $0x118] sm:$0xff]  }
  0x34   : > { %3589 = vmatprep.subr.bf16.mxu0 %v4149_v24 }
  0x36   : > { %593 = vmatmul.mubr.bf16.gmra.mrb[8].mxu0 %v3904_v21  ;;  %v3923_v21 = vld [vmem:[%s5061_s4 + $0x68] sm:$0xff]  }
  0x37   : > { %600 = vmatprep.mubr.bf16.mxu0 %v3905_v22  ;;  %3590 = vmatpush3.bf16.msra.mxu0 %v3922_v20  ;;  %v3924_v22 = vld [vmem:[%s5061_s4 + $0x70] sm:$0xff]   ;;  %v3951_v20 = vld [vmem:[%s5061_s4 + $0x140] sm:$0xff]  }
  0x38   : > { %3591 = vmatprep.subr.bf16.mxu0 %v4149_v24 }
  0x3b   : > { %3592 = vmatpush3.bf16.msra.mxu0 %v3923_v21  ;;  %v3952_v21 = vld [vmem:[%s5061_s4 + $0x128] sm:$0xff]  }
  0x3c   : > { %3593 = vmatprep.subr.bf16.mxu0 %v4149_v24 }
  0x3e   : > { %601 = vmatmul.mubr.bf16.gmra.mrb[12].mxu0 %v3907_v23  ;;  %v3925_v23 = vld [vmem:[%s5061_s4 + $0x78] sm:$0xff]  }
  0x3f   : > { %3597 = vmatprep.mubr.msk.bf16.mxu0 %vm4150_vm0, %v4149_v24  ;;  %3594 = vmatpush3.bf16.msra.mxu0 %v3924_v22  ;;  %v3953_v22 = vld [vmem:[%s5061_s4 + $0x148] sm:$0xff]  }
  0x40   : > { %3595 = vmatprep.subr.bf16.mxu0 %v4149_v24 }
  0x43   : > { %3596 = vmatpush3.bf16.msra.mxu0 %v3925_v23  ;;  %v3954_v23 = vld [vmem:[%s5061_s4 + $0x130] sm:$0xff]  }
  0x44   : > { %3621 = vmatprep.subr.bf16.mxu0 %v4149_v24 }
  0xf9   : > { %v3407_v28 = vpop.f32.mrb[0].mxu0 }
  0xfa   : > { %v3408_v30 = vpop.f32.mrb[1].mxu0 }
  0xfb   : > { %v3409_v31 = vadd.f32 %v3408_v30, %v3407_v28  ;;  %v3410_v32 = vpop.f32.mrb[2].mxu0 }
  0xfc   : > { %v3411_v33 = vpop.f32.mrb[3].mxu0 }
  0xfd   : > { %v579_v34 = vadd.f32 %v3409_v31, %v3022_v29  ;;  %v3412_v35 = vadd.f32 %v3411_v33, %v3410_v32 }
  0xff   : > { %v582_v36 = vadd.f32 %v3412_v35, %v3022_v29  ;;  %v609_v37 = vmax.f32 %v579_v34, 0.0  ;;  %v3926_v35 = vld [vmem:[%s5058_s1 + $0x10] sm:$0xff]  }
 0x101   : > { %v610_v38 = vmax.f32 %v582_v36, 0.0  ;;  %v3413_v39 = vpop.f32.mrb[4].mxu0  ;;  %v3927_v36 = vld [vmem:[%s5058_s1 + $0x18] sm:$0xff]  }
 0x102   : > { %v3414_v40 = vpop.f32.mrb[5].mxu0 }
 0x103   : > { %v4300_v41 = vpack.c.bf16 %v610_v38, %v609_v37  ;;  %v3415_v42 = vadd.f32 %v3414_v40, %v3413_v39  ;;  %v3416_v43 = vpop.f32.mrb[6].mxu0  ;;  %v3928_v37 = vld [vmem:[%s5061_s4 + $0x80] sm:$0xff]   ;;  %v3929_v38 = vld [vmem:[%s5061_s4 + $0x88] sm:$0xff]   ;;  %v3930_v39 = vld [vmem:[%s5061_s4 + $0x90] sm:$0xff]  }
 0x104   : > { %v3417_v44 = vpop.f32.mrb[7].mxu0  ;;  %v3931_v40 = vld [vmem:[%s5061_s4 + $0x98] sm:$0xff]  }
 0x105   : > { %v587_v45 = vadd.f32 %v3415_v42, %v3022_v29  ;;  %v3418_v46 = vadd.f32 %v3417_v44, %v3416_v43  ;;  %3558 = vmatpush3.bf16.msra.mxu1 %v4300_v41  ;;  %v3932_v42 = vld [vmem:[%s5061_s4 + $0xa0] sm:$0xff]   ;;  %v3934_v44 = vld [vmem:[%s5061_s4 + $0xa8] sm:$0xff]  }
 0x106   : > { %3559 = vmatprep.subr.bf16.mxu1 %v4149_v24  ;;  %v3933_v43 = vld [vmem:[%s5061_s4 + $0xc0] sm:$0xff]  }
 0x107   : > { %v590_v47 = vadd.f32 %v3418_v46, %v3022_v29  ;;  %v611_v48 = vmax.f32 %v587_v45, 0.0  ;;  %v3935_v45 = vld [vmem:[%s5061_s4 + $0xc8] sm:$0xff]   ;;  %v3936_v46 = vld [vmem:[%s5061_s4 + $0xb0] sm:$0xff]  }
 0x109   : > { %v612_v49 = vmax.f32 %v590_v47, 0.0  ;;  %v3419_v50 = vpop.f32.mrb[8].mxu0  ;;  %v3937_v47 = vld [vmem:[%s5061_s4 + $0xd0] sm:$0xff]  }
 0x10a   : > { %v3420_v51 = vpop.f32.mrb[9].mxu0 }
 0x10b   : > { %v4304_v52 = vpack.c.bf16 %v612_v49, %v611_v48  ;;  %v3421_v53 = vadd.f32 %v3420_v51, %v3419_v50  ;;  %v3422_v54 = vpop.f32.mrb[10].mxu0  ;;  %v3938_v48 = vld [vmem:[%s5061_s4 + $0xb8] sm:$0xff]   ;;  %v3940_v50 = vld [vmem:[%s5061_s4 + $0xe0] sm:$0xff]   ;;  %v3941_v51 = vld [vmem:[%s5061_s4 + $0xe8] sm:$0xff]  }
 0x10c   : > { %v3423_v55 = vpop.f32.mrb[11].mxu0  ;;  %v3939_v49 = vld [vmem:[%s5061_s4 + $0xd8] sm:$0xff]  }
 0x10d   : > { %v595_v56 = vadd.f32 %v3421_v53, %v3022_v29  ;;  %v3424_v57 = vadd.f32 %v3423_v55, %v3422_v54  ;;  %3560 = vmatpush3.bf16.msra.mxu1 %v4304_v52  ;;  %v3942_v53 = vld [vmem:[%s5061_s4 + $0xf0] sm:$0xff]   ;;  %v3943_v54 = vld [vmem:[%s5061_s4 + $0xf8] sm:$0xff]  }
 0x10e   : > { %3561 = vmatprep.subr.bf16.mxu1 %v4149_v24 }
 0x10f   : > { %v598_v58 = vadd.f32 %v3424_v57, %v3022_v29  ;;  %v613_v59 = vmax.f32 %v595_v56, 0.0 }
 0x111   : > { %v614_v60 = vmax.f32 %v598_v58, 0.0  ;;  %v3425_v61 = vpop.f32.mrb[12].mxu0 }
 0x112   : > { %v3426_v62 = vpop.f32.mrb[13].mxu0 }
 0x113   : > { %v4308_v63 = vpack.c.bf16 %v614_v60, %v613_v59  ;;  %v3427_v0 = vadd.f32 %v3426_v62, %v3425_v61  ;;  %v3428_v1 = vpop.f32.mrb[14].mxu0 }
 0x114   : > { %v3429_v2 = vpop.f32.mrb[15].mxu0 }
 0x115   : > { %v603_v3 = vadd.f32 %v3427_v0, %v3022_v29  ;;  %v3430_v4 = vadd.f32 %v3429_v2, %v3428_v1  ;;  %3562 = vmatpush3.bf16.msra.mxu1 %v4308_v63 }
 0x116   : > { %3563 = vmatprep.subr.bf16.mxu1 %v4149_v24 }
 0x117   : > { %v606_v5 = vadd.f32 %v3430_v4, %v3022_v29  ;;  %v615_v6 = vmax.f32 %v603_v3, 0.0 }
 0x119   : > { %v616_v7 = vmax.f32 %v606_v5, 0.0 }
 0x11b   : > { %v4312_v8 = vpack.c.bf16 %v616_v7, %v615_v6 }
 0x11d   : > { %3564 = vmatpush3.bf16.msra.mxu1 %v4312_v8 }
 0x11e   : > { %3569 = vmatprep.subr.bf16.mxu1 %v4149_v24 }
 0x120   : > { %3566 = vmatmul.mubr.msk.bf16.vlgmr.msra.gmra.mrb[0].mxu1 %vm628_vm1, %v3908_v9 }
 0x121   : > { %3570 = vmatpush3.bf16.msra.mxu1 %v4300_v41  ;;  %3577 = vmatprep.mubr.msk.bf16.mxu1 %vm4150_vm0, %v4149_v24 }
 0x122   : > { %3571 = vmatprep.subr.bf16.mxu1 %v4149_v24 }
 0x125   : > { %3572 = vmatpush3.bf16.msra.mxu1 %v4304_v52 }
 0x126   : > { %3573 = vmatprep.subr.bf16.mxu1 %v4149_v24 }
 0x129   : > { %3574 = vmatpush3.bf16.msra.mxu1 %v4308_v63 }
 0x12a   : > { %3575 = vmatprep.subr.bf16.mxu1 %v4149_v24 }
 0x12d   : > { %3576 = vmatpush3.bf16.msra.mxu1 %v4312_v8 }
 0x12e   : > { %3601 = vmatprep.subr.bf16.mxu1 %v4149_v24 }
 0x130   : > { %3578 = vmatmul.mubr.msk.bf16.vlgmr.msra.gmra.mrb[4].mxu1 %vm628_vm1, %v3909_v10  ;;  %v4499_v10 = vld [vmem:[%s5058_s1 + $0x20] sm:$0xff]  }
 0x131   : > { %3602 = vmatpush3.bf16.msra.mxu1 %v3910_v11  ;;  %3617 = vmatprep.mubr.msk.bf16.mxu1 %vm4150_vm0, %v4149_v24 }
 0x132   : > { %3603 = vmatprep.subr.bf16.mxu1 %v4149_v24 }
 0x135   : > { %3604 = vmatpush3.bf16.msra.mxu1 %v3911_v12 }
 0x136   : > { %3605 = vmatprep.subr.bf16.mxu1 %v4149_v24 }
 0x139   : > { %3606 = vmatpush3.bf16.msra.mxu1 %v3912_v13  ;;  %v3946_v13 = vld [vmem:[%s5061_s4 + $0x100] sm:$0xff]  }
 0x13a   : > { %3607 = vmatprep.subr.bf16.mxu1 %v4149_v24 }
 0x13d   : > { %3608 = vmatpush3.bf16.msra.mxu1 %v3913_v14 }
 0x13e   : > { %3609 = vmatprep.subr.bf16.mxu1 %v4149_v24 }
 0x141   : > { %3610 = vmatpush3.bf16.msra.mxu1 %v3915_v15  ;;  %v3947_v15 = vld [vmem:[%s5061_s4 + $0x108] sm:$0xff]  }
 0x142   : > { %3611 = vmatprep.subr.bf16.mxu1 %v4149_v24 }
 0x145   : > { %3612 = vmatpush3.bf16.msra.mxu1 %v3917_v16  ;;  %v3948_v16 = vld [vmem:[%s5061_s4 + $0x110] sm:$0xff]  }
 0x146   : > { %3613 = vmatprep.subr.bf16.mxu1 %v4149_v24 }
 0x149   : > { %3614 = vmatpush3.bf16.msra.mxu1 %v3919_v17  ;;  %v3945_v17 = vld [vmem:[%s5058_s1 + $0x28] sm:$0xff]  }
 0x14a   : > { %3615 = vmatprep.subr.bf16.mxu1 %v4149_v24 }
 0x14d   : > { %3616 = vmatpush3.bf16.msra.mxu1 %v3921_v19  ;;  %v3950_v19 = vld [vmem:[%s5061_s4 + $0x120] sm:$0xff]  }
 0x14e   : > { %3633 = vmatprep.subr.bf16.mxu1 %v4149_v24 }
 0x1f3   : > { %v666_v25 = vpop.f32.mrb[0].mxu1 }
 0x1f4   : > { %v3567_v26 = vpop.f32.mrb[1].mxu1 }
 0x1f5   : > { %v669_v27 = vpop.f32.mrb[2].mxu1  ;;  %v3956_v26 = vld [vmem:[%s5061_s4 + $0x138] sm:$0xff]  }
 0x1f6   : > { %v673_v28 = vpack.c.bf16 %v669_v27, %v666_v25  ;;  %v3568_v29 = vpop.f32.mrb[3].mxu1  ;;  %v3955_v25 = vld [vmem:[%s5061_s4 + $0x150] sm:$0xff]   ;;  %v3957_v27 = vld [vmem:[%s5061_s4 + $0x158] sm:$0xff]  }
 0x1f7   : > { %v3959_v29 = vld [vmem:[%s5061_s4 + $0x168] sm:$0xff]  }
 0x1f8   : > { %3618 = vmatmul.mubr.bf16.vlgmr.msra.gmra.mrb[8].mxu1 %v673_v28  ;;  %v3958_v28 = vld [vmem:[%s5061_s4 + $0x160] sm:$0xff]  }
 0x1f9   : > { %3649 = vmatprep.mubr.msk.bf16.mxu1 %vm4150_vm0, %v4149_v24  ;;  %3634 = vmatpush3.bf16.msra.mxu1 %v3928_v37 }
 0x1fa   : > { %3635 = vmatprep.subr.bf16.mxu1 %v4149_v24 }
 0x1fd   : > { %3636 = vmatpush3.bf16.msra.mxu1 %v3929_v38 }
 0x1fe   : > { %3637 = vmatprep.subr.bf16.mxu1 %v4149_v24 }
 0x201   : > { %3638 = vmatpush3.bf16.msra.mxu1 %v3930_v39 }
 0x202   : > { %3639 = vmatprep.subr.bf16.mxu1 %v4149_v24 }
 0x203   : > { %v735_v30 = vpop.f32.mrb[4].mxu1 }
 0x204   : > { %v3579_v31 = vpop.f32.mrb[5].mxu1 }
 0x205   : > { %v738_v32 = vpop.f32.mrb[6].mxu1  ;;  %3640 = vmatpush3.bf16.msra.mxu1 %v3931_v40  ;;  %v3961_v31 = vld [vmem:[%s5061_s4 + $0x178] sm:$0xff]  }
 0x206   : > { %v742_v33 = vpack.c.bf16 %v738_v32, %v735_v30  ;;  %v3580_v34 = vpop.f32.mrb[7].mxu1  ;;  %3641 = vmatprep.subr.bf16.mxu1 %v4149_v24  ;;  %v3960_v30 = vld [vmem:[%s5061_s4 + $0x170] sm:$0xff]  }
 0x208   : > { %3598 = vmatmul.mubr.bf16.vlgmr.msra.gmra.mrb[16].mxu0 %v742_v33 }
 0x209   : > { %3622 = vmatpush3.bf16.msra.mxu0 %v4300_v41  ;;  %3629 = vmatprep.mubr.msk.bf16.mxu0 %vm4150_vm0, %v4149_v24 }
 0x20a   : > { %3623 = vmatprep.subr.bf16.mxu0 %v4149_v24  ;;  %3642 = vmatpush3.bf16.msra.mxu1 %v3932_v42 }
 0x20b   : > { %3643 = vmatprep.subr.bf16.mxu1 %v4149_v24 }
 0x20d   : > { %3624 = vmatpush3.bf16.msra.mxu0 %v4304_v52 }
 0x20e   : > { %3625 = vmatprep.subr.bf16.mxu0 %v4149_v24  ;;  %3644 = vmatpush3.bf16.msra.mxu1 %v3934_v44 }
 0x20f   : > { %3645 = vmatprep.subr.bf16.mxu1 %v4149_v24 }
 0x211   : > { %3626 = vmatpush3.bf16.msra.mxu0 %v4308_v63 }
 0x212   : > { %3627 = vmatprep.subr.bf16.mxu0 %v4149_v24  ;;  %3646 = vmatpush3.bf16.msra.mxu1 %v3936_v46 }
 0x213   : > { %3647 = vmatprep.subr.bf16.mxu1 %v4149_v24 }
 0x215   : > { %3628 = vmatpush3.bf16.msra.mxu0 %v4312_v8 }
 0x216   : > { %3653 = vmatprep.subr.bf16.mxu0 %v4149_v24  ;;  %3648 = vmatpush3.bf16.msra.mxu1 %v3938_v48 }
 0x217   : > { %3685 = vmatprep.subr.bf16.mxu1 %v4149_v24 }
 0x218   : > { %3630 = vmatmul.mubr.msk.bf16.vlgmr.msra.gmra.mrb[20].mxu0 %vm628_vm1, %v3926_v35 }
 0x219   : > { %3654 = vmatpush3.bf16.msra.mxu0 %v4300_v41  ;;  %3661 = vmatprep.mubr.msk.bf16.mxu0 %vm4150_vm0, %v4149_v24 }
 0x21a   : > { %3655 = vmatprep.subr.bf16.mxu0 %v4149_v24 }
 0x21d   : > { %3656 = vmatpush3.bf16.msra.mxu0 %v4304_v52 }
 0x21e   : > { %3657 = vmatprep.subr.bf16.mxu0 %v4149_v24 }
 0x221   : > { %3658 = vmatpush3.bf16.msra.mxu0 %v4308_v63 }
 0x222   : > { %3659 = vmatprep.subr.bf16.mxu0 %v4149_v24 }
 0x225   : > { %3660 = vmatpush3.bf16.msra.mxu0 %v4312_v8 }
 0x226   : > { %3665 = vmatprep.subr.bf16.mxu0 %v4149_v24 }
 0x228   : > { %3662 = vmatmul.mubr.msk.bf16.vlgmr.msra.gmra.mrb[24].mxu0 %vm628_vm1, %v3927_v36 }
 0x229   : > { %3681 = vmatprep.mubr.msk.bf16.mxu0 %vm4150_vm0, %v4149_v24  ;;  %3666 = vmatpush3.bf16.msra.mxu0 %v3933_v43 }
 0x22a   : > { %3667 = vmatprep.subr.bf16.mxu0 %v4149_v24 }
 0x22d   : > { %3668 = vmatpush3.bf16.msra.mxu0 %v3935_v45 }
 0x22e   : > { %3669 = vmatprep.subr.bf16.mxu0 %v4149_v24 }
 0x231   : > { %3670 = vmatpush3.bf16.msra.mxu0 %v3937_v47 }
 0x232   : > { %3671 = vmatprep.subr.bf16.mxu0 %v4149_v24 }
 0x235   : > { %3672 = vmatpush3.bf16.msra.mxu0 %v3939_v49 }
 0x236   : > { %3673 = vmatprep.subr.bf16.mxu0 %v4149_v24 }
 0x239   : > { %3674 = vmatpush3.bf16.msra.mxu0 %v3940_v50 }
 0x23a   : > { %3675 = vmatprep.subr.bf16.mxu0 %v4149_v24 }
 0x23d   : > { %3676 = vmatpush3.bf16.msra.mxu0 %v3941_v51 }
 0x23e   : > { %3677 = vmatprep.subr.bf16.mxu0 %v4149_v24 }
 0x241   : > { %3678 = vmatpush3.bf16.msra.mxu0 %v3942_v53  ;;  %v3962_v53 = vld [vmem:[%s5058_s1 + $0x30] sm:$0xff]  }
 0x242   : > { %3679 = vmatprep.subr.bf16.mxu0 %v4149_v24 }
 0x245   : > { %3680 = vmatpush3.bf16.msra.mxu0 %v3943_v54 }
 0x246   : > { %3717 = vmatprep.subr.bf16.mxu0 %v4149_v24 }
 0x2cb   : > { %v931_v55 = vpop.f32.mrb[8].mxu1 }
 0x2cc   : > { %v3619_v56 = vpop.f32.mrb[9].mxu1 }
 0x2cd   : > { %v934_v57 = vpop.f32.mrb[10].mxu1  ;;  %v3964_v56 = vld [vmem:[%s5061_s4 + $0x180] sm:$0xff]  }
 0x2ce   : > { %v3620_v58 = vpop.f32.mrb[11].mxu1 }
 0x2cf   : > { %v3965_v58 = vld [vmem:[%s5061_s4 + $0x188] sm:$0xff]  }
 0x2db   : > { %v842_v59 = vpop.f32.mrb[16].mxu0 }
 0x2dc   : > { %v4484_v60 = vadd.f32 %v931_v55, %v842_v59  ;;  %v3599_v61 = vpop.f32.mrb[17].mxu0  ;;  %v3966_v59 = vld [vmem:[%s5061_s4 + $0x190] sm:$0xff]  }
 0x2dd   : > { %v845_v62 = vpop.f32.mrb[18].mxu0  ;;  %v3967_v61 = vld [vmem:[%s5061_s4 + $0x198] sm:$0xff]  }
 0x2de   : > { %v4486_v0 = vadd.f32 %v934_v57, %v845_v62  ;;  %v3600_v1 = vpop.f32.mrb[19].mxu0  ;;  %v3968_v62 = vld [vmem:[%s5061_s4 + $0x1a0] sm:$0xff]  }
 0x2df   : > { %v3970_v1 = vld [vmem:[%s5061_s4 + $0x1a8] sm:$0xff]  }
 0x2eb   : > { %v983_v2 = vpop.f32.mrb[20].mxu0 }
 0x2ec   : > { %v3631_v3 = vpop.f32.mrb[21].mxu0 }
 0x2ed   : > { %v986_v4 = vpop.f32.mrb[22].mxu0  ;;  %v3972_v3 = vld [vmem:[%s5061_s4 + $0x1b0] sm:$0xff]  }
 0x2ee   : > { %v990_v5 = vpack.c.bf16 %v986_v4, %v983_v2  ;;  %v3632_v6 = vpop.f32.mrb[23].mxu0  ;;  %v3971_v2 = vld [vmem:[%s5061_s4 + $0x1c8] sm:$0xff]   ;;  %v3973_v4 = vld [vmem:[%s5061_s4 + $0x1d0] sm:$0xff]  }
 0x2ef   : > { %v3975_v6 = vld [vmem:[%s5061_s4 + $0x1d8] sm:$0xff]  }
 0x2f0   : > { %3650 = vmatmul.mubr.bf16.vlgmr.msra.gmra.mrb[12].mxu1 %v990_v5  ;;  %v3974_v5 = vld [vmem:[%s5061_s4 + $0x1b8] sm:$0xff]  }
 0x2f1   : > { %3686 = vmatpush3.bf16.msra.mxu1 %v4300_v41  ;;  %3693 = vmatprep.mubr.msk.bf16.mxu1 %vm4150_vm0, %v4149_v24 }
 0x2f2   : > { %3687 = vmatprep.subr.bf16.mxu1 %v4149_v24 }
 0x2f5   : > { %3688 = vmatpush3.bf16.msra.mxu1 %v4304_v52 }
 0x2f6   : > { %3689 = vmatprep.subr.bf16.mxu1 %v4149_v24 }
 0x2f9   : > { %3690 = vmatpush3.bf16.msra.mxu1 %v4308_v63 }
 0x2fa   : > { %3691 = vmatprep.subr.bf16.mxu1 %v4149_v24 }
 0x2fb   : > { %v1144_v7 = vpop.f32.mrb[24].mxu0 }
 0x2fc   : > { %v3663_v9 = vpop.f32.mrb[25].mxu0 }
 0x2fd   : > { %3692 = vmatpush3.bf16.msra.mxu1 %v4312_v8  ;;  %v1147_v11 = vpop.f32.mrb[26].mxu0  ;;  %v3977_v9 = vld [vmem:[%s5061_s4 + $0x1e8] sm:$0xff]  }
 0x2fe   : > { %v1151_v12 = vpack.c.bf16 %v1147_v11, %v1144_v7  ;;  %3697 = vmatprep.subr.bf16.mxu1 %v4149_v24  ;;  %v3664_v14 = vpop.f32.mrb[27].mxu0  ;;  %v3976_v7 = vld [vmem:[%s5061_s4 + $0x1e0] sm:$0xff]   ;;  %v3978_v11 = vld [vmem:[%s5061_s4 + $0x1f0] sm:$0xff]  }
 0x300   : > { %3694 = vmatmul.mubr.msk.bf16.vlgmr.msra.gmra.mrb[16].mxu1 %vm628_vm1, %v4499_v10  ;;  %3682 = vmatmul.mubr.bf16.vlgmr.msra.gmra.mrb[28].mxu0 %v1151_v12  ;;  %v3979_v12 = vld [vmem:[%s5061_s4 + $0x1f8] sm:$0xff]  }
 0x301   : > { %3718 = vmatpush3.bf16.msra.mxu0 %v4300_v41  ;;  %3725 = vmatprep.mubr.msk.bf16.mxu0 %vm4150_vm0, %v4149_v24 }
 0x302   : > { %3719 = vmatprep.subr.bf16.mxu0 %v4149_v24  ;;  %3698 = vmatpush3.bf16.msra.mxu1 %v3946_v13 }
 0x303   : > { %3699 = vmatprep.subr.bf16.mxu1 %v4149_v24  ;;  %3713 = vmatprep.mubr.msk.bf16.mxu1 %vm4150_vm0, %v4149_v24 }
 0x305   : > { %3720 = vmatpush3.bf16.msra.mxu0 %v4304_v52 }
 0x306   : > { %3721 = vmatprep.subr.bf16.mxu0 %v4149_v24  ;;  %3700 = vmatpush3.bf16.msra.mxu1 %v3947_v15 }
 0x307   : > { %3701 = vmatprep.subr.bf16.mxu1 %v4149_v24 }
 0x309   : > { %3722 = vmatpush3.bf16.msra.mxu0 %v4308_v63 }
 0x30a   : > { %3723 = vmatprep.subr.bf16.mxu0 %v4149_v24  ;;  %3702 = vmatpush3.bf16.msra.mxu1 %v3948_v16 }
 0x30b   : > { %3703 = vmatprep.subr.bf16.mxu1 %v4149_v24 }
 0x30d   : > { %3724 = vmatpush3.bf16.msra.mxu0 %v4312_v8 }
 0x30e   : > { %3729 = vmatprep.subr.bf16.mxu0 %v4149_v24  ;;  %3704 = vmatpush3.bf16.msra.mxu1 %v3949_v18 }
 0x30f   : > { %3705 = vmatprep.subr.bf16.mxu1 %v4149_v24 }
 0x310   : > { %3726 = vmatmul.mubr.msk.bf16.vlgmr.msra.gmra.mrb[32].mxu0 %vm628_vm1, %v3945_v17 }
 0x311   : > { %3745 = vmatprep.mubr.msk.bf16.mxu0 %vm4150_vm0, %v4149_v24  ;;  %3730 = vmatpush3.bf16.msra.mxu0 %v3951_v20 }
 0x312   : > { %3706 = vmatpush3.bf16.msra.mxu1 %v3950_v19  ;;  %3731 = vmatprep.subr.bf16.mxu0 %v4149_v24 }
 0x313   : > { %3707 = vmatprep.subr.bf16.mxu1 %v4149_v24 }
 0x315   : > { %3732 = vmatpush3.bf16.msra.mxu0 %v3953_v22 }
 0x316   : > { %3708 = vmatpush3.bf16.msra.mxu1 %v3952_v21  ;;  %3733 = vmatprep.subr.bf16.mxu0 %v4149_v24 }
 0x317   : > { %3709 = vmatprep.subr.bf16.mxu1 %v4149_v24 }
 0x319   : > { %3734 = vmatpush3.bf16.msra.mxu0 %v3955_v25 }
 0x31a   : > { %3710 = vmatpush3.bf16.msra.mxu1 %v3954_v23  ;;  %3735 = vmatprep.subr.bf16.mxu0 %v4149_v24 }
 0x31b   : > { %3711 = vmatprep.subr.bf16.mxu1 %v4149_v24 }
 0x31d   : > { %3736 = vmatpush3.bf16.msra.mxu0 %v3957_v27 }
 0x31e   : > { %3712 = vmatpush3.bf16.msra.mxu1 %v3956_v26  ;;  %3737 = vmatprep.subr.bf16.mxu0 %v4149_v24 }
 0x31f   : > { %3749 = vmatprep.subr.bf16.mxu1 %v4149_v24 }
 0x321   : > { %3738 = vmatpush3.bf16.msra.mxu0 %v3958_v28 }
 0x322   : > { %3739 = vmatprep.subr.bf16.mxu0 %v4149_v24 }
 0x325   : > { %3740 = vmatpush3.bf16.msra.mxu0 %v3959_v29 }
 0x326   : > { %3741 = vmatprep.subr.bf16.mxu0 %v4149_v24 }
 0x329   : > { %3742 = vmatpush3.bf16.msra.mxu0 %v3960_v30 }
 0x32a   : > { %3743 = vmatprep.subr.bf16.mxu0 %v4149_v24 }
 0x32d   : > { %3744 = vmatpush3.bf16.msra.mxu0 %v3961_v31 }
 0x32e   : > { %3781 = vmatprep.subr.bf16.mxu0 %v4149_v24 }
 0x3c3   : > { %v1090_v32 = vpop.f32.mrb[12].mxu1 }
 0x3c4   : > { %v1097_v33 = vadd.f32 %v1090_v32, %v4484_v60  ;;  %v3651_v34 = vpop.f32.mrb[13].mxu1  ;;  %v3963_v60 = vld [vmem:[%s5058_s1 + $0x38] sm:$0xff]  }
 0x3c5   : > { %v1093_v35 = vpop.f32.mrb[14].mxu1  ;;  %v3981_v34 = vld [vmem:[%s5061_s4 + $0x200] sm:$0xff]  }
 0x3c6   : > { %v1098_v36 = vadd.f32 %v1093_v35, %v4486_v0  ;;  %v3652_v37 = vpop.f32.mrb[15].mxu1  ;;  %v3969_v0 = vld [vmem:[%s5061_s4 + $0x1c0] sm:$0xff]  }
 0x3c7   : > { %v3985_v37 = vld [vmem:[%s5061_s4 + $0x220] sm:$0xff]  }
 0x3d3   : > { %v1305_v38 = vpop.f32.mrb[16].mxu1  ;;  %v1251_v39 = vpop.f32.mrb[28].mxu0 }
 0x3d4   : > { %v4589_v40 = vadd.f32 %v1251_v39, %v1097_v33  ;;  %v3695_v42 = vpop.f32.mrb[17].mxu1  ;;  %v3683_v43 = vpop.f32.mrb[29].mxu0  ;;  %v3980_v33 = vld [vmem:[%s5058_s1 + $0x40] sm:$0xff]   ;;  %v3987_v39 = vld [vmem:[%s5061_s4 + $0x230] sm:$0xff]  }
 0x3d5   : > { %v1308_v44 = vpop.f32.mrb[18].mxu1  ;;  %v1254_v45 = vpop.f32.mrb[30].mxu0  ;;  %v3989_v42 = vld [vmem:[%s5063_s6] ss:$16 sps:$4 sm:$0xff]   ;;  %v3991_v43 = vld [vmem:[%s5063_s6 + $0x4] ss:$16 sps:$4 sm:$0xff]  }
 0x3d6   : > { %v1312_v46 = vpack.c.bf16 %v1308_v44, %v1305_v38  ;;  %v4591_v47 = vadd.f32 %v1254_v45, %v1098_v36  ;;  %v3696_v48 = vpop.f32.mrb[19].mxu1  ;;  %v3684_v49 = vpop.f32.mrb[31].mxu0  ;;  %v3984_v36 = vld [vmem:[%s5061_s4 + $0x218] sm:$0xff]   ;;  %v3986_v38 = vld [vmem:[%s5061_s4 + $0x228] sm:$0xff]   ;;  %v3995_v45 = vld [vmem:[%s5063_s6 + $0x20] ss:$16 sps:$4 sm:$0xff]  }
 0x3d7   : > { %v3994_v44 = vld [vmem:[%s5063_s6 + $0xc] ss:$16 sps:$4 sm:$0xff]   ;;  %v4009_v48 = vld [vmem:[%s5063_s6 + $0x64] ss:$16 sps:$4 sm:$0xff]   ;;  %v4007_v49 = vld [vmem:[%s5063_s6 + $0x60] ss:$16 sps:$4 sm:$0xff]  }
 0x3d8   : > { %3714 = vmatmul.mubr.bf16.vlgmr.msra.gmra.mrb[20].mxu1 %v1312_v46  ;;  %v4003_v46 = vld [vmem:[%s5063_s6 + $0x44] ss:$16 sps:$4 sm:$0xff]  }
 0x3d9   : > { %3750 = vmatpush3.bf16.msra.mxu1 %v4300_v41  ;;  %3757 = vmatprep.mubr.msk.bf16.mxu1 %vm4150_vm0, %v4149_v24 }
 0x3da   : > { %3751 = vmatprep.subr.bf16.mxu1 %v4149_v24 }
 0x3dd   : > { %3752 = vmatpush3.bf16.msra.mxu1 %v4304_v52 }
 0x3de   : > { %3753 = vmatprep.subr.bf16.mxu1 %v4149_v24 }
 0x3e1   : > { %3754 = vmatpush3.bf16.msra.mxu1 %v4308_v63 }
 0x3e2   : > { %3755 = vmatprep.subr.bf16.mxu1 %v4149_v24 }
 0x3e3   : > { %v1466_v50 = vpop.f32.mrb[32].mxu0 }
 0x3e4   : > { %v3727_v51 = vpop.f32.mrb[33].mxu0 }
 0x3e5   : > { %3756 = vmatpush3.bf16.msra.mxu1 %v4312_v8  ;;  %v1469_v54 = vpop.f32.mrb[34].mxu0  ;;  %v4013_v51 = vld [vmem:[%s5063_s6 + $0x80] ss:$16 sps:$4 sm:$0xff]  }
 0x3e6   : > { %v1473_v55 = vpack.c.bf16 %v1469_v54, %v1466_v50  ;;  %3761 = vmatprep.subr.bf16.mxu1 %v4149_v24  ;;  %v3728_v57 = vpop.f32.mrb[35].mxu0  ;;  %v4015_v50 = vld [vmem:[%s5063_s6 + $0x84] ss:$16 sps:$4 sm:$0xff]   ;;  %v4019_v54 = vld [vmem:[%s5063_s6 + $0xa0] ss:$16 sps:$4 sm:$0xff]  }
 0x3e8   : > { %3758 = vmatmul.mubr.msk.bf16.vlgmr.msra.gmra.mrb[24].mxu1 %vm628_vm1, %v3962_v53  ;;  %3746 = vmatmul.mubr.bf16.vlgmr.msra.gmra.mrb[36].mxu0 %v1473_v55  ;;  %v4021_v53 = vld [vmem:[%s5063_s6 + $0xa4] ss:$16 sps:$4 sm:$0xff]  }
 0x3e9   : > { %3782 = vmatpush3.bf16.msra.mxu0 %v4300_v41  ;;  %3789 = vmatprep.mubr.msk.bf16.mxu0 %vm4150_vm0, %v4149_v24 }
 0x3ea   : > { %3783 = vmatprep.subr.bf16.mxu0 %v4149_v24  ;;  %3762 = vmatpush3.bf16.msra.mxu1 %v3964_v56 }
 0x3eb   : > { %3763 = vmatprep.subr.bf16.mxu1 %v4149_v24  ;;  %3777 = vmatprep.mubr.msk.bf16.mxu1 %vm4150_vm0, %v4149_v24 }
 0x3ed   : > { %3784 = vmatpush3.bf16.msra.mxu0 %v4304_v52 }
 0x3ee   : > { %3785 = vmatprep.subr.bf16.mxu0 %v4149_v24  ;;  %3764 = vmatpush3.bf16.msra.mxu1 %v3965_v58 }
 0x3ef   : > { %3765 = vmatprep.subr.bf16.mxu1 %v4149_v24 }
 0x3f1   : > { %3786 = vmatpush3.bf16.msra.mxu0 %v4308_v63 }
 0x3f2   : > { %3787 = vmatprep.subr.bf16.mxu0 %v4149_v24  ;;  %3766 = vmatpush3.bf16.msra.mxu1 %v3966_v59 }
 0x3f3   : > { %3767 = vmatprep.subr.bf16.mxu1 %v4149_v24 }
 0x3f5   : > { %3788 = vmatpush3.bf16.msra.mxu0 %v4312_v8 }
 0x3f6   : > { %3793 = vmatprep.subr.bf16.mxu0 %v4149_v24  ;;  %3768 = vmatpush3.bf16.msra.mxu1 %v3967_v61 }
 0x3f7   : > { %3769 = vmatprep.subr.bf16.mxu1 %v4149_v24 }
 0x3f8   : > { %3790 = vmatmul.mubr.msk.bf16.vlgmr.msra.gmra.mrb[40].mxu0 %vm628_vm1, %v3963_v60 }
 0x3f9   : > { %3809 = vmatprep.mubr.msk.bf16.mxu0 %vm4150_vm0, %v4149_v24  ;;  %3794 = vmatpush3.bf16.msra.mxu0 %v3969_v0 }
 0x3fa   : > { %3770 = vmatpush3.bf16.msra.mxu1 %v3968_v62  ;;  %3795 = vmatprep.subr.bf16.mxu0 %v4149_v24 }
 0x3fb   : > { %3771 = vmatprep.subr.bf16.mxu1 %v4149_v24 }
 0x3fd   : > { %3796 = vmatpush3.bf16.msra.mxu0 %v3971_v2 }
 0x3fe   : > { %3772 = vmatpush3.bf16.msra.mxu1 %v3970_v1  ;;  %3797 = vmatprep.subr.bf16.mxu0 %v4149_v24 }
 0x3ff   : > { %3773 = vmatprep.subr.bf16.mxu1 %v4149_v24 }
 0x401   : > { %3798 = vmatpush3.bf16.msra.mxu0 %v3973_v4 }
 0x402   : > { %3774 = vmatpush3.bf16.msra.mxu1 %v3972_v3  ;;  %3799 = vmatprep.subr.bf16.mxu0 %v4149_v24 }
 0x403   : > { %3775 = vmatprep.subr.bf16.mxu1 %v4149_v24 }
 0x405   : > { %3800 = vmatpush3.bf16.msra.mxu0 %v3975_v6 }
 0x406   : > { %3776 = vmatpush3.bf16.msra.mxu1 %v3974_v5  ;;  %3801 = vmatprep.subr.bf16.mxu0 %v4149_v24  ;;  %v3992_v5 = vld [vmem:[%s5063_s6 + $0x8] ss:$16 sps:$4 sm:$0xff]  }
 0x407   : > { %3813 = vmatprep.subr.bf16.mxu1 %v4149_v24 }
 0x409   : > { %3802 = vmatpush3.bf16.msra.mxu0 %v3976_v7 }
 0x40a   : > { %3803 = vmatprep.subr.bf16.mxu0 %v4149_v24 }
 0x40d   : > { %3804 = vmatpush3.bf16.msra.mxu0 %v3977_v9 }
 0x40e   : > { %3805 = vmatprep.subr.bf16.mxu0 %v4149_v24 }
 0x411   : > { %3806 = vmatpush3.bf16.msra.mxu0 %v3978_v11  ;;  %v4000_v11 = vld [vmem:[%s5063_s6 + $0x2c] ss:$16 sps:$4 sm:$0xff]  }
 0x412   : > { %3807 = vmatprep.subr.bf16.mxu0 %v4149_v24 }
 0x415   : > { %3808 = vmatpush3.bf16.msra.mxu0 %v3979_v12 }
 0x416   : > { %2291 = vmatprep.subr.bf16.mxu0 %v3991_v43  ;;  %v4040_v43 = vld [vmem:[%s5065_s8 + $0x8] ss:$16 sps:$4 sm:$0xff]  }
 0x4ab   : > { %v1412_v13 = vpop.f32.mrb[20].mxu1 }
 0x4ac   : > { %v1419_v14 = vadd.f32 %v1412_v13, %v4589_v40  ;;  %v3715_v15 = vpop.f32.mrb[21].mxu1  ;;  %v3988_v40 = vld [vmem:[%s5061_s4 + $0x238] sm:$0xff]  }
 0x4ad   : > { %v1415_v16 = vpop.f32.mrb[22].mxu1  ;;  %v3998_v13 = vld [vmem:[%s5063_s6 + $0x28] ss:$16 sps:$4 sm:$0xff]  }
 0x4ae   : > { %v1420_v17 = vadd.f32 %v1415_v16, %v4591_v47  ;;  %v3716_v18 = vpop.f32.mrb[23].mxu1  ;;  %v4001_v47 = vld [vmem:[%s5063_s6 + $0x40] ss:$16 sps:$4 sm:$0xff]   ;;  %v4004_v15 = vld [vmem:[%s5063_s6 + $0x48] ss:$16 sps:$4 sm:$0xff]  }
 0x4af   : > { %v4012_v16 = vld [vmem:[%s5063_s6 + $0x6c] ss:$16 sps:$4 sm:$0xff]  }
 0x4b0   : > { %v4018_v18 = vld [vmem:[%s5063_s6 + $0x8c] ss:$16 sps:$4 sm:$0xff]  }
 0x4bb   : > { %v1627_v19 = vpop.f32.mrb[24].mxu1  ;;  %v1573_v20 = vpop.f32.mrb[36].mxu0 }
 0x4bc   : > { %v4690_v21 = vadd.f32 %v1573_v20, %v1419_v14  ;;  %v3759_v22 = vpop.f32.mrb[25].mxu1  ;;  %v3747_v23 = vpop.f32.mrb[37].mxu0  ;;  %v4006_v14 = vld [vmem:[%s5063_s6 + $0x4c] ss:$16 sps:$4 sm:$0xff]  }
 0x4bd   : > { %v1630_v25 = vpop.f32.mrb[26].mxu1  ;;  %v1576_v26 = vpop.f32.mrb[38].mxu0  ;;  %v4024_v20 = vld [vmem:[%s5063_s6 + $0xac] ss:$16 sps:$4 sm:$0xff]   ;;  %v4027_v22 = vld [vmem:[%s5063_s6 + $0xc4] ss:$16 sps:$4 sm:$0xff]  }
 0x4be   : > { %v1634_v27 = vpack.c.bf16 %v1630_v25, %v1627_v19  ;;  %v4692_v28 = vadd.f32 %v1576_v26, %v1420_v17  ;;  %v3760_v29 = vpop.f32.mrb[27].mxu1  ;;  %v3748_v30 = vpop.f32.mrb[39].mxu0  ;;  %v4010_v17 = vld [vmem:[%s5063_s6 + $0x68] ss:$16 sps:$4 sm:$0xff]   ;;  %v4025_v23 = vld [vmem:[%s5063_s6 + $0xc0] ss:$16 sps:$4 sm:$0xff]  }
 0x4bf   : > { %v4016_v19 = vld [vmem:[%s5063_s6 + $0x88] ss:$16 sps:$4 sm:$0xff]   ;;  %v4030_v25 = vld [vmem:[%s5063_s6 + $0xcc] ss:$16 sps:$4 sm:$0xff]  }
 0x4c0   : > { %3778 = vmatmul.mubr.bf16.vlgmr.msra.gmra.mrb[28].mxu1 %v1634_v27  ;;  %v4028_v26 = vld [vmem:[%s5063_s6 + $0xc8] ss:$16 sps:$4 sm:$0xff]   ;;  %v4033_v27 = vld [vmem:[%s5063_s6 + $0xe4] ss:$16 sps:$4 sm:$0xff]   ;;  %v4036_v29 = vld [vmem:[%s5063_s6 + $0xec] ss:$16 sps:$4 sm:$0xff]  }
 0x4c1   : > { %3814 = vmatpush3.bf16.msra.mxu1 %v4300_v41  ;;  %3821 = vmatprep.mubr.msk.bf16.mxu1 %vm4150_vm0, %v4149_v24  ;;  %v4034_v30 = vld [vmem:[%s5063_s6 + $0xe8] ss:$16 sps:$4 sm:$0xff]  }
 0x4c2   : > { %3815 = vmatprep.subr.bf16.mxu1 %v4149_v24 }
 0x4c5   : > { %3816 = vmatpush3.bf16.msra.mxu1 %v4304_v52 }
 0x4c6   : > { %3817 = vmatprep.subr.bf16.mxu1 %v4149_v24 }
 0x4c9   : > { %3818 = vmatpush3.bf16.msra.mxu1 %v4308_v63  ;;  %v3982_v63 = vld [vmem:[%s5061_s4 + $0x208] sm:$0xff]  }
 0x4ca   : > { %3819 = vmatprep.subr.bf16.mxu1 %v4149_v24 }
 0x4cb   : > { %v1788_v31 = vpop.f32.mrb[40].mxu0 }
 0x4cc   : > { %v3791_v32 = vpop.f32.mrb[41].mxu0 }
 0x4cd   : > { %3820 = vmatpush3.bf16.msra.mxu1 %v4312_v8  ;;  %v1791_v41 = vpop.f32.mrb[42].mxu0  ;;  %v3983_v8 = vld [vmem:[%s5061_s4 + $0x210] sm:$0xff]   ;;  %v4151_v32 = vmov 0  }
 0x4ce   : > { %v1795_v52 = vpack.c.bf16 %v1791_v41, %v1788_v31  ;;  %3825 = vmatprep.subr.bf16.mxu1 %v4149_v24  ;;  %v3792_v35 = vpop.f32.mrb[43].mxu0  ;;  %v4133_v31 = vld [vmem:[%s4248_s18 + $0x4] ss:$8 sps:$4 sm:$0xff]  }
 0x4d0   : > { %3822 = vmatmul.mubr.msk.bf16.vlgmr.msra.gmra.mrb[32].mxu1 %vm628_vm1, %v3980_v33  ;;  %3810 = vmatmul.mubr.bf16.vlgmr.msra.gmra.mrb[44].mxu0 %v1795_v52  ;;  %v4042_v33 = vld [vmem:[%s5065_s8 + $0xc] ss:$16 sps:$4 sm:$0xff]  }
 0x4d1   : > { %3826 = vmatpush3.bf16.msra.mxu1 %v3981_v34  ;;  %3841 = vmatprep.mubr.msk.bf16.mxu1 %vm4150_vm0, %v4149_v24  ;;  %v3281_v34 = vld [vmem:[%s5062_s5] ss:$0 sm:$0xff] }
 0x4d2   : > { %3827 = vmatprep.subr.bf16.mxu1 %v4149_v24  ;;  %2292 = vmatpush1.bf16.msra.mxu0 %v3989_v42 }
 0x4d3   : > { %2323 = vmatprep.mubr.bf16.mxu0 %v4151_v32 }
 0x4d5   : > { %3828 = vmatpush3.bf16.msra.mxu1 %v3982_v63 }
 0x4d6   : > { %3829 = vmatprep.subr.bf16.mxu1 %v4149_v24 }
 0x4d9   : > { %3830 = vmatpush3.bf16.msra.mxu1 %v3983_v8 }
 0x4da   : > { %3831 = vmatprep.subr.bf16.mxu1 %v4149_v24 }
 0x4dd   : > { %3832 = vmatpush3.bf16.msra.mxu1 %v3984_v36 }
 0x4de   : > { %3833 = vmatprep.subr.bf16.mxu1 %v4149_v24 }
 0x4e1   : > { %3834 = vmatpush3.bf16.msra.mxu1 %v3985_v37 }
 0x4e2   : > { %3835 = vmatprep.subr.bf16.mxu1 %v4149_v24 }
 0x4e5   : > { %3836 = vmatpush3.bf16.msra.mxu1 %v3986_v38 }
 0x4e6   : > { %3837 = vmatprep.subr.bf16.mxu1 %v4149_v24 }
 0x4e9   : > { %3838 = vmatpush3.bf16.msra.mxu1 %v3987_v39 }
 0x4ea   : > { %3839 = vmatprep.subr.bf16.mxu1 %v4149_v24  ;;  %v3997_v24 = vld [vmem:[%s5063_s6 + $0x24] ss:$16 sps:$4 sm:$0xff]  }
 0x4eb   : > { %2293 = vmatprep.subr.bf16.mxu0 %v3997_v24  ;;  %v4134_v24 = vld [vmem:[%s4248_s18] ss:$8 sps:$4 sm:$0xff]  }
 0x4ec   : > { %2294 = vmatpush1.bf16.msra.mxu0 %v3995_v45  ;;  %v4135_v45 = vld [vmem:[%s4248_s18 + $0x14] ss:$8 sps:$4 sm:$0xff]  }
 0x4ed   : > { %3840 = vmatpush3.bf16.msra.mxu1 %v3988_v40  ;;  %2295 = vmatprep.subr.bf16.mxu0 %v4003_v46  ;;  %v4046_v46 = vld [vmem:[%s5065_s8 + $0x28] ss:$16 sps:$4 sm:$0xff]  }
 0x4ee   : > { %2334 = vmatprep.subr.bf16.mxu1 %v3994_v44  ;;  %v4048_v44 = vld [vmem:[%s5065_s8 + $0x2c] ss:$16 sps:$4 sm:$0xff]  }
 0x4f0   : > { %2296 = vmatpush1.bf16.msra.mxu0 %v4001_v47  ;;  %v4054_v47 = vld [vmem:[%s5065_s8 + $0x4c] ss:$16 sps:$4 sm:$0xff]  }
 0x4f1   : > { %2297 = vmatprep.subr.bf16.mxu0 %v4009_v48  ;;  %v4136_v48 = vld [vmem:[%s4248_s18 + $0x10] ss:$8 sps:$4 sm:$0xff]  }
 0x4f4   : > { %2298 = vmatpush1.bf16.msra.mxu0 %v4007_v49  ;;  %v4137_v49 = vld [vmem:[%s4248_s18 + $0x24] ss:$8 sps:$4 sm:$0xff]  }
 0x4f5   : > { %2299 = vmatprep.subr.bf16.mxu0 %v4015_v50  ;;  %v4052_v50 = vld [vmem:[%s5065_s8 + $0x48] ss:$16 sps:$4 sm:$0xff]  }
 0x4f8   : > { %2300 = vmatpush1.bf16.msra.mxu0 %v4013_v51  ;;  %v4060_v51 = vld [vmem:[%s5065_s8 + $0x6c] ss:$16 sps:$4 sm:$0xff]  }
 0x4f9   : > { %2301 = vmatprep.subr.bf16.mxu0 %v4021_v53  ;;  %v4138_v53 = vld [vmem:[%s4248_s18 + $0x20] ss:$8 sps:$4 sm:$0xff]  }
 0x4fc   : > { %2302 = vmatpush1.bf16.msra.mxu0 %v4019_v54  ;;  %v4139_v54 = vld [vmem:[%s4248_s18 + $0x34] ss:$8 sps:$4 sm:$0xff]  }
 0x4fd   : > { %2303 = vmatprep.subr.bf16.mxu0 %v4027_v22  ;;  %v4081_v22 = vld [vmem:[%s5065_s8 + $0xe4] ss:$16 sps:$4 sm:$0xff]  }
 0x500   : > { %2304 = vmatpush1.bf16.msra.mxu0 %v4025_v23  ;;  %v4100_v23 = vld [vmem:[%s5065_s8 + $0x148] ss:$16 sps:$4 sm:$0xff]  }
 0x501   : > { %2305 = vmatprep.subr.bf16.mxu0 %v4033_v27  ;;  %v4087_v27 = vld [vmem:[%s5065_s8 + $0x104] ss:$16 sps:$4 sm:$0xff]  }
 0x593   : > { %v1734_v55 = vpop.f32.mrb[28].mxu1 }
 0x594   : > { %v1741_v56 = vadd.f32 %v1734_v55, %v4690_v21  ;;  %v3779_v57 = vpop.f32.mrb[29].mxu1  ;;  %v4022_v21 = vld [vmem:[%s5063_s6 + $0xa8] ss:$16 sps:$4 sm:$0xff]   ;;  %v4039_v55 = vld [vmem:[%s5065_s8 + $0x4] ss:$16 sps:$4 sm:$0xff]  }
 0x595   : > { %v1737_v58 = vpop.f32.mrb[30].mxu1  ;;  %v4066_v57 = vld [vmem:[%s5065_s8 + $0x8c] ss:$16 sps:$4 sm:$0xff]  }
 0x596   : > { %v1742_v59 = vadd.f32 %v1737_v58, %v4692_v28  ;;  %v3780_v60 = vpop.f32.mrb[31].mxu1  ;;  %v4031_v28 = vld [vmem:[%s5063_s6 + $0xe0] ss:$16 sps:$4 sm:$0xff]  }
 0x597   : > { %2306 = vmatpush1.bf16.msra.mxu0 %v4031_v28  ;;  %v4140_v58 = vld [vmem:[%s4248_s18 + $0x30] ss:$8 sps:$4 sm:$0xff]   ;;  %v4045_v60 = vld [vmem:[%s5065_s8 + $0x24] ss:$16 sps:$4 sm:$0xff]  }
 0x598   : > { %2377 = vmatprep.subr.bf16.mxu0 %v4133_v31  ;;  %v4106_v28 = vld [vmem:[%s5065_s8 + $0x168] ss:$16 sps:$4 sm:$0xff]   ;;  %v4093_v31 = vld [vmem:[%s5065_s8 + $0x124] ss:$16 sps:$4 sm:$0xff]  }
 0x5a3   : > { %v1949_v61 = vpop.f32.mrb[32].mxu1  ;;  %v1895_v62 = vpop.f32.mrb[44].mxu0 }
 0x5a4   : > { %v1902_v0 = vadd.f32 %v1895_v62, %v1741_v56  ;;  %v3823_v1 = vpop.f32.mrb[33].mxu1  ;;  %v3811_v2 = vpop.f32.mrb[45].mxu0  ;;  %v4058_v56 = vld [vmem:[%s5065_s8 + $0x68] ss:$16 sps:$4 sm:$0xff]   ;;  %v4072_v62 = vld [vmem:[%s5065_s8 + $0xac] ss:$16 sps:$4 sm:$0xff]  }
 0x5a5   : > { %v1952_v3 = vpop.f32.mrb[34].mxu1  ;;  %v1898_v4 = vpop.f32.mrb[46].mxu0  ;;  %v4051_v1 = vld [vmem:[%s5065_s8 + $0x44] ss:$16 sps:$4 sm:$0xff]   ;;  %v4070_v2 = vld [vmem:[%s5065_s8 + $0xa8] ss:$16 sps:$4 sm:$0xff]  }
 0x5a6   : > { %v1956_v6 = vpack.c.bf16 %v1952_v3, %v1949_v61  ;;  %v1903_v7 = vadd.f32 %v1898_v4, %v1742_v59  ;;  %v3824_v9 = vpop.f32.mrb[35].mxu1  ;;  %v3812_v12 = vpop.f32.mrb[47].mxu0  ;;  %v4037_v59 = vld [vmem:[%s5065_s8] ss:$16 sps:$4 sm:$0xff]   ;;  %v4064_v61 = vld [vmem:[%s5065_s8 + $0x88] ss:$16 sps:$4 sm:$0xff]  }
 0x5a7   : > { %v4049_v3 = vld [vmem:[%s5065_s8 + $0x40] ss:$16 sps:$4 sm:$0xff]   ;;  %v4057_v4 = vld [vmem:[%s5065_s8 + $0x64] ss:$16 sps:$4 sm:$0xff]   ;;  %v4090_v12 = vld [vmem:[%s5065_s8 + $0x10c] ss:$16 sps:$4 sm:$0xff]  }
 0x5a8   : > { %3842 = vmatmul.mubr.bf16.vlgmr.msra.gmra.mrb[36].mxu1 %v1956_v6  ;;  %v4084_v6 = vld [vmem:[%s5065_s8 + $0xec] ss:$16 sps:$4 sm:$0xff]   ;;  %v4063_v9 = vld [vmem:[%s5065_s8 + $0x84] ss:$16 sps:$4 sm:$0xff]  }
 0x5a9   : > { %2335 = vmatpush1.bf16.msra.mxu1 %v3992_v5  ;;  %2366 = vmatprep.mubr.bf16.mxu1 %v4151_v32  ;;  %v4076_v5 = vld [vmem:[%s5065_s8 + $0xc8] ss:$16 sps:$4 sm:$0xff]  }
 0x5aa   : > { %2336 = vmatprep.subr.bf16.mxu1 %v4000_v11  ;;  %v4082_v11 = vld [vmem:[%s5065_s8 + $0xe8] ss:$16 sps:$4 sm:$0xff]  }
 0x5ad   : > { %2337 = vmatpush1.bf16.msra.mxu1 %v3998_v13  ;;  %v4061_v13 = vld [vmem:[%s5065_s8 + $0x80] ss:$16 sps:$4 sm:$0xff]  }
 0x5ae   : > { %2338 = vmatprep.subr.bf16.mxu1 %v4006_v14  ;;  %v4069_v14 = vld [vmem:[%s5065_s8 + $0xa4] ss:$16 sps:$4 sm:$0xff]  }
 0x5b1   : > { %2339 = vmatpush1.bf16.msra.mxu1 %v4004_v15  ;;  %v4088_v15 = vld [vmem:[%s5065_s8 + $0x108] ss:$16 sps:$4 sm:$0xff]  }
 0x5b2   : > { %2340 = vmatprep.subr.bf16.mxu1 %v4012_v16  ;;  %v4096_v16 = vld [vmem:[%s5065_s8 + $0x12c] ss:$16 sps:$4 sm:$0xff]  }
 0x5b5   : > { %2341 = vmatpush1.bf16.msra.mxu1 %v4010_v17  ;;  %v4067_v17 = vld [vmem:[%s5065_s8 + $0xa0] ss:$16 sps:$4 sm:$0xff]  }
 0x5b6   : > { %2342 = vmatprep.subr.bf16.mxu1 %v4018_v18  ;;  %v4075_v18 = vld [vmem:[%s5065_s8 + $0xc4] ss:$16 sps:$4 sm:$0xff]  }
 0x5b9   : > { %2343 = vmatpush1.bf16.msra.mxu1 %v4016_v19  ;;  %v4094_v19 = vld [vmem:[%s5065_s8 + $0x128] ss:$16 sps:$4 sm:$0xff]  }
 0x5ba   : > { %2344 = vmatprep.subr.bf16.mxu1 %v4024_v20  ;;  %v4102_v20 = vld [vmem:[%s5065_s8 + $0x14c] ss:$16 sps:$4 sm:$0xff]  }
 0x5bd   : > { %2345 = vmatpush1.bf16.msra.mxu1 %v4022_v21  ;;  %v4073_v21 = vld [vmem:[%s5065_s8 + $0xc0] ss:$16 sps:$4 sm:$0xff]  }
 0x5be   : > { %2346 = vmatprep.subr.bf16.mxu1 %v4030_v25  ;;  %v4108_v25 = vld [vmem:[%s5065_s8 + $0x16c] ss:$16 sps:$4 sm:$0xff]  }
 0x5c1   : > { %2347 = vmatpush1.bf16.msra.mxu1 %v4028_v26  ;;  %v4079_v26 = vld [vmem:[%s5065_s8 + $0xe0] ss:$16 sps:$4 sm:$0xff]  }
 0x5c2   : > { %2348 = vmatprep.subr.bf16.mxu1 %v4036_v29  ;;  %v4114_v29 = vld [vmem:[%s5065_s8 + $0x18c] ss:$16 sps:$4 sm:$0xff]  }
 0x5c5   : > { %2349 = vmatpush1.bf16.msra.mxu1 %v4034_v30  ;;  %v4085_v30 = vld [vmem:[%s5065_s8 + $0x100] ss:$16 sps:$4 sm:$0xff]  }
 0x5c6   : > { %2871 = vmatprep.subr.bf16.mxu1 %v4042_v33  ;;  %v4120_v33 = vld [vmem:[%s5065_s8 + $0x1ac] ss:$16 sps:$4 sm:$0xff]  }
 0x67b   : > { %v2056_v41 = vpop.f32.mrb[36].mxu1 }
 0x67c   : > { %v2063_v52 = vadd.f32 %v2056_v41, %v1902_v0  ;;  %v3843_v35 = vpop.f32.mrb[37].mxu1  ;;  %v4043_v0 = vld [vmem:[%s5065_s8 + $0x20] ss:$16 sps:$4 sm:$0xff]  }
 0x67d   : > { %v2059_v63 = vpop.f32.mrb[38].mxu1  ;;  %v4091_v41 = vld [vmem:[%s5065_s8 + $0x120] ss:$16 sps:$4 sm:$0xff]   ;;  %v4126_v35 = vld [vmem:[%s5065_s8 + $0x1cc] ss:$16 sps:$4 sm:$0xff]  }
 0x67e   : > { %v2072_v8 = vadd.f32 %v3281_v34, %v2063_v52  ;;  %v2064_v36 = vadd.f32 %v2059_v63, %v1903_v7  ;;  %v3844_v37 = vpop.f32.mrb[39].mxu1  ;;  %v4055_v7 = vld [vmem:[%s5065_s8 + $0x60] ss:$16 sps:$4 sm:$0xff]   ;;  %v4118_v52 = vld [vmem:[%s5065_s8 + $0x1a8] ss:$16 sps:$4 sm:$0xff]  }
 0x67f   : > { %v4097_v63 = vld [vmem:[%s5065_s8 + $0x140] ss:$16 sps:$4 sm:$0xff]  }
 0x680   : > { %v2073_v38 = vadd.f32 %v3281_v34, %v2064_v36  ;;  %v2074_v39 = vmax.f32 %v2072_v8, 0.0  ;;  %v4099_v34 = vld [vmem:[%s5065_s8 + $0x144] ss:$16 sps:$4 sm:$0xff]   ;;  %v4124_v36 = vld [vmem:[%s5065_s8 + $0x1c8] ss:$16 sps:$4 sm:$0xff]  }
 0x681   : > { %v4105_v8 = vld [vmem:[%s5065_s8 + $0x164] ss:$16 sps:$4 sm:$0xff]   ;;  %v4103_v37 = vld [vmem:[%s5065_s8 + $0x160] ss:$16 sps:$4 sm:$0xff]  }
 0x682   : > { %v2075_v40 = vmax.f32 %v2073_v38, 0.0  ;;  %v4111_v38 = vld [vmem:[%s5065_s8 + $0x184] ss:$16 sps:$4 sm:$0xff]  }
 0x684   : > { %v2076_v42 = vpack.c.bf16 %v2075_v40, %v2074_v39  ;;  %v4109_v39 = vld [vmem:[%s5065_s8 + $0x180] ss:$16 sps:$4 sm:$0xff]   ;;  %v4117_v40 = vld [vmem:[%s5065_s8 + $0x1a4] ss:$16 sps:$4 sm:$0xff]  }
 0x686   : > { %2324 = vmatmul.mubr.bf16.vlgmr.msra.gmra.mrb[48].mxu0 %v2076_v42  ;;  %2367 = vmatmul.mubr.bf16.vlgmr.msra.gmra.mrb[40].mxu1 %v2076_v42  ;;  %v4115_v42 = vld [vmem:[%s5065_s8 + $0x1a0] ss:$16 sps:$4 sm:$0xff]  }
 0x687   : > { %2378 = vmatpush1.bf16.msra.mxu0 %v4134_v24  ;;  %2409 = vmatprep.mubr.bf16.mxu0 %v4151_v32  ;;  %v4112_v32 = vld [vmem:[%s5065_s8 + $0x188] ss:$16 sps:$4 sm:$0xff]   ;;  %v4129_v24 = vld [vmem:[%s5065_s8 + $0x1e4] ss:$16 sps:$4 sm:$0xff]  }
 0x688   : > { %2379 = vmatprep.subr.bf16.mxu0 %v4135_v45  ;;  %2872 = vmatpush1.bf16.msra.mxu1 %v4040_v43  ;;  %v4123_v43 = vld [vmem:[%s5065_s8 + $0x1c4] ss:$16 sps:$4 sm:$0xff]   ;;  %v4132_v45 = vld [vmem:[%s5065_s8 + $0x1ec] ss:$16 sps:$4 sm:$0xff]  }
 0x689   : > { %2873 = vmatprep.subr.bf16.mxu1 %v4048_v44  ;;  %v4121_v44 = vld [vmem:[%s5065_s8 + $0x1c0] ss:$16 sps:$4 sm:$0xff]  }
 0x68b   : > { %2380 = vmatpush1.bf16.msra.mxu0 %v4136_v48 }
 0x68c   : > { %2381 = vmatprep.subr.bf16.mxu0 %v4137_v49  ;;  %2874 = vmatpush1.bf16.msra.mxu1 %v4046_v46  ;;  %v4127_v46 = vld [vmem:[%s5065_s8 + $0x1e0] ss:$16 sps:$4 sm:$0xff]  }
 0x68d   : > { %2875 = vmatprep.subr.bf16.mxu1 %v4054_v47  ;;  %v4130_v47 = vld [vmem:[%s5065_s8 + $0x1e8] ss:$16 sps:$4 sm:$0xff]  }
 0x68f   : > { %2382 = vmatpush1.bf16.msra.mxu0 %v4138_v53 }
 0x690   : > { %2383 = vmatprep.subr.bf16.mxu0 %v4139_v54  ;;  %2876 = vmatpush1.bf16.msra.mxu1 %v4052_v50 }
 0x691   : > { %2877 = vmatprep.subr.bf16.mxu1 %v4060_v51 }
 0x693   : > { %2384 = vmatpush1.bf16.msra.mxu0 %v4140_v58 }
 0x694   : > { %2828 = vmatprep.subr.bf16.mxu0 %v4039_v55  ;;  %2878 = vmatpush1.bf16.msra.mxu1 %v4058_v56  ;;  %v2111_v55 = vlaneseq }
 0x695   : > { %2879 = vmatprep.subr.bf16.mxu1 %v4066_v57 }
 0x696   : > { %3314 = vmatmul.mubr.msk.bf16.vlgmr.msra.gmra.mrb[52].mxu0 %vm628_vm1, %v4499_v10  ;;  %v4078_v10 = vld [vmem:[%s5065_s8 + $0xcc] ss:$16 sps:$4 sm:$0xff]   ;;  %v2112_v56 = vshrl.u32 %v2111_v55, 7 }
 0x697   : > { %2829 = vmatpush1.bf16.msra.mxu0 %v4037_v59  ;;  %v2109_v59 = vld [vmem:[%s5064_s7] sm:$0xf] }
 0x698   : > { %2830 = vmatprep.subr.bf16.mxu0 %v4045_v60  ;;  %2880 = vmatpush1.bf16.msra.mxu1 %v4064_v61  ;;  %v2113_v57 = vsub.s32 0, %v2112_v56  ;;  %v2121_v58 = vsub.s32 2, %v2112_v56  ;;  %v2486_v60 = vld [vmem:[%s5066_s9] sm:$0xf]  ;;  %v2117_v61 = vsub.s32 1, %v2112_v56 }
 0x699   : > { %2881 = vmatprep.subr.bf16.mxu1 %v4072_v62  ;;  %v2125_v62 = vsub.s32 3, %v2112_v56 }
 0x69b   : > { %2831 = vmatpush1.bf16.msra.mxu0 %v4043_v0  ;;  %v2114_v0 = vrot.slane %v2109_v59, %v2113_v57 }
 0x69c   : > { %2832 = vmatprep.subr.bf16.mxu0 %v4051_v1  ;;  %2882 = vmatpush1.bf16.msra.mxu1 %v4070_v2  ;;  %v2491_v1 = vrot.slane %v2486_v60, %v2113_v57  ;;  %v2122_v2 = vrot.slane %v2109_v59, %v2121_v58 }
 0x69d   : > { %2883 = vmatprep.subr.bf16.mxu1 %v4078_v10  ;;  %v2499_v10 = vrot.slane %v2486_v60, %v2121_v58 }
 0x69f   : > { %2833 = vmatpush1.bf16.msra.mxu0 %v4049_v3  ;;  %v2118_v3 = vrot.slane %v2109_v59, %v2117_v61 }
 0x6a0   : > { %2834 = vmatprep.subr.bf16.mxu0 %v4057_v4  ;;  %2884 = vmatpush1.bf16.msra.mxu1 %v4076_v5  ;;  %v2495_v4 = vrot.slane %v2486_v60, %v2117_v61  ;;  %v2126_v5 = vrot.slane %v2109_v59, %v2125_v62 }
 0x6a1   : > { %2885 = vmatprep.subr.bf16.mxu1 %v4084_v6  ;;  %v2503_v6 = vrot.slane %v2486_v60, %v2125_v62 }
 0x6a3   : > { %2835 = vmatpush1.bf16.msra.mxu0 %v4055_v7  ;;  %v3845_v7 = vadd.f32 %v2491_v1, %v2114_v0 }
 0x6a4   : > { %2836 = vmatprep.subr.bf16.mxu0 %v4063_v9  ;;  %2886 = vmatpush1.bf16.msra.mxu1 %v4082_v11  ;;  %v3853_v9 = vadd.f32 %v2499_v10, %v2122_v2  ;;  %v3847_v11 = vadd.f32 %v2495_v4, %v2118_v3 }
 0x6a5   : > { %2887 = vmatprep.subr.bf16.mxu1 %v4090_v12  ;;  %v3855_v12 = vadd.f32 %v2503_v6, %v2126_v5 }
 0x6a7   : > { %2837 = vmatpush1.bf16.msra.mxu0 %v4061_v13 }
 0x6a8   : > { %2838 = vmatprep.subr.bf16.mxu0 %v4069_v14  ;;  %2888 = vmatpush1.bf16.msra.mxu1 %v4088_v15 }
 0x6a9   : > { %2889 = vmatprep.subr.bf16.mxu1 %v4096_v16 }
 0x6ab   : > { %2839 = vmatpush1.bf16.msra.mxu0 %v4067_v17 }
 0x6ac   : > { %2840 = vmatprep.subr.bf16.mxu0 %v4075_v18  ;;  %2890 = vmatpush1.bf16.msra.mxu1 %v4094_v19 }
 0x6ad   : > { %2891 = vmatprep.subr.bf16.mxu1 %v4102_v20 }
 0x6af   : > { %2841 = vmatpush1.bf16.msra.mxu0 %v4073_v21 }
 0x6b0   : > { %2842 = vmatprep.subr.bf16.mxu0 %v4081_v22  ;;  %2892 = vmatpush1.bf16.msra.mxu1 %v4100_v23 }
 0x6b1   : > { %2893 = vmatprep.subr.bf16.mxu1 %v4108_v25 }
 0x6b3   : > { %2843 = vmatpush1.bf16.msra.mxu0 %v4079_v26 }
 0x6b4   : > { %2844 = vmatprep.subr.bf16.mxu0 %v4087_v27  ;;  %2894 = vmatpush1.bf16.msra.mxu1 %v4106_v28 }
 0x6b5   : > { %2895 = vmatprep.subr.bf16.mxu1 %v4114_v29 }
 0x6b7   : > { %2845 = vmatpush1.bf16.msra.mxu0 %v4085_v30 }
 0x6b8   : > { %2846 = vmatprep.subr.bf16.mxu0 %v4093_v31  ;;  %2896 = vmatpush1.bf16.msra.mxu1 %v4112_v32 }
 0x6b9   : > { %2897 = vmatprep.subr.bf16.mxu1 %v4120_v33 }
 0x6bb   : > { %2847 = vmatpush1.bf16.msra.mxu0 %v4091_v41 }
 0x6bc   : > { %2848 = vmatprep.subr.bf16.mxu0 %v4099_v34  ;;  %2898 = vmatpush1.bf16.msra.mxu1 %v4118_v52 }
 0x6bd   : > { %2899 = vmatprep.subr.bf16.mxu1 %v4126_v35 }
 0x6bf   : > { %2849 = vmatpush1.bf16.msra.mxu0 %v4097_v63 }
 0x6c0   : > { %2850 = vmatprep.subr.bf16.mxu0 %v4105_v8  ;;  %2900 = vmatpush1.bf16.msra.mxu1 %v4124_v36 }
 0x6c1   : > { %2901 = vmatprep.subr.bf16.mxu1 %v4132_v45 }
 0x6c3   : > { %2851 = vmatpush1.bf16.msra.mxu0 %v4103_v37 }
 0x6c4   : > { %2852 = vmatprep.subr.bf16.mxu0 %v4111_v38  ;;  %2902 = vmatpush1.bf16.msra.mxu1 %v4130_v47 }
 0x6c7   : > { %2853 = vmatpush1.bf16.msra.mxu0 %v4109_v39 }
 0x6c8   : > { %2854 = vmatprep.subr.bf16.mxu0 %v4117_v40 }
 0x6cb   : > { %2855 = vmatpush1.bf16.msra.mxu0 %v4115_v42 }
 0x6cc   : > { %2856 = vmatprep.subr.bf16.mxu0 %v4123_v43 }
 0x6cf   : > { %2857 = vmatpush1.bf16.msra.mxu0 %v4121_v44 }
 0x6d0   : > { %2858 = vmatprep.subr.bf16.mxu0 %v4129_v24 }
 0x6d3   : > { %2859 = vmatpush1.bf16.msra.mxu0 %v4127_v46 }
 0x769   : > { %v2411_v48 = vpop.f32.mrb[52].mxu0 }
 0x76a   : > { %v2413_v49 = vpop.f32.mrb[53].mxu0 }
 0x76b   : > { %v2415_v50 = vpop.f32.mrb[54].mxu0 }
 0x76c   : > { %v2420_v51 = vpack.c.bf16 %v2415_v50, %v2411_v48  ;;  %v2417_v53 = vpop.f32.mrb[55].mxu0 }
 0x76d   : > { %v2421_v54 = vpack.c.bf16 %v2417_v53, %v2413_v49 }
 0x76f   : > { %2860 = vmatprep.mubr.bf16.mxu0 %v2421_v54  ;;  %2903 = vmatprep.mubr.bf16.mxu1 %v2421_v54 }
 0x770   : > { %2861 = vmatmul.mubr.bf16.vlgmr.msra.gmra.mrb[48].mxu0 %v2420_v51  ;;  %2904 = vmatmul.mubr.bf16.vlgmr.msra.gmra.mrb[40].mxu1 %v2420_v51 }
 0x843   : > { %v2862_v13 = vpop.f32.mrb[48].mxu0  ;;  %v2905_v14 = vpop.f32.mrb[40].mxu1 }
 0x844   : > { %v3846_v15 = vadd.f32 %v3845_v7, %v2862_v13  ;;  %v3854_v16 = vadd.f32 %v3853_v9, %v2905_v14  ;;  %v2864_v17 = vpop.f32.mrb[49].mxu0  ;;  %v2907_v18 = vpop.f32.mrb[41].mxu1 }
 0x845   : > { %v3848_v19 = vadd.f32 %v3847_v11, %v2864_v17  ;;  %v3856_v20 = vadd.f32 %v3855_v12, %v2907_v18  ;;  %v2866_v21 = vpop.f32.mrb[50].mxu0  ;;  %v2909_v22 = vpop.f32.mrb[42].mxu1 }
 0x846   : > { %v2922_v23 = vmax.f32 %v3846_v15, 0.0  ;;  %v2924_v25 = vmax.f32 %v3854_v16, 0.0  ;;  %v3850_v26 = vadd.f32 %v3845_v7, %v2866_v21  ;;  %v3858_v27 = vadd.f32 %v3853_v9, %v2909_v22  ;;  %v2868_v28 = vpop.f32.mrb[51].mxu0  ;;  %v2911_v29 = vpop.f32.mrb[43].mxu1 }
 0x847   : > { %v2923_v30 = vmax.f32 %v3848_v19, 0.0  ;;  %v2925_v31 = vmax.f32 %v3856_v20, 0.0  ;;  %v3852_v32 = vadd.f32 %v3847_v11, %v2868_v28  ;;  %v3860_v33 = vadd.f32 %v3855_v12, %v2911_v29 }
 0x848   : > { %v2926_v41 = vmax.f32 %v3850_v26, 0.0  ;;  %v2928_v34 = vmax.f32 %v3858_v27, 0.0 }
 0x849   : > { %v3387_v52 = vpack.c.bf16 %v2923_v30, %v2922_v23  ;;  %v3388_v35 = vpack.c.bf16 %v2925_v31, %v2924_v25  ;;  %v2927_v63 = vmax.f32 %v3852_v32, 0.0  ;;  %v2929_v8 = vmax.f32 %v3860_v33, 0.0 }
 0x84b   : > { %2954 = vst [vmem:[%s359_s17] sm:$0xff] %v3387_v52  ;;  %2955 = vst [vmem:[%s359_s17 + $0x8] sm:$0xff] %v3388_v35  ;;  %v3389_v36 = vpack.c.bf16 %v2927_v63, %v2926_v41  ;;  %v3390_v37 = vpack.c.bf16 %v2929_v8, %v2928_v34 }
 0x84d   : > { %2956 = vst [vmem:[%s359_s17 + $0x10] sm:$0xff] %v3389_v36  ;;  %2957 = vst [vmem:[%s359_s17 + $0x18] sm:$0xff] %v3390_v37 }
 0x84e PF: > { %s20_s13 = sadd.s32 1, %s4147_s13  }
 0x84f   : > { %p17_p4 = scmp.ge.s32.totalorder %s20_s13, 4  }
 0x851   :  { %19 = sbr.rel (!%p17_p4) target bundleno = 1 (0x1), region = 106 }

// kernel: vae_recon_encoder_forward.15
= control target key start
LH: loop header
LB: loop body
LE: loop exit
PB: predicated region body
PF: predicated region fallthrough
CT: control target
= control target key end

     0   :  { %s3507_s27 = smov 0   ;;  %s4150_s0 = inlined_call_operand.vmem [shape: bf16[2,16,512], index: 0, kind: input, shape index: {}]   ;;  %s4151_s1 = inlined_call_operand.vmem [shape: bf16[9,16,16], index: 1, kind: input, shape index: {}]   ;;  %s4152_s2 = inlined_call_operand.vmem [shape: bf16[512,128], index: 2, kind: input, shape index: {}]   ;;  %s4153_s3 = inlined_call_operand.vmem [shape: f32[1,128], index: 3, kind: input, shape index: {}, may-alias: {3,5}]   ;;  %s4154_s4 = inlined_call_operand.vmem [shape: bf16[9,128,128], index: 4, kind: input, shape index: {}]   ;;  %s4155_s5 = inlined_call_operand.vmem [shape: f32[1,128], index: 5, kind: input, shape index: {}, may-alias: {3,5}]   ;;  %s4156_s6 = inlined_call_operand.vmem [shape: bf16[128,512], index: 6, kind: input, shape index: {}]   ;;  %s4157_s7 = inlined_call_operand.vmem [shape: f32[1,512], index: 7, kind: input, shape index: {}]   ;;  %s4158_s8 = inlined_call_operand.vmem [shape: f32[2,1,512], index: 8, kind: output, shape index: {}]  }
   0x1 LB: > { %s2577_s28 = sadd.s32 4294967295, %s3456_s27   ;;  %p2581_p0 = scmp.ge.s32.totalorder %s3456_s27, 1  ;;  %s3456_s27 = sphi %s3507_s27, %s18_s27  }
   0x2   : > { %p262_p1 = scmp.lt.s32.totalorder %s3456_s27, 3 }
   0x4   : > { %p263_p2 = pnand %p2581_p0, %p262_p1 }
   0x5   : > { %v3281_v0 = vld [vmem:[%s4152_s2 + $0x40] sm:$0xff] (!%p263_p2)   ;;  %v3285_v4 = vld [vmem:[%s4152_s2 + $0x48] sm:$0xff] (!%p263_p2)   ;;  %v3289_v8 = vld [vmem:[%s4152_s2 + $0x50] sm:$0xff] (!%p263_p2)   ;;  %p295_p3 = scmp.lt.s32.totalorder (!%p263_p2), %s2577_s28, 1  ;;  %v3458_v40 = vmov (!%p263_p2), 0.0   ;;  %vm3459_vm0 = vmmov (!%p263_p2), 0  }
   0x6   : > { %266 = sbr.rel (%p263_p2) target bundleno = 1855 (0x73f), region = 52  ;;  %v3282_v1 = vld [vmem:[%s4152_s2 + $0xc0] sm:$0xff] (!%p263_p2)   ;;  %2892 = vmatprep.subr.bf16.mxu0 (!%p263_p2), %v3281_v0  ;;  %v3286_v5 = vld [vmem:[%s4152_s2 + $0xc8] sm:$0xff] (!%p263_p2)   ;;  %v3290_v9 = vld [vmem:[%s4152_s2 + $0xd0] sm:$0xff] (!%p263_p2)   ;;  %vm684_vm1 = vcmask (!%p263_p2), 130048  }
   0x7   : > { %v3283_v2 = vld [vmem:[%s4152_s2] sm:$0xff] (!%p263_p2)   ;;  %2914 = vmatprep.subr.bf16.mxu1 (!%p263_p2), %v3282_v1  ;;  %v3287_v6 = vld [vmem:[%s4152_s2 + $0x8] sm:$0xff] (!%p263_p2)   ;;  %v3291_v10 = vld [vmem:[%s4152_s2 + $0x10] sm:$0xff] (!%p263_p2)  }
   0x8   : > { %v3284_v3 = vld [vmem:[%s4152_s2 + $0x80] sm:$0xff] (!%p263_p2)   ;;  %2893 = vmatpush3.bf16.msra.mxu0 (!%p263_p2), %v3283_v2  ;;  %v3288_v7 = vld [vmem:[%s4152_s2 + $0x88] sm:$0xff] (!%p263_p2)   ;;  %v3292_v11 = vld [vmem:[%s4152_s2 + $0x90] sm:$0xff] (!%p263_p2)  }
   0x9   : > { %2915 = vmatpush3.bf16.msra.mxu1 (!%p263_p2), %v3284_v3  ;;  %2894 = vmatprep.subr.bf16.mxu0 (!%p263_p2), %v3285_v4  ;;  %v3293_v12 = vld [vmem:[%s4152_s2 + $0x58] sm:$0xff] (!%p263_p2)   ;;  %v3297_v16 = vld [vmem:[%s4152_s2 + $0x60] sm:$0xff] (!%p263_p2)   ;;  %v3301_v20 = vld [vmem:[%s4152_s2 + $0x68] sm:$0xff] (!%p263_p2)  }
   0xa   : > { %2916 = vmatprep.subr.bf16.mxu1 (!%p263_p2), %v3286_v5  ;;  %v3294_v13 = vld [vmem:[%s4152_s2 + $0xd8] sm:$0xff] (!%p263_p2)   ;;  %v3298_v17 = vld [vmem:[%s4152_s2 + $0xe0] sm:$0xff] (!%p263_p2)   ;;  %v3302_v21 = vld [vmem:[%s4152_s2 + $0xe8] sm:$0xff] (!%p263_p2)  }
   0xb   : > { %v3295_v14 = vld [vmem:[%s4152_s2 + $0x18] sm:$0xff] (!%p263_p2)   ;;  %v3299_v18 = vld [vmem:[%s4152_s2 + $0x20] sm:$0xff] (!%p263_p2)   ;;  %v3303_v22 = vld [vmem:[%s4152_s2 + $0x28] sm:$0xff] (!%p263_p2)  }
   0xc   : > { %2895 = vmatpush3.bf16.msra.mxu0 (!%p263_p2), %v3287_v6  ;;  %v3296_v15 = vld [vmem:[%s4152_s2 + $0x98] sm:$0xff] (!%p263_p2)   ;;  %v3300_v19 = vld [vmem:[%s4152_s2 + $0xa0] sm:$0xff] (!%p263_p2)   ;;  %v3304_v23 = vld [vmem:[%s4152_s2 + $0xa8] sm:$0xff] (!%p263_p2)  }
   0xd   : > { %2917 = vmatpush3.bf16.msra.mxu1 %v3288_v7  ;;  %2896 = vmatprep.subr.bf16.mxu0 %v3289_v8  ;;  %s4160_s28 = smov (!%p295_p3, %s2577_s28), 1  ;;  %v3305_v24 = vld [vmem:[%s4152_s2 + $0x70] sm:$0xff]   ;;  %v3309_v28 = vld [vmem:[%s4152_s2 + $0x78] sm:$0xff]   ;;  %v3319_v41 = vld [vmem:[%s4154_s4] sm:$0xff]  }
   0xe   : > { %2918 = vmatprep.subr.bf16.mxu1 %v3290_v9  ;;  %v3306_v25 = vld [vmem:[%s4152_s2 + $0xf0] sm:$0xff]   ;;  %s2891_s21 = sshll.u32 %s4160_s28, 5  ;;  %v3310_v29 = vld [vmem:[%s4152_s2 + $0xf8] sm:$0xff]   ;;  %v3320_v42 = vld [vmem:[%s4154_s4 + $0x8] sm:$0xff]  }
   0xf   : > { %v3307_v26 = vld [vmem:[%s4152_s2 + $0x30] sm:$0xff]   ;;  %s3615_s10 = scalar_lea.vmem %s4150_s0, %s2891_s21  ;;  %v3311_v30 = vld [vmem:[%s4152_s2 + $0x38] sm:$0xff]   ;;  %v3326_v45 = vld [vmem:[%s4154_s4 + $0x20] sm:$0xff]  }
  0x10   : > { %2897 = vmatpush3.bf16.msra.mxu0 %v3291_v10  ;;  %v3308_v27 = vld [vmem:[%s4152_s2 + $0xb0] sm:$0xff]   ;;  %v3312_v31 = vld [vmem:[%s4152_s2 + $0xb8] sm:$0xff]   ;;  %v305_v32 = vld [vmem:[%s3615_s10] sm:$0xff] }
  0x11   : > { %2919 = vmatpush3.bf16.msra.mxu1 %v3292_v11  ;;  %2898 = vmatprep.subr.bf16.mxu0 %v3293_v12  ;;  %v307_v33 = vld [vmem:[%s3615_s10 + $0x10] sm:$0xff]  ;;  %v306_v34 = vld [vmem:[%s3615_s10 + $0x8] sm:$0xff]  ;;  %v308_v36 = vld [vmem:[%s3615_s10 + $0x18] sm:$0xff] }
  0x12   : > { %2920 = vmatprep.subr.bf16.mxu1 %v3294_v13  ;;  %v2587_v35 = vcombine.high %v305_v32, %v307_v33  ;;  %v2586_v37 = vcombine.low %v305_v32, %v307_v33  ;;  %v2589_v38 = vcombine.high %v306_v34, %v308_v36  ;;  %v2588_v39 = vcombine.low %v306_v34, %v308_v36  ;;  %v3322_v43 = vld [vmem:[%s4154_s4 + $0x10] sm:$0xff]   ;;  %v3324_v44 = vld [vmem:[%s4154_s4 + $0x18] sm:$0xff]   ;;  %v3328_v46 = vld [vmem:[%s4154_s4 + $0x28] sm:$0xff]  }
  0x13   : > { %v3330_v47 = vld [vmem:[%s4154_s4 + $0x30] sm:$0xff]   ;;  %v2585_v50 = vld [vmem:[%s4153_s3] ss:$0 sm:$0xff]  ;;  %v3318_v5 = vld [vmem:[%s4151_s1 + $0x8] sm:$0xff]  }
  0x14   : > { %2899 = vmatpush3.bf16.msra.mxu0 %v3295_v14  ;;  %624 = vmatprep.mubr.bf16.mxu0 %v2587_v35  ;;  %v3317_v4 = vld [vmem:[%s4151_s1] sm:$0xff]   ;;  %v3323_v7 = vld [vmem:[%s4154_s4 + $0x48] sm:$0xff]   ;;  %v3325_v8 = vld [vmem:[%s4154_s4 + $0x50] sm:$0xff]  }
  0x15   : > { %2921 = vmatpush3.bf16.msra.mxu1 %v3296_v15  ;;  %2900 = vmatprep.subr.bf16.mxu0 %v3297_v16  ;;  %v3321_v6 = vld [vmem:[%s4154_s4 + $0x40] sm:$0xff]   ;;  %v3327_v9 = vld [vmem:[%s4154_s4 + $0x58] sm:$0xff]   ;;  %v3331_v11 = vld [vmem:[%s4154_s4 + $0x68] sm:$0xff]  }
  0x16   : > { %2922 = vmatprep.subr.bf16.mxu1 %v3298_v17  ;;  %665 = vmatprep.mubr.bf16.mxu1 %v2589_v38  ;;  %v3329_v10 = vld [vmem:[%s4154_s4 + $0x60] sm:$0xff]   ;;  %v3332_v12 = vld [vmem:[%s4154_s4 + $0x38] sm:$0xff]   ;;  %v3333_v13 = vld [vmem:[%s4154_s4 + $0x70] sm:$0xff]  }
  0x17   : > { %v3334_v14 = vld [vmem:[%s4154_s4 + $0x78] sm:$0xff]   ;;  %v3342_v32 = vld [vmem:[%s4154_s4 + $0xc8] sm:$0xff]   ;;  %v3343_v33 = vld [vmem:[%s4154_s4 + $0xa0] sm:$0xff]  }
  0x18   : > { %2901 = vmatpush3.bf16.msra.mxu0 %v3299_v18  ;;  %v3337_v18 = vld [vmem:[%s4154_s4 + $0x80] sm:$0xff]   ;;  %v3344_v34 = vld [vmem:[%s4154_s4 + $0xd0] sm:$0xff]   ;;  %v3345_v35 = vld [vmem:[%s4154_s4 + $0xa8] sm:$0xff]  }
  0x19   : > { %2923 = vmatpush3.bf16.msra.mxu1 %v3300_v19  ;;  %2902 = vmatprep.subr.bf16.mxu0 %v3301_v20  ;;  %v3346_v36 = vld [vmem:[%s4154_s4 + $0xd8] sm:$0xff]   ;;  %v3348_v38 = vld [vmem:[%s4154_s4 + $0xe0] sm:$0xff]  }
  0x1a   : > { %2924 = vmatprep.subr.bf16.mxu1 %v3302_v21  ;;  %v3338_v21 = vld [vmem:[%s4154_s4 + $0x88] sm:$0xff]  }
  0x1c   : > { %2903 = vmatpush3.bf16.msra.mxu0 %v3303_v22 }
  0x1d   : > { %2925 = vmatpush3.bf16.msra.mxu1 %v3304_v23  ;;  %2904 = vmatprep.subr.bf16.mxu0 %v3305_v24 }
  0x1e   : > { %2926 = vmatprep.subr.bf16.mxu1 %v3306_v25 }
  0x20   : > { %2905 = vmatpush3.bf16.msra.mxu0 %v3307_v26 }
  0x21   : > { %2927 = vmatpush3.bf16.msra.mxu1 %v3308_v27  ;;  %2906 = vmatprep.subr.bf16.mxu0 %v3309_v28  ;;  %v3339_v27 = vld [vmem:[%s4154_s4 + $0x90] sm:$0xff]  }
  0x22   : > { %2928 = vmatprep.subr.bf16.mxu1 %v3310_v29  ;;  %v3335_v28 = vld [vmem:[%s4151_s1 + $0x10] sm:$0xff]   ;;  %v3336_v29 = vld [vmem:[%s4151_s1 + $0x18] sm:$0xff]  }
  0x24   : > { %2907 = vmatpush3.bf16.msra.mxu0 %v3311_v30  ;;  %v3340_v30 = vld [vmem:[%s4154_s4 + $0xc0] sm:$0xff]  }
  0x25   : > { %2929 = vmatpush3.bf16.msra.mxu1 %v3312_v31  ;;  %3035 = vmatprep.subr.bf16.mxu0 %v3458_v40  ;;  %v3341_v31 = vld [vmem:[%s4154_s4 + $0x98] sm:$0xff]  }
  0x26   : > { %3067 = vmatprep.subr.bf16.mxu1 %v3458_v40 }
  0x27   : > { %625 = vmatmul.mubr.bf16.vlgmr.msra.gmra.mrb[0].mxu0 %v2586_v37  ;;  %v3347_v37 = vld [vmem:[%s4154_s4 + $0xb0] sm:$0xff]  }
  0x28   : > { %666 = vmatmul.mubr.bf16.vlgmr.msra.gmra.mrb[0].mxu1 %v2588_v39  ;;  %3037 = vmatprep.mubr.msk.bf16.mxu0 %vm3459_vm0, %v3458_v40  ;;  %v3349_v39 = vld [vmem:[%s4154_s4 + $0xb8] sm:$0xff]  }
  0x29   : > { %3083 = vmatprep.mubr.msk.bf16.mxu1 %vm3459_vm0, %v3458_v40  ;;  %3068 = vmatpush3.bf16.msra.mxu1 %v3319_v41  ;;  %v3350_v41 = vld [vmem:[%s4154_s4 + $0xe8] sm:$0xff]  }
  0x2a   : > { %3069 = vmatprep.subr.bf16.mxu1 %v3458_v40 }
  0x2d   : > { %3070 = vmatpush3.bf16.msra.mxu1 %v3320_v42  ;;  %v3351_v42 = vld [vmem:[%s4154_s4 + $0xf0] sm:$0xff]  }
  0x2e   : > { %3071 = vmatprep.subr.bf16.mxu1 %v3458_v40 }
  0x31   : > { %3072 = vmatpush3.bf16.msra.mxu1 %v3322_v43  ;;  %v3352_v43 = vld [vmem:[%s4154_s4 + $0xf8] sm:$0xff]  }
  0x32   : > { %3073 = vmatprep.subr.bf16.mxu1 %v3458_v40 }
  0x35   : > { %3074 = vmatpush3.bf16.msra.mxu1 %v3324_v44 }
  0x36   : > { %3075 = vmatprep.subr.bf16.mxu1 %v3458_v40 }
  0x39   : > { %3076 = vmatpush3.bf16.msra.mxu1 %v3326_v45 }
  0x3a   : > { %3077 = vmatprep.subr.bf16.mxu1 %v3458_v40 }
  0x3d   : > { %3078 = vmatpush3.bf16.msra.mxu1 %v3328_v46 }
  0x3e   : > { %3079 = vmatprep.subr.bf16.mxu1 %v3458_v40 }
  0x41   : > { %3080 = vmatpush3.bf16.msra.mxu1 %v3330_v47 }
  0x42   : > { %3081 = vmatprep.subr.bf16.mxu1 %v3458_v40 }
  0x45   : > { %3082 = vmatpush3.bf16.msra.mxu1 %v3332_v12  ;;  %v3364_v12 = vld [vmem:[%s4154_s4 + $0x158] sm:$0xff]  }
  0x46   : > { %3093 = vmatprep.subr.bf16.mxu1 %v3458_v40 }
  0xfa   : > { %v2908_v48 = vpop.f32.mrb[0].mxu0 }
  0xfb   : > { %v2930_v49 = vpop.f32.mrb[0].mxu1  ;;  %v2909_v51 = vpop.f32.mrb[1].mxu0 }
  0xfc   : > { %v2910_v52 = vadd.f32 %v2909_v51, %v2908_v48  ;;  %v2931_v53 = vpop.f32.mrb[1].mxu1  ;;  %v2911_v54 = vpop.f32.mrb[2].mxu0 }
  0xfd   : > { %v2932_v55 = vadd.f32 %v2931_v53, %v2930_v49  ;;  %v2933_v56 = vpop.f32.mrb[2].mxu1  ;;  %v2912_v57 = vpop.f32.mrb[3].mxu0 }
  0xfe   : > { %v627_v58 = vadd.f32 %v2910_v52, %v2585_v50  ;;  %v2913_v59 = vadd.f32 %v2912_v57, %v2911_v54  ;;  %v2934_v60 = vpop.f32.mrb[3].mxu1 }
  0xff   : > { %v2935_v61 = vadd.f32 %v2934_v60, %v2933_v56 }
 0x100   : > { %v668_v62 = vadd.f32 %v2932_v55, %v627_v58  ;;  %v630_v63 = vadd.f32 %v2913_v59, %v2585_v50 }
 0x102   : > { %v671_v0 = vadd.f32 %v2935_v61, %v630_v63  ;;  %v674_v1 = vmax.f32 %v668_v62, 0.0  ;;  %v3353_v61 = vld [vmem:[%s4151_s1 + $0x20] sm:$0xff]  }
 0x104   : > { %v675_v2 = vmax.f32 %v671_v0, 0.0  ;;  %v3355_v0 = vld [vmem:[%s4154_s4 + $0x100] sm:$0xff]  }
 0x106   : > { %v3664_v3 = vpack.c.bf16 %v675_v2, %v674_v1  ;;  %v3356_v2 = vld [vmem:[%s4154_s4 + $0x108] sm:$0xff]  }
 0x108   : > { %3036 = vmatpush3.bf16.msra.mxu0 %v3664_v3 }
 0x109   : > { %3041 = vmatprep.subr.bf16.mxu0 %v3458_v40 }
 0x10b   : > { %3038 = vmatmul.mubr.msk.bf16.vlgmr.msra.gmra.mrb[4].mxu0 %vm684_vm1, %v3317_v4  ;;  %v3354_v4 = vld [vmem:[%s4151_s1 + $0x28] sm:$0xff]  }
 0x10c   : > { %3042 = vmatpush3.bf16.msra.mxu0 %v3664_v3  ;;  %3043 = vmatprep.mubr.msk.bf16.mxu0 %vm3459_vm0, %v3458_v40 }
 0x10d   : > { %3047 = vmatprep.subr.bf16.mxu0 %v3458_v40 }
 0x113   : > { %3044 = vmatmul.mubr.msk.bf16.vlgmr.msra.gmra.mrb[8].mxu0 %vm684_vm1, %v3318_v5  ;;  %v3358_v5 = vld [vmem:[%s4154_s4 + $0x140] sm:$0xff]  }
 0x114   : > { %3048 = vmatpush3.bf16.msra.mxu0 %v3321_v6  ;;  %3063 = vmatprep.mubr.msk.bf16.mxu0 %vm3459_vm0, %v3458_v40  ;;  %v3357_v6 = vld [vmem:[%s4154_s4 + $0x110] sm:$0xff]  }
 0x115   : > { %3049 = vmatprep.subr.bf16.mxu0 %v3458_v40 }
 0x118   : > { %3050 = vmatpush3.bf16.msra.mxu0 %v3323_v7  ;;  %v3360_v7 = vld [vmem:[%s4154_s4 + $0x148] sm:$0xff]  }
 0x119   : > { %3051 = vmatprep.subr.bf16.mxu0 %v3458_v40 }
 0x11c   : > { %3052 = vmatpush3.bf16.msra.mxu0 %v3325_v8  ;;  %v3359_v8 = vld [vmem:[%s4154_s4 + $0x118] sm:$0xff]  }
 0x11d   : > { %3053 = vmatprep.subr.bf16.mxu0 %v3458_v40 }
 0x120   : > { %3054 = vmatpush3.bf16.msra.mxu0 %v3327_v9  ;;  %v3362_v9 = vld [vmem:[%s4154_s4 + $0x150] sm:$0xff]  }
 0x121   : > { %3055 = vmatprep.subr.bf16.mxu0 %v3458_v40 }
 0x124   : > { %3056 = vmatpush3.bf16.msra.mxu0 %v3329_v10  ;;  %v3361_v10 = vld [vmem:[%s4154_s4 + $0x120] sm:$0xff]  }
 0x125   : > { %3057 = vmatprep.subr.bf16.mxu0 %v3458_v40 }
 0x128   : > { %3058 = vmatpush3.bf16.msra.mxu0 %v3331_v11  ;;  %v3363_v11 = vld [vmem:[%s4154_s4 + $0x128] sm:$0xff]  }
 0x129   : > { %3059 = vmatprep.subr.bf16.mxu0 %v3458_v40 }
 0x12c   : > { %3060 = vmatpush3.bf16.msra.mxu0 %v3333_v13  ;;  %v3365_v13 = vld [vmem:[%s4154_s4 + $0x130] sm:$0xff]  }
 0x12d   : > { %3061 = vmatprep.subr.bf16.mxu0 %v3458_v40 }
 0x130   : > { %3062 = vmatpush3.bf16.msra.mxu0 %v3334_v14  ;;  %v3366_v14 = vld [vmem:[%s4154_s4 + $0x160] sm:$0xff]  }
 0x131   : > { %3087 = vmatprep.subr.bf16.mxu0 %v3458_v40 }
 0x1de   : > { %v722_v15 = vpop.f32.mrb[4].mxu0 }
 0x1df   : > { %v3039_v16 = vpop.f32.mrb[5].mxu0 }
 0x1e0   : > { %v725_v17 = vpop.f32.mrb[6].mxu0  ;;  %v3368_v16 = vld [vmem:[%s4154_s4 + $0x168] sm:$0xff]  }
 0x1e1   : > { %v729_v19 = vpack.c.bf16 %v725_v17, %v722_v15  ;;  %v3040_v20 = vpop.f32.mrb[7].mxu0  ;;  %v3367_v15 = vld [vmem:[%s4154_s4 + $0x138] sm:$0xff]   ;;  %v3369_v17 = vld [vmem:[%s4154_s4 + $0x170] sm:$0xff]  }
 0x1e3   : > { %3084 = vmatmul.mubr.bf16.vlgmr.msra.gmra.mrb[4].mxu1 %v729_v19 }
 0x1e4   : > { %3094 = vmatpush3.bf16.msra.mxu1 %v3337_v18  ;;  %3109 = vmatprep.mubr.msk.bf16.mxu1 %vm3459_vm0, %v3458_v40  ;;  %v3370_v18 = vld [vmem:[%s4154_s4 + $0x178] sm:$0xff]  }
 0x1e5   : > { %3095 = vmatprep.subr.bf16.mxu1 %v3458_v40 }
 0x1e6   : > { %v791_v22 = vpop.f32.mrb[8].mxu0 }
 0x1e7   : > { %v3045_v23 = vpop.f32.mrb[9].mxu0 }
 0x1e8   : > { %v794_v24 = vpop.f32.mrb[10].mxu0  ;;  %3096 = vmatpush3.bf16.msra.mxu1 %v3338_v21 }
 0x1e9   : > { %v798_v25 = vpack.c.bf16 %v794_v24, %v791_v22  ;;  %v3046_v26 = vpop.f32.mrb[11].mxu0  ;;  %3097 = vmatprep.subr.bf16.mxu1 %v3458_v40 }
 0x1eb   : > { %3064 = vmatmul.mubr.bf16.vlgmr.msra.gmra.mrb[12].mxu0 %v798_v25 }
 0x1ec   : > { %3088 = vmatpush3.bf16.msra.mxu0 %v3664_v3  ;;  %3089 = vmatprep.mubr.msk.bf16.mxu0 %vm3459_vm0, %v3458_v40 }
 0x1ed   : > { %3113 = vmatprep.subr.bf16.mxu0 %v3458_v40  ;;  %3098 = vmatpush3.bf16.msra.mxu1 %v3339_v27 }
 0x1ee   : > { %3099 = vmatprep.subr.bf16.mxu1 %v3458_v40 }
 0x1f1   : > { %3100 = vmatpush3.bf16.msra.mxu1 %v3341_v31 }
 0x1f2   : > { %3101 = vmatprep.subr.bf16.mxu1 %v3458_v40 }
 0x1f3   : > { %3090 = vmatmul.mubr.msk.bf16.vlgmr.msra.gmra.mrb[16].mxu0 %vm684_vm1, %v3335_v28 }
 0x1f4   : > { %3114 = vmatpush3.bf16.msra.mxu0 %v3664_v3  ;;  %3115 = vmatprep.mubr.msk.bf16.mxu0 %vm3459_vm0, %v3458_v40 }
 0x1f5   : > { %3119 = vmatprep.subr.bf16.mxu0 %v3458_v40  ;;  %3102 = vmatpush3.bf16.msra.mxu1 %v3343_v33 }
 0x1f6   : > { %3103 = vmatprep.subr.bf16.mxu1 %v3458_v40 }
 0x1f9   : > { %3104 = vmatpush3.bf16.msra.mxu1 %v3345_v35 }
 0x1fa   : > { %3105 = vmatprep.subr.bf16.mxu1 %v3458_v40 }
 0x1fb   : > { %3116 = vmatmul.mubr.msk.bf16.vlgmr.msra.gmra.mrb[20].mxu0 %vm684_vm1, %v3336_v29 }
 0x1fc   : > { %3120 = vmatpush3.bf16.msra.mxu0 %v3340_v30  ;;  %3135 = vmatprep.mubr.msk.bf16.mxu0 %vm3459_vm0, %v3458_v40 }
 0x1fd   : > { %3121 = vmatprep.subr.bf16.mxu0 %v3458_v40  ;;  %3106 = vmatpush3.bf16.msra.mxu1 %v3347_v37 }
 0x1fe   : > { %3107 = vmatprep.subr.bf16.mxu1 %v3458_v40 }
 0x200   : > { %3122 = vmatpush3.bf16.msra.mxu0 %v3342_v32 }
 0x201   : > { %3123 = vmatprep.subr.bf16.mxu0 %v3458_v40  ;;  %3108 = vmatpush3.bf16.msra.mxu1 %v3349_v39 }
 0x202   : > { %3139 = vmatprep.subr.bf16.mxu1 %v3458_v40 }
 0x204   : > { %3124 = vmatpush3.bf16.msra.mxu0 %v3344_v34 }
 0x205   : > { %3125 = vmatprep.subr.bf16.mxu0 %v3458_v40 }
 0x208   : > { %3126 = vmatpush3.bf16.msra.mxu0 %v3346_v36 }
 0x209   : > { %3127 = vmatprep.subr.bf16.mxu0 %v3458_v40 }
 0x20c   : > { %3128 = vmatpush3.bf16.msra.mxu0 %v3348_v38  ;;  %v3371_v38 = vld [vmem:[%s4151_s1 + $0x30] sm:$0xff]  }
 0x20d   : > { %3129 = vmatprep.subr.bf16.mxu0 %v3458_v40 }
 0x210   : > { %3130 = vmatpush3.bf16.msra.mxu0 %v3350_v41 }
 0x211   : > { %3131 = vmatprep.subr.bf16.mxu0 %v3458_v40 }
 0x214   : > { %3132 = vmatpush3.bf16.msra.mxu0 %v3351_v42  ;;  %v3373_v42 = vld [vmem:[%s4154_s4 + $0x180] sm:$0xff]  }
 0x215   : > { %3133 = vmatprep.subr.bf16.mxu0 %v3458_v40 }
 0x218   : > { %3134 = vmatpush3.bf16.msra.mxu0 %v3352_v43 }
 0x219   : > { %3165 = vmatprep.subr.bf16.mxu0 %v3458_v40 }
 0x2b6   : > { %v987_v44 = vpop.f32.mrb[4].mxu1 }
 0x2b7   : > { %v3085_v45 = vpop.f32.mrb[5].mxu1 }
 0x2b8   : > { %v990_v46 = vpop.f32.mrb[6].mxu1  ;;  %v3372_v45 = vld [vmem:[%s4151_s1 + $0x38] sm:$0xff]  }
 0x2b9   : > { %v3086_v47 = vpop.f32.mrb[7].mxu1 }
 0x2ba   : > { %v3375_v47 = vld [vmem:[%s4154_s4 + $0x190] sm:$0xff]  }
 0x2be   : > { %v898_v48 = vpop.f32.mrb[12].mxu0 }
 0x2bf   : > { %v3802_v49 = vadd.f32 %v987_v44, %v898_v48  ;;  %v3065_v50 = vpop.f32.mrb[13].mxu0  ;;  %v3374_v44 = vld [vmem:[%s4154_s4 + $0x188] sm:$0xff]  }
 0x2c0   : > { %v901_v51 = vpop.f32.mrb[14].mxu0  ;;  %v3378_v48 = vld [vmem:[%s4154_s4 + $0x1c8] sm:$0xff]   ;;  %v3380_v50 = vld [vmem:[%s4154_s4 + $0x1d0] sm:$0xff]  }
 0x2c1   : > { %v3804_v52 = vadd.f32 %v990_v46, %v901_v51  ;;  %v3066_v53 = vpop.f32.mrb[15].mxu0  ;;  %v3376_v46 = vld [vmem:[%s4154_s4 + $0x1c0] sm:$0xff]  }
 0x2c2   : > { %v3379_v51 = vld [vmem:[%s4154_s4 + $0x1a0] sm:$0xff]   ;;  %v3382_v53 = vld [vmem:[%s4154_s4 + $0x1d8] sm:$0xff]  }
 0x2c6   : > { %v1039_v54 = vpop.f32.mrb[16].mxu0 }
 0x2c7   : > { %v3091_v55 = vpop.f32.mrb[17].mxu0 }
 0x2c8   : > { %v1042_v56 = vpop.f32.mrb[18].mxu0  ;;  %v3384_v55 = vld [vmem:[%s4154_s4 + $0x1e0] sm:$0xff]  }
 0x2c9   : > { %v1046_v57 = vpack.c.bf16 %v1042_v56, %v1039_v54  ;;  %v3092_v58 = vpop.f32.mrb[19].mxu0  ;;  %v3383_v54 = vld [vmem:[%s4154_s4 + $0x1b0] sm:$0xff]   ;;  %v3385_v56 = vld [vmem:[%s4154_s4 + $0x1b8] sm:$0xff]  }
 0x2ca   : > { %v3387_v58 = vld [vmem:[%s4154_s4 + $0x1f0] sm:$0xff]  }
 0x2cb   : > { %3110 = vmatmul.mubr.bf16.vlgmr.msra.gmra.mrb[8].mxu1 %v1046_v57  ;;  %v3386_v57 = vld [vmem:[%s4154_s4 + $0x1e8] sm:$0xff]  }
 0x2cc   : > { %3140 = vmatpush3.bf16.msra.mxu1 %v3664_v3  ;;  %3141 = vmatprep.mubr.msk.bf16.mxu1 %vm3459_vm0, %v3458_v40 }
 0x2cd   : > { %3145 = vmatprep.subr.bf16.mxu1 %v3458_v40 }
 0x2ce   : > { %v1200_v59 = vpop.f32.mrb[20].mxu0 }
 0x2cf   : > { %v3117_v60 = vpop.f32.mrb[21].mxu0 }
 0x2d0   : > { %v1203_v62 = vpop.f32.mrb[22].mxu0 }
 0x2d1   : > { %v1207_v63 = vpack.c.bf16 %v1203_v62, %v1200_v59  ;;  %v3118_v1 = vpop.f32.mrb[23].mxu0  ;;  %v3388_v59 = vld [vmem:[%s4154_s4 + $0x1f8] sm:$0xff]  }
 0x2d3   : > { %3136 = vmatmul.mubr.bf16.vlgmr.msra.gmra.mrb[24].mxu0 %v1207_v63  ;;  %3142 = vmatmul.mubr.msk.bf16.vlgmr.msra.gmra.mrb[12].mxu1 %vm684_vm1, %v3353_v61 }
 0x2d4   : > { %3166 = vmatpush3.bf16.msra.mxu0 %v3664_v3  ;;  %3167 = vmatprep.mubr.msk.bf16.mxu0 %vm3459_vm0, %v3458_v40 }
 0x2d5   : > { %3146 = vmatpush3.bf16.msra.mxu1 %v3355_v0  ;;  %3171 = vmatprep.subr.bf16.mxu0 %v3458_v40 }
 0x2d6   : > { %3147 = vmatprep.subr.bf16.mxu1 %v3458_v40  ;;  %3161 = vmatprep.mubr.msk.bf16.mxu1 %vm3459_vm0, %v3458_v40 }
 0x2d9   : > { %3148 = vmatpush3.bf16.msra.mxu1 %v3356_v2 }
 0x2da   : > { %3149 = vmatprep.subr.bf16.mxu1 %v3458_v40 }
 0x2db   : > { %3168 = vmatmul.mubr.msk.bf16.vlgmr.msra.gmra.mrb[28].mxu0 %vm684_vm1, %v3354_v4 }
 0x2dc   : > { %3172 = vmatpush3.bf16.msra.mxu0 %v3358_v5  ;;  %3187 = vmatprep.mubr.msk.bf16.mxu0 %vm3459_vm0, %v3458_v40 }
 0x2dd   : > { %3150 = vmatpush3.bf16.msra.mxu1 %v3357_v6  ;;  %3173 = vmatprep.subr.bf16.mxu0 %v3458_v40 }
 0x2de   : > { %3151 = vmatprep.subr.bf16.mxu1 %v3458_v40 }
 0x2e0   : > { %3174 = vmatpush3.bf16.msra.mxu0 %v3360_v7 }
 0x2e1   : > { %3152 = vmatpush3.bf16.msra.mxu1 %v3359_v8  ;;  %3175 = vmatprep.subr.bf16.mxu0 %v3458_v40 }
 0x2e2   : > { %3153 = vmatprep.subr.bf16.mxu1 %v3458_v40 }
 0x2e4   : > { %3176 = vmatpush3.bf16.msra.mxu0 %v3362_v9 }
 0x2e5   : > { %3154 = vmatpush3.bf16.msra.mxu1 %v3361_v10  ;;  %3177 = vmatprep.subr.bf16.mxu0 %v3458_v40 }
 0x2e6   : > { %3155 = vmatprep.subr.bf16.mxu1 %v3458_v40 }
 0x2e8   : > { %3178 = vmatpush3.bf16.msra.mxu0 %v3364_v12 }
 0x2e9   : > { %3156 = vmatpush3.bf16.msra.mxu1 %v3363_v11  ;;  %3179 = vmatprep.subr.bf16.mxu0 %v3458_v40 }
 0x2ea   : > { %3157 = vmatprep.subr.bf16.mxu1 %v3458_v40 }
 0x2ec   : > { %3180 = vmatpush3.bf16.msra.mxu0 %v3366_v14 }
 0x2ed   : > { %3158 = vmatpush3.bf16.msra.mxu1 %v3365_v13  ;;  %3181 = vmatprep.subr.bf16.mxu0 %v3458_v40 }
 0x2ee   : > { %3159 = vmatprep.subr.bf16.mxu1 %v3458_v40 }
 0x2f0   : > { %3182 = vmatpush3.bf16.msra.mxu0 %v3368_v16  ;;  %v3389_v16 = vld [vmem:[%s4151_s1 + $0x40] sm:$0xff]  }
 0x2f1   : > { %3160 = vmatpush3.bf16.msra.mxu1 %v3367_v15  ;;  %3183 = vmatprep.subr.bf16.mxu0 %v3458_v40 }
 0x2f2   : > { %3191 = vmatprep.subr.bf16.mxu1 %v3458_v40 }
 0x2f4   : > { %3184 = vmatpush3.bf16.msra.mxu0 %v3369_v17 }
 0x2f5   : > { %3185 = vmatprep.subr.bf16.mxu0 %v3458_v40 }
 0x2f8   : > { %3186 = vmatpush3.bf16.msra.mxu0 %v3370_v18  ;;  %v3390_v18 = vld [vmem:[%s4154_s4 + $0x200] sm:$0xff]  }
 0x2f9   : > { %3217 = vmatprep.subr.bf16.mxu0 %v3458_v40 }
 0x39e   : > { %v1146_v19 = vpop.f32.mrb[8].mxu1 }
 0x39f   : > { %v1153_v20 = vadd.f32 %v1146_v19, %v3802_v49  ;;  %v3111_v21 = vpop.f32.mrb[9].mxu1  ;;  %v3377_v49 = vld [vmem:[%s4154_s4 + $0x198] sm:$0xff]  }
 0x3a0   : > { %v1149_v22 = vpop.f32.mrb[10].mxu1  ;;  %v3392_v21 = vld [vmem:[%s4154_s4 + $0x210] sm:$0xff]  }
 0x3a1   : > { %v1154_v23 = vadd.f32 %v1149_v22, %v3804_v52  ;;  %v3112_v24 = vpop.f32.mrb[11].mxu1  ;;  %v3381_v52 = vld [vmem:[%s4154_s4 + $0x1a8] sm:$0xff]   ;;  %v3393_v22 = vld [vmem:[%s4154_s4 + $0x218] sm:$0xff]  }
 0x3a2   : > { %v3395_v24 = vld [vmem:[%s4154_s4 + $0x228] sm:$0xff]  }
 0x3a6   : > { %v1307_v25 = vpop.f32.mrb[24].mxu0  ;;  %v1361_v26 = vpop.f32.mrb[12].mxu1 }
 0x3a7   : > { %v3892_v27 = vadd.f32 %v1307_v25, %v1153_v20  ;;  %v3137_v28 = vpop.f32.mrb[25].mxu0  ;;  %v3143_v29 = vpop.f32.mrb[13].mxu1  ;;  %v3396_v25 = vld [vmem:[%s4154_s4 + $0x230] sm:$0xff]  }
 0x3a8   : > { %v1310_v30 = vpop.f32.mrb[26].mxu0  ;;  %v1364_v31 = vpop.f32.mrb[14].mxu1  ;;  %v3400_v28 = vld [vmem:[%s4156_s6 + $0x4] ss:$16 sps:$4 sm:$0xff]   ;;  %v3403_v29 = vld [vmem:[%s4156_s6 + $0xc] ss:$16 sps:$4 sm:$0xff]  }
 0x3a9   : > { %v3894_v32 = vadd.f32 %v1310_v30, %v1154_v23  ;;  %v1368_v33 = vpack.c.bf16 %v1364_v31, %v1361_v26  ;;  %v3144_v34 = vpop.f32.mrb[15].mxu1  ;;  %v3138_v35 = vpop.f32.mrb[27].mxu0  ;;  %v3394_v23 = vld [vmem:[%s4154_s4 + $0x220] sm:$0xff]   ;;  %v3397_v26 = vld [vmem:[%s4154_s4 + $0x238] sm:$0xff]  }
 0x3aa   : > { %v3404_v30 = vld [vmem:[%s4156_s6 + $0x20] ss:$16 sps:$4 sm:$0xff]   ;;  %v3412_v31 = vld [vmem:[%s4156_s6 + $0x44] ss:$16 sps:$4 sm:$0xff]  }
 0x3ab   : > { %3162 = vmatmul.mubr.bf16.vlgmr.msra.gmra.mrb[16].mxu1 %v1368_v33  ;;  %v3418_v33 = vld [vmem:[%s4156_s6 + $0x64] ss:$16 sps:$4 sm:$0xff]   ;;  %v3416_v34 = vld [vmem:[%s4156_s6 + $0x60] ss:$16 sps:$4 sm:$0xff]  }
 0x3ac   : > { %3192 = vmatpush3.bf16.msra.mxu1 %v3664_v3  ;;  %3193 = vmatprep.mubr.msk.bf16.mxu1 %vm3459_vm0, %v3458_v40  ;;  %v3424_v35 = vld [vmem:[%s4156_s6 + $0x84] ss:$16 sps:$4 sm:$0xff]  }
 0x3ad   : > { %3197 = vmatprep.subr.bf16.mxu1 %v3458_v40 }
 0x3ae   : > { %v1522_v36 = vpop.f32.mrb[28].mxu0 }
 0x3af   : > { %v3169_v37 = vpop.f32.mrb[29].mxu0 }
 0x3b0   : > { %v1525_v39 = vpop.f32.mrb[30].mxu0  ;;  %v3430_v37 = vld [vmem:[%s4156_s6 + $0xa4] ss:$16 sps:$4 sm:$0xff]  }
 0x3b1   : > { %v1529_v41 = vpack.c.bf16 %v1525_v39, %v1522_v36  ;;  %v3170_v43 = vpop.f32.mrb[31].mxu0  ;;  %v3422_v36 = vld [vmem:[%s4156_s6 + $0x80] ss:$16 sps:$4 sm:$0xff]  }
 0x3b3   : > { %3188 = vmatmul.mubr.bf16.vlgmr.msra.gmra.mrb[32].mxu0 %v1529_v41  ;;  %3194 = vmatmul.mubr.msk.bf16.vlgmr.msra.gmra.mrb[20].mxu1 %vm684_vm1, %v3371_v38  ;;  %v3428_v38 = vld [vmem:[%s4156_s6 + $0xa0] ss:$16 sps:$4 sm:$0xff]  }
 0x3b4   : > { %3218 = vmatpush3.bf16.msra.mxu0 %v3664_v3  ;;  %3219 = vmatprep.mubr.msk.bf16.mxu0 %vm3459_vm0, %v3458_v40 }
 0x3b5   : > { %3198 = vmatpush3.bf16.msra.mxu1 %v3373_v42  ;;  %3223 = vmatprep.subr.bf16.mxu0 %v3458_v40 }
 0x3b6   : > { %3199 = vmatprep.subr.bf16.mxu1 %v3458_v40  ;;  %3213 = vmatprep.mubr.msk.bf16.mxu1 %vm3459_vm0, %v3458_v40 }
 0x3b9   : > { %3200 = vmatpush3.bf16.msra.mxu1 %v3374_v44 }
 0x3ba   : > { %3201 = vmatprep.subr.bf16.mxu1 %v3458_v40 }
 0x3bb   : > { %3220 = vmatmul.mubr.msk.bf16.vlgmr.msra.gmra.mrb[36].mxu0 %vm684_vm1, %v3372_v45 }
 0x3bc   : > { %3224 = vmatpush3.bf16.msra.mxu0 %v3376_v46  ;;  %3239 = vmatprep.mubr.msk.bf16.mxu0 %vm3459_vm0, %v3458_v40 }
 0x3bd   : > { %3202 = vmatpush3.bf16.msra.mxu1 %v3375_v47  ;;  %3225 = vmatprep.subr.bf16.mxu0 %v3458_v40 }
 0x3be   : > { %3203 = vmatprep.subr.bf16.mxu1 %v3458_v40 }
 0x3c0   : > { %3226 = vmatpush3.bf16.msra.mxu0 %v3378_v48 }
 0x3c1   : > { %3204 = vmatpush3.bf16.msra.mxu1 %v3377_v49  ;;  %3227 = vmatprep.subr.bf16.mxu0 %v3458_v40 }
 0x3c2   : > { %3205 = vmatprep.subr.bf16.mxu1 %v3458_v40 }
 0x3c4   : > { %3228 = vmatpush3.bf16.msra.mxu0 %v3380_v50 }
 0x3c5   : > { %3206 = vmatpush3.bf16.msra.mxu1 %v3379_v51  ;;  %3229 = vmatprep.subr.bf16.mxu0 %v3458_v40 }
 0x3c6   : > { %3207 = vmatprep.subr.bf16.mxu1 %v3458_v40 }
 0x3c8   : > { %3230 = vmatpush3.bf16.msra.mxu0 %v3382_v53  ;;  %v3401_v53 = vld [vmem:[%s4156_s6 + $0x8] ss:$16 sps:$4 sm:$0xff]  }
 0x3c9   : > { %3208 = vmatpush3.bf16.msra.mxu1 %v3381_v52  ;;  %3231 = vmatprep.subr.bf16.mxu0 %v3458_v40 }
 0x3ca   : > { %3209 = vmatprep.subr.bf16.mxu1 %v3458_v40 }
 0x3cc   : > { %3232 = vmatpush3.bf16.msra.mxu0 %v3384_v55 }
 0x3cd   : > { %3210 = vmatpush3.bf16.msra.mxu1 %v3383_v54  ;;  %3233 = vmatprep.subr.bf16.mxu0 %v3458_v40 }
 0x3ce   : > { %3211 = vmatprep.subr.bf16.mxu1 %v3458_v40 }
 0x3d0   : > { %3234 = vmatpush3.bf16.msra.mxu0 %v3386_v57  ;;  %v3409_v57 = vld [vmem:[%s4156_s6 + $0x2c] ss:$16 sps:$4 sm:$0xff]  }
 0x3d1   : > { %3212 = vmatpush3.bf16.msra.mxu1 %v3385_v56  ;;  %3235 = vmatprep.subr.bf16.mxu0 %v3458_v40 }
 0x3d2   : > { %3243 = vmatprep.subr.bf16.mxu1 %v3458_v40 }
 0x3d4   : > { %3236 = vmatpush3.bf16.msra.mxu0 %v3387_v58 }
 0x3d5   : > { %3237 = vmatprep.subr.bf16.mxu0 %v3458_v40 }
 0x3d8   : > { %3238 = vmatpush3.bf16.msra.mxu0 %v3388_v59  ;;  %v3407_v59 = vld [vmem:[%s4156_s6 + $0x28] ss:$16 sps:$4 sm:$0xff]  }
 0x3d9   : > { %2347 = vmatprep.subr.bf16.mxu0 %v3400_v28 }
 0x47e   : > { %v1468_v60 = vpop.f32.mrb[16].mxu1 }
 0x47f   : > { %v1475_v61 = vadd.f32 %v1468_v60, %v3892_v27  ;;  %v3163_v62 = vpop.f32.mrb[17].mxu1  ;;  %v3398_v27 = vld [vmem:[%s4156_s6] ss:$16 sps:$4 sm:$0xff]   ;;  %v3415_v60 = vld [vmem:[%s4156_s6 + $0x4c] ss:$16 sps:$4 sm:$0xff]  }
 0x480   : > { %v1471_v63 = vpop.f32.mrb[18].mxu1  ;;  %v3421_v62 = vld [vmem:[%s4156_s6 + $0x6c] ss:$16 sps:$4 sm:$0xff]  }
 0x481   : > { %v1476_v0 = vadd.f32 %v1471_v63, %v3894_v32  ;;  %v3164_v1 = vpop.f32.mrb[19].mxu1  ;;  %v3410_v32 = vld [vmem:[%s4156_s6 + $0x40] ss:$16 sps:$4 sm:$0xff]   ;;  %v3419_v63 = vld [vmem:[%s4156_s6 + $0x68] ss:$16 sps:$4 sm:$0xff]  }
 0x482   : > { %v3425_v1 = vld [vmem:[%s4156_s6 + $0x88] ss:$16 sps:$4 sm:$0xff]  }
 0x486   : > { %v1629_v2 = vpop.f32.mrb[32].mxu0  ;;  %v1683_v4 = vpop.f32.mrb[20].mxu1 }
 0x487   : > { %v3981_v5 = vadd.f32 %v1629_v2, %v1475_v61  ;;  %v3189_v6 = vpop.f32.mrb[33].mxu0  ;;  %v3195_v7 = vpop.f32.mrb[21].mxu1  ;;  %v3413_v61 = vld [vmem:[%s4156_s6 + $0x48] ss:$16 sps:$4 sm:$0xff]   ;;  %v3433_v2 = vld [vmem:[%s4156_s6 + $0xac] ss:$16 sps:$4 sm:$0xff]  }
 0x488   : > { %v1632_v8 = vpop.f32.mrb[34].mxu0  ;;  %v1686_v9 = vpop.f32.mrb[22].mxu1  ;;  %v3439_v6 = vld [vmem:[%s4156_s6 + $0xcc] ss:$16 sps:$4 sm:$0xff]   ;;  %v3434_v7 = vld [vmem:[%s4156_s6 + $0xc0] ss:$16 sps:$4 sm:$0xff]  }
 0x489   : > { %v3983_v10 = vadd.f32 %v1632_v8, %v1476_v0  ;;  %v1690_v11 = vpack.c.bf16 %v1686_v9, %v1683_v4  ;;  %v3196_v12 = vpop.f32.mrb[23].mxu1  ;;  %v3190_v13 = vpop.f32.mrb[35].mxu0  ;;  %v3427_v0 = vld [vmem:[%s4156_s6 + $0x8c] ss:$16 sps:$4 sm:$0xff]   ;;  %v3431_v4 = vld [vmem:[%s4156_s6 + $0xa8] ss:$16 sps:$4 sm:$0xff]  }
 0x48a   : > { %v3437_v8 = vld [vmem:[%s4156_s6 + $0xc8] ss:$16 sps:$4 sm:$0xff]   ;;  %v3442_v9 = vld [vmem:[%s4156_s6 + $0xe4] ss:$16 sps:$4 sm:$0xff]   ;;  %v3460_v13 = vmov 0  }
 0x48b   : > { %3214 = vmatmul.mubr.bf16.vlgmr.msra.gmra.mrb[24].mxu1 %v1690_v11  ;;  %v3440_v11 = vld [vmem:[%s4156_s6 + $0xe0] ss:$16 sps:$4 sm:$0xff]   ;;  %v3443_v12 = vld [vmem:[%s4156_s6 + $0xe8] ss:$16 sps:$4 sm:$0xff]  }
 0x48c   : > { %3244 = vmatpush3.bf16.msra.mxu1 %v3664_v3  ;;  %3245 = vmatprep.mubr.msk.bf16.mxu1 %vm3459_vm0, %v3458_v40  ;;  %v3391_v3 = vld [vmem:[%s4154_s4 + $0x208] sm:$0xff]  }
 0x48d   : > { %3249 = vmatprep.subr.bf16.mxu1 %v3458_v40 }
 0x48e   : > { %v1844_v14 = vpop.f32.mrb[36].mxu0 }
 0x48f   : > { %v3221_v15 = vpop.f32.mrb[37].mxu0 }
 0x490   : > { %v1847_v17 = vpop.f32.mrb[38].mxu0  ;;  %v2856_v15 = vld [vmem:[%s4155_s5] ss:$0 sm:$0xff] }
 0x491   : > { %v1851_v19 = vpack.c.bf16 %v1847_v17, %v1844_v14  ;;  %v3222_v20 = vpop.f32.mrb[39].mxu0 }
 0x493   : > { %3240 = vmatmul.mubr.bf16.vlgmr.msra.gmra.mrb[40].mxu0 %v1851_v19  ;;  %3246 = vmatmul.mubr.msk.bf16.vlgmr.msra.gmra.mrb[28].mxu1 %vm684_vm1, %v3389_v16 }
 0x494   : > { %3250 = vmatpush3.bf16.msra.mxu1 %v3390_v18  ;;  %3265 = vmatprep.mubr.msk.bf16.mxu1 %vm3459_vm0, %v3458_v40 }
 0x495   : > { %3251 = vmatprep.subr.bf16.mxu1 %v3458_v40  ;;  %2348 = vmatpush1.bf16.msra.mxu0 %v3398_v27 }
 0x496   : > { %2379 = vmatprep.mubr.bf16.mxu0 %v3460_v13 }
 0x498   : > { %3252 = vmatpush3.bf16.msra.mxu1 %v3391_v3 }
 0x499   : > { %3253 = vmatprep.subr.bf16.mxu1 %v3458_v40 }
 0x49c   : > { %3254 = vmatpush3.bf16.msra.mxu1 %v3392_v21 }
 0x49d   : > { %3255 = vmatprep.subr.bf16.mxu1 %v3458_v40 }
 0x4a0   : > { %3256 = vmatpush3.bf16.msra.mxu1 %v3393_v22 }
 0x4a1   : > { %3257 = vmatprep.subr.bf16.mxu1 %v3458_v40 }
 0x4a4   : > { %3258 = vmatpush3.bf16.msra.mxu1 %v3394_v23 }
 0x4a5   : > { %3259 = vmatprep.subr.bf16.mxu1 %v3458_v40 }
 0x4a8   : > { %3260 = vmatpush3.bf16.msra.mxu1 %v3395_v24 }
 0x4a9   : > { %3261 = vmatprep.subr.bf16.mxu1 %v3458_v40 }
 0x4ac   : > { %3262 = vmatpush3.bf16.msra.mxu1 %v3396_v25  ;;  %v2167_v25 = vlaneseq }
 0x4ad   : > { %3263 = vmatprep.subr.bf16.mxu1 %v3458_v40  ;;  %v3406_v40 = vld [vmem:[%s4156_s6 + $0x24] ss:$16 sps:$4 sm:$0xff]  }
 0x4ae   : > { %2349 = vmatprep.subr.bf16.mxu0 %v3406_v40  ;;  %vm2521_vm2 = vcmp.lt.s32.totalorder %v2167_v25, 512 }
 0x4af   : > { %2350 = vmatpush1.bf16.msra.mxu0 %v3404_v30 }
 0x4b0   : > { %3264 = vmatpush3.bf16.msra.mxu1 %v3397_v26  ;;  %2351 = vmatprep.subr.bf16.mxu0 %v3412_v31  ;;  %v4128_v26 = vshrl.u32 %v2167_v25, 7 }
 0x4b1   : > { %2390 = vmatprep.subr.bf16.mxu1 %v3403_v29  ;;  %v2165_v29 = vld [vmem:[%s4157_s7] sm:$0xf] }
 0x4b2   : > { %v2169_v27 = vsub.s32 0, %v4128_v26  ;;  %v2177_v28 = vsub.s32 2, %v4128_v26  ;;  %v2173_v40 = vsub.s32 1, %v4128_v26  ;;  %v2181_v30 = vsub.s32 3, %v4128_v26 }
 0x4b3   : > { %2352 = vmatpush1.bf16.msra.mxu0 %v3410_v32 }
 0x4b4   : > { %2353 = vmatprep.subr.bf16.mxu0 %v3418_v33  ;;  %v2170_v31 = vrot.slane %v2165_v29, %v2169_v27  ;;  %v2178_v32 = vrot.slane %v2165_v29, %v2177_v28  ;;  %v2174_v33 = vrot.slane %v2165_v29, %v2173_v40 }
 0x4b7   : > { %2354 = vmatpush1.bf16.msra.mxu0 %v3416_v34  ;;  %v2182_v34 = vrot.slane %v2165_v29, %v2181_v30 }
 0x4b8   : > { %2355 = vmatprep.subr.bf16.mxu0 %v3424_v35  ;;  %v3446_v35 = vld [vmem:[%s3615_s10] sm:$0xff] }
 0x4bb   : > { %2356 = vmatpush1.bf16.msra.mxu0 %v3422_v36  ;;  %v2433_v36 = vunpack.c.l.bf16 %v3446_v35 }
 0x4bc   : > { %2357 = vmatprep.subr.bf16.mxu0 %v3430_v37  ;;  %v3447_v37 = vld [vmem:[%s3615_s10 + $0x8] sm:$0xff] }
 0x4bf   : > { %2358 = vmatpush1.bf16.msra.mxu0 %v3428_v38  ;;  %v2435_v38 = vunpack.c.l.bf16 %v3447_v37 }
 0x55e   : > { %v1790_v39 = vpop.f32.mrb[24].mxu1 }
 0x55f   : > { %v1797_v41 = vadd.f32 %v1790_v39, %v3981_v5  ;;  %v3215_v42 = vpop.f32.mrb[25].mxu1  ;;  %v3436_v5 = vld [vmem:[%s4156_s6 + $0xc4] ss:$16 sps:$4 sm:$0xff]  }
 0x560   : > { %v1793_v43 = vpop.f32.mrb[26].mxu1  ;;  %2359 = vmatprep.subr.bf16.mxu0 %v3436_v5  ;;  %v2434_v42 = vunpack.c.h.bf16 %v3446_v35 }
 0x561   : > { %v1798_v44 = vadd.f32 %v1793_v43, %v3983_v10  ;;  %v3216_v45 = vpop.f32.mrb[27].mxu1  ;;  %2360 = vmatpush1.bf16.msra.mxu0 %v3434_v7  ;;  %v3445_v10 = vld [vmem:[%s4156_s6 + $0xec] ss:$16 sps:$4 sm:$0xff]   ;;  %v2436_v43 = vunpack.c.h.bf16 %v3447_v37 }
 0x562   : > { %2361 = vmatprep.subr.bf16.mxu0 %v3442_v9 }
 0x565   : > { %2362 = vmatpush1.bf16.msra.mxu0 %v3440_v11 }
 0x566   : > { %v1951_v46 = vpop.f32.mrb[40].mxu0  ;;  %v2005_v47 = vpop.f32.mrb[28].mxu1 }
 0x567   : > { %v1958_v48 = vadd.f32 %v1951_v46, %v1797_v41  ;;  %v3241_v49 = vpop.f32.mrb[41].mxu0  ;;  %v3247_v50 = vpop.f32.mrb[29].mxu1 }
 0x568   : > { %v1954_v51 = vpop.f32.mrb[42].mxu0  ;;  %v2008_v52 = vpop.f32.mrb[30].mxu1  ;;  %v3449_v50 = vld [vmem:[%s3615_s10 + $0x18] sm:$0xff] }
 0x569   : > { %v1959_v54 = vadd.f32 %v1954_v51, %v1798_v44  ;;  %v2012_v55 = vpack.c.bf16 %v2008_v52, %v2005_v47  ;;  %v3248_v56 = vpop.f32.mrb[31].mxu1  ;;  %v3242_v58 = vpop.f32.mrb[43].mxu0  ;;  %v2439_v51 = vunpack.c.l.bf16 %v3449_v50 }
 0x56b   : > { %3266 = vmatmul.mubr.bf16.vlgmr.msra.gmra.mrb[32].mxu1 %v2012_v55 }
 0x56c   : > { %2391 = vmatpush1.bf16.msra.mxu1 %v3401_v53  ;;  %2422 = vmatprep.mubr.bf16.mxu1 %v3460_v13 }
 0x56d   : > { %2392 = vmatprep.subr.bf16.mxu1 %v3409_v57  ;;  %v2440_v57 = vunpack.c.h.bf16 %v3449_v50 }
 0x570   : > { %2393 = vmatpush1.bf16.msra.mxu1 %v3407_v59 }
 0x571   : > { %2394 = vmatprep.subr.bf16.mxu1 %v3415_v60 }
 0x574   : > { %2395 = vmatpush1.bf16.msra.mxu1 %v3413_v61 }
 0x575   : > { %2396 = vmatprep.subr.bf16.mxu1 %v3421_v62 }
 0x578   : > { %2397 = vmatpush1.bf16.msra.mxu1 %v3419_v63 }
 0x579   : > { %2398 = vmatprep.subr.bf16.mxu1 %v3427_v0 }
 0x57c   : > { %2399 = vmatpush1.bf16.msra.mxu1 %v3425_v1 }
 0x57d   : > { %2400 = vmatprep.subr.bf16.mxu1 %v3433_v2 }
 0x580   : > { %2401 = vmatpush1.bf16.msra.mxu1 %v3431_v4 }
 0x581   : > { %2402 = vmatprep.subr.bf16.mxu1 %v3439_v6 }
 0x584   : > { %2403 = vmatpush1.bf16.msra.mxu1 %v3437_v8 }
 0x585   : > { %2404 = vmatprep.subr.bf16.mxu1 %v3445_v10 }
 0x588   : > { %2405 = vmatpush1.bf16.msra.mxu1 %v3443_v12 }
 0x63e   : > { %v2112_v14 = vpop.f32.mrb[32].mxu1 }
 0x63f   : > { %v2119_v16 = vadd.f32 %v2112_v14, %v1958_v48  ;;  %v3267_v17 = vpop.f32.mrb[33].mxu1  ;;  %v3448_v48 = vld [vmem:[%s3615_s10 + $0x10] sm:$0xff]  ;;  %s2584_s10 = sshll.u32 %s4160_s28, 2 }
 0x640   : > { %v2115_v18 = vpop.f32.mrb[34].mxu1  ;;  %v2437_v49 = vunpack.c.l.bf16 %v3448_v48  ;;  %v2438_v56 = vunpack.c.h.bf16 %v3448_v48  ;;  %s303_s21 = scalar_lea.vmem %s4158_s8, %s2584_s10 }
 0x641   : > { %v2128_v19 = vadd.f32 %v2856_v15, %v2119_v16  ;;  %v2120_v20 = vadd.f32 %v2115_v18, %v1959_v54  ;;  %v3268_v3 = vpop.f32.mrb[35].mxu1 }
 0x643   : > { %v2129_v21 = vadd.f32 %v2856_v15, %v2120_v20  ;;  %v2130_v22 = vmax.f32 %v2128_v19, 0.0 }
 0x645   : > { %v2131_v23 = vmax.f32 %v2129_v21, 0.0 }
 0x647   : > { %v2132_v24 = vpack.c.bf16 %v2131_v23, %v2130_v22 }
 0x649   : > { %2380 = vmatmul.mubr.bf16.vlgmr.msra.gmra.mrb[44].mxu0 %v2132_v24  ;;  %2423 = vmatmul.mubr.bf16.vlgmr.msra.gmra.mrb[36].mxu1 %v2132_v24 }
 0x71c   : > { %v2381_v39 = vpop.f32.mrb[44].mxu0  ;;  %v2424_v41 = vpop.f32.mrb[36].mxu1 }
 0x71d   : > { %v2382_v44 = vadd.f32 %v2381_v39, %v2170_v31  ;;  %v2425_v45 = vadd.f32 %v2424_v41, %v2178_v32  ;;  %v2383_v46 = vpop.f32.mrb[45].mxu0  ;;  %v2426_v47 = vpop.f32.mrb[37].mxu1 }
 0x71e   : > { %v2384_v52 = vadd.f32 %v2383_v46, %v2174_v33  ;;  %v2427_v53 = vadd.f32 %v2426_v47, %v2182_v34  ;;  %v2385_v54 = vpop.f32.mrb[46].mxu0  ;;  %v2428_v55 = vpop.f32.mrb[38].mxu1 }
 0x71f   : > { %v2441_v58 = vadd.f32 %v2433_v36, %v2382_v44  ;;  %v2443_v59 = vadd.f32 %v2435_v38, %v2425_v45  ;;  %v2386_v60 = vadd.f32 %v2385_v54, %v2170_v31  ;;  %v2429_v61 = vadd.f32 %v2428_v55, %v2178_v32  ;;  %v2387_v62 = vpop.f32.mrb[47].mxu0  ;;  %v2430_v63 = vpop.f32.mrb[39].mxu1 }
 0x720   : > { %v2442_v0 = vadd.f32 %v2434_v42, %v2384_v52  ;;  %v2444_v1 = vadd.f32 %v2436_v43, %v2427_v53  ;;  %v2388_v2 = vadd.f32 %v2387_v62, %v2174_v33  ;;  %v2431_v4 = vadd.f32 %v2430_v63, %v2182_v34 }
 0x721   : > { %v2445_v5 = vadd.f32 %v2437_v49, %v2386_v60  ;;  %v2447_v6 = vadd.f32 %v2439_v51, %v2429_v61  ;;  %v2449_v9 = vmax.f32 %v2441_v58, 0.0  ;;  %v2451_v10 = vmax.f32 %v2443_v59, 0.0 }
 0x722   : > { %v2446_v7 = vadd.f32 %v2438_v56, %v2388_v2  ;;  %v2448_v8 = vadd.f32 %v2440_v57, %v2431_v4  ;;  %v2450_v13 = vmax.f32 %v2442_v0, 0.0  ;;  %v2452_v14 = vmax.f32 %v2444_v1, 0.0 }
 0x723   : > { %v2453_v11 = vmax.f32 %v2445_v5, 0.0  ;;  %v2455_v12 = vmax.f32 %v2447_v6, 0.0  ;;  %v3461_v32 = vmov 1966171168  }
 0x724   : > { %v2454_v15 = vmax.f32 %v2446_v7, 0.0  ;;  %v2456_v16 = vmax.f32 %v2448_v8, 0.0  ;;  %v2497_v33 = vunpack.c.l.s4 %v3461_v32 }
 0x725   : > { %v2457_v17 = vadd.f32 %v2453_v11, %v2449_v9  ;;  %v2471_v18 = vadd.f32 %v2455_v12, %v2451_v10 }
 0x726   : > { %v2464_v19 = vadd.f32 %v2454_v15, %v2450_v13  ;;  %v2478_v20 = vadd.f32 %v2456_v16, %v2452_v14  ;;  %v2498_v43 = vunpack.c.0.s8 %v2497_v33 }
 0x727   : > { %v2458_v3 = vrot.slane %v2457_v17, 4  ;;  %v2472_v21 = vrot.slane %v2471_v18, 4 }
 0x728   : > { %v2465_v22 = vrot.slane %v2464_v19, 4  ;;  %v2479_v23 = vrot.slane %v2478_v20, 4  ;;  %v2501_v52 = vsub.s32 %v2498_v43, %v4128_v26 }
 0x729   : > { %v2459_v24 = vadd.f32 %v2458_v3, %v2457_v17  ;;  %v2473_v27 = vadd.f32 %v2472_v21, %v2471_v18 }
 0x72a   : > { %v2466_v28 = vadd.f32 %v2465_v22, %v2464_v19  ;;  %v2480_v29 = vadd.f32 %v2479_v23, %v2478_v20 }
 0x72b   : > { %v2460_v40 = vrot.slane %v2459_v24, 2  ;;  %v2474_v30 = vrot.slane %v2473_v27, 2 }
 0x72c   : > { %v2467_v31 = vrot.slane %v2466_v28, 2  ;;  %v2481_v34 = vrot.slane %v2480_v29, 2 }
 0x72d   : > { %v2461_v35 = vadd.f32 %v2460_v40, %v2459_v24  ;;  %v2475_v36 = vadd.f32 %v2474_v30, %v2473_v27 }
 0x72e   : > { %v2468_v37 = vadd.f32 %v2467_v31, %v2466_v28  ;;  %v2482_v38 = vadd.f32 %v2481_v34, %v2480_v29 }
 0x72f   : > { %v2462_v39 = vrot.slane %v2461_v35, 1  ;;  %v2476_v41 = vrot.slane %v2475_v36, 1 }
 0x730   : > { %v2469_v42 = vrot.slane %v2468_v37, 1  ;;  %v2483_v44 = vrot.slane %v2482_v38, 1 }
 0x731   : > { %v2463_v45 = vadd.f32 %v2462_v39, %v2461_v35  ;;  %v2477_v46 = vadd.f32 %v2476_v41, %v2475_v36 }
 0x732   : > { %v2470_v47 = vadd.f32 %v2469_v42, %v2468_v37  ;;  %v2484_v48 = vadd.f32 %v2483_v44, %v2482_v38 }
 0x733   : > { %v2486_v49 = vmul.f32 0.0625, %v2463_v45  ;;  %v2488_v50 = vmul.f32 0.0625, %v2477_v46 }
 0x734   : > { %v2487_v51 = vmul.f32 0.0625, %v2470_v47  ;;  %v2489_v53 = vmul.f32 0.0625, %v2484_v48 }
 0x736   : > { %v2494_v54 = vcombine.low %v2486_v49, %v2487_v51  ;;  %v2495_v55 = vcombine.low %v2488_v50, %v2489_v53 }
 0x738   : > { %v2502_v56 = vrot.slane %v2494_v54, %v2501_v52  ;;  %v2509_v57 = vrot.slane %v2495_v55, %v2501_v52 }
 0x73a   : > { %v2510_v58 = vcombine.low %v2502_v56, %v2509_v57 }
 0x73c   : > { %v2517_v59 = vrot.slane %v2510_v58, %v2501_v52 }
 0x73e   : > { %2523 = vst.msk [vmem:[%s303_s21] sm:$0xf] %vm2521_vm2, %v2517_v59 }
 0x73f PF: > { %s18_s27 = sadd.s32 1, %s3456_s27  }
 0x740   : > { %p15_p4 = scmp.ge.s32.totalorder %s18_s27, 4  }
 0x742   :  { %17 = sbr.rel (!%p15_p4) target bundleno = 1 (0x1), region = 98 }

// kernel: vae_recon_encoder_forward.13
= control target key start
LH: loop header
LB: loop body
LE: loop exit
PB: predicated region body
PF: predicated region fallthrough
CT: control target
= control target key end

     0   :  { %s3480_s27 = smov 0   ;;  %s4117_s0 = inlined_call_operand.vmem [shape: bf16[2,16,512], index: 0, kind: input, shape index: {}]   ;;  %s4118_s1 = inlined_call_operand.vmem [shape: bf16[9,16,16], index: 1, kind: input, shape index: {}]   ;;  %s4119_s2 = inlined_call_operand.vmem [shape: bf16[512,128], index: 2, kind: input, shape index: {}]   ;;  %s4120_s3 = inlined_call_operand.vmem [shape: f32[1,128], index: 3, kind: input, shape index: {}, may-alias: {3,5}]   ;;  %s4121_s4 = inlined_call_operand.vmem [shape: bf16[9,128,128], index: 4, kind: input, shape index: {}]   ;;  %s4122_s5 = inlined_call_operand.vmem [shape: f32[1,128], index: 5, kind: input, shape index: {}, may-alias: {3,5}]   ;;  %s4123_s6 = inlined_call_operand.vmem [shape: bf16[128,512], index: 6, kind: input, shape index: {}]   ;;  %s4124_s7 = inlined_call_operand.vmem [shape: f32[1,512], index: 7, kind: input, shape index: {}]   ;;  %s4125_s8 = inlined_call_operand.vmem [shape: bf16[2,16,512], index: 8, kind: output, shape index: {}]  }
   0x1 LB: > { %s2542_s28 = sadd.s32 4294967295, %s3430_s27   ;;  %p2546_p0 = scmp.ge.s32.totalorder %s3430_s27, 1  ;;  %s3430_s27 = sphi %s3480_s27, %s18_s27  }
   0x2   : > { %p262_p1 = scmp.lt.s32.totalorder %s3430_s27, 3 }
   0x4   : > { %p263_p2 = pnand %p2546_p0, %p262_p1 }
   0x5   : > { %v3255_v0 = vld [vmem:[%s4119_s2 + $0x40] sm:$0xff] (!%p263_p2)   ;;  %v3259_v4 = vld [vmem:[%s4119_s2 + $0x48] sm:$0xff] (!%p263_p2)   ;;  %v3263_v8 = vld [vmem:[%s4119_s2 + $0x50] sm:$0xff] (!%p263_p2)   ;;  %p296_p3 = scmp.lt.s32.totalorder (!%p263_p2), %s2542_s28, 1  ;;  %v3432_v40 = vmov (!%p263_p2), 0.0   ;;  %vm3433_vm0 = vmmov (!%p263_p2), 0  }
   0x6   : > { %266 = sbr.rel (%p263_p2) target bundleno = 1833 (0x729), region = 52  ;;  %v3256_v1 = vld [vmem:[%s4119_s2 + $0xc0] sm:$0xff] (!%p263_p2)   ;;  %2867 = vmatprep.subr.bf16.mxu0 (!%p263_p2), %v3255_v0  ;;  %v3260_v5 = vld [vmem:[%s4119_s2 + $0xc8] sm:$0xff] (!%p263_p2)   ;;  %v3264_v9 = vld [vmem:[%s4119_s2 + $0xd0] sm:$0xff] (!%p263_p2)   ;;  %vm686_vm1 = vcmask (!%p263_p2), 130048  }
   0x7   : > { %v3257_v2 = vld [vmem:[%s4119_s2] sm:$0xff] (!%p263_p2)   ;;  %2889 = vmatprep.subr.bf16.mxu1 (!%p263_p2), %v3256_v1  ;;  %v3261_v6 = vld [vmem:[%s4119_s2 + $0x8] sm:$0xff] (!%p263_p2)   ;;  %v3265_v10 = vld [vmem:[%s4119_s2 + $0x10] sm:$0xff] (!%p263_p2)  }
   0x8   : > { %v3258_v3 = vld [vmem:[%s4119_s2 + $0x80] sm:$0xff] (!%p263_p2)   ;;  %2868 = vmatpush3.bf16.msra.mxu0 (!%p263_p2), %v3257_v2  ;;  %v3262_v7 = vld [vmem:[%s4119_s2 + $0x88] sm:$0xff] (!%p263_p2)   ;;  %v3266_v11 = vld [vmem:[%s4119_s2 + $0x90] sm:$0xff] (!%p263_p2)  }
   0x9   : > { %2890 = vmatpush3.bf16.msra.mxu1 (!%p263_p2), %v3258_v3  ;;  %2869 = vmatprep.subr.bf16.mxu0 (!%p263_p2), %v3259_v4  ;;  %v3267_v12 = vld [vmem:[%s4119_s2 + $0x58] sm:$0xff] (!%p263_p2)   ;;  %v3271_v16 = vld [vmem:[%s4119_s2 + $0x60] sm:$0xff] (!%p263_p2)   ;;  %v3275_v20 = vld [vmem:[%s4119_s2 + $0x68] sm:$0xff] (!%p263_p2)  }
   0xa   : > { %2891 = vmatprep.subr.bf16.mxu1 (!%p263_p2), %v3260_v5  ;;  %v3268_v13 = vld [vmem:[%s4119_s2 + $0xd8] sm:$0xff] (!%p263_p2)   ;;  %v3272_v17 = vld [vmem:[%s4119_s2 + $0xe0] sm:$0xff] (!%p263_p2)   ;;  %v3276_v21 = vld [vmem:[%s4119_s2 + $0xe8] sm:$0xff] (!%p263_p2)  }
   0xb   : > { %v3269_v14 = vld [vmem:[%s4119_s2 + $0x18] sm:$0xff] (!%p263_p2)   ;;  %v3273_v18 = vld [vmem:[%s4119_s2 + $0x20] sm:$0xff] (!%p263_p2)   ;;  %v3277_v22 = vld [vmem:[%s4119_s2 + $0x28] sm:$0xff] (!%p263_p2)  }
   0xc   : > { %2870 = vmatpush3.bf16.msra.mxu0 (!%p263_p2), %v3261_v6  ;;  %v3270_v15 = vld [vmem:[%s4119_s2 + $0x98] sm:$0xff] (!%p263_p2)   ;;  %v3274_v19 = vld [vmem:[%s4119_s2 + $0xa0] sm:$0xff] (!%p263_p2)   ;;  %v3278_v23 = vld [vmem:[%s4119_s2 + $0xa8] sm:$0xff] (!%p263_p2)  }
   0xd   : > { %2892 = vmatpush3.bf16.msra.mxu1 %v3262_v7  ;;  %2871 = vmatprep.subr.bf16.mxu0 %v3263_v8  ;;  %s4127_s28 = smov (!%p296_p3, %s2542_s28), 1  ;;  %v3279_v24 = vld [vmem:[%s4119_s2 + $0x70] sm:$0xff]   ;;  %v3283_v28 = vld [vmem:[%s4119_s2 + $0x78] sm:$0xff]   ;;  %v3293_v41 = vld [vmem:[%s4121_s4] sm:$0xff]  }
   0xe   : > { %2893 = vmatprep.subr.bf16.mxu1 %v3264_v9  ;;  %v3280_v25 = vld [vmem:[%s4119_s2 + $0xf0] sm:$0xff]   ;;  %s2861_s21 = sshll.u32 %s4127_s28, 5  ;;  %v3284_v29 = vld [vmem:[%s4119_s2 + $0xf8] sm:$0xff]   ;;  %v3294_v42 = vld [vmem:[%s4121_s4 + $0x8] sm:$0xff]  }
   0xf   : > { %v3281_v26 = vld [vmem:[%s4119_s2 + $0x30] sm:$0xff]   ;;  %s3590_s10 = scalar_lea.vmem %s4117_s0, %s2861_s21  ;;  %v3285_v30 = vld [vmem:[%s4119_s2 + $0x38] sm:$0xff]   ;;  %v3300_v45 = vld [vmem:[%s4121_s4 + $0x20] sm:$0xff]   ;;  %s305_s14 = scalar_lea.vmem %s4125_s8, %s2861_s21 }
  0x10   : > { %2872 = vmatpush3.bf16.msra.mxu0 %v3265_v10  ;;  %v3282_v27 = vld [vmem:[%s4119_s2 + $0xb0] sm:$0xff]   ;;  %v3286_v31 = vld [vmem:[%s4119_s2 + $0xb8] sm:$0xff]   ;;  %v307_v32 = vld [vmem:[%s3590_s10] sm:$0xff] }
  0x11   : > { %2894 = vmatpush3.bf16.msra.mxu1 %v3266_v11  ;;  %2873 = vmatprep.subr.bf16.mxu0 %v3267_v12  ;;  %v309_v33 = vld [vmem:[%s3590_s10 + $0x10] sm:$0xff]  ;;  %v308_v34 = vld [vmem:[%s3590_s10 + $0x8] sm:$0xff]  ;;  %v310_v36 = vld [vmem:[%s3590_s10 + $0x18] sm:$0xff] }
  0x12   : > { %2895 = vmatprep.subr.bf16.mxu1 %v3268_v13  ;;  %v2553_v35 = vcombine.high %v307_v32, %v309_v33  ;;  %v2552_v37 = vcombine.low %v307_v32, %v309_v33  ;;  %v2555_v38 = vcombine.high %v308_v34, %v310_v36  ;;  %v2554_v39 = vcombine.low %v308_v34, %v310_v36  ;;  %v3296_v43 = vld [vmem:[%s4121_s4 + $0x10] sm:$0xff]   ;;  %v3298_v44 = vld [vmem:[%s4121_s4 + $0x18] sm:$0xff]   ;;  %v3302_v46 = vld [vmem:[%s4121_s4 + $0x28] sm:$0xff]  }
  0x13   : > { %v3304_v47 = vld [vmem:[%s4121_s4 + $0x30] sm:$0xff]   ;;  %v2551_v50 = vld [vmem:[%s4120_s3] ss:$0 sm:$0xff]  ;;  %v3292_v5 = vld [vmem:[%s4118_s1 + $0x8] sm:$0xff]  }
  0x14   : > { %2874 = vmatpush3.bf16.msra.mxu0 %v3269_v14  ;;  %626 = vmatprep.mubr.bf16.mxu0 %v2553_v35  ;;  %v3291_v4 = vld [vmem:[%s4118_s1] sm:$0xff]   ;;  %v3297_v7 = vld [vmem:[%s4121_s4 + $0x48] sm:$0xff]   ;;  %v3299_v8 = vld [vmem:[%s4121_s4 + $0x50] sm:$0xff]  }
  0x15   : > { %2896 = vmatpush3.bf16.msra.mxu1 %v3270_v15  ;;  %2875 = vmatprep.subr.bf16.mxu0 %v3271_v16  ;;  %v3295_v6 = vld [vmem:[%s4121_s4 + $0x40] sm:$0xff]   ;;  %v3301_v9 = vld [vmem:[%s4121_s4 + $0x58] sm:$0xff]   ;;  %v3305_v11 = vld [vmem:[%s4121_s4 + $0x68] sm:$0xff]  }
  0x16   : > { %2897 = vmatprep.subr.bf16.mxu1 %v3272_v17  ;;  %667 = vmatprep.mubr.bf16.mxu1 %v2555_v38  ;;  %v3303_v10 = vld [vmem:[%s4121_s4 + $0x60] sm:$0xff]   ;;  %v3306_v12 = vld [vmem:[%s4121_s4 + $0x38] sm:$0xff]   ;;  %v3307_v13 = vld [vmem:[%s4121_s4 + $0x70] sm:$0xff]  }
  0x17   : > { %v3308_v14 = vld [vmem:[%s4121_s4 + $0x78] sm:$0xff]   ;;  %v3316_v32 = vld [vmem:[%s4121_s4 + $0xc8] sm:$0xff]   ;;  %v3317_v33 = vld [vmem:[%s4121_s4 + $0xa0] sm:$0xff]  }
  0x18   : > { %2876 = vmatpush3.bf16.msra.mxu0 %v3273_v18  ;;  %v3311_v18 = vld [vmem:[%s4121_s4 + $0x80] sm:$0xff]   ;;  %v3318_v34 = vld [vmem:[%s4121_s4 + $0xd0] sm:$0xff]   ;;  %v3319_v35 = vld [vmem:[%s4121_s4 + $0xa8] sm:$0xff]  }
  0x19   : > { %2898 = vmatpush3.bf16.msra.mxu1 %v3274_v19  ;;  %2877 = vmatprep.subr.bf16.mxu0 %v3275_v20  ;;  %v3320_v36 = vld [vmem:[%s4121_s4 + $0xd8] sm:$0xff]   ;;  %v3322_v38 = vld [vmem:[%s4121_s4 + $0xe0] sm:$0xff]  }
  0x1a   : > { %2899 = vmatprep.subr.bf16.mxu1 %v3276_v21  ;;  %v3312_v21 = vld [vmem:[%s4121_s4 + $0x88] sm:$0xff]  }
  0x1c   : > { %2878 = vmatpush3.bf16.msra.mxu0 %v3277_v22 }
  0x1d   : > { %2900 = vmatpush3.bf16.msra.mxu1 %v3278_v23  ;;  %2879 = vmatprep.subr.bf16.mxu0 %v3279_v24 }
  0x1e   : > { %2901 = vmatprep.subr.bf16.mxu1 %v3280_v25 }
  0x20   : > { %2880 = vmatpush3.bf16.msra.mxu0 %v3281_v26 }
  0x21   : > { %2902 = vmatpush3.bf16.msra.mxu1 %v3282_v27  ;;  %2881 = vmatprep.subr.bf16.mxu0 %v3283_v28  ;;  %v3313_v27 = vld [vmem:[%s4121_s4 + $0x90] sm:$0xff]  }
  0x22   : > { %2903 = vmatprep.subr.bf16.mxu1 %v3284_v29  ;;  %v3309_v28 = vld [vmem:[%s4118_s1 + $0x10] sm:$0xff]   ;;  %v3310_v29 = vld [vmem:[%s4118_s1 + $0x18] sm:$0xff]  }
  0x24   : > { %2882 = vmatpush3.bf16.msra.mxu0 %v3285_v30  ;;  %v3314_v30 = vld [vmem:[%s4121_s4 + $0xc0] sm:$0xff]  }
  0x25   : > { %2904 = vmatpush3.bf16.msra.mxu1 %v3286_v31  ;;  %3010 = vmatprep.subr.bf16.mxu0 %v3432_v40  ;;  %v3315_v31 = vld [vmem:[%s4121_s4 + $0x98] sm:$0xff]  }
  0x26   : > { %3042 = vmatprep.subr.bf16.mxu1 %v3432_v40 }
  0x27   : > { %627 = vmatmul.mubr.bf16.vlgmr.msra.gmra.mrb[0].mxu0 %v2552_v37  ;;  %v3321_v37 = vld [vmem:[%s4121_s4 + $0xb0] sm:$0xff]  }
  0x28   : > { %668 = vmatmul.mubr.bf16.vlgmr.msra.gmra.mrb[0].mxu1 %v2554_v39  ;;  %3012 = vmatprep.mubr.msk.bf16.mxu0 %vm3433_vm0, %v3432_v40  ;;  %v3323_v39 = vld [vmem:[%s4121_s4 + $0xb8] sm:$0xff]  }
  0x29   : > { %3058 = vmatprep.mubr.msk.bf16.mxu1 %vm3433_vm0, %v3432_v40  ;;  %3043 = vmatpush3.bf16.msra.mxu1 %v3293_v41  ;;  %v3324_v41 = vld [vmem:[%s4121_s4 + $0xe8] sm:$0xff]  }
  0x2a   : > { %3044 = vmatprep.subr.bf16.mxu1 %v3432_v40 }
  0x2d   : > { %3045 = vmatpush3.bf16.msra.mxu1 %v3294_v42  ;;  %v3325_v42 = vld [vmem:[%s4121_s4 + $0xf0] sm:$0xff]  }
  0x2e   : > { %3046 = vmatprep.subr.bf16.mxu1 %v3432_v40 }
  0x31   : > { %3047 = vmatpush3.bf16.msra.mxu1 %v3296_v43  ;;  %v3326_v43 = vld [vmem:[%s4121_s4 + $0xf8] sm:$0xff]  }
  0x32   : > { %3048 = vmatprep.subr.bf16.mxu1 %v3432_v40 }
  0x35   : > { %3049 = vmatpush3.bf16.msra.mxu1 %v3298_v44 }
  0x36   : > { %3050 = vmatprep.subr.bf16.mxu1 %v3432_v40 }
  0x39   : > { %3051 = vmatpush3.bf16.msra.mxu1 %v3300_v45 }
  0x3a   : > { %3052 = vmatprep.subr.bf16.mxu1 %v3432_v40 }
  0x3d   : > { %3053 = vmatpush3.bf16.msra.mxu1 %v3302_v46 }
  0x3e   : > { %3054 = vmatprep.subr.bf16.mxu1 %v3432_v40 }
  0x41   : > { %3055 = vmatpush3.bf16.msra.mxu1 %v3304_v47 }
  0x42   : > { %3056 = vmatprep.subr.bf16.mxu1 %v3432_v40 }
  0x45   : > { %3057 = vmatpush3.bf16.msra.mxu1 %v3306_v12  ;;  %v3338_v12 = vld [vmem:[%s4121_s4 + $0x158] sm:$0xff]  }
  0x46   : > { %3068 = vmatprep.subr.bf16.mxu1 %v3432_v40 }
  0xfa   : > { %v2883_v48 = vpop.f32.mrb[0].mxu0 }
  0xfb   : > { %v2905_v49 = vpop.f32.mrb[0].mxu1  ;;  %v2884_v51 = vpop.f32.mrb[1].mxu0 }
  0xfc   : > { %v2885_v52 = vadd.f32 %v2884_v51, %v2883_v48  ;;  %v2906_v53 = vpop.f32.mrb[1].mxu1  ;;  %v2886_v54 = vpop.f32.mrb[2].mxu0 }
  0xfd   : > { %v2907_v55 = vadd.f32 %v2906_v53, %v2905_v49  ;;  %v2908_v56 = vpop.f32.mrb[2].mxu1  ;;  %v2887_v57 = vpop.f32.mrb[3].mxu0 }
  0xfe   : > { %v629_v58 = vadd.f32 %v2885_v52, %v2551_v50  ;;  %v2888_v59 = vadd.f32 %v2887_v57, %v2886_v54  ;;  %v2909_v60 = vpop.f32.mrb[3].mxu1 }
  0xff   : > { %v2910_v61 = vadd.f32 %v2909_v60, %v2908_v56 }
 0x100   : > { %v670_v62 = vadd.f32 %v2907_v55, %v629_v58  ;;  %v632_v63 = vadd.f32 %v2888_v59, %v2551_v50 }
 0x102   : > { %v673_v0 = vadd.f32 %v2910_v61, %v632_v63  ;;  %v676_v1 = vmax.f32 %v670_v62, 0.0  ;;  %v3327_v61 = vld [vmem:[%s4118_s1 + $0x20] sm:$0xff]  }
 0x104   : > { %v677_v2 = vmax.f32 %v673_v0, 0.0  ;;  %v3329_v0 = vld [vmem:[%s4121_s4 + $0x100] sm:$0xff]  }
 0x106   : > { %v3639_v3 = vpack.c.bf16 %v677_v2, %v676_v1  ;;  %v3330_v2 = vld [vmem:[%s4121_s4 + $0x108] sm:$0xff]  }
 0x108   : > { %3011 = vmatpush3.bf16.msra.mxu0 %v3639_v3 }
 0x109   : > { %3016 = vmatprep.subr.bf16.mxu0 %v3432_v40 }
 0x10b   : > { %3013 = vmatmul.mubr.msk.bf16.vlgmr.msra.gmra.mrb[4].mxu0 %vm686_vm1, %v3291_v4  ;;  %v3328_v4 = vld [vmem:[%s4118_s1 + $0x28] sm:$0xff]  }
 0x10c   : > { %3017 = vmatpush3.bf16.msra.mxu0 %v3639_v3  ;;  %3018 = vmatprep.mubr.msk.bf16.mxu0 %vm3433_vm0, %v3432_v40 }
 0x10d   : > { %3022 = vmatprep.subr.bf16.mxu0 %v3432_v40 }
 0x113   : > { %3019 = vmatmul.mubr.msk.bf16.vlgmr.msra.gmra.mrb[8].mxu0 %vm686_vm1, %v3292_v5  ;;  %v3332_v5 = vld [vmem:[%s4121_s4 + $0x140] sm:$0xff]  }
 0x114   : > { %3023 = vmatpush3.bf16.msra.mxu0 %v3295_v6  ;;  %3038 = vmatprep.mubr.msk.bf16.mxu0 %vm3433_vm0, %v3432_v40  ;;  %v3331_v6 = vld [vmem:[%s4121_s4 + $0x110] sm:$0xff]  }
 0x115   : > { %3024 = vmatprep.subr.bf16.mxu0 %v3432_v40 }
 0x118   : > { %3025 = vmatpush3.bf16.msra.mxu0 %v3297_v7  ;;  %v3334_v7 = vld [vmem:[%s4121_s4 + $0x148] sm:$0xff]  }
 0x119   : > { %3026 = vmatprep.subr.bf16.mxu0 %v3432_v40 }
 0x11c   : > { %3027 = vmatpush3.bf16.msra.mxu0 %v3299_v8  ;;  %v3333_v8 = vld [vmem:[%s4121_s4 + $0x118] sm:$0xff]  }
 0x11d   : > { %3028 = vmatprep.subr.bf16.mxu0 %v3432_v40 }
 0x120   : > { %3029 = vmatpush3.bf16.msra.mxu0 %v3301_v9  ;;  %v3336_v9 = vld [vmem:[%s4121_s4 + $0x150] sm:$0xff]  }
 0x121   : > { %3030 = vmatprep.subr.bf16.mxu0 %v3432_v40 }
 0x124   : > { %3031 = vmatpush3.bf16.msra.mxu0 %v3303_v10  ;;  %v3335_v10 = vld [vmem:[%s4121_s4 + $0x120] sm:$0xff]  }
 0x125   : > { %3032 = vmatprep.subr.bf16.mxu0 %v3432_v40 }
 0x128   : > { %3033 = vmatpush3.bf16.msra.mxu0 %v3305_v11  ;;  %v3337_v11 = vld [vmem:[%s4121_s4 + $0x128] sm:$0xff]  }
 0x129   : > { %3034 = vmatprep.subr.bf16.mxu0 %v3432_v40 }
 0x12c   : > { %3035 = vmatpush3.bf16.msra.mxu0 %v3307_v13  ;;  %v3339_v13 = vld [vmem:[%s4121_s4 + $0x130] sm:$0xff]  }
 0x12d   : > { %3036 = vmatprep.subr.bf16.mxu0 %v3432_v40 }
 0x130   : > { %3037 = vmatpush3.bf16.msra.mxu0 %v3308_v14  ;;  %v3340_v14 = vld [vmem:[%s4121_s4 + $0x160] sm:$0xff]  }
 0x131   : > { %3062 = vmatprep.subr.bf16.mxu0 %v3432_v40 }
 0x1de   : > { %v724_v15 = vpop.f32.mrb[4].mxu0 }
 0x1df   : > { %v3014_v16 = vpop.f32.mrb[5].mxu0 }
 0x1e0   : > { %v727_v17 = vpop.f32.mrb[6].mxu0  ;;  %v3342_v16 = vld [vmem:[%s4121_s4 + $0x168] sm:$0xff]  }
 0x1e1   : > { %v731_v19 = vpack.c.bf16 %v727_v17, %v724_v15  ;;  %v3015_v20 = vpop.f32.mrb[7].mxu0  ;;  %v3341_v15 = vld [vmem:[%s4121_s4 + $0x138] sm:$0xff]   ;;  %v3343_v17 = vld [vmem:[%s4121_s4 + $0x170] sm:$0xff]  }
 0x1e3   : > { %3059 = vmatmul.mubr.bf16.vlgmr.msra.gmra.mrb[4].mxu1 %v731_v19 }
 0x1e4   : > { %3069 = vmatpush3.bf16.msra.mxu1 %v3311_v18  ;;  %3084 = vmatprep.mubr.msk.bf16.mxu1 %vm3433_vm0, %v3432_v40  ;;  %v3344_v18 = vld [vmem:[%s4121_s4 + $0x178] sm:$0xff]  }
 0x1e5   : > { %3070 = vmatprep.subr.bf16.mxu1 %v3432_v40 }
 0x1e6   : > { %v793_v22 = vpop.f32.mrb[8].mxu0 }
 0x1e7   : > { %v3020_v23 = vpop.f32.mrb[9].mxu0 }
 0x1e8   : > { %v796_v24 = vpop.f32.mrb[10].mxu0  ;;  %3071 = vmatpush3.bf16.msra.mxu1 %v3312_v21 }
 0x1e9   : > { %v800_v25 = vpack.c.bf16 %v796_v24, %v793_v22  ;;  %v3021_v26 = vpop.f32.mrb[11].mxu0  ;;  %3072 = vmatprep.subr.bf16.mxu1 %v3432_v40 }
 0x1eb   : > { %3039 = vmatmul.mubr.bf16.vlgmr.msra.gmra.mrb[12].mxu0 %v800_v25 }
 0x1ec   : > { %3063 = vmatpush3.bf16.msra.mxu0 %v3639_v3  ;;  %3064 = vmatprep.mubr.msk.bf16.mxu0 %vm3433_vm0, %v3432_v40 }
 0x1ed   : > { %3088 = vmatprep.subr.bf16.mxu0 %v3432_v40  ;;  %3073 = vmatpush3.bf16.msra.mxu1 %v3313_v27 }
 0x1ee   : > { %3074 = vmatprep.subr.bf16.mxu1 %v3432_v40 }
 0x1f1   : > { %3075 = vmatpush3.bf16.msra.mxu1 %v3315_v31 }
 0x1f2   : > { %3076 = vmatprep.subr.bf16.mxu1 %v3432_v40 }
 0x1f3   : > { %3065 = vmatmul.mubr.msk.bf16.vlgmr.msra.gmra.mrb[16].mxu0 %vm686_vm1, %v3309_v28 }
 0x1f4   : > { %3089 = vmatpush3.bf16.msra.mxu0 %v3639_v3  ;;  %3090 = vmatprep.mubr.msk.bf16.mxu0 %vm3433_vm0, %v3432_v40 }
 0x1f5   : > { %3094 = vmatprep.subr.bf16.mxu0 %v3432_v40  ;;  %3077 = vmatpush3.bf16.msra.mxu1 %v3317_v33 }
 0x1f6   : > { %3078 = vmatprep.subr.bf16.mxu1 %v3432_v40 }
 0x1f9   : > { %3079 = vmatpush3.bf16.msra.mxu1 %v3319_v35 }
 0x1fa   : > { %3080 = vmatprep.subr.bf16.mxu1 %v3432_v40 }
 0x1fb   : > { %3091 = vmatmul.mubr.msk.bf16.vlgmr.msra.gmra.mrb[20].mxu0 %vm686_vm1, %v3310_v29 }
 0x1fc   : > { %3095 = vmatpush3.bf16.msra.mxu0 %v3314_v30  ;;  %3110 = vmatprep.mubr.msk.bf16.mxu0 %vm3433_vm0, %v3432_v40 }
 0x1fd   : > { %3096 = vmatprep.subr.bf16.mxu0 %v3432_v40  ;;  %3081 = vmatpush3.bf16.msra.mxu1 %v3321_v37 }
 0x1fe   : > { %3082 = vmatprep.subr.bf16.mxu1 %v3432_v40 }
 0x200   : > { %3097 = vmatpush3.bf16.msra.mxu0 %v3316_v32 }
 0x201   : > { %3098 = vmatprep.subr.bf16.mxu0 %v3432_v40  ;;  %3083 = vmatpush3.bf16.msra.mxu1 %v3323_v39 }
 0x202   : > { %3114 = vmatprep.subr.bf16.mxu1 %v3432_v40 }
 0x204   : > { %3099 = vmatpush3.bf16.msra.mxu0 %v3318_v34 }
 0x205   : > { %3100 = vmatprep.subr.bf16.mxu0 %v3432_v40 }
 0x208   : > { %3101 = vmatpush3.bf16.msra.mxu0 %v3320_v36 }
 0x209   : > { %3102 = vmatprep.subr.bf16.mxu0 %v3432_v40 }
 0x20c   : > { %3103 = vmatpush3.bf16.msra.mxu0 %v3322_v38  ;;  %v3345_v38 = vld [vmem:[%s4118_s1 + $0x30] sm:$0xff]  }
 0x20d   : > { %3104 = vmatprep.subr.bf16.mxu0 %v3432_v40 }
 0x210   : > { %3105 = vmatpush3.bf16.msra.mxu0 %v3324_v41 }
 0x211   : > { %3106 = vmatprep.subr.bf16.mxu0 %v3432_v40 }
 0x214   : > { %3107 = vmatpush3.bf16.msra.mxu0 %v3325_v42  ;;  %v3347_v42 = vld [vmem:[%s4121_s4 + $0x180] sm:$0xff]  }
 0x215   : > { %3108 = vmatprep.subr.bf16.mxu0 %v3432_v40 }
 0x218   : > { %3109 = vmatpush3.bf16.msra.mxu0 %v3326_v43 }
 0x219   : > { %3140 = vmatprep.subr.bf16.mxu0 %v3432_v40 }
 0x2b6   : > { %v989_v44 = vpop.f32.mrb[4].mxu1 }
 0x2b7   : > { %v3060_v45 = vpop.f32.mrb[5].mxu1 }
 0x2b8   : > { %v992_v46 = vpop.f32.mrb[6].mxu1  ;;  %v3346_v45 = vld [vmem:[%s4118_s1 + $0x38] sm:$0xff]  }
 0x2b9   : > { %v3061_v47 = vpop.f32.mrb[7].mxu1 }
 0x2ba   : > { %v3349_v47 = vld [vmem:[%s4121_s4 + $0x190] sm:$0xff]  }
 0x2be   : > { %v900_v48 = vpop.f32.mrb[12].mxu0 }
 0x2bf   : > { %v3777_v49 = vadd.f32 %v989_v44, %v900_v48  ;;  %v3040_v50 = vpop.f32.mrb[13].mxu0  ;;  %v3348_v44 = vld [vmem:[%s4121_s4 + $0x188] sm:$0xff]  }
 0x2c0   : > { %v903_v51 = vpop.f32.mrb[14].mxu0  ;;  %v3352_v48 = vld [vmem:[%s4121_s4 + $0x1c8] sm:$0xff]   ;;  %v3354_v50 = vld [vmem:[%s4121_s4 + $0x1d0] sm:$0xff]  }
 0x2c1   : > { %v3779_v52 = vadd.f32 %v992_v46, %v903_v51  ;;  %v3041_v53 = vpop.f32.mrb[15].mxu0  ;;  %v3350_v46 = vld [vmem:[%s4121_s4 + $0x1c0] sm:$0xff]  }
 0x2c2   : > { %v3353_v51 = vld [vmem:[%s4121_s4 + $0x1a0] sm:$0xff]   ;;  %v3356_v53 = vld [vmem:[%s4121_s4 + $0x1d8] sm:$0xff]  }
 0x2c6   : > { %v1041_v54 = vpop.f32.mrb[16].mxu0 }
 0x2c7   : > { %v3066_v55 = vpop.f32.mrb[17].mxu0 }
 0x2c8   : > { %v1044_v56 = vpop.f32.mrb[18].mxu0  ;;  %v3358_v55 = vld [vmem:[%s4121_s4 + $0x1e0] sm:$0xff]  }
 0x2c9   : > { %v1048_v57 = vpack.c.bf16 %v1044_v56, %v1041_v54  ;;  %v3067_v58 = vpop.f32.mrb[19].mxu0  ;;  %v3357_v54 = vld [vmem:[%s4121_s4 + $0x1b0] sm:$0xff]   ;;  %v3359_v56 = vld [vmem:[%s4121_s4 + $0x1b8] sm:$0xff]  }
 0x2ca   : > { %v3361_v58 = vld [vmem:[%s4121_s4 + $0x1f0] sm:$0xff]  }
 0x2cb   : > { %3085 = vmatmul.mubr.bf16.vlgmr.msra.gmra.mrb[8].mxu1 %v1048_v57  ;;  %v3360_v57 = vld [vmem:[%s4121_s4 + $0x1e8] sm:$0xff]  }
 0x2cc   : > { %3115 = vmatpush3.bf16.msra.mxu1 %v3639_v3  ;;  %3116 = vmatprep.mubr.msk.bf16.mxu1 %vm3433_vm0, %v3432_v40 }
 0x2cd   : > { %3120 = vmatprep.subr.bf16.mxu1 %v3432_v40 }
 0x2ce   : > { %v1202_v59 = vpop.f32.mrb[20].mxu0 }
 0x2cf   : > { %v3092_v60 = vpop.f32.mrb[21].mxu0 }
 0x2d0   : > { %v1205_v62 = vpop.f32.mrb[22].mxu0 }
 0x2d1   : > { %v1209_v63 = vpack.c.bf16 %v1205_v62, %v1202_v59  ;;  %v3093_v1 = vpop.f32.mrb[23].mxu0  ;;  %v3362_v59 = vld [vmem:[%s4121_s4 + $0x1f8] sm:$0xff]  }
 0x2d3   : > { %3111 = vmatmul.mubr.bf16.vlgmr.msra.gmra.mrb[24].mxu0 %v1209_v63  ;;  %3117 = vmatmul.mubr.msk.bf16.vlgmr.msra.gmra.mrb[12].mxu1 %vm686_vm1, %v3327_v61 }
 0x2d4   : > { %3141 = vmatpush3.bf16.msra.mxu0 %v3639_v3  ;;  %3142 = vmatprep.mubr.msk.bf16.mxu0 %vm3433_vm0, %v3432_v40 }
 0x2d5   : > { %3121 = vmatpush3.bf16.msra.mxu1 %v3329_v0  ;;  %3146 = vmatprep.subr.bf16.mxu0 %v3432_v40 }
 0x2d6   : > { %3122 = vmatprep.subr.bf16.mxu1 %v3432_v40  ;;  %3136 = vmatprep.mubr.msk.bf16.mxu1 %vm3433_vm0, %v3432_v40 }
 0x2d9   : > { %3123 = vmatpush3.bf16.msra.mxu1 %v3330_v2 }
 0x2da   : > { %3124 = vmatprep.subr.bf16.mxu1 %v3432_v40 }
 0x2db   : > { %3143 = vmatmul.mubr.msk.bf16.vlgmr.msra.gmra.mrb[28].mxu0 %vm686_vm1, %v3328_v4 }
 0x2dc   : > { %3147 = vmatpush3.bf16.msra.mxu0 %v3332_v5  ;;  %3162 = vmatprep.mubr.msk.bf16.mxu0 %vm3433_vm0, %v3432_v40 }
 0x2dd   : > { %3125 = vmatpush3.bf16.msra.mxu1 %v3331_v6  ;;  %3148 = vmatprep.subr.bf16.mxu0 %v3432_v40 }
 0x2de   : > { %3126 = vmatprep.subr.bf16.mxu1 %v3432_v40 }
 0x2e0   : > { %3149 = vmatpush3.bf16.msra.mxu0 %v3334_v7 }
 0x2e1   : > { %3127 = vmatpush3.bf16.msra.mxu1 %v3333_v8  ;;  %3150 = vmatprep.subr.bf16.mxu0 %v3432_v40 }
 0x2e2   : > { %3128 = vmatprep.subr.bf16.mxu1 %v3432_v40 }
 0x2e4   : > { %3151 = vmatpush3.bf16.msra.mxu0 %v3336_v9 }
 0x2e5   : > { %3129 = vmatpush3.bf16.msra.mxu1 %v3335_v10  ;;  %3152 = vmatprep.subr.bf16.mxu0 %v3432_v40 }
 0x2e6   : > { %3130 = vmatprep.subr.bf16.mxu1 %v3432_v40 }
 0x2e8   : > { %3153 = vmatpush3.bf16.msra.mxu0 %v3338_v12 }
 0x2e9   : > { %3131 = vmatpush3.bf16.msra.mxu1 %v3337_v11  ;;  %3154 = vmatprep.subr.bf16.mxu0 %v3432_v40 }
 0x2ea   : > { %3132 = vmatprep.subr.bf16.mxu1 %v3432_v40 }
 0x2ec   : > { %3155 = vmatpush3.bf16.msra.mxu0 %v3340_v14 }
 0x2ed   : > { %3133 = vmatpush3.bf16.msra.mxu1 %v3339_v13  ;;  %3156 = vmatprep.subr.bf16.mxu0 %v3432_v40 }
 0x2ee   : > { %3134 = vmatprep.subr.bf16.mxu1 %v3432_v40 }
 0x2f0   : > { %3157 = vmatpush3.bf16.msra.mxu0 %v3342_v16  ;;  %v3363_v16 = vld [vmem:[%s4118_s1 + $0x40] sm:$0xff]  }
 0x2f1   : > { %3135 = vmatpush3.bf16.msra.mxu1 %v3341_v15  ;;  %3158 = vmatprep.subr.bf16.mxu0 %v3432_v40 }
 0x2f2   : > { %3166 = vmatprep.subr.bf16.mxu1 %v3432_v40 }
 0x2f4   : > { %3159 = vmatpush3.bf16.msra.mxu0 %v3343_v17 }
 0x2f5   : > { %3160 = vmatprep.subr.bf16.mxu0 %v3432_v40 }
 0x2f8   : > { %3161 = vmatpush3.bf16.msra.mxu0 %v3344_v18  ;;  %v3364_v18 = vld [vmem:[%s4121_s4 + $0x200] sm:$0xff]  }
 0x2f9   : > { %3192 = vmatprep.subr.bf16.mxu0 %v3432_v40 }
 0x39e   : > { %v1148_v19 = vpop.f32.mrb[8].mxu1 }
 0x39f   : > { %v1155_v20 = vadd.f32 %v1148_v19, %v3777_v49  ;;  %v3086_v21 = vpop.f32.mrb[9].mxu1  ;;  %v3351_v49 = vld [vmem:[%s4121_s4 + $0x198] sm:$0xff]  }
 0x3a0   : > { %v1151_v22 = vpop.f32.mrb[10].mxu1  ;;  %v3366_v21 = vld [vmem:[%s4121_s4 + $0x210] sm:$0xff]  }
 0x3a1   : > { %v1156_v23 = vadd.f32 %v1151_v22, %v3779_v52  ;;  %v3087_v24 = vpop.f32.mrb[11].mxu1  ;;  %v3355_v52 = vld [vmem:[%s4121_s4 + $0x1a8] sm:$0xff]   ;;  %v3367_v22 = vld [vmem:[%s4121_s4 + $0x218] sm:$0xff]  }
 0x3a2   : > { %v3369_v24 = vld [vmem:[%s4121_s4 + $0x228] sm:$0xff]  }
 0x3a6   : > { %v1309_v25 = vpop.f32.mrb[24].mxu0  ;;  %v1363_v26 = vpop.f32.mrb[12].mxu1 }
 0x3a7   : > { %v3867_v27 = vadd.f32 %v1309_v25, %v1155_v20  ;;  %v3112_v28 = vpop.f32.mrb[25].mxu0  ;;  %v3118_v29 = vpop.f32.mrb[13].mxu1  ;;  %v3370_v25 = vld [vmem:[%s4121_s4 + $0x230] sm:$0xff]  }
 0x3a8   : > { %v1312_v30 = vpop.f32.mrb[26].mxu0  ;;  %v1366_v31 = vpop.f32.mrb[14].mxu1  ;;  %v3374_v28 = vld [vmem:[%s4123_s6 + $0x4] ss:$16 sps:$4 sm:$0xff]   ;;  %v3377_v29 = vld [vmem:[%s4123_s6 + $0xc] ss:$16 sps:$4 sm:$0xff]  }
 0x3a9   : > { %v3869_v32 = vadd.f32 %v1312_v30, %v1156_v23  ;;  %v1370_v33 = vpack.c.bf16 %v1366_v31, %v1363_v26  ;;  %v3119_v34 = vpop.f32.mrb[15].mxu1  ;;  %v3113_v35 = vpop.f32.mrb[27].mxu0  ;;  %v3368_v23 = vld [vmem:[%s4121_s4 + $0x220] sm:$0xff]   ;;  %v3371_v26 = vld [vmem:[%s4121_s4 + $0x238] sm:$0xff]  }
 0x3aa   : > { %v3378_v30 = vld [vmem:[%s4123_s6 + $0x20] ss:$16 sps:$4 sm:$0xff]   ;;  %v3386_v31 = vld [vmem:[%s4123_s6 + $0x44] ss:$16 sps:$4 sm:$0xff]  }
 0x3ab   : > { %3137 = vmatmul.mubr.bf16.vlgmr.msra.gmra.mrb[16].mxu1 %v1370_v33  ;;  %v3392_v33 = vld [vmem:[%s4123_s6 + $0x64] ss:$16 sps:$4 sm:$0xff]   ;;  %v3390_v34 = vld [vmem:[%s4123_s6 + $0x60] ss:$16 sps:$4 sm:$0xff]  }
 0x3ac   : > { %3167 = vmatpush3.bf16.msra.mxu1 %v3639_v3  ;;  %3168 = vmatprep.mubr.msk.bf16.mxu1 %vm3433_vm0, %v3432_v40  ;;  %v3398_v35 = vld [vmem:[%s4123_s6 + $0x84] ss:$16 sps:$4 sm:$0xff]  }
 0x3ad   : > { %3172 = vmatprep.subr.bf16.mxu1 %v3432_v40 }
 0x3ae   : > { %v1524_v36 = vpop.f32.mrb[28].mxu0 }
 0x3af   : > { %v3144_v37 = vpop.f32.mrb[29].mxu0 }
 0x3b0   : > { %v1527_v39 = vpop.f32.mrb[30].mxu0  ;;  %v3404_v37 = vld [vmem:[%s4123_s6 + $0xa4] ss:$16 sps:$4 sm:$0xff]  }
 0x3b1   : > { %v1531_v41 = vpack.c.bf16 %v1527_v39, %v1524_v36  ;;  %v3145_v43 = vpop.f32.mrb[31].mxu0  ;;  %v3396_v36 = vld [vmem:[%s4123_s6 + $0x80] ss:$16 sps:$4 sm:$0xff]  }
 0x3b3   : > { %3163 = vmatmul.mubr.bf16.vlgmr.msra.gmra.mrb[32].mxu0 %v1531_v41  ;;  %3169 = vmatmul.mubr.msk.bf16.vlgmr.msra.gmra.mrb[20].mxu1 %vm686_vm1, %v3345_v38  ;;  %v3402_v38 = vld [vmem:[%s4123_s6 + $0xa0] ss:$16 sps:$4 sm:$0xff]  }
 0x3b4   : > { %3193 = vmatpush3.bf16.msra.mxu0 %v3639_v3  ;;  %3194 = vmatprep.mubr.msk.bf16.mxu0 %vm3433_vm0, %v3432_v40 }
 0x3b5   : > { %3173 = vmatpush3.bf16.msra.mxu1 %v3347_v42  ;;  %3198 = vmatprep.subr.bf16.mxu0 %v3432_v40 }
 0x3b6   : > { %3174 = vmatprep.subr.bf16.mxu1 %v3432_v40  ;;  %3188 = vmatprep.mubr.msk.bf16.mxu1 %vm3433_vm0, %v3432_v40 }
 0x3b9   : > { %3175 = vmatpush3.bf16.msra.mxu1 %v3348_v44 }
 0x3ba   : > { %3176 = vmatprep.subr.bf16.mxu1 %v3432_v40 }
 0x3bb   : > { %3195 = vmatmul.mubr.msk.bf16.vlgmr.msra.gmra.mrb[36].mxu0 %vm686_vm1, %v3346_v45 }
 0x3bc   : > { %3199 = vmatpush3.bf16.msra.mxu0 %v3350_v46  ;;  %3214 = vmatprep.mubr.msk.bf16.mxu0 %vm3433_vm0, %v3432_v40 }
 0x3bd   : > { %3177 = vmatpush3.bf16.msra.mxu1 %v3349_v47  ;;  %3200 = vmatprep.subr.bf16.mxu0 %v3432_v40 }
 0x3be   : > { %3178 = vmatprep.subr.bf16.mxu1 %v3432_v40 }
 0x3c0   : > { %3201 = vmatpush3.bf16.msra.mxu0 %v3352_v48 }
 0x3c1   : > { %3179 = vmatpush3.bf16.msra.mxu1 %v3351_v49  ;;  %3202 = vmatprep.subr.bf16.mxu0 %v3432_v40 }
 0x3c2   : > { %3180 = vmatprep.subr.bf16.mxu1 %v3432_v40 }
 0x3c4   : > { %3203 = vmatpush3.bf16.msra.mxu0 %v3354_v50 }
 0x3c5   : > { %3181 = vmatpush3.bf16.msra.mxu1 %v3353_v51  ;;  %3204 = vmatprep.subr.bf16.mxu0 %v3432_v40 }
 0x3c6   : > { %3182 = vmatprep.subr.bf16.mxu1 %v3432_v40 }
 0x3c8   : > { %3205 = vmatpush3.bf16.msra.mxu0 %v3356_v53  ;;  %v3375_v53 = vld [vmem:[%s4123_s6 + $0x8] ss:$16 sps:$4 sm:$0xff]  }
 0x3c9   : > { %3183 = vmatpush3.bf16.msra.mxu1 %v3355_v52  ;;  %3206 = vmatprep.subr.bf16.mxu0 %v3432_v40 }
 0x3ca   : > { %3184 = vmatprep.subr.bf16.mxu1 %v3432_v40 }
 0x3cc   : > { %3207 = vmatpush3.bf16.msra.mxu0 %v3358_v55 }
 0x3cd   : > { %3185 = vmatpush3.bf16.msra.mxu1 %v3357_v54  ;;  %3208 = vmatprep.subr.bf16.mxu0 %v3432_v40 }
 0x3ce   : > { %3186 = vmatprep.subr.bf16.mxu1 %v3432_v40 }
 0x3d0   : > { %3209 = vmatpush3.bf16.msra.mxu0 %v3360_v57  ;;  %v3383_v57 = vld [vmem:[%s4123_s6 + $0x2c] ss:$16 sps:$4 sm:$0xff]  }
 0x3d1   : > { %3187 = vmatpush3.bf16.msra.mxu1 %v3359_v56  ;;  %3210 = vmatprep.subr.bf16.mxu0 %v3432_v40 }
 0x3d2   : > { %3218 = vmatprep.subr.bf16.mxu1 %v3432_v40 }
 0x3d4   : > { %3211 = vmatpush3.bf16.msra.mxu0 %v3361_v58 }
 0x3d5   : > { %3212 = vmatprep.subr.bf16.mxu0 %v3432_v40 }
 0x3d8   : > { %3213 = vmatpush3.bf16.msra.mxu0 %v3362_v59  ;;  %v3381_v59 = vld [vmem:[%s4123_s6 + $0x28] ss:$16 sps:$4 sm:$0xff]  }
 0x3d9   : > { %2349 = vmatprep.subr.bf16.mxu0 %v3374_v28 }
 0x47e   : > { %v1470_v60 = vpop.f32.mrb[16].mxu1 }
 0x47f   : > { %v1477_v61 = vadd.f32 %v1470_v60, %v3867_v27  ;;  %v3138_v62 = vpop.f32.mrb[17].mxu1  ;;  %v3372_v27 = vld [vmem:[%s4123_s6] ss:$16 sps:$4 sm:$0xff]   ;;  %v3389_v60 = vld [vmem:[%s4123_s6 + $0x4c] ss:$16 sps:$4 sm:$0xff]  }
 0x480   : > { %v1473_v63 = vpop.f32.mrb[18].mxu1  ;;  %v3395_v62 = vld [vmem:[%s4123_s6 + $0x6c] ss:$16 sps:$4 sm:$0xff]  }
 0x481   : > { %v1478_v0 = vadd.f32 %v1473_v63, %v3869_v32  ;;  %v3139_v1 = vpop.f32.mrb[19].mxu1  ;;  %v3384_v32 = vld [vmem:[%s4123_s6 + $0x40] ss:$16 sps:$4 sm:$0xff]   ;;  %v3393_v63 = vld [vmem:[%s4123_s6 + $0x68] ss:$16 sps:$4 sm:$0xff]  }
 0x482   : > { %v3399_v1 = vld [vmem:[%s4123_s6 + $0x88] ss:$16 sps:$4 sm:$0xff]  }
 0x486   : > { %v1631_v2 = vpop.f32.mrb[32].mxu0  ;;  %v1685_v4 = vpop.f32.mrb[20].mxu1 }
 0x487   : > { %v3956_v5 = vadd.f32 %v1631_v2, %v1477_v61  ;;  %v3164_v6 = vpop.f32.mrb[33].mxu0  ;;  %v3170_v7 = vpop.f32.mrb[21].mxu1  ;;  %v3387_v61 = vld [vmem:[%s4123_s6 + $0x48] ss:$16 sps:$4 sm:$0xff]   ;;  %v3407_v2 = vld [vmem:[%s4123_s6 + $0xac] ss:$16 sps:$4 sm:$0xff]  }
 0x488   : > { %v1634_v8 = vpop.f32.mrb[34].mxu0  ;;  %v1688_v9 = vpop.f32.mrb[22].mxu1  ;;  %v3413_v6 = vld [vmem:[%s4123_s6 + $0xcc] ss:$16 sps:$4 sm:$0xff]   ;;  %v3408_v7 = vld [vmem:[%s4123_s6 + $0xc0] ss:$16 sps:$4 sm:$0xff]  }
 0x489   : > { %v3958_v10 = vadd.f32 %v1634_v8, %v1478_v0  ;;  %v1692_v11 = vpack.c.bf16 %v1688_v9, %v1685_v4  ;;  %v3171_v12 = vpop.f32.mrb[23].mxu1  ;;  %v3165_v13 = vpop.f32.mrb[35].mxu0  ;;  %v3401_v0 = vld [vmem:[%s4123_s6 + $0x8c] ss:$16 sps:$4 sm:$0xff]   ;;  %v3405_v4 = vld [vmem:[%s4123_s6 + $0xa8] ss:$16 sps:$4 sm:$0xff]  }
 0x48a   : > { %v3411_v8 = vld [vmem:[%s4123_s6 + $0xc8] ss:$16 sps:$4 sm:$0xff]   ;;  %v3416_v9 = vld [vmem:[%s4123_s6 + $0xe4] ss:$16 sps:$4 sm:$0xff]   ;;  %v3434_v13 = vmov 0  }
 0x48b   : > { %3189 = vmatmul.mubr.bf16.vlgmr.msra.gmra.mrb[24].mxu1 %v1692_v11  ;;  %v3414_v11 = vld [vmem:[%s4123_s6 + $0xe0] ss:$16 sps:$4 sm:$0xff]   ;;  %v3417_v12 = vld [vmem:[%s4123_s6 + $0xe8] ss:$16 sps:$4 sm:$0xff]  }
 0x48c   : > { %3219 = vmatpush3.bf16.msra.mxu1 %v3639_v3  ;;  %3220 = vmatprep.mubr.msk.bf16.mxu1 %vm3433_vm0, %v3432_v40  ;;  %v3365_v3 = vld [vmem:[%s4121_s4 + $0x208] sm:$0xff]  }
 0x48d   : > { %3224 = vmatprep.subr.bf16.mxu1 %v3432_v40 }
 0x48e   : > { %v1846_v14 = vpop.f32.mrb[36].mxu0 }
 0x48f   : > { %v3196_v15 = vpop.f32.mrb[37].mxu0 }
 0x490   : > { %v1849_v17 = vpop.f32.mrb[38].mxu0  ;;  %v2822_v15 = vld [vmem:[%s4122_s5] ss:$0 sm:$0xff] }
 0x491   : > { %v1853_v19 = vpack.c.bf16 %v1849_v17, %v1846_v14  ;;  %v3197_v20 = vpop.f32.mrb[39].mxu0 }
 0x493   : > { %3215 = vmatmul.mubr.bf16.vlgmr.msra.gmra.mrb[40].mxu0 %v1853_v19  ;;  %3221 = vmatmul.mubr.msk.bf16.vlgmr.msra.gmra.mrb[28].mxu1 %vm686_vm1, %v3363_v16 }
 0x494   : > { %3225 = vmatpush3.bf16.msra.mxu1 %v3364_v18  ;;  %3240 = vmatprep.mubr.msk.bf16.mxu1 %vm3433_vm0, %v3432_v40 }
 0x495   : > { %3226 = vmatprep.subr.bf16.mxu1 %v3432_v40  ;;  %2350 = vmatpush1.bf16.msra.mxu0 %v3372_v27 }
 0x496   : > { %2381 = vmatprep.mubr.bf16.mxu0 %v3434_v13 }
 0x498   : > { %3227 = vmatpush3.bf16.msra.mxu1 %v3365_v3 }
 0x499   : > { %3228 = vmatprep.subr.bf16.mxu1 %v3432_v40 }
 0x49c   : > { %3229 = vmatpush3.bf16.msra.mxu1 %v3366_v21 }
 0x49d   : > { %3230 = vmatprep.subr.bf16.mxu1 %v3432_v40 }
 0x4a0   : > { %3231 = vmatpush3.bf16.msra.mxu1 %v3367_v22 }
 0x4a1   : > { %3232 = vmatprep.subr.bf16.mxu1 %v3432_v40 }
 0x4a4   : > { %3233 = vmatpush3.bf16.msra.mxu1 %v3368_v23 }
 0x4a5   : > { %3234 = vmatprep.subr.bf16.mxu1 %v3432_v40 }
 0x4a8   : > { %3235 = vmatpush3.bf16.msra.mxu1 %v3369_v24 }
 0x4a9   : > { %3236 = vmatprep.subr.bf16.mxu1 %v3432_v40 }
 0x4ac   : > { %3237 = vmatpush3.bf16.msra.mxu1 %v3370_v25  ;;  %v2169_v25 = vlaneseq }
 0x4ad   : > { %3238 = vmatprep.subr.bf16.mxu1 %v3432_v40  ;;  %v3380_v40 = vld [vmem:[%s4123_s6 + $0x24] ss:$16 sps:$4 sm:$0xff]  }
 0x4ae   : > { %2351 = vmatprep.subr.bf16.mxu0 %v3380_v40 }
 0x4af   : > { %2352 = vmatpush1.bf16.msra.mxu0 %v3378_v30 }
 0x4b0   : > { %3239 = vmatpush3.bf16.msra.mxu1 %v3371_v26  ;;  %2353 = vmatprep.subr.bf16.mxu0 %v3386_v31  ;;  %v2170_v26 = vshrl.u32 %v2169_v25, 7 }
 0x4b1   : > { %2392 = vmatprep.subr.bf16.mxu1 %v3377_v29  ;;  %v2167_v29 = vld [vmem:[%s4124_s7] sm:$0xf] }
 0x4b2   : > { %v2171_v27 = vsub.s32 0, %v2170_v26  ;;  %v2179_v28 = vsub.s32 2, %v2170_v26  ;;  %v2175_v40 = vsub.s32 1, %v2170_v26  ;;  %v2183_v30 = vsub.s32 3, %v2170_v26 }
 0x4b3   : > { %2354 = vmatpush1.bf16.msra.mxu0 %v3384_v32 }
 0x4b4   : > { %2355 = vmatprep.subr.bf16.mxu0 %v3392_v33  ;;  %v2172_v31 = vrot.slane %v2167_v29, %v2171_v27  ;;  %v2180_v32 = vrot.slane %v2167_v29, %v2179_v28  ;;  %v2176_v33 = vrot.slane %v2167_v29, %v2175_v40 }
 0x4b7   : > { %2356 = vmatpush1.bf16.msra.mxu0 %v3390_v34  ;;  %v2184_v34 = vrot.slane %v2167_v29, %v2183_v30 }
 0x4b8   : > { %2357 = vmatprep.subr.bf16.mxu0 %v3398_v35  ;;  %v3420_v35 = vld [vmem:[%s3590_s10] sm:$0xff] }
 0x4bb   : > { %2358 = vmatpush1.bf16.msra.mxu0 %v3396_v36  ;;  %v2435_v36 = vunpack.c.l.bf16 %v3420_v35 }
 0x4bc   : > { %2359 = vmatprep.subr.bf16.mxu0 %v3404_v37  ;;  %v3421_v37 = vld [vmem:[%s3590_s10 + $0x8] sm:$0xff] }
 0x4bf   : > { %2360 = vmatpush1.bf16.msra.mxu0 %v3402_v38  ;;  %v2437_v38 = vunpack.c.l.bf16 %v3421_v37 }
 0x55e   : > { %v1792_v39 = vpop.f32.mrb[24].mxu1 }
 0x55f   : > { %v1799_v41 = vadd.f32 %v1792_v39, %v3956_v5  ;;  %v3190_v42 = vpop.f32.mrb[25].mxu1  ;;  %v3410_v5 = vld [vmem:[%s4123_s6 + $0xc4] ss:$16 sps:$4 sm:$0xff]  }
 0x560   : > { %v1795_v43 = vpop.f32.mrb[26].mxu1  ;;  %2361 = vmatprep.subr.bf16.mxu0 %v3410_v5  ;;  %v2436_v42 = vunpack.c.h.bf16 %v3420_v35 }
 0x561   : > { %v1800_v44 = vadd.f32 %v1795_v43, %v3958_v10  ;;  %v3191_v45 = vpop.f32.mrb[27].mxu1  ;;  %2362 = vmatpush1.bf16.msra.mxu0 %v3408_v7  ;;  %v3419_v10 = vld [vmem:[%s4123_s6 + $0xec] ss:$16 sps:$4 sm:$0xff]   ;;  %v2438_v43 = vunpack.c.h.bf16 %v3421_v37 }
 0x562   : > { %2363 = vmatprep.subr.bf16.mxu0 %v3416_v9 }
 0x565   : > { %2364 = vmatpush1.bf16.msra.mxu0 %v3414_v11 }
 0x566   : > { %v1953_v46 = vpop.f32.mrb[40].mxu0  ;;  %v2007_v47 = vpop.f32.mrb[28].mxu1 }
 0x567   : > { %v1960_v48 = vadd.f32 %v1953_v46, %v1799_v41  ;;  %v3216_v49 = vpop.f32.mrb[41].mxu0  ;;  %v3222_v50 = vpop.f32.mrb[29].mxu1 }
 0x568   : > { %v1956_v51 = vpop.f32.mrb[42].mxu0  ;;  %v2010_v52 = vpop.f32.mrb[30].mxu1  ;;  %v3423_v50 = vld [vmem:[%s3590_s10 + $0x18] sm:$0xff] }
 0x569   : > { %v1961_v54 = vadd.f32 %v1956_v51, %v1800_v44  ;;  %v2014_v55 = vpack.c.bf16 %v2010_v52, %v2007_v47  ;;  %v3223_v56 = vpop.f32.mrb[31].mxu1  ;;  %v3217_v58 = vpop.f32.mrb[43].mxu0  ;;  %v2441_v51 = vunpack.c.l.bf16 %v3423_v50 }
 0x56b   : > { %3241 = vmatmul.mubr.bf16.vlgmr.msra.gmra.mrb[32].mxu1 %v2014_v55 }
 0x56c   : > { %2393 = vmatpush1.bf16.msra.mxu1 %v3375_v53  ;;  %2424 = vmatprep.mubr.bf16.mxu1 %v3434_v13 }
 0x56d   : > { %2394 = vmatprep.subr.bf16.mxu1 %v3383_v57  ;;  %v2442_v57 = vunpack.c.h.bf16 %v3423_v50 }
 0x570   : > { %2395 = vmatpush1.bf16.msra.mxu1 %v3381_v59 }
 0x571   : > { %2396 = vmatprep.subr.bf16.mxu1 %v3389_v60 }
 0x574   : > { %2397 = vmatpush1.bf16.msra.mxu1 %v3387_v61 }
 0x575   : > { %2398 = vmatprep.subr.bf16.mxu1 %v3395_v62 }
 0x578   : > { %2399 = vmatpush1.bf16.msra.mxu1 %v3393_v63 }
 0x579   : > { %2400 = vmatprep.subr.bf16.mxu1 %v3401_v0 }
 0x57c   : > { %2401 = vmatpush1.bf16.msra.mxu1 %v3399_v1 }
 0x57d   : > { %2402 = vmatprep.subr.bf16.mxu1 %v3407_v2 }
 0x580   : > { %2403 = vmatpush1.bf16.msra.mxu1 %v3405_v4 }
 0x581   : > { %2404 = vmatprep.subr.bf16.mxu1 %v3413_v6 }
 0x584   : > { %2405 = vmatpush1.bf16.msra.mxu1 %v3411_v8 }
 0x585   : > { %2406 = vmatprep.subr.bf16.mxu1 %v3419_v10 }
 0x588   : > { %2407 = vmatpush1.bf16.msra.mxu1 %v3417_v12 }
 0x63e   : > { %v2114_v14 = vpop.f32.mrb[32].mxu1 }
 0x63f   : > { %v2121_v16 = vadd.f32 %v2114_v14, %v1960_v48  ;;  %v3242_v17 = vpop.f32.mrb[33].mxu1  ;;  %v3422_v48 = vld [vmem:[%s3590_s10 + $0x10] sm:$0xff] }
 0x640   : > { %v2117_v18 = vpop.f32.mrb[34].mxu1  ;;  %v2439_v49 = vunpack.c.l.bf16 %v3422_v48  ;;  %v2440_v56 = vunpack.c.h.bf16 %v3422_v48 }
 0x641   : > { %v2130_v19 = vadd.f32 %v2822_v15, %v2121_v16  ;;  %v2122_v20 = vadd.f32 %v2117_v18, %v1961_v54  ;;  %v3243_v3 = vpop.f32.mrb[35].mxu1 }
 0x643   : > { %v2131_v21 = vadd.f32 %v2822_v15, %v2122_v20  ;;  %v2132_v22 = vmax.f32 %v2130_v19, 0.0 }
 0x645   : > { %v2133_v23 = vmax.f32 %v2131_v21, 0.0 }
 0x647   : > { %v2134_v24 = vpack.c.bf16 %v2133_v23, %v2132_v22 }
 0x649   : > { %2382 = vmatmul.mubr.bf16.vlgmr.msra.gmra.mrb[44].mxu0 %v2134_v24  ;;  %2425 = vmatmul.mubr.bf16.vlgmr.msra.gmra.mrb[36].mxu1 %v2134_v24 }
 0x71c   : > { %v2383_v39 = vpop.f32.mrb[44].mxu0  ;;  %v2426_v41 = vpop.f32.mrb[36].mxu1 }
 0x71d   : > { %v2384_v44 = vadd.f32 %v2383_v39, %v2172_v31  ;;  %v2427_v45 = vadd.f32 %v2426_v41, %v2180_v32  ;;  %v2385_v46 = vpop.f32.mrb[45].mxu0  ;;  %v2428_v47 = vpop.f32.mrb[37].mxu1 }
 0x71e   : > { %v2386_v52 = vadd.f32 %v2385_v46, %v2176_v33  ;;  %v2429_v53 = vadd.f32 %v2428_v47, %v2184_v34  ;;  %v2387_v54 = vpop.f32.mrb[46].mxu0  ;;  %v2430_v55 = vpop.f32.mrb[38].mxu1 }
 0x71f   : > { %v2443_v58 = vadd.f32 %v2435_v36, %v2384_v44  ;;  %v2445_v59 = vadd.f32 %v2437_v38, %v2427_v45  ;;  %v2388_v60 = vadd.f32 %v2387_v54, %v2172_v31  ;;  %v2431_v61 = vadd.f32 %v2430_v55, %v2180_v32  ;;  %v2389_v62 = vpop.f32.mrb[47].mxu0  ;;  %v2432_v63 = vpop.f32.mrb[39].mxu1 }
 0x720   : > { %v2444_v0 = vadd.f32 %v2436_v42, %v2386_v52  ;;  %v2446_v1 = vadd.f32 %v2438_v43, %v2429_v53  ;;  %v2390_v2 = vadd.f32 %v2389_v62, %v2176_v33  ;;  %v2433_v4 = vadd.f32 %v2432_v63, %v2184_v34 }
 0x721   : > { %v2451_v5 = vmax.f32 %v2443_v58, 0.0  ;;  %v2453_v6 = vmax.f32 %v2445_v59, 0.0  ;;  %v2447_v7 = vadd.f32 %v2439_v49, %v2388_v60  ;;  %v2449_v8 = vadd.f32 %v2441_v51, %v2431_v61 }
 0x722   : > { %v2452_v9 = vmax.f32 %v2444_v0, 0.0  ;;  %v2454_v10 = vmax.f32 %v2446_v1, 0.0  ;;  %v2448_v11 = vadd.f32 %v2440_v56, %v2390_v2  ;;  %v2450_v12 = vadd.f32 %v2442_v57, %v2433_v4 }
 0x723   : > { %v2455_v13 = vmax.f32 %v2447_v7, 0.0  ;;  %v2457_v14 = vmax.f32 %v2449_v8, 0.0 }
 0x724   : > { %v2863_v15 = vpack.c.bf16 %v2452_v9, %v2451_v5  ;;  %v2864_v16 = vpack.c.bf16 %v2454_v10, %v2453_v6  ;;  %v2456_v17 = vmax.f32 %v2448_v11, 0.0  ;;  %v2458_v18 = vmax.f32 %v2450_v12, 0.0 }
 0x726   : > { %2483 = vst [vmem:[%s305_s14] sm:$0xff] %v2863_v15  ;;  %2484 = vst [vmem:[%s305_s14 + $0x8] sm:$0xff] %v2864_v16  ;;  %v2865_v19 = vpack.c.bf16 %v2456_v17, %v2455_v13  ;;  %v2866_v20 = vpack.c.bf16 %v2458_v18, %v2457_v14 }
 0x728   : > { %2485 = vst [vmem:[%s305_s14 + $0x10] sm:$0xff] %v2865_v19  ;;  %2486 = vst [vmem:[%s305_s14 + $0x18] sm:$0xff] %v2866_v20 }
 0x729 PF: > { %s18_s27 = sadd.s32 1, %s3430_s27  }
 0x72a   : > { %p15_p4 = scmp.ge.s32.totalorder %s18_s27, 4  }
 0x72c   :  { %17 = sbr.rel (!%p15_p4) target bundleno = 1 (0x1), region = 98 }

</bundles_post_ra>
